<compile_context>
chip_gen: v6e
topology: v6e:2x2x1
jax: 0.10.0
libtpu: 0.0.40
codegen_flags: <defaults>
</compile_context>

<pallas_src>
import numpy as np

import jax
import jax.numpy as jnp
from jax import lax
from jax.experimental import pallas as pl
from jax.experimental.pallas import tpu as pltpu

NC = 3          # input channels (RGB)
NDF = 8         # base discriminator width (small demo; DCGAN default 64)
EPS = 1e-5      # BatchNorm2d eps
SLOPE = 0.2     # LeakyReLU negative slope
KSZ = 4         # conv kernel size
CIN_PAD = 4     # layer-1 input channels padded 3 -> 4 for lane alignment
IMG = 64        # DCGAN discriminator needs 64x64 input to reach 1x1 output


def _leaky(y):
    return jnp.where(y > 0, y, SLOPE * y)


# ----------------------------------------------------------------------------
# Fused whole-network kernel
# ----------------------------------------------------------------------------
def discriminator_kernel(
        x_ref,
        r1_ref, w1_ref,
        r2_ref, w2_ref, s2_ref, t2_ref, g2_ref, b2_ref,
        r3_ref, w3_ref, s3_ref, t3_ref, g3_ref, b3_ref,
        r4_ref, w4_ref, s4_ref, t4_ref, g4_ref, b4_ref,
        w5_ref,
        out_ref,
        act1_ref, act2_ref, act3_ref, act4_ref):
    """DCGAN discriminator forward for the whole batch, fully VMEM-resident."""
    B = x_ref.shape[0]

    def conv(src_ref, r_ref, w_ref, b):
        # One 4x4 strided conv as 4 x (row-select matmul @ banded-weight matmul).
        hout = r_ref.shape[1]
        n = w_ref.shape[2]
        xb = src_ref[b]                                    # (Hin, Win*Cin) bf16
        acc = jnp.zeros((hout, n), jnp.float32)
        for ki in range(KSZ):
            tap = jnp.dot(r_ref[ki], xb,                   # H gather (+ H pad)
                          preferred_element_type=jnp.float32)
            acc = acc + jnp.dot(tap.astype(jnp.bfloat16), w_ref[ki],
                                preferred_element_type=jnp.float32)
        return acc                                         # (Hout, Wout*Cout) f32

    # ---- layer 1: conv(3->ndf, 4, s2, p1) + LeakyReLU ----------------------
    for b in range(B):
        act1_ref[b] = _leaky(conv(x_ref, r1_ref, w1_ref, b)).astype(jnp.bfloat16)

    # ---- layers 2..4: conv + BatchNorm (batch stats) + LeakyReLU -----------
    def conv_bn(src_ref, dst_ref, r_ref, w_ref, s_ref, t_ref, g_ref, bt_ref):
        hout = r_ref.shape[1]
        lanes = w_ref.shape[2]              # Wout * Cout
        cout = s_ref.shape[1]
        m = B * hout * (lanes // cout)      # N*H*W per channel (static int)

        accs = [conv(src_ref, r_ref, w_ref, b) for b in range(B)]

        # One-pass statistics: sum and sum-of-squares in the same sweep.
        lane_sum = jnp.zeros((1, lanes), jnp.float32)
        lane_sq = jnp.zeros((1, lanes), jnp.float32)
        for a in accs:
            lane_sum = lane_sum + jnp.sum(a, axis=0, keepdims=True)
            lane_sq = lane_sq + jnp.sum(a * a, axis=0, keepdims=True)
        # Per-channel reduce over the w part of the (w, c) lane layout.
        ch_sum = jnp.dot(lane_sum, s_ref[...], preferred_element_type=jnp.float32)
        ch_sq = jnp.dot(lane_sq, s_ref[...], preferred_element_type=jnp.float32)
        mean = ch_sum * (1.0 / m)
        var = jnp.maximum(ch_sq * (1.0 / m) - mean * mean, 0.0)
        inv = lax.rsqrt(var + EPS)
        # Broadcast per-channel values back to lanes.
        mean_l = jnp.dot(mean, t_ref[...], preferred_element_type=jnp.float32)
        inv_l = jnp.dot(inv, t_ref[...], preferred_element_type=jnp.float32)
        scale = g_ref[...] * inv_l
        shift = bt_ref[...] - mean_l * scale
        for b in range(B):
            dst_ref[b] = _leaky(accs[b] * scale + shift).astype(jnp.bfloat16)

    conv_bn(act1_ref, act2_ref, r2_ref, w2_ref, s2_ref, t2_ref, g2_ref, b2_ref)
    conv_bn(act2_ref, act3_ref, r3_ref, w3_ref, s3_ref, t3_ref, g3_ref, b3_ref)
    conv_bn(act3_ref, act4_ref, r4_ref, w4_ref, s4_ref, t4_ref, g4_ref, b4_ref)

    # ---- layer 5: 4x4 valid conv to 1 logit + exact sigmoid ----------------
    w5 = w5_ref[...]                                       # (4, 4*NDF*8) f32
    for b in range(B):
        prod = act4_ref[b].astype(jnp.float32) * w5
        logit = jnp.sum(jnp.sum(prod, axis=1, keepdims=True),
                        axis=0, keepdims=True)             # (1, 1)
        out_ref[pl.ds(b, 1), :] = 1.0 / (1.0 + jnp.exp(-logit))


# ----------------------------------------------------------------------------
# One-time parameter repacking (host side, outside the jitted forward)
# ----------------------------------------------------------------------------
def _row_select(hin, hout, stride, pad):
    """R[ki, oh, h] = 1 iff h == stride*oh + ki - pad (H-stride + H-pad)."""
    r = np.zeros((KSZ, hout, hin), np.float32)
    for ki in range(KSZ):
        for oh in range(hout):
            h = stride * oh + ki - pad
            if 0 <= h < hin:
                r[ki, oh, h] = 1.0
    return r


def _banded_weight(w, win, wout, stride, pad, cin_pad=None):
    """Wb[ki, w_in*Cin+ci, ow*Cout+co] = w[co, ci, ki, kj], w_in=stride*ow+kj-pad."""
    cout, cin, k, _ = w.shape
    cinp = cin if cin_pad is None else cin_pad
    wb = np.zeros((k, win * cinp, wout * cout), np.float32)
    w_np = np.asarray(w, np.float32)
    for ki in range(k):
        for ow in range(wout):
            for kj in range(k):
                w_in = stride * ow + kj - pad
                if 0 <= w_in < win:
                    wb[ki, w_in * cinp:w_in * cinp + cin,
                       ow * cout:(ow + 1) * cout] += w_np[:, :, ki, kj].T
    return wb


def _channel_reduce_mats(wout, c):
    """S: (Wout*C, C) one-hot reduce over w;  S^T: (C, Wout*C) broadcast."""
    s = np.zeros((wout * c, c), np.float32)
    for w in range(wout):
        s[w * c:(w + 1) * c, :] = np.eye(c, dtype=np.float32)
    return s, np.ascontiguousarray(s.T)


def prepare_params(params):
    """Repack PyTorch-layout weights into the fused kernel's operands."""
    def f32(a):
        return np.asarray(a, np.float32)

    prep = {}
    # layer 1: 64x64x3 -> 32x32xNDF (input channels padded to CIN_PAD)
    prep["r1"] = jnp.asarray(_row_select(IMG, IMG // 2, 2, 1), jnp.bfloat16)
    prep["w1"] = jnp.asarray(
        _banded_weight(f32(params["w1"]), IMG, IMG // 2, 2, 1, cin_pad=CIN_PAD),
        jnp.bfloat16)

    spatial_in = IMG // 2
    for name in ("2", "3", "4"):
        w = f32(params["w" + name])
        cout = w.shape[0]
        win = spatial_in
        wout = win // 2
        prep["r" + name] = jnp.asarray(_row_select(win, wout, 2, 1), jnp.bfloat16)
        prep["w" + name] = jnp.asarray(_banded_weight(w, win, wout, 2, 1),
                                       jnp.bfloat16)
        s, st = _channel_reduce_mats(wout, cout)
        prep["s" + name] = jnp.asarray(s)
        prep["t" + name] = jnp.asarray(st)
        prep["g" + name] = jnp.asarray(
            np.tile(f32(params["g" + name]), wout).reshape(1, wout * cout))
        prep["b" + name] = jnp.asarray(
            np.tile(f32(params["b" + name]), wout).reshape(1, wout * cout))
        spatial_in = wout

    # layer 5: 4x4x(8*NDF) -> 1 logit;  W5[h, w*C + c] = w5[0, c, h, w]
    w5 = f32(params["w5"])[0]                               # (C, 4, 4)
    prep["w5"] = jnp.asarray(np.transpose(w5, (1, 2, 0)).reshape(KSZ, -1))
    return prep


# ----------------------------------------------------------------------------
# pallas_call wrapper + forward
# ----------------------------------------------------------------------------
def _full_spec(shape):
    ndim = len(shape)
    return pl.BlockSpec(shape, lambda i, _n=ndim: (0,) * _n)


def _run_discriminator(x_slab, prep):
    B = x_slab.shape[0]
    args = (
        x_slab,
        prep["r1"], prep["w1"],
        prep["r2"], prep["w2"], prep["s2"], prep["t2"], prep["g2"], prep["b2"],
        prep["r3"], prep["w3"], prep["s3"], prep["t3"], prep["g3"], prep["b3"],
        prep["r4"], prep["w4"], prep["s4"], prep["t4"], prep["g4"], prep["b4"],
        prep["w5"],
    )
    lanes = (
        (IMG // 2) * NDF,        # 32*8  = 256
        (IMG // 4) * NDF * 2,    # 16*16 = 256
        (IMG // 8) * NDF * 4,    # 8*32  = 256
        (IMG // 16) * NDF * 8,   # 4*64  = 256
    )
    return pl.pallas_call(
        discriminator_kernel,
        out_shape=jax.ShapeDtypeStruct((B, 1), jnp.float32),
        grid_spec=pltpu.PrefetchScalarGridSpec(
            num_scalar_prefetch=0,
            grid=(1,),
            in_specs=[_full_spec(a.shape) for a in args],
            out_specs=pl.BlockSpec((B, 1), lambda i: (0, 0)),
            scratch_shapes=[
                pltpu.VMEM((B, IMG // 2, lanes[0]), jnp.bfloat16),
                pltpu.VMEM((B, IMG // 4, lanes[1]), jnp.bfloat16),
                pltpu.VMEM((B, IMG // 8, lanes[2]), jnp.bfloat16),
                pltpu.VMEM((B, IMG // 16, lanes[3]), jnp.bfloat16),
            ]),
        compiler_params=pltpu.CompilerParams(
            dimension_semantics=("arbitrary",)),
    )(*args)


def discriminator_forward(prep, x_nchw):
    B, C, H, W = x_nchw.shape
    x = jnp.transpose(x_nchw, (0, 2, 3, 1))                        # NCHW -> NHWC
    x = jnp.pad(x, ((0, 0), (0, 0), (0, 0), (0, CIN_PAD - C)))     # ch 3 -> 4
    x_slab = x.reshape(B, H, W * CIN_PAD).astype(jnp.bfloat16)     # lane-dense
    out = _run_discriminator(x_slab, prep)                         # (B, 1)
    return out[:, 0]                                               # view(-1,1).squeeze(1)


# ----------------------------------------------------------------------------
# Parameter init + pure-XLA reference (for a tolerance check)
# ----------------------------------------------------------------------------
def init_params(key):
    ks = jax.random.split(key, 8)

    def conv_w(k, cout, cin, ksz):
        return 0.02 * jax.random.normal(k, (cout, cin, ksz, ksz), jnp.float32)

    def bn_g(k, c):
        return 1.0 + 0.02 * jax.random.normal(k, (c,), jnp.float32)

    return {
        "w1": conv_w(ks[0], NDF, NC, KSZ),
        "w2": conv_w(ks[1], NDF * 2, NDF, KSZ),
        "g2": bn_g(ks[2], NDF * 2),
        "b2": jnp.zeros((NDF * 2,), jnp.float32),
        "w3": conv_w(ks[3], NDF * 4, NDF * 2, KSZ),
        "g3": bn_g(ks[4], NDF * 4),
        "b3": jnp.zeros((NDF * 4,), jnp.float32),
        "w4": conv_w(ks[5], NDF * 8, NDF * 4, KSZ),
        "g4": bn_g(ks[6], NDF * 8),
        "b4": jnp.zeros((NDF * 8,), jnp.float32),
        "w5": conv_w(ks[7], 1, NDF * 8, KSZ),
    }


def reference_forward(params, x_nchw):
    """Pure-XLA reference mirroring the PyTorch module (training-mode BN)."""
    def conv(x, w, stride, pad):
        return lax.conv_general_dilated(
            x, w, (stride, stride), ((pad, pad), (pad, pad)),
            dimension_numbers=("NCHW", "OIHW", "NCHW"),
            precision=lax.Precision.HIGHEST)

    def bn(x, g, b):
        mean = jnp.mean(x, axis=(0, 2, 3), keepdims=True)
        var = jnp.mean(jnp.square(x - mean), axis=(0, 2, 3), keepdims=True)
        return (x - mean) * lax.rsqrt(var + EPS) * g.reshape(1, -1, 1, 1) \
            + b.reshape(1, -1, 1, 1)

    act = lambda v: jnp.where(v > 0, v, SLOPE * v)
    x = act(conv(x_nchw, params["w1"], 2, 1))
    x = act(bn(conv(x, params["w2"], 2, 1), params["g2"], params["b2"]))
    x = act(bn(conv(x, params["w3"], 2, 1), params["g3"], params["b3"]))
    x = act(bn(conv(x, params["w4"], 2, 1), params["g4"], params["b4"]))
    x = jax.nn.sigmoid(conv(x, params["w5"], 1, 0))
    return x.reshape(-1, 1)[:, 0]


if __name__ == "__main__":
    key = jax.random.PRNGKey(0)
    pkey, xkey = jax.random.split(key)
    params = init_params(pkey)
    prep = prepare_params(params)

    # DCGAN discriminator architecture requires 64x64 spatial input to reach
    # 1x1 at the final 4x4/s1 conv; batch=2, channels=3 kept small.
    x = jax.random.normal(xkey, (2, NC, IMG, IMG), jnp.float32)

    out = jax.jit(discriminator_forward)(prep, x)
    out = jax.block_until_ready(out)

    assert out.shape == (2,), out.shape
    assert bool(jnp.all(jnp.isfinite(out)))
    assert bool(jnp.all((out > 0.0) & (out < 1.0)))  # sigmoid output range

    ref = reference_forward(params, x)
    max_err = float(jnp.max(jnp.abs(out - ref)))
    assert max_err < 5e-2, f"kernel vs reference mismatch: {max_err}"

    print("KERNEL_OK")
</pallas_src>

<mosaic_0001>
module attributes {stable_mosaic.version = 11 : i64} {
  func.func @discriminator_kernel(%arg0: i32, %arg1: memref<2x64x256xbf16, #tpu.memory_space<vmem>>, %arg2: memref<4x32x64xbf16, #tpu.memory_space<vmem>>, %arg3: memref<4x256x256xbf16, #tpu.memory_space<vmem>>, %arg4: memref<4x16x32xbf16, #tpu.memory_space<vmem>>, %arg5: memref<4x256x256xbf16, #tpu.memory_space<vmem>>, %arg6: memref<256x16xf32, #tpu.memory_space<vmem>>, %arg7: memref<16x256xf32, #tpu.memory_space<vmem>>, %arg8: memref<1x256xf32, #tpu.memory_space<vmem>>, %arg9: memref<1x256xf32, #tpu.memory_space<vmem>>, %arg10: memref<4x8x16xbf16, #tpu.memory_space<vmem>>, %arg11: memref<4x256x256xbf16, #tpu.memory_space<vmem>>, %arg12: memref<256x32xf32, #tpu.memory_space<vmem>>, %arg13: memref<32x256xf32, #tpu.memory_space<vmem>>, %arg14: memref<1x256xf32, #tpu.memory_space<vmem>>, %arg15: memref<1x256xf32, #tpu.memory_space<vmem>>, %arg16: memref<4x4x8xbf16, #tpu.memory_space<vmem>>, %arg17: memref<4x256x256xbf16, #tpu.memory_space<vmem>>, %arg18: memref<256x64xf32, #tpu.memory_space<vmem>>, %arg19: memref<64x256xf32, #tpu.memory_space<vmem>>, %arg20: memref<1x256xf32, #tpu.memory_space<vmem>>, %arg21: memref<1x256xf32, #tpu.memory_space<vmem>>, %arg22: memref<4x256xf32, #tpu.memory_space<vmem>>, %arg23: memref<2x1xf32, #tpu.memory_space<vmem>>, %arg24: memref<2x32x256xbf16, #tpu.memory_space<vmem>>, %arg25: memref<2x16x256xbf16, #tpu.memory_space<vmem>>, %arg26: memref<2x8x256xbf16, #tpu.memory_space<vmem>>, %arg27: memref<2x4x256xbf16, #tpu.memory_space<vmem>>) attributes {dimension_semantics = [#tpu.dimension_semantics<arbitrary>], iteration_bounds = array<i64: 1>, scalar_prefetch = 0 : i64, scratch_operands = 4 : i64, tpu.core_type = #tpu.core_type<tc>, window_params = [{pipeline_mode = #tpu.pipeline_mode<synchronous>, transform_indices = @transform_0, window_bounds = array<i64: 2, 64, 256>}, {pipeline_mode = #tpu.pipeline_mode<synchronous>, transform_indices = @transform_1, window_bounds = array<i64: 4, 32, 64>}, {pipeline_mode = #tpu.pipeline_mode<synchronous>, transform_indices = @transform_2, window_bounds = array<i64: 4, 256, 256>}, {pipeline_mode = #tpu.pipeline_mode<synchronous>, transform_indices = @transform_3, window_bounds = array<i64: 4, 16, 32>}, {pipeline_mode = #tpu.pipeline_mode<synchronous>, transform_indices = @transform_4, window_bounds = array<i64: 4, 256, 256>}, {pipeline_mode = #tpu.pipeline_mode<synchronous>, transform_indices = @transform_5, window_bounds = array<i64: 256, 16>}, {pipeline_mode = #tpu.pipeline_mode<synchronous>, transform_indices = @transform_6, window_bounds = array<i64: 16, 256>}, {pipeline_mode = #tpu.pipeline_mode<synchronous>, transform_indices = @transform_7, window_bounds = array<i64: 1, 256>}, {pipeline_mode = #tpu.pipeline_mode<synchronous>, transform_indices = @transform_8, window_bounds = array<i64: 1, 256>}, {pipeline_mode = #tpu.pipeline_mode<synchronous>, transform_indices = @transform_9, window_bounds = array<i64: 4, 8, 16>}, {pipeline_mode = #tpu.pipeline_mode<synchronous>, transform_indices = @transform_10, window_bounds = array<i64: 4, 256, 256>}, {pipeline_mode = #tpu.pipeline_mode<synchronous>, transform_indices = @transform_11, window_bounds = array<i64: 256, 32>}, {pipeline_mode = #tpu.pipeline_mode<synchronous>, transform_indices = @transform_12, window_bounds = array<i64: 32, 256>}, {pipeline_mode = #tpu.pipeline_mode<synchronous>, transform_indices = @transform_13, window_bounds = array<i64: 1, 256>}, {pipeline_mode = #tpu.pipeline_mode<synchronous>, transform_indices = @transform_14, window_bounds = array<i64: 1, 256>}, {pipeline_mode = #tpu.pipeline_mode<synchronous>, transform_indices = @transform_15, window_bounds = array<i64: 4, 4, 8>}, {pipeline_mode = #tpu.pipeline_mode<synchronous>, transform_indices = @transform_16, window_bounds = array<i64: 4, 256, 256>}, {pipeline_mode = #tpu.pipeline_mode<synchronous>, transform_indices = @transform_17, window_bounds = array<i64: 256, 64>}, {pipeline_mode = #tpu.pipeline_mode<synchronous>, transform_indices = @transform_18, window_bounds = array<i64: 64, 256>}, {pipeline_mode = #tpu.pipeline_mode<synchronous>, transform_indices = @transform_19, window_bounds = array<i64: 1, 256>}, {pipeline_mode = #tpu.pipeline_mode<synchronous>, transform_indices = @transform_20, window_bounds = array<i64: 1, 256>}, {pipeline_mode = #tpu.pipeline_mode<synchronous>, transform_indices = @transform_21, window_bounds = array<i64: 4, 256>}, {pipeline_mode = #tpu.pipeline_mode<synchronous>, transform_indices = @transform_22, window_bounds = array<i64: 2, 1>}]} {
    %c0 = arith.constant 0 : index
    %c0_0 = arith.constant 0 : index
    %c0_1 = arith.constant 0 : index
    %0 = vector.load %arg1[%c0, %c0_0, %c0_1] : memref<2x64x256xbf16, #tpu.memory_space<vmem>>, vector<1x64x256xbf16>
    %1 = vector.shape_cast %0 : vector<1x64x256xbf16> to vector<64x256xbf16>
    %cst = arith.constant 0.000000e+00 : f32
    %2 = vector.broadcast %cst : f32 to vector<32x256xf32>
    %c0_2 = arith.constant 0 : index
    %c0_3 = arith.constant 0 : index
    %c0_4 = arith.constant 0 : index
    %3 = vector.load %arg2[%c0_2, %c0_3, %c0_4] : memref<4x32x64xbf16, #tpu.memory_space<vmem>>, vector<1x32x64xbf16>
    %4 = vector.shape_cast %3 : vector<1x32x64xbf16> to vector<32x64xbf16>
    %cst_5 = arith.constant dense<0.000000e+00> : vector<32x256xf32>
    %5 = tpu.matmul %4, %1, %cst_5 {dimension_numbers = #tpu.dot_dimension_numbers<[1], [0], [0], [1], [0, 0, 1, 1], [], []>} : vector<32x64xbf16>, vector<64x256xbf16>, vector<32x256xf32> -> vector<32x256xf32>
    %6 = arith.truncf %5 : vector<32x256xf32> to vector<32x256xbf16>
    %c0_6 = arith.constant 0 : index
    %c0_7 = arith.constant 0 : index
    %c0_8 = arith.constant 0 : index
    %7 = vector.load %arg3[%c0_6, %c0_7, %c0_8] : memref<4x256x256xbf16, #tpu.memory_space<vmem>>, vector<1x256x256xbf16>
    %8 = vector.shape_cast %7 : vector<1x256x256xbf16> to vector<256x256xbf16>
    %cst_9 = arith.constant dense<0.000000e+00> : vector<32x256xf32>
    %9 = tpu.matmul %6, %8, %cst_9 {dimension_numbers = #tpu.dot_dimension_numbers<[1], [0], [0], [1], [0, 0, 1, 1], [], []>} : vector<32x256xbf16>, vector<256x256xbf16>, vector<32x256xf32> -> vector<32x256xf32>
    %10 = arith.addf %2, %9 : vector<32x256xf32>
    %c1 = arith.constant 1 : index
    %c0_10 = arith.constant 0 : index
    %c0_11 = arith.constant 0 : index
    %11 = vector.load %arg2[%c1, %c0_10, %c0_11] : memref<4x32x64xbf16, #tpu.memory_space<vmem>>, vector<1x32x64xbf16>
    %12 = vector.shape_cast %11 : vector<1x32x64xbf16> to vector<32x64xbf16>
    %cst_12 = arith.constant dense<0.000000e+00> : vector<32x256xf32>
    %13 = tpu.matmul %12, %1, %cst_12 {dimension_numbers = #tpu.dot_dimension_numbers<[1], [0], [0], [1], [0, 0, 1, 1], [], []>} : vector<32x64xbf16>, vector<64x256xbf16>, vector<32x256xf32> -> vector<32x256xf32>
    %14 = arith.truncf %13 : vector<32x256xf32> to vector<32x256xbf16>
    %c1_13 = arith.constant 1 : index
    %c0_14 = arith.constant 0 : index
    %c0_15 = arith.constant 0 : index
    %15 = vector.load %arg3[%c1_13, %c0_14, %c0_15] : memref<4x256x256xbf16, #tpu.memory_space<vmem>>, vector<1x256x256xbf16>
    %16 = vector.shape_cast %15 : vector<1x256x256xbf16> to vector<256x256xbf16>
    %cst_16 = arith.constant dense<0.000000e+00> : vector<32x256xf32>
    %17 = tpu.matmul %14, %16, %cst_16 {dimension_numbers = #tpu.dot_dimension_numbers<[1], [0], [0], [1], [0, 0, 1, 1], [], []>} : vector<32x256xbf16>, vector<256x256xbf16>, vector<32x256xf32> -> vector<32x256xf32>
    %18 = arith.addf %10, %17 : vector<32x256xf32>
    %c2 = arith.constant 2 : index
    %c0_17 = arith.constant 0 : index
    %c0_18 = arith.constant 0 : index
    %19 = vector.load %arg2[%c2, %c0_17, %c0_18] : memref<4x32x64xbf16, #tpu.memory_space<vmem>>, vector<1x32x64xbf16>
    %20 = vector.shape_cast %19 : vector<1x32x64xbf16> to vector<32x64xbf16>
    %cst_19 = arith.constant dense<0.000000e+00> : vector<32x256xf32>
    %21 = tpu.matmul %20, %1, %cst_19 {dimension_numbers = #tpu.dot_dimension_numbers<[1], [0], [0], [1], [0, 0, 1, 1], [], []>} : vector<32x64xbf16>, vector<64x256xbf16>, vector<32x256xf32> -> vector<32x256xf32>
    %22 = arith.truncf %21 : vector<32x256xf32> to vector<32x256xbf16>
    %c2_20 = arith.constant 2 : index
    %c0_21 = arith.constant 0 : index
    %c0_22 = arith.constant 0 : index
    %23 = vector.load %arg3[%c2_20, %c0_21, %c0_22] : memref<4x256x256xbf16, #tpu.memory_space<vmem>>, vector<1x256x256xbf16>
    %24 = vector.shape_cast %23 : vector<1x256x256xbf16> to vector<256x256xbf16>
    %cst_23 = arith.constant dense<0.000000e+00> : vector<32x256xf32>
    %25 = tpu.matmul %22, %24, %cst_23 {dimension_numbers = #tpu.dot_dimension_numbers<[1], [0], [0], [1], [0, 0, 1, 1], [], []>} : vector<32x256xbf16>, vector<256x256xbf16>, vector<32x256xf32> -> vector<32x256xf32>
    %26 = arith.addf %18, %25 : vector<32x256xf32>
    %c3 = arith.constant 3 : index
    %c0_24 = arith.constant 0 : index
    %c0_25 = arith.constant 0 : index
    %27 = vector.load %arg2[%c3, %c0_24, %c0_25] : memref<4x32x64xbf16, #tpu.memory_space<vmem>>, vector<1x32x64xbf16>
    %28 = vector.shape_cast %27 : vector<1x32x64xbf16> to vector<32x64xbf16>
    %cst_26 = arith.constant dense<0.000000e+00> : vector<32x256xf32>
    %29 = tpu.matmul %28, %1, %cst_26 {dimension_numbers = #tpu.dot_dimension_numbers<[1], [0], [0], [1], [0, 0, 1, 1], [], []>} : vector<32x64xbf16>, vector<64x256xbf16>, vector<32x256xf32> -> vector<32x256xf32>
    %30 = arith.truncf %29 : vector<32x256xf32> to vector<32x256xbf16>
    %c3_27 = arith.constant 3 : index
    %c0_28 = arith.constant 0 : index
    %c0_29 = arith.constant 0 : index
    %31 = vector.load %arg3[%c3_27, %c0_28, %c0_29] : memref<4x256x256xbf16, #tpu.memory_space<vmem>>, vector<1x256x256xbf16>
    %32 = vector.shape_cast %31 : vector<1x256x256xbf16> to vector<256x256xbf16>
    %cst_30 = arith.constant dense<0.000000e+00> : vector<32x256xf32>
    %33 = tpu.matmul %30, %32, %cst_30 {dimension_numbers = #tpu.dot_dimension_numbers<[1], [0], [0], [1], [0, 0, 1, 1], [], []>} : vector<32x256xbf16>, vector<256x256xbf16>, vector<32x256xf32> -> vector<32x256xf32>
    %34 = arith.addf %26, %33 : vector<32x256xf32>
    %cst_31 = arith.constant 0.000000e+00 : f32
    %35 = vector.broadcast %cst_31 : f32 to vector<32x256xf32>
    %36 = arith.cmpf ogt, %34, %35 : vector<32x256xf32>
    %cst_32 = arith.constant 2.000000e-01 : f32
    %37 = vector.broadcast %cst_32 : f32 to vector<32x256xf32>
    %38 = arith.mulf %37, %34 : vector<32x256xf32>
    %39 = arith.select %36, %34, %38 : vector<32x256xi1>, vector<32x256xf32>
    %40 = arith.truncf %39 : vector<32x256xf32> to vector<32x256xbf16>
    %c0_33 = arith.constant 0 : index
    %c0_34 = arith.constant 0 : index
    %c0_35 = arith.constant 0 : index
    %41 = vector.load %arg24[%c0_33, %c0_34, %c0_35] : memref<2x32x256xbf16, #tpu.memory_space<vmem>>, vector<1x32x256xbf16>
    %42 = vector.shape_cast %41 : vector<1x32x256xbf16> to vector<32x256xbf16>
    %43 = vector.shape_cast %40 : vector<32x256xbf16> to vector<1x32x256xbf16>
    tpu.vector_store %arg24[%c0_33, %c0_34, %c0_35], %43 {strides = array<i32>} : memref<2x32x256xbf16, #tpu.memory_space<vmem>>, vector<1x32x256xbf16>,
    %c1_36 = arith.constant 1 : index
    %c0_37 = arith.constant 0 : index
    %c0_38 = arith.constant 0 : index
    %44 = vector.load %arg1[%c1_36, %c0_37, %c0_38] : memref<2x64x256xbf16, #tpu.memory_space<vmem>>, vector<1x64x256xbf16>
    %45 = vector.shape_cast %44 : vector<1x64x256xbf16> to vector<64x256xbf16>
    %cst_39 = arith.constant 0.000000e+00 : f32
    %46 = vector.broadcast %cst_39 : f32 to vector<32x256xf32>
    %c0_40 = arith.constant 0 : index
    %c0_41 = arith.constant 0 : index
    %c0_42 = arith.constant 0 : index
    %47 = vector.load %arg2[%c0_40, %c0_41, %c0_42] : memref<4x32x64xbf16, #tpu.memory_space<vmem>>, vector<1x32x64xbf16>
    %48 = vector.shape_cast %47 : vector<1x32x64xbf16> to vector<32x64xbf16>
    %cst_43 = arith.constant dense<0.000000e+00> : vector<32x256xf32>
    %49 = tpu.matmul %48, %45, %cst_43 {dimension_numbers = #tpu.dot_dimension_numbers<[1], [0], [0], [1], [0, 0, 1, 1], [], []>} : vector<32x64xbf16>, vector<64x256xbf16>, vector<32x256xf32> -> vector<32x256xf32>
    %50 = arith.truncf %49 : vector<32x256xf32> to vector<32x256xbf16>
    %c0_44 = arith.constant 0 : index
    %c0_45 = arith.constant 0 : index
    %c0_46 = arith.constant 0 : index
    %51 = vector.load %arg3[%c0_44, %c0_45, %c0_46] : memref<4x256x256xbf16, #tpu.memory_space<vmem>>, vector<1x256x256xbf16>
    %52 = vector.shape_cast %51 : vector<1x256x256xbf16> to vector<256x256xbf16>
    %cst_47 = arith.constant dense<0.000000e+00> : vector<32x256xf32>
    %53 = tpu.matmul %50, %52, %cst_47 {dimension_numbers = #tpu.dot_dimension_numbers<[1], [0], [0], [1], [0, 0, 1, 1], [], []>} : vector<32x256xbf16>, vector<256x256xbf16>, vector<32x256xf32> -> vector<32x256xf32>
    %54 = arith.addf %46, %53 : vector<32x256xf32>
    %c1_48 = arith.constant 1 : index
    %c0_49 = arith.constant 0 : index
    %c0_50 = arith.constant 0 : index
    %55 = vector.load %arg2[%c1_48, %c0_49, %c0_50] : memref<4x32x64xbf16, #tpu.memory_space<vmem>>, vector<1x32x64xbf16>
    %56 = vector.shape_cast %55 : vector<1x32x64xbf16> to vector<32x64xbf16>
    %cst_51 = arith.constant dense<0.000000e+00> : vector<32x256xf32>
    %57 = tpu.matmul %56, %45, %cst_51 {dimension_numbers = #tpu.dot_dimension_numbers<[1], [0], [0], [1], [0, 0, 1, 1], [], []>} : vector<32x64xbf16>, vector<64x256xbf16>, vector<32x256xf32> -> vector<32x256xf32>
    %58 = arith.truncf %57 : vector<32x256xf32> to vector<32x256xbf16>
    %c1_52 = arith.constant 1 : index
    %c0_53 = arith.constant 0 : index
    %c0_54 = arith.constant 0 : index
    %59 = vector.load %arg3[%c1_52, %c0_53, %c0_54] : memref<4x256x256xbf16, #tpu.memory_space<vmem>>, vector<1x256x256xbf16>
    %60 = vector.shape_cast %59 : vector<1x256x256xbf16> to vector<256x256xbf16>
    %cst_55 = arith.constant dense<0.000000e+00> : vector<32x256xf32>
    %61 = tpu.matmul %58, %60, %cst_55 {dimension_numbers = #tpu.dot_dimension_numbers<[1], [0], [0], [1], [0, 0, 1, 1], [], []>} : vector<32x256xbf16>, vector<256x256xbf16>, vector<32x256xf32> -> vector<32x256xf32>
    %62 = arith.addf %54, %61 : vector<32x256xf32>
    %c2_56 = arith.constant 2 : index
    %c0_57 = arith.constant 0 : index
    %c0_58 = arith.constant 0 : index
    %63 = vector.load %arg2[%c2_56, %c0_57, %c0_58] : memref<4x32x64xbf16, #tpu.memory_space<vmem>>, vector<1x32x64xbf16>
    %64 = vector.shape_cast %63 : vector<1x32x64xbf16> to vector<32x64xbf16>
    %cst_59 = arith.constant dense<0.000000e+00> : vector<32x256xf32>
    %65 = tpu.matmul %64, %45, %cst_59 {dimension_numbers = #tpu.dot_dimension_numbers<[1], [0], [0], [1], [0, 0, 1, 1], [], []>} : vector<32x64xbf16>, vector<64x256xbf16>, vector<32x256xf32> -> vector<32x256xf32>
    %66 = arith.truncf %65 : vector<32x256xf32> to vector<32x256xbf16>
    %c2_60 = arith.constant 2 : index
    %c0_61 = arith.constant 0 : index
    %c0_62 = arith.constant 0 : index
    %67 = vector.load %arg3[%c2_60, %c0_61, %c0_62] : memref<4x256x256xbf16, #tpu.memory_space<vmem>>, vector<1x256x256xbf16>
    %68 = vector.shape_cast %67 : vector<1x256x256xbf16> to vector<256x256xbf16>
    %cst_63 = arith.constant dense<0.000000e+00> : vector<32x256xf32>
    %69 = tpu.matmul %66, %68, %cst_63 {dimension_numbers = #tpu.dot_dimension_numbers<[1], [0], [0], [1], [0, 0, 1, 1], [], []>} : vector<32x256xbf16>, vector<256x256xbf16>, vector<32x256xf32> -> vector<32x256xf32>
    %70 = arith.addf %62, %69 : vector<32x256xf32>
    %c3_64 = arith.constant 3 : index
    %c0_65 = arith.constant 0 : index
    %c0_66 = arith.constant 0 : index
    %71 = vector.load %arg2[%c3_64, %c0_65, %c0_66] : memref<4x32x64xbf16, #tpu.memory_space<vmem>>, vector<1x32x64xbf16>
    %72 = vector.shape_cast %71 : vector<1x32x64xbf16> to vector<32x64xbf16>
    %cst_67 = arith.constant dense<0.000000e+00> : vector<32x256xf32>
    %73 = tpu.matmul %72, %45, %cst_67 {dimension_numbers = #tpu.dot_dimension_numbers<[1], [0], [0], [1], [0, 0, 1, 1], [], []>} : vector<32x64xbf16>, vector<64x256xbf16>, vector<32x256xf32> -> vector<32x256xf32>
    %74 = arith.truncf %73 : vector<32x256xf32> to vector<32x256xbf16>
    %c3_68 = arith.constant 3 : index
    %c0_69 = arith.constant 0 : index
    %c0_70 = arith.constant 0 : index
    %75 = vector.load %arg3[%c3_68, %c0_69, %c0_70] : memref<4x256x256xbf16, #tpu.memory_space<vmem>>, vector<1x256x256xbf16>
    %76 = vector.shape_cast %75 : vector<1x256x256xbf16> to vector<256x256xbf16>
    %cst_71 = arith.constant dense<0.000000e+00> : vector<32x256xf32>
    %77 = tpu.matmul %74, %76, %cst_71 {dimension_numbers = #tpu.dot_dimension_numbers<[1], [0], [0], [1], [0, 0, 1, 1], [], []>} : vector<32x256xbf16>, vector<256x256xbf16>, vector<32x256xf32> -> vector<32x256xf32>
    %78 = arith.addf %70, %77 : vector<32x256xf32>
    %cst_72 = arith.constant 0.000000e+00 : f32
    %79 = vector.broadcast %cst_72 : f32 to vector<32x256xf32>
    %80 = arith.cmpf ogt, %78, %79 : vector<32x256xf32>
    %cst_73 = arith.constant 2.000000e-01 : f32
    %81 = vector.broadcast %cst_73 : f32 to vector<32x256xf32>
    %82 = arith.mulf %81, %78 : vector<32x256xf32>
    %83 = arith.select %80, %78, %82 : vector<32x256xi1>, vector<32x256xf32>
    %84 = arith.truncf %83 : vector<32x256xf32> to vector<32x256xbf16>
    %c1_74 = arith.constant 1 : index
    %c0_75 = arith.constant 0 : index
    %c0_76 = arith.constant 0 : index
    %85 = vector.load %arg24[%c1_74, %c0_75, %c0_76] : memref<2x32x256xbf16, #tpu.memory_space<vmem>>, vector<1x32x256xbf16>
    %86 = vector.shape_cast %85 : vector<1x32x256xbf16> to vector<32x256xbf16>
    %87 = vector.shape_cast %84 : vector<32x256xbf16> to vector<1x32x256xbf16>
    tpu.vector_store %arg24[%c1_74, %c0_75, %c0_76], %87 {strides = array<i32>} : memref<2x32x256xbf16, #tpu.memory_space<vmem>>, vector<1x32x256xbf16>,
    %c0_77 = arith.constant 0 : index
    %c0_78 = arith.constant 0 : index
    %c0_79 = arith.constant 0 : index
    %88 = vector.load %arg24[%c0_77, %c0_78, %c0_79] : memref<2x32x256xbf16, #tpu.memory_space<vmem>>, vector<1x32x256xbf16>
    %89 = vector.shape_cast %88 : vector<1x32x256xbf16> to vector<32x256xbf16>
    %cst_80 = arith.constant 0.000000e+00 : f32
    %90 = vector.broadcast %cst_80 : f32 to vector<16x256xf32>
    %c0_81 = arith.constant 0 : index
    %c0_82 = arith.constant 0 : index
    %c0_83 = arith.constant 0 : index
    %91 = vector.load %arg4[%c0_81, %c0_82, %c0_83] : memref<4x16x32xbf16, #tpu.memory_space<vmem>>, vector<1x16x32xbf16>
    %92 = vector.shape_cast %91 : vector<1x16x32xbf16> to vector<16x32xbf16>
    %cst_84 = arith.constant dense<0.000000e+00> : vector<16x256xf32>
    %93 = tpu.matmul %92, %89, %cst_84 {dimension_numbers = #tpu.dot_dimension_numbers<[1], [0], [0], [1], [0, 0, 1, 1], [], []>} : vector<16x32xbf16>, vector<32x256xbf16>, vector<16x256xf32> -> vector<16x256xf32>
    %94 = arith.truncf %93 : vector<16x256xf32> to vector<16x256xbf16>
    %c0_85 = arith.constant 0 : index
    %c0_86 = arith.constant 0 : index
    %c0_87 = arith.constant 0 : index
    %95 = vector.load %arg5[%c0_85, %c0_86, %c0_87] : memref<4x256x256xbf16, #tpu.memory_space<vmem>>, vector<1x256x256xbf16>
    %96 = vector.shape_cast %95 : vector<1x256x256xbf16> to vector<256x256xbf16>
    %cst_88 = arith.constant dense<0.000000e+00> : vector<16x256xf32>
    %97 = tpu.matmul %94, %96, %cst_88 {dimension_numbers = #tpu.dot_dimension_numbers<[1], [0], [0], [1], [0, 0, 1, 1], [], []>} : vector<16x256xbf16>, vector<256x256xbf16>, vector<16x256xf32> -> vector<16x256xf32>
    %98 = arith.addf %90, %97 : vector<16x256xf32>
    %c1_89 = arith.constant 1 : index
    %c0_90 = arith.constant 0 : index
    %c0_91 = arith.constant 0 : index
    %99 = vector.load %arg4[%c1_89, %c0_90, %c0_91] : memref<4x16x32xbf16, #tpu.memory_space<vmem>>, vector<1x16x32xbf16>
    %100 = vector.shape_cast %99 : vector<1x16x32xbf16> to vector<16x32xbf16>
    %cst_92 = arith.constant dense<0.000000e+00> : vector<16x256xf32>
    %101 = tpu.matmul %100, %89, %cst_92 {dimension_numbers = #tpu.dot_dimension_numbers<[1], [0], [0], [1], [0, 0, 1, 1], [], []>} : vector<16x32xbf16>, vector<32x256xbf16>, vector<16x256xf32> -> vector<16x256xf32>
    %102 = arith.truncf %101 : vector<16x256xf32> to vector<16x256xbf16>
    %c1_93 = arith.constant 1 : index
    %c0_94 = arith.constant 0 : index
    %c0_95 = arith.constant 0 : index
    %103 = vector.load %arg5[%c1_93, %c0_94, %c0_95] : memref<4x256x256xbf16, #tpu.memory_space<vmem>>, vector<1x256x256xbf16>
    %104 = vector.shape_cast %103 : vector<1x256x256xbf16> to vector<256x256xbf16>
    %cst_96 = arith.constant dense<0.000000e+00> : vector<16x256xf32>
    %105 = tpu.matmul %102, %104, %cst_96 {dimension_numbers = #tpu.dot_dimension_numbers<[1], [0], [0], [1], [0, 0, 1, 1], [], []>} : vector<16x256xbf16>, vector<256x256xbf16>, vector<16x256xf32> -> vector<16x256xf32>
    %106 = arith.addf %98, %105 : vector<16x256xf32>
    %c2_97 = arith.constant 2 : index
    %c0_98 = arith.constant 0 : index
    %c0_99 = arith.constant 0 : index
    %107 = vector.load %arg4[%c2_97, %c0_98, %c0_99] : memref<4x16x32xbf16, #tpu.memory_space<vmem>>, vector<1x16x32xbf16>
    %108 = vector.shape_cast %107 : vector<1x16x32xbf16> to vector<16x32xbf16>
    %cst_100 = arith.constant dense<0.000000e+00> : vector<16x256xf32>
    %109 = tpu.matmul %108, %89, %cst_100 {dimension_numbers = #tpu.dot_dimension_numbers<[1], [0], [0], [1], [0, 0, 1, 1], [], []>} : vector<16x32xbf16>, vector<32x256xbf16>, vector<16x256xf32> -> vector<16x256xf32>
    %110 = arith.truncf %109 : vector<16x256xf32> to vector<16x256xbf16>
    %c2_101 = arith.constant 2 : index
    %c0_102 = arith.constant 0 : index
    %c0_103 = arith.constant 0 : index
    %111 = vector.load %arg5[%c2_101, %c0_102, %c0_103] : memref<4x256x256xbf16, #tpu.memory_space<vmem>>, vector<1x256x256xbf16>
    %112 = vector.shape_cast %111 : vector<1x256x256xbf16> to vector<256x256xbf16>
    %cst_104 = arith.constant dense<0.000000e+00> : vector<16x256xf32>
    %113 = tpu.matmul %110, %112, %cst_104 {dimension_numbers = #tpu.dot_dimension_numbers<[1], [0], [0], [1], [0, 0, 1, 1], [], []>} : vector<16x256xbf16>, vector<256x256xbf16>, vector<16x256xf32> -> vector<16x256xf32>
    %114 = arith.addf %106, %113 : vector<16x256xf32>
    %c3_105 = arith.constant 3 : index
    %c0_106 = arith.constant 0 : index
    %c0_107 = arith.constant 0 : index
    %115 = vector.load %arg4[%c3_105, %c0_106, %c0_107] : memref<4x16x32xbf16, #tpu.memory_space<vmem>>, vector<1x16x32xbf16>
    %116 = vector.shape_cast %115 : vector<1x16x32xbf16> to vector<16x32xbf16>
    %cst_108 = arith.constant dense<0.000000e+00> : vector<16x256xf32>
    %117 = tpu.matmul %116, %89, %cst_108 {dimension_numbers = #tpu.dot_dimension_numbers<[1], [0], [0], [1], [0, 0, 1, 1], [], []>} : vector<16x32xbf16>, vector<32x256xbf16>, vector<16x256xf32> -> vector<16x256xf32>
    %118 = arith.truncf %117 : vector<16x256xf32> to vector<16x256xbf16>
    %c3_109 = arith.constant 3 : index
    %c0_110 = arith.constant 0 : index
    %c0_111 = arith.constant 0 : index
    %119 = vector.load %arg5[%c3_109, %c0_110, %c0_111] : memref<4x256x256xbf16, #tpu.memory_space<vmem>>, vector<1x256x256xbf16>
    %120 = vector.shape_cast %119 : vector<1x256x256xbf16> to vector<256x256xbf16>
    %cst_112 = arith.constant dense<0.000000e+00> : vector<16x256xf32>
    %121 = tpu.matmul %118, %120, %cst_112 {dimension_numbers = #tpu.dot_dimension_numbers<[1], [0], [0], [1], [0, 0, 1, 1], [], []>} : vector<16x256xbf16>, vector<256x256xbf16>, vector<16x256xf32> -> vector<16x256xf32>
    %122 = arith.addf %114, %121 : vector<16x256xf32>
    %c1_113 = arith.constant 1 : index
    %c0_114 = arith.constant 0 : index
    %c0_115 = arith.constant 0 : index
    %123 = vector.load %arg24[%c1_113, %c0_114, %c0_115] : memref<2x32x256xbf16, #tpu.memory_space<vmem>>, vector<1x32x256xbf16>
    %124 = vector.shape_cast %123 : vector<1x32x256xbf16> to vector<32x256xbf16>
    %cst_116 = arith.constant 0.000000e+00 : f32
    %125 = vector.broadcast %cst_116 : f32 to vector<16x256xf32>
    %c0_117 = arith.constant 0 : index
    %c0_118 = arith.constant 0 : index
    %c0_119 = arith.constant 0 : index
    %126 = vector.load %arg4[%c0_117, %c0_118, %c0_119] : memref<4x16x32xbf16, #tpu.memory_space<vmem>>, vector<1x16x32xbf16>
    %127 = vector.shape_cast %126 : vector<1x16x32xbf16> to vector<16x32xbf16>
    %cst_120 = arith.constant dense<0.000000e+00> : vector<16x256xf32>
    %128 = tpu.matmul %127, %124, %cst_120 {dimension_numbers = #tpu.dot_dimension_numbers<[1], [0], [0], [1], [0, 0, 1, 1], [], []>} : vector<16x32xbf16>, vector<32x256xbf16>, vector<16x256xf32> -> vector<16x256xf32>
    %129 = arith.truncf %128 : vector<16x256xf32> to vector<16x256xbf16>
    %c0_121 = arith.constant 0 : index
    %c0_122 = arith.constant 0 : index
    %c0_123 = arith.constant 0 : index
    %130 = vector.load %arg5[%c0_121, %c0_122, %c0_123] : memref<4x256x256xbf16, #tpu.memory_space<vmem>>, vector<1x256x256xbf16>
    %131 = vector.shape_cast %130 : vector<1x256x256xbf16> to vector<256x256xbf16>
    %cst_124 = arith.constant dense<0.000000e+00> : vector<16x256xf32>
    %132 = tpu.matmul %129, %131, %cst_124 {dimension_numbers = #tpu.dot_dimension_numbers<[1], [0], [0], [1], [0, 0, 1, 1], [], []>} : vector<16x256xbf16>, vector<256x256xbf16>, vector<16x256xf32> -> vector<16x256xf32>
    %133 = arith.addf %125, %132 : vector<16x256xf32>
    %c1_125 = arith.constant 1 : index
    %c0_126 = arith.constant 0 : index
    %c0_127 = arith.constant 0 : index
    %134 = vector.load %arg4[%c1_125, %c0_126, %c0_127] : memref<4x16x32xbf16, #tpu.memory_space<vmem>>, vector<1x16x32xbf16>
    %135 = vector.shape_cast %134 : vector<1x16x32xbf16> to vector<16x32xbf16>
    %cst_128 = arith.constant dense<0.000000e+00> : vector<16x256xf32>
    %136 = tpu.matmul %135, %124, %cst_128 {dimension_numbers = #tpu.dot_dimension_numbers<[1], [0], [0], [1], [0, 0, 1, 1], [], []>} : vector<16x32xbf16>, vector<32x256xbf16>, vector<16x256xf32> -> vector<16x256xf32>
    %137 = arith.truncf %136 : vector<16x256xf32> to vector<16x256xbf16>
    %c1_129 = arith.constant 1 : index
    %c0_130 = arith.constant 0 : index
    %c0_131 = arith.constant 0 : index
    %138 = vector.load %arg5[%c1_129, %c0_130, %c0_131] : memref<4x256x256xbf16, #tpu.memory_space<vmem>>, vector<1x256x256xbf16>
    %139 = vector.shape_cast %138 : vector<1x256x256xbf16> to vector<256x256xbf16>
    %cst_132 = arith.constant dense<0.000000e+00> : vector<16x256xf32>
    %140 = tpu.matmul %137, %139, %cst_132 {dimension_numbers = #tpu.dot_dimension_numbers<[1], [0], [0], [1], [0, 0, 1, 1], [], []>} : vector<16x256xbf16>, vector<256x256xbf16>, vector<16x256xf32> -> vector<16x256xf32>
    %141 = arith.addf %133, %140 : vector<16x256xf32>
    %c2_133 = arith.constant 2 : index
    %c0_134 = arith.constant 0 : index
    %c0_135 = arith.constant 0 : index
    %142 = vector.load %arg4[%c2_133, %c0_134, %c0_135] : memref<4x16x32xbf16, #tpu.memory_space<vmem>>, vector<1x16x32xbf16>
    %143 = vector.shape_cast %142 : vector<1x16x32xbf16> to vector<16x32xbf16>
    %cst_136 = arith.constant dense<0.000000e+00> : vector<16x256xf32>
    %144 = tpu.matmul %143, %124, %cst_136 {dimension_numbers = #tpu.dot_dimension_numbers<[1], [0], [0], [1], [0, 0, 1, 1], [], []>} : vector<16x32xbf16>, vector<32x256xbf16>, vector<16x256xf32> -> vector<16x256xf32>
    %145 = arith.truncf %144 : vector<16x256xf32> to vector<16x256xbf16>
    %c2_137 = arith.constant 2 : index
    %c0_138 = arith.constant 0 : index
    %c0_139 = arith.constant 0 : index
    %146 = vector.load %arg5[%c2_137, %c0_138, %c0_139] : memref<4x256x256xbf16, #tpu.memory_space<vmem>>, vector<1x256x256xbf16>
    %147 = vector.shape_cast %146 : vector<1x256x256xbf16> to vector<256x256xbf16>
    %cst_140 = arith.constant dense<0.000000e+00> : vector<16x256xf32>
    %148 = tpu.matmul %145, %147, %cst_140 {dimension_numbers = #tpu.dot_dimension_numbers<[1], [0], [0], [1], [0, 0, 1, 1], [], []>} : vector<16x256xbf16>, vector<256x256xbf16>, vector<16x256xf32> -> vector<16x256xf32>
    %149 = arith.addf %141, %148 : vector<16x256xf32>
    %c3_141 = arith.constant 3 : index
    %c0_142 = arith.constant 0 : index
    %c0_143 = arith.constant 0 : index
    %150 = vector.load %arg4[%c3_141, %c0_142, %c0_143] : memref<4x16x32xbf16, #tpu.memory_space<vmem>>, vector<1x16x32xbf16>
    %151 = vector.shape_cast %150 : vector<1x16x32xbf16> to vector<16x32xbf16>
    %cst_144 = arith.constant dense<0.000000e+00> : vector<16x256xf32>
    %152 = tpu.matmul %151, %124, %cst_144 {dimension_numbers = #tpu.dot_dimension_numbers<[1], [0], [0], [1], [0, 0, 1, 1], [], []>} : vector<16x32xbf16>, vector<32x256xbf16>, vector<16x256xf32> -> vector<16x256xf32>
    %153 = arith.truncf %152 : vector<16x256xf32> to vector<16x256xbf16>
    %c3_145 = arith.constant 3 : index
    %c0_146 = arith.constant 0 : index
    %c0_147 = arith.constant 0 : index
    %154 = vector.load %arg5[%c3_145, %c0_146, %c0_147] : memref<4x256x256xbf16, #tpu.memory_space<vmem>>, vector<1x256x256xbf16>
    %155 = vector.shape_cast %154 : vector<1x256x256xbf16> to vector<256x256xbf16>
    %cst_148 = arith.constant dense<0.000000e+00> : vector<16x256xf32>
    %156 = tpu.matmul %153, %155, %cst_148 {dimension_numbers = #tpu.dot_dimension_numbers<[1], [0], [0], [1], [0, 0, 1, 1], [], []>} : vector<16x256xbf16>, vector<256x256xbf16>, vector<16x256xf32> -> vector<16x256xf32>
    %157 = arith.addf %149, %156 : vector<16x256xf32>
    %cst_149 = arith.constant 0.000000e+00 : f32
    %158 = vector.broadcast %cst_149 : f32 to vector<1x256xf32>
    %cst_150 = arith.constant 0.000000e+00 : f32
    %159 = vector.broadcast %cst_150 : f32 to vector<1x256xf32>
    %cst_151 = arith.constant dense<0.000000e+00> : vector<256xf32>
    %160 = vector.multi_reduction <add>, %122, %cst_151 [0] : vector<16x256xf32> to vector<256xf32>
    %161 = vector.shape_cast %160 : vector<256xf32> to vector<1x256xf32>
    %162 = arith.addf %158, %161 : vector<1x256xf32>
    %163 = arith.mulf %122, %122 : vector<16x256xf32>
    %cst_152 = arith.constant dense<0.000000e+00> : vector<256xf32>
    %164 = vector.multi_reduction <add>, %163, %cst_152 [0] : vector<16x256xf32> to vector<256xf32>
    %165 = vector.shape_cast %164 : vector<256xf32> to vector<1x256xf32>
    %166 = arith.addf %159, %165 : vector<1x256xf32>
    %cst_153 = arith.constant dense<0.000000e+00> : vector<256xf32>
    %167 = vector.multi_reduction <add>, %157, %cst_153 [0] : vector<16x256xf32> to vector<256xf32>
    %168 = vector.shape_cast %167 : vector<256xf32> to vector<1x256xf32>
    %169 = arith.addf %162, %168 : vector<1x256xf32>
    %170 = arith.mulf %157, %157 : vector<16x256xf32>
    %cst_154 = arith.constant dense<0.000000e+00> : vector<256xf32>
    %171 = vector.multi_reduction <add>, %170, %cst_154 [0] : vector<16x256xf32> to vector<256xf32>
    %172 = vector.shape_cast %171 : vector<256xf32> to vector<1x256xf32>
    %173 = arith.addf %166, %172 : vector<1x256xf32>
    %c0_155 = arith.constant 0 : index
    %c0_156 = arith.constant 0 : index
    %174 = vector.load %arg6[%c0_155, %c0_156] : memref<256x16xf32, #tpu.memory_space<vmem>>, vector<256x16xf32>
    %cst_157 = arith.constant dense<0.000000e+00> : vector<1x16xf32>
    %175 = tpu.matmul %169, %174, %cst_157 {dimension_numbers = #tpu.dot_dimension_numbers<[1], [0], [0], [1], [0, 0, 1, 1], [], []>} : vector<1x256xf32>, vector<256x16xf32>, vector<1x16xf32> -> vector<1x16xf32>
    %c0_158 = arith.constant 0 : index
    %c0_159 = arith.constant 0 : index
    %176 = vector.load %arg6[%c0_158, %c0_159] : memref<256x16xf32, #tpu.memory_space<vmem>>, vector<256x16xf32>
    %cst_160 = arith.constant dense<0.000000e+00> : vector<1x16xf32>
    %177 = tpu.matmul %173, %176, %cst_160 {dimension_numbers = #tpu.dot_dimension_numbers<[1], [0], [0], [1], [0, 0, 1, 1], [], []>} : vector<1x256xf32>, vector<256x16xf32>, vector<1x16xf32> -> vector<1x16xf32>
    %cst_161 = arith.constant 0.001953125 : f32
    %178 = vector.broadcast %cst_161 : f32 to vector<1x16xf32>
    %179 = arith.mulf %175, %178 : vector<1x16xf32>
    %cst_162 = arith.constant 0.001953125 : f32
    %180 = vector.broadcast %cst_162 : f32 to vector<1x16xf32>
    %181 = arith.mulf %177, %180 : vector<1x16xf32>
    %182 = arith.mulf %179, %179 : vector<1x16xf32>
    %183 = arith.subf %181, %182 : vector<1x16xf32>
    %cst_163 = arith.constant 0.000000e+00 : f32
    %184 = vector.broadcast %cst_163 : f32 to vector<1x16xf32>
    %185 = arith.maximumf %183, %184 : vector<1x16xf32>
    %cst_164 = arith.constant 9.99999974E-6 : f32
    %186 = vector.broadcast %cst_164 : f32 to vector<1x16xf32>
    %187 = arith.addf %185, %186 : vector<1x16xf32>
    %188 = math.rsqrt %187 : vector<1x16xf32>
    %c0_165 = arith.constant 0 : index
    %c0_166 = arith.constant 0 : index
    %189 = vector.load %arg7[%c0_165, %c0_166] : memref<16x256xf32, #tpu.memory_space<vmem>>, vector<16x256xf32>
    %cst_167 = arith.constant dense<0.000000e+00> : vector<1x256xf32>
    %190 = tpu.matmul %179, %189, %cst_167 {dimension_numbers = #tpu.dot_dimension_numbers<[1], [0], [0], [1], [0, 0, 1, 1], [], []>} : vector<1x16xf32>, vector<16x256xf32>, vector<1x256xf32> -> vector<1x256xf32>
    %c0_168 = arith.constant 0 : index
    %c0_169 = arith.constant 0 : index
    %191 = vector.load %arg7[%c0_168, %c0_169] : memref<16x256xf32, #tpu.memory_space<vmem>>, vector<16x256xf32>
    %cst_170 = arith.constant dense<0.000000e+00> : vector<1x256xf32>
    %192 = tpu.matmul %188, %191, %cst_170 {dimension_numbers = #tpu.dot_dimension_numbers<[1], [0], [0], [1], [0, 0, 1, 1], [], []>} : vector<1x16xf32>, vector<16x256xf32>, vector<1x256xf32> -> vector<1x256xf32>
    %c0_171 = arith.constant 0 : index
    %c0_172 = arith.constant 0 : index
    %193 = vector.load %arg8[%c0_171, %c0_172] : memref<1x256xf32, #tpu.memory_space<vmem>>, vector<1x256xf32>
    %194 = arith.mulf %193, %192 : vector<1x256xf32>
    %c0_173 = arith.constant 0 : index
    %c0_174 = arith.constant 0 : index
    %195 = vector.load %arg9[%c0_173, %c0_174] : memref<1x256xf32, #tpu.memory_space<vmem>>, vector<1x256xf32>
    %196 = arith.mulf %190, %194 : vector<1x256xf32>
    %197 = arith.subf %195, %196 : vector<1x256xf32>
    %198 = vector.broadcast %194 : vector<1x256xf32> to vector<16x256xf32>
    %199 = arith.mulf %122, %198 : vector<16x256xf32>
    %200 = vector.broadcast %197 : vector<1x256xf32> to vector<16x256xf32>
    %201 = arith.addf %199, %200 : vector<16x256xf32>
    %cst_175 = arith.constant 0.000000e+00 : f32
    %202 = vector.broadcast %cst_175 : f32 to vector<16x256xf32>
    %203 = arith.cmpf ogt, %201, %202 : vector<16x256xf32>
    %cst_176 = arith.constant 2.000000e-01 : f32
    %204 = vector.broadcast %cst_176 : f32 to vector<16x256xf32>
    %205 = arith.mulf %204, %201 : vector<16x256xf32>
    %206 = arith.select %203, %201, %205 : vector<16x256xi1>, vector<16x256xf32>
    %207 = arith.truncf %206 : vector<16x256xf32> to vector<16x256xbf16>
    %c0_177 = arith.constant 0 : index
    %c0_178 = arith.constant 0 : index
    %c0_179 = arith.constant 0 : index
    %208 = vector.load %arg25[%c0_177, %c0_178, %c0_179] : memref<2x16x256xbf16, #tpu.memory_space<vmem>>, vector<1x16x256xbf16>
    %209 = vector.shape_cast %208 : vector<1x16x256xbf16> to vector<16x256xbf16>
    %210 = vector.shape_cast %207 : vector<16x256xbf16> to vector<1x16x256xbf16>
    tpu.vector_store %arg25[%c0_177, %c0_178, %c0_179], %210 {strides = array<i32>} : memref<2x16x256xbf16, #tpu.memory_space<vmem>>, vector<1x16x256xbf16>,
    %211 = vector.broadcast %194 : vector<1x256xf32> to vector<16x256xf32>
    %212 = arith.mulf %157, %211 : vector<16x256xf32>
    %213 = vector.broadcast %197 : vector<1x256xf32> to vector<16x256xf32>
    %214 = arith.addf %212, %213 : vector<16x256xf32>
    %cst_180 = arith.constant 0.000000e+00 : f32
    %215 = vector.broadcast %cst_180 : f32 to vector<16x256xf32>
    %216 = arith.cmpf ogt, %214, %215 : vector<16x256xf32>
    %cst_181 = arith.constant 2.000000e-01 : f32
    %217 = vector.broadcast %cst_181 : f32 to vector<16x256xf32>
    %218 = arith.mulf %217, %214 : vector<16x256xf32>
    %219 = arith.select %216, %214, %218 : vector<16x256xi1>, vector<16x256xf32>
    %220 = arith.truncf %219 : vector<16x256xf32> to vector<16x256xbf16>
    %c1_182 = arith.constant 1 : index
    %c0_183 = arith.constant 0 : index
    %c0_184 = arith.constant 0 : index
    %221 = vector.load %arg25[%c1_182, %c0_183, %c0_184] : memref<2x16x256xbf16, #tpu.memory_space<vmem>>, vector<1x16x256xbf16>
    %222 = vector.shape_cast %221 : vector<1x16x256xbf16> to vector<16x256xbf16>
    %223 = vector.shape_cast %220 : vector<16x256xbf16> to vector<1x16x256xbf16>
    tpu.vector_store %arg25[%c1_182, %c0_183, %c0_184], %223 {strides = array<i32>} : memref<2x16x256xbf16, #tpu.memory_space<vmem>>, vector<1x16x256xbf16>,
    %c0_185 = arith.constant 0 : index
    %c0_186 = arith.constant 0 : index
    %c0_187 = arith.constant 0 : index
    %224 = vector.load %arg25[%c0_185, %c0_186, %c0_187] : memref<2x16x256xbf16, #tpu.memory_space<vmem>>, vector<1x16x256xbf16>
    %225 = vector.shape_cast %224 : vector<1x16x256xbf16> to vector<16x256xbf16>
    %cst_188 = arith.constant 0.000000e+00 : f32
    %226 = vector.broadcast %cst_188 : f32 to vector<8x256xf32>
    %c0_189 = arith.constant 0 : index
    %c0_190 = arith.constant 0 : index
    %c0_191 = arith.constant 0 : index
    %227 = vector.load %arg10[%c0_189, %c0_190, %c0_191] : memref<4x8x16xbf16, #tpu.memory_space<vmem>>, vector<1x8x16xbf16>
    %228 = vector.shape_cast %227 : vector<1x8x16xbf16> to vector<8x16xbf16>
    %cst_192 = arith.constant dense<0.000000e+00> : vector<8x256xf32>
    %229 = tpu.matmul %228, %225, %cst_192 {dimension_numbers = #tpu.dot_dimension_numbers<[1], [0], [0], [1], [0, 0, 1, 1], [], []>} : vector<8x16xbf16>, vector<16x256xbf16>, vector<8x256xf32> -> vector<8x256xf32>
    %230 = arith.truncf %229 : vector<8x256xf32> to vector<8x256xbf16>
    %c0_193 = arith.constant 0 : index
    %c0_194 = arith.constant 0 : index
    %c0_195 = arith.constant 0 : index
    %231 = vector.load %arg11[%c0_193, %c0_194, %c0_195] : memref<4x256x256xbf16, #tpu.memory_space<vmem>>, vector<1x256x256xbf16>
    %232 = vector.shape_cast %231 : vector<1x256x256xbf16> to vector<256x256xbf16>
    %cst_196 = arith.constant dense<0.000000e+00> : vector<8x256xf32>
    %233 = tpu.matmul %230, %232, %cst_196 {dimension_numbers = #tpu.dot_dimension_numbers<[1], [0], [0], [1], [0, 0, 1, 1], [], []>} : vector<8x256xbf16>, vector<256x256xbf16>, vector<8x256xf32> -> vector<8x256xf32>
    %234 = arith.addf %226, %233 : vector<8x256xf32>
    %c1_197 = arith.constant 1 : index
    %c0_198 = arith.constant 0 : index
    %c0_199 = arith.constant 0 : index
    %235 = vector.load %arg10[%c1_197, %c0_198, %c0_199] : memref<4x8x16xbf16, #tpu.memory_space<vmem>>, vector<1x8x16xbf16>
    %236 = vector.shape_cast %235 : vector<1x8x16xbf16> to vector<8x16xbf16>
    %cst_200 = arith.constant dense<0.000000e+00> : vector<8x256xf32>
    %237 = tpu.matmul %236, %225, %cst_200 {dimension_numbers = #tpu.dot_dimension_numbers<[1], [0], [0], [1], [0, 0, 1, 1], [], []>} : vector<8x16xbf16>, vector<16x256xbf16>, vector<8x256xf32> -> vector<8x256xf32>
    %238 = arith.truncf %237 : vector<8x256xf32> to vector<8x256xbf16>
    %c1_201 = arith.constant 1 : index
    %c0_202 = arith.constant 0 : index
    %c0_203 = arith.constant 0 : index
    %239 = vector.load %arg11[%c1_201, %c0_202, %c0_203] : memref<4x256x256xbf16, #tpu.memory_space<vmem>>, vector<1x256x256xbf16>
    %240 = vector.shape_cast %239 : vector<1x256x256xbf16> to vector<256x256xbf16>
    %cst_204 = arith.constant dense<0.000000e+00> : vector<8x256xf32>
    %241 = tpu.matmul %238, %240, %cst_204 {dimension_numbers = #tpu.dot_dimension_numbers<[1], [0], [0], [1], [0, 0, 1, 1], [], []>} : vector<8x256xbf16>, vector<256x256xbf16>, vector<8x256xf32> -> vector<8x256xf32>
    %242 = arith.addf %234, %241 : vector<8x256xf32>
    %c2_205 = arith.constant 2 : index
    %c0_206 = arith.constant 0 : index
    %c0_207 = arith.constant 0 : index
    %243 = vector.load %arg10[%c2_205, %c0_206, %c0_207] : memref<4x8x16xbf16, #tpu.memory_space<vmem>>, vector<1x8x16xbf16>
    %244 = vector.shape_cast %243 : vector<1x8x16xbf16> to vector<8x16xbf16>
    %cst_208 = arith.constant dense<0.000000e+00> : vector<8x256xf32>
    %245 = tpu.matmul %244, %225, %cst_208 {dimension_numbers = #tpu.dot_dimension_numbers<[1], [0], [0], [1], [0, 0, 1, 1], [], []>} : vector<8x16xbf16>, vector<16x256xbf16>, vector<8x256xf32> -> vector<8x256xf32>
    %246 = arith.truncf %245 : vector<8x256xf32> to vector<8x256xbf16>
    %c2_209 = arith.constant 2 : index
    %c0_210 = arith.constant 0 : index
    %c0_211 = arith.constant 0 : index
    %247 = vector.load %arg11[%c2_209, %c0_210, %c0_211] : memref<4x256x256xbf16, #tpu.memory_space<vmem>>, vector<1x256x256xbf16>
    %248 = vector.shape_cast %247 : vector<1x256x256xbf16> to vector<256x256xbf16>
    %cst_212 = arith.constant dense<0.000000e+00> : vector<8x256xf32>
    %249 = tpu.matmul %246, %248, %cst_212 {dimension_numbers = #tpu.dot_dimension_numbers<[1], [0], [0], [1], [0, 0, 1, 1], [], []>} : vector<8x256xbf16>, vector<256x256xbf16>, vector<8x256xf32> -> vector<8x256xf32>
    %250 = arith.addf %242, %249 : vector<8x256xf32>
    %c3_213 = arith.constant 3 : index
    %c0_214 = arith.constant 0 : index
    %c0_215 = arith.constant 0 : index
    %251 = vector.load %arg10[%c3_213, %c0_214, %c0_215] : memref<4x8x16xbf16, #tpu.memory_space<vmem>>, vector<1x8x16xbf16>
    %252 = vector.shape_cast %251 : vector<1x8x16xbf16> to vector<8x16xbf16>
    %cst_216 = arith.constant dense<0.000000e+00> : vector<8x256xf32>
    %253 = tpu.matmul %252, %225, %cst_216 {dimension_numbers = #tpu.dot_dimension_numbers<[1], [0], [0], [1], [0, 0, 1, 1], [], []>} : vector<8x16xbf16>, vector<16x256xbf16>, vector<8x256xf32> -> vector<8x256xf32>
    %254 = arith.truncf %253 : vector<8x256xf32> to vector<8x256xbf16>
    %c3_217 = arith.constant 3 : index
    %c0_218 = arith.constant 0 : index
    %c0_219 = arith.constant 0 : index
    %255 = vector.load %arg11[%c3_217, %c0_218, %c0_219] : memref<4x256x256xbf16, #tpu.memory_space<vmem>>, vector<1x256x256xbf16>
    %256 = vector.shape_cast %255 : vector<1x256x256xbf16> to vector<256x256xbf16>
    %cst_220 = arith.constant dense<0.000000e+00> : vector<8x256xf32>
    %257 = tpu.matmul %254, %256, %cst_220 {dimension_numbers = #tpu.dot_dimension_numbers<[1], [0], [0], [1], [0, 0, 1, 1], [], []>} : vector<8x256xbf16>, vector<256x256xbf16>, vector<8x256xf32> -> vector<8x256xf32>
    %258 = arith.addf %250, %257 : vector<8x256xf32>
    %c1_221 = arith.constant 1 : index
    %c0_222 = arith.constant 0 : index
    %c0_223 = arith.constant 0 : index
    %259 = vector.load %arg25[%c1_221, %c0_222, %c0_223] : memref<2x16x256xbf16, #tpu.memory_space<vmem>>, vector<1x16x256xbf16>
    %260 = vector.shape_cast %259 : vector<1x16x256xbf16> to vector<16x256xbf16>
    %cst_224 = arith.constant 0.000000e+00 : f32
    %261 = vector.broadcast %cst_224 : f32 to vector<8x256xf32>
    %c0_225 = arith.constant 0 : index
    %c0_226 = arith.constant 0 : index
    %c0_227 = arith.constant 0 : index
    %262 = vector.load %arg10[%c0_225, %c0_226, %c0_227] : memref<4x8x16xbf16, #tpu.memory_space<vmem>>, vector<1x8x16xbf16>
    %263 = vector.shape_cast %262 : vector<1x8x16xbf16> to vector<8x16xbf16>
    %cst_228 = arith.constant dense<0.000000e+00> : vector<8x256xf32>
    %264 = tpu.matmul %263, %260, %cst_228 {dimension_numbers = #tpu.dot_dimension_numbers<[1], [0], [0], [1], [0, 0, 1, 1], [], []>} : vector<8x16xbf16>, vector<16x256xbf16>, vector<8x256xf32> -> vector<8x256xf32>
    %265 = arith.truncf %264 : vector<8x256xf32> to vector<8x256xbf16>
    %c0_229 = arith.constant 0 : index
    %c0_230 = arith.constant 0 : index
    %c0_231 = arith.constant 0 : index
    %266 = vector.load %arg11[%c0_229, %c0_230, %c0_231] : memref<4x256x256xbf16, #tpu.memory_space<vmem>>, vector<1x256x256xbf16>
    %267 = vector.shape_cast %266 : vector<1x256x256xbf16> to vector<256x256xbf16>
    %cst_232 = arith.constant dense<0.000000e+00> : vector<8x256xf32>
    %268 = tpu.matmul %265, %267, %cst_232 {dimension_numbers = #tpu.dot_dimension_numbers<[1], [0], [0], [1], [0, 0, 1, 1], [], []>} : vector<8x256xbf16>, vector<256x256xbf16>, vector<8x256xf32> -> vector<8x256xf32>
    %269 = arith.addf %261, %268 : vector<8x256xf32>
    %c1_233 = arith.constant 1 : index
    %c0_234 = arith.constant 0 : index
    %c0_235 = arith.constant 0 : index
    %270 = vector.load %arg10[%c1_233, %c0_234, %c0_235] : memref<4x8x16xbf16, #tpu.memory_space<vmem>>, vector<1x8x16xbf16>
    %271 = vector.shape_cast %270 : vector<1x8x16xbf16> to vector<8x16xbf16>
    %cst_236 = arith.constant dense<0.000000e+00> : vector<8x256xf32>
    %272 = tpu.matmul %271, %260, %cst_236 {dimension_numbers = #tpu.dot_dimension_numbers<[1], [0], [0], [1], [0, 0, 1, 1], [], []>} : vector<8x16xbf16>, vector<16x256xbf16>, vector<8x256xf32> -> vector<8x256xf32>
    %273 = arith.truncf %272 : vector<8x256xf32> to vector<8x256xbf16>
    %c1_237 = arith.constant 1 : index
    %c0_238 = arith.constant 0 : index
    %c0_239 = arith.constant 0 : index
    %274 = vector.load %arg11[%c1_237, %c0_238, %c0_239] : memref<4x256x256xbf16, #tpu.memory_space<vmem>>, vector<1x256x256xbf16>
    %275 = vector.shape_cast %274 : vector<1x256x256xbf16> to vector<256x256xbf16>
    %cst_240 = arith.constant dense<0.000000e+00> : vector<8x256xf32>
    %276 = tpu.matmul %273, %275, %cst_240 {dimension_numbers = #tpu.dot_dimension_numbers<[1], [0], [0], [1], [0, 0, 1, 1], [], []>} : vector<8x256xbf16>, vector<256x256xbf16>, vector<8x256xf32> -> vector<8x256xf32>
    %277 = arith.addf %269, %276 : vector<8x256xf32>
    %c2_241 = arith.constant 2 : index
    %c0_242 = arith.constant 0 : index
    %c0_243 = arith.constant 0 : index
    %278 = vector.load %arg10[%c2_241, %c0_242, %c0_243] : memref<4x8x16xbf16, #tpu.memory_space<vmem>>, vector<1x8x16xbf16>
    %279 = vector.shape_cast %278 : vector<1x8x16xbf16> to vector<8x16xbf16>
    %cst_244 = arith.constant dense<0.000000e+00> : vector<8x256xf32>
    %280 = tpu.matmul %279, %260, %cst_244 {dimension_numbers = #tpu.dot_dimension_numbers<[1], [0], [0], [1], [0, 0, 1, 1], [], []>} : vector<8x16xbf16>, vector<16x256xbf16>, vector<8x256xf32> -> vector<8x256xf32>
    %281 = arith.truncf %280 : vector<8x256xf32> to vector<8x256xbf16>
    %c2_245 = arith.constant 2 : index
    %c0_246 = arith.constant 0 : index
    %c0_247 = arith.constant 0 : index
    %282 = vector.load %arg11[%c2_245, %c0_246, %c0_247] : memref<4x256x256xbf16, #tpu.memory_space<vmem>>, vector<1x256x256xbf16>
    %283 = vector.shape_cast %282 : vector<1x256x256xbf16> to vector<256x256xbf16>
    %cst_248 = arith.constant dense<0.000000e+00> : vector<8x256xf32>
    %284 = tpu.matmul %281, %283, %cst_248 {dimension_numbers = #tpu.dot_dimension_numbers<[1], [0], [0], [1], [0, 0, 1, 1], [], []>} : vector<8x256xbf16>, vector<256x256xbf16>, vector<8x256xf32> -> vector<8x256xf32>
    %285 = arith.addf %277, %284 : vector<8x256xf32>
    %c3_249 = arith.constant 3 : index
    %c0_250 = arith.constant 0 : index
    %c0_251 = arith.constant 0 : index
    %286 = vector.load %arg10[%c3_249, %c0_250, %c0_251] : memref<4x8x16xbf16, #tpu.memory_space<vmem>>, vector<1x8x16xbf16>
    %287 = vector.shape_cast %286 : vector<1x8x16xbf16> to vector<8x16xbf16>
    %cst_252 = arith.constant dense<0.000000e+00> : vector<8x256xf32>
    %288 = tpu.matmul %287, %260, %cst_252 {dimension_numbers = #tpu.dot_dimension_numbers<[1], [0], [0], [1], [0, 0, 1, 1], [], []>} : vector<8x16xbf16>, vector<16x256xbf16>, vector<8x256xf32> -> vector<8x256xf32>
    %289 = arith.truncf %288 : vector<8x256xf32> to vector<8x256xbf16>
    %c3_253 = arith.constant 3 : index
    %c0_254 = arith.constant 0 : index
    %c0_255 = arith.constant 0 : index
    %290 = vector.load %arg11[%c3_253, %c0_254, %c0_255] : memref<4x256x256xbf16, #tpu.memory_space<vmem>>, vector<1x256x256xbf16>
    %291 = vector.shape_cast %290 : vector<1x256x256xbf16> to vector<256x256xbf16>
    %cst_256 = arith.constant dense<0.000000e+00> : vector<8x256xf32>
    %292 = tpu.matmul %289, %291, %cst_256 {dimension_numbers = #tpu.dot_dimension_numbers<[1], [0], [0], [1], [0, 0, 1, 1], [], []>} : vector<8x256xbf16>, vector<256x256xbf16>, vector<8x256xf32> -> vector<8x256xf32>
    %293 = arith.addf %285, %292 : vector<8x256xf32>
    %cst_257 = arith.constant 0.000000e+00 : f32
    %294 = vector.broadcast %cst_257 : f32 to vector<1x256xf32>
    %cst_258 = arith.constant 0.000000e+00 : f32
    %295 = vector.broadcast %cst_258 : f32 to vector<1x256xf32>
    %cst_259 = arith.constant dense<0.000000e+00> : vector<256xf32>
    %296 = vector.multi_reduction <add>, %258, %cst_259 [0] : vector<8x256xf32> to vector<256xf32>
    %297 = vector.shape_cast %296 : vector<256xf32> to vector<1x256xf32>
    %298 = arith.addf %294, %297 : vector<1x256xf32>
    %299 = arith.mulf %258, %258 : vector<8x256xf32>
    %cst_260 = arith.constant dense<0.000000e+00> : vector<256xf32>
    %300 = vector.multi_reduction <add>, %299, %cst_260 [0] : vector<8x256xf32> to vector<256xf32>
    %301 = vector.shape_cast %300 : vector<256xf32> to vector<1x256xf32>
    %302 = arith.addf %295, %301 : vector<1x256xf32>
    %cst_261 = arith.constant dense<0.000000e+00> : vector<256xf32>
    %303 = vector.multi_reduction <add>, %293, %cst_261 [0] : vector<8x256xf32> to vector<256xf32>
    %304 = vector.shape_cast %303 : vector<256xf32> to vector<1x256xf32>
    %305 = arith.addf %298, %304 : vector<1x256xf32>
    %306 = arith.mulf %293, %293 : vector<8x256xf32>
    %cst_262 = arith.constant dense<0.000000e+00> : vector<256xf32>
    %307 = vector.multi_reduction <add>, %306, %cst_262 [0] : vector<8x256xf32> to vector<256xf32>
    %308 = vector.shape_cast %307 : vector<256xf32> to vector<1x256xf32>
    %309 = arith.addf %302, %308 : vector<1x256xf32>
    %c0_263 = arith.constant 0 : index
    %c0_264 = arith.constant 0 : index
    %310 = vector.load %arg12[%c0_263, %c0_264] : memref<256x32xf32, #tpu.memory_space<vmem>>, vector<256x32xf32>
    %cst_265 = arith.constant dense<0.000000e+00> : vector<1x32xf32>
    %311 = tpu.matmul %305, %310, %cst_265 {dimension_numbers = #tpu.dot_dimension_numbers<[1], [0], [0], [1], [0, 0, 1, 1], [], []>} : vector<1x256xf32>, vector<256x32xf32>, vector<1x32xf32> -> vector<1x32xf32>
    %c0_266 = arith.constant 0 : index
    %c0_267 = arith.constant 0 : index
    %312 = vector.load %arg12[%c0_266, %c0_267] : memref<256x32xf32, #tpu.memory_space<vmem>>, vector<256x32xf32>
    %cst_268 = arith.constant dense<0.000000e+00> : vector<1x32xf32>
    %313 = tpu.matmul %309, %312, %cst_268 {dimension_numbers = #tpu.dot_dimension_numbers<[1], [0], [0], [1], [0, 0, 1, 1], [], []>} : vector<1x256xf32>, vector<256x32xf32>, vector<1x32xf32> -> vector<1x32xf32>
    %cst_269 = arith.constant 7.812500e-03 : f32
    %314 = vector.broadcast %cst_269 : f32 to vector<1x32xf32>
    %315 = arith.mulf %311, %314 : vector<1x32xf32>
    %cst_270 = arith.constant 7.812500e-03 : f32
    %316 = vector.broadcast %cst_270 : f32 to vector<1x32xf32>
    %317 = arith.mulf %313, %316 : vector<1x32xf32>
    %318 = arith.mulf %315, %315 : vector<1x32xf32>
    %319 = arith.subf %317, %318 : vector<1x32xf32>
    %cst_271 = arith.constant 0.000000e+00 : f32
    %320 = vector.broadcast %cst_271 : f32 to vector<1x32xf32>
    %321 = arith.maximumf %319, %320 : vector<1x32xf32>
    %cst_272 = arith.constant 9.99999974E-6 : f32
    %322 = vector.broadcast %cst_272 : f32 to vector<1x32xf32>
    %323 = arith.addf %321, %322 : vector<1x32xf32>
    %324 = math.rsqrt %323 : vector<1x32xf32>
    %c0_273 = arith.constant 0 : index
    %c0_274 = arith.constant 0 : index
    %325 = vector.load %arg13[%c0_273, %c0_274] : memref<32x256xf32, #tpu.memory_space<vmem>>, vector<32x256xf32>
    %cst_275 = arith.constant dense<0.000000e+00> : vector<1x256xf32>
    %326 = tpu.matmul %315, %325, %cst_275 {dimension_numbers = #tpu.dot_dimension_numbers<[1], [0], [0], [1], [0, 0, 1, 1], [], []>} : vector<1x32xf32>, vector<32x256xf32>, vector<1x256xf32> -> vector<1x256xf32>
    %c0_276 = arith.constant 0 : index
    %c0_277 = arith.constant 0 : index
    %327 = vector.load %arg13[%c0_276, %c0_277] : memref<32x256xf32, #tpu.memory_space<vmem>>, vector<32x256xf32>
    %cst_278 = arith.constant dense<0.000000e+00> : vector<1x256xf32>
    %328 = tpu.matmul %324, %327, %cst_278 {dimension_numbers = #tpu.dot_dimension_numbers<[1], [0], [0], [1], [0, 0, 1, 1], [], []>} : vector<1x32xf32>, vector<32x256xf32>, vector<1x256xf32> -> vector<1x256xf32>
    %c0_279 = arith.constant 0 : index
    %c0_280 = arith.constant 0 : index
    %329 = vector.load %arg14[%c0_279, %c0_280] : memref<1x256xf32, #tpu.memory_space<vmem>>, vector<1x256xf32>
    %330 = arith.mulf %329, %328 : vector<1x256xf32>
    %c0_281 = arith.constant 0 : index
    %c0_282 = arith.constant 0 : index
    %331 = vector.load %arg15[%c0_281, %c0_282] : memref<1x256xf32, #tpu.memory_space<vmem>>, vector<1x256xf32>
    %332 = arith.mulf %326, %330 : vector<1x256xf32>
    %333 = arith.subf %331, %332 : vector<1x256xf32>
    %334 = vector.broadcast %330 : vector<1x256xf32> to vector<8x256xf32>
    %335 = arith.mulf %258, %334 : vector<8x256xf32>
    %336 = vector.broadcast %333 : vector<1x256xf32> to vector<8x256xf32>
    %337 = arith.addf %335, %336 : vector<8x256xf32>
    %cst_283 = arith.constant 0.000000e+00 : f32
    %338 = vector.broadcast %cst_283 : f32 to vector<8x256xf32>
    %339 = arith.cmpf ogt, %337, %338 : vector<8x256xf32>
    %cst_284 = arith.constant 2.000000e-01 : f32
    %340 = vector.broadcast %cst_284 : f32 to vector<8x256xf32>
    %341 = arith.mulf %340, %337 : vector<8x256xf32>
    %342 = arith.select %339, %337, %341 : vector<8x256xi1>, vector<8x256xf32>
    %343 = arith.truncf %342 : vector<8x256xf32> to vector<8x256xbf16>
    %c0_285 = arith.constant 0 : index
    %c0_286 = arith.constant 0 : index
    %c0_287 = arith.constant 0 : index
    %344 = vector.load %arg26[%c0_285, %c0_286, %c0_287] : memref<2x8x256xbf16, #tpu.memory_space<vmem>>, vector<1x8x256xbf16>
    %345 = vector.shape_cast %344 : vector<1x8x256xbf16> to vector<8x256xbf16>
    %346 = vector.shape_cast %343 : vector<8x256xbf16> to vector<1x8x256xbf16>
    tpu.vector_store %arg26[%c0_285, %c0_286, %c0_287], %346 {strides = array<i32>} : memref<2x8x256xbf16, #tpu.memory_space<vmem>>, vector<1x8x256xbf16>,
    %347 = vector.broadcast %330 : vector<1x256xf32> to vector<8x256xf32>
    %348 = arith.mulf %293, %347 : vector<8x256xf32>
    %349 = vector.broadcast %333 : vector<1x256xf32> to vector<8x256xf32>
    %350 = arith.addf %348, %349 : vector<8x256xf32>
    %cst_288 = arith.constant 0.000000e+00 : f32
    %351 = vector.broadcast %cst_288 : f32 to vector<8x256xf32>
    %352 = arith.cmpf ogt, %350, %351 : vector<8x256xf32>
    %cst_289 = arith.constant 2.000000e-01 : f32
    %353 = vector.broadcast %cst_289 : f32 to vector<8x256xf32>
    %354 = arith.mulf %353, %350 : vector<8x256xf32>
    %355 = arith.select %352, %350, %354 : vector<8x256xi1>, vector<8x256xf32>
    %356 = arith.truncf %355 : vector<8x256xf32> to vector<8x256xbf16>
    %c1_290 = arith.constant 1 : index
    %c0_291 = arith.constant 0 : index
    %c0_292 = arith.constant 0 : index
    %357 = vector.load %arg26[%c1_290, %c0_291, %c0_292] : memref<2x8x256xbf16, #tpu.memory_space<vmem>>, vector<1x8x256xbf16>
    %358 = vector.shape_cast %357 : vector<1x8x256xbf16> to vector<8x256xbf16>
    %359 = vector.shape_cast %356 : vector<8x256xbf16> to vector<1x8x256xbf16>
    tpu.vector_store %arg26[%c1_290, %c0_291, %c0_292], %359 {strides = array<i32>} : memref<2x8x256xbf16, #tpu.memory_space<vmem>>, vector<1x8x256xbf16>,
    %c0_293 = arith.constant 0 : index
    %c0_294 = arith.constant 0 : index
    %c0_295 = arith.constant 0 : index
    %360 = vector.load %arg26[%c0_293, %c0_294, %c0_295] : memref<2x8x256xbf16, #tpu.memory_space<vmem>>, vector<1x8x256xbf16>
    %361 = vector.shape_cast %360 : vector<1x8x256xbf16> to vector<8x256xbf16>
    %cst_296 = arith.constant 0.000000e+00 : f32
    %362 = vector.broadcast %cst_296 : f32 to vector<4x256xf32>
    %c0_297 = arith.constant 0 : index
    %c0_298 = arith.constant 0 : index
    %c0_299 = arith.constant 0 : index
    %363 = vector.load %arg16[%c0_297, %c0_298, %c0_299] : memref<4x4x8xbf16, #tpu.memory_space<vmem>>, vector<1x4x8xbf16>
    %364 = vector.shape_cast %363 : vector<1x4x8xbf16> to vector<4x8xbf16>
    %cst_300 = arith.constant dense<0.000000e+00> : vector<4x256xf32>
    %365 = tpu.matmul %364, %361, %cst_300 {dimension_numbers = #tpu.dot_dimension_numbers<[1], [0], [0], [1], [0, 0, 1, 1], [], []>} : vector<4x8xbf16>, vector<8x256xbf16>, vector<4x256xf32> -> vector<4x256xf32>
    %366 = arith.truncf %365 : vector<4x256xf32> to vector<4x256xbf16>
    %c0_301 = arith.constant 0 : index
    %c0_302 = arith.constant 0 : index
    %c0_303 = arith.constant 0 : index
    %367 = vector.load %arg17[%c0_301, %c0_302, %c0_303] : memref<4x256x256xbf16, #tpu.memory_space<vmem>>, vector<1x256x256xbf16>
    %368 = vector.shape_cast %367 : vector<1x256x256xbf16> to vector<256x256xbf16>
    %cst_304 = arith.constant dense<0.000000e+00> : vector<4x256xf32>
    %369 = tpu.matmul %366, %368, %cst_304 {dimension_numbers = #tpu.dot_dimension_numbers<[1], [0], [0], [1], [0, 0, 1, 1], [], []>} : vector<4x256xbf16>, vector<256x256xbf16>, vector<4x256xf32> -> vector<4x256xf32>
    %370 = arith.addf %362, %369 : vector<4x256xf32>
    %c1_305 = arith.constant 1 : index
    %c0_306 = arith.constant 0 : index
    %c0_307 = arith.constant 0 : index
    %371 = vector.load %arg16[%c1_305, %c0_306, %c0_307] : memref<4x4x8xbf16, #tpu.memory_space<vmem>>, vector<1x4x8xbf16>
    %372 = vector.shape_cast %371 : vector<1x4x8xbf16> to vector<4x8xbf16>
    %cst_308 = arith.constant dense<0.000000e+00> : vector<4x256xf32>
    %373 = tpu.matmul %372, %361, %cst_308 {dimension_numbers = #tpu.dot_dimension_numbers<[1], [0], [0], [1], [0, 0, 1, 1], [], []>} : vector<4x8xbf16>, vector<8x256xbf16>, vector<4x256xf32> -> vector<4x256xf32>
    %374 = arith.truncf %373 : vector<4x256xf32> to vector<4x256xbf16>
    %c1_309 = arith.constant 1 : index
    %c0_310 = arith.constant 0 : index
    %c0_311 = arith.constant 0 : index
    %375 = vector.load %arg17[%c1_309, %c0_310, %c0_311] : memref<4x256x256xbf16, #tpu.memory_space<vmem>>, vector<1x256x256xbf16>
    %376 = vector.shape_cast %375 : vector<1x256x256xbf16> to vector<256x256xbf16>
    %cst_312 = arith.constant dense<0.000000e+00> : vector<4x256xf32>
    %377 = tpu.matmul %374, %376, %cst_312 {dimension_numbers = #tpu.dot_dimension_numbers<[1], [0], [0], [1], [0, 0, 1, 1], [], []>} : vector<4x256xbf16>, vector<256x256xbf16>, vector<4x256xf32> -> vector<4x256xf32>
    %378 = arith.addf %370, %377 : vector<4x256xf32>
    %c2_313 = arith.constant 2 : index
    %c0_314 = arith.constant 0 : index
    %c0_315 = arith.constant 0 : index
    %379 = vector.load %arg16[%c2_313, %c0_314, %c0_315] : memref<4x4x8xbf16, #tpu.memory_space<vmem>>, vector<1x4x8xbf16>
    %380 = vector.shape_cast %379 : vector<1x4x8xbf16> to vector<4x8xbf16>
    %cst_316 = arith.constant dense<0.000000e+00> : vector<4x256xf32>
    %381 = tpu.matmul %380, %361, %cst_316 {dimension_numbers = #tpu.dot_dimension_numbers<[1], [0], [0], [1], [0, 0, 1, 1], [], []>} : vector<4x8xbf16>, vector<8x256xbf16>, vector<4x256xf32> -> vector<4x256xf32>
    %382 = arith.truncf %381 : vector<4x256xf32> to vector<4x256xbf16>
    %c2_317 = arith.constant 2 : index
    %c0_318 = arith.constant 0 : index
    %c0_319 = arith.constant 0 : index
    %383 = vector.load %arg17[%c2_317, %c0_318, %c0_319] : memref<4x256x256xbf16, #tpu.memory_space<vmem>>, vector<1x256x256xbf16>
    %384 = vector.shape_cast %383 : vector<1x256x256xbf16> to vector<256x256xbf16>
    %cst_320 = arith.constant dense<0.000000e+00> : vector<4x256xf32>
    %385 = tpu.matmul %382, %384, %cst_320 {dimension_numbers = #tpu.dot_dimension_numbers<[1], [0], [0], [1], [0, 0, 1, 1], [], []>} : vector<4x256xbf16>, vector<256x256xbf16>, vector<4x256xf32> -> vector<4x256xf32>
    %386 = arith.addf %378, %385 : vector<4x256xf32>
    %c3_321 = arith.constant 3 : index
    %c0_322 = arith.constant 0 : index
    %c0_323 = arith.constant 0 : index
    %387 = vector.load %arg16[%c3_321, %c0_322, %c0_323] : memref<4x4x8xbf16, #tpu.memory_space<vmem>>, vector<1x4x8xbf16>
    %388 = vector.shape_cast %387 : vector<1x4x8xbf16> to vector<4x8xbf16>
    %cst_324 = arith.constant dense<0.000000e+00> : vector<4x256xf32>
    %389 = tpu.matmul %388, %361, %cst_324 {dimension_numbers = #tpu.dot_dimension_numbers<[1], [0], [0], [1], [0, 0, 1, 1], [], []>} : vector<4x8xbf16>, vector<8x256xbf16>, vector<4x256xf32> -> vector<4x256xf32>
    %390 = arith.truncf %389 : vector<4x256xf32> to vector<4x256xbf16>
    %c3_325 = arith.constant 3 : index
    %c0_326 = arith.constant 0 : index
    %c0_327 = arith.constant 0 : index
    %391 = vector.load %arg17[%c3_325, %c0_326, %c0_327] : memref<4x256x256xbf16, #tpu.memory_space<vmem>>, vector<1x256x256xbf16>
    %392 = vector.shape_cast %391 : vector<1x256x256xbf16> to vector<256x256xbf16>
    %cst_328 = arith.constant dense<0.000000e+00> : vector<4x256xf32>
    %393 = tpu.matmul %390, %392, %cst_328 {dimension_numbers = #tpu.dot_dimension_numbers<[1], [0], [0], [1], [0, 0, 1, 1], [], []>} : vector<4x256xbf16>, vector<256x256xbf16>, vector<4x256xf32> -> vector<4x256xf32>
    %394 = arith.addf %386, %393 : vector<4x256xf32>
    %c1_329 = arith.constant 1 : index
    %c0_330 = arith.constant 0 : index
    %c0_331 = arith.constant 0 : index
    %395 = vector.load %arg26[%c1_329, %c0_330, %c0_331] : memref<2x8x256xbf16, #tpu.memory_space<vmem>>, vector<1x8x256xbf16>
    %396 = vector.shape_cast %395 : vector<1x8x256xbf16> to vector<8x256xbf16>
    %cst_332 = arith.constant 0.000000e+00 : f32
    %397 = vector.broadcast %cst_332 : f32 to vector<4x256xf32>
    %c0_333 = arith.constant 0 : index
    %c0_334 = arith.constant 0 : index
    %c0_335 = arith.constant 0 : index
    %398 = vector.load %arg16[%c0_333, %c0_334, %c0_335] : memref<4x4x8xbf16, #tpu.memory_space<vmem>>, vector<1x4x8xbf16>
    %399 = vector.shape_cast %398 : vector<1x4x8xbf16> to vector<4x8xbf16>
    %cst_336 = arith.constant dense<0.000000e+00> : vector<4x256xf32>
    %400 = tpu.matmul %399, %396, %cst_336 {dimension_numbers = #tpu.dot_dimension_numbers<[1], [0], [0], [1], [0, 0, 1, 1], [], []>} : vector<4x8xbf16>, vector<8x256xbf16>, vector<4x256xf32> -> vector<4x256xf32>
    %401 = arith.truncf %400 : vector<4x256xf32> to vector<4x256xbf16>
    %c0_337 = arith.constant 0 : index
    %c0_338 = arith.constant 0 : index
    %c0_339 = arith.constant 0 : index
    %402 = vector.load %arg17[%c0_337, %c0_338, %c0_339] : memref<4x256x256xbf16, #tpu.memory_space<vmem>>, vector<1x256x256xbf16>
    %403 = vector.shape_cast %402 : vector<1x256x256xbf16> to vector<256x256xbf16>
    %cst_340 = arith.constant dense<0.000000e+00> : vector<4x256xf32>
    %404 = tpu.matmul %401, %403, %cst_340 {dimension_numbers = #tpu.dot_dimension_numbers<[1], [0], [0], [1], [0, 0, 1, 1], [], []>} : vector<4x256xbf16>, vector<256x256xbf16>, vector<4x256xf32> -> vector<4x256xf32>
    %405 = arith.addf %397, %404 : vector<4x256xf32>
    %c1_341 = arith.constant 1 : index
    %c0_342 = arith.constant 0 : index
    %c0_343 = arith.constant 0 : index
    %406 = vector.load %arg16[%c1_341, %c0_342, %c0_343] : memref<4x4x8xbf16, #tpu.memory_space<vmem>>, vector<1x4x8xbf16>
    %407 = vector.shape_cast %406 : vector<1x4x8xbf16> to vector<4x8xbf16>
    %cst_344 = arith.constant dense<0.000000e+00> : vector<4x256xf32>
    %408 = tpu.matmul %407, %396, %cst_344 {dimension_numbers = #tpu.dot_dimension_numbers<[1], [0], [0], [1], [0, 0, 1, 1], [], []>} : vector<4x8xbf16>, vector<8x256xbf16>, vector<4x256xf32> -> vector<4x256xf32>
    %409 = arith.truncf %408 : vector<4x256xf32> to vector<4x256xbf16>
    %c1_345 = arith.constant 1 : index
    %c0_346 = arith.constant 0 : index
    %c0_347 = arith.constant 0 : index
    %410 = vector.load %arg17[%c1_345, %c0_346, %c0_347] : memref<4x256x256xbf16, #tpu.memory_space<vmem>>, vector<1x256x256xbf16>
    %411 = vector.shape_cast %410 : vector<1x256x256xbf16> to vector<256x256xbf16>
    %cst_348 = arith.constant dense<0.000000e+00> : vector<4x256xf32>
    %412 = tpu.matmul %409, %411, %cst_348 {dimension_numbers = #tpu.dot_dimension_numbers<[1], [0], [0], [1], [0, 0, 1, 1], [], []>} : vector<4x256xbf16>, vector<256x256xbf16>, vector<4x256xf32> -> vector<4x256xf32>
    %413 = arith.addf %405, %412 : vector<4x256xf32>
    %c2_349 = arith.constant 2 : index
    %c0_350 = arith.constant 0 : index
    %c0_351 = arith.constant 0 : index
    %414 = vector.load %arg16[%c2_349, %c0_350, %c0_351] : memref<4x4x8xbf16, #tpu.memory_space<vmem>>, vector<1x4x8xbf16>
    %415 = vector.shape_cast %414 : vector<1x4x8xbf16> to vector<4x8xbf16>
    %cst_352 = arith.constant dense<0.000000e+00> : vector<4x256xf32>
    %416 = tpu.matmul %415, %396, %cst_352 {dimension_numbers = #tpu.dot_dimension_numbers<[1], [0], [0], [1], [0, 0, 1, 1], [], []>} : vector<4x8xbf16>, vector<8x256xbf16>, vector<4x256xf32> -> vector<4x256xf32>
    %417 = arith.truncf %416 : vector<4x256xf32> to vector<4x256xbf16>
    %c2_353 = arith.constant 2 : index
    %c0_354 = arith.constant 0 : index
    %c0_355 = arith.constant 0 : index
    %418 = vector.load %arg17[%c2_353, %c0_354, %c0_355] : memref<4x256x256xbf16, #tpu.memory_space<vmem>>, vector<1x256x256xbf16>
    %419 = vector.shape_cast %418 : vector<1x256x256xbf16> to vector<256x256xbf16>
    %cst_356 = arith.constant dense<0.000000e+00> : vector<4x256xf32>
    %420 = tpu.matmul %417, %419, %cst_356 {dimension_numbers = #tpu.dot_dimension_numbers<[1], [0], [0], [1], [0, 0, 1, 1], [], []>} : vector<4x256xbf16>, vector<256x256xbf16>, vector<4x256xf32> -> vector<4x256xf32>
    %421 = arith.addf %413, %420 : vector<4x256xf32>
    %c3_357 = arith.constant 3 : index
    %c0_358 = arith.constant 0 : index
    %c0_359 = arith.constant 0 : index
    %422 = vector.load %arg16[%c3_357, %c0_358, %c0_359] : memref<4x4x8xbf16, #tpu.memory_space<vmem>>, vector<1x4x8xbf16>
    %423 = vector.shape_cast %422 : vector<1x4x8xbf16> to vector<4x8xbf16>
    %cst_360 = arith.constant dense<0.000000e+00> : vector<4x256xf32>
    %424 = tpu.matmul %423, %396, %cst_360 {dimension_numbers = #tpu.dot_dimension_numbers<[1], [0], [0], [1], [0, 0, 1, 1], [], []>} : vector<4x8xbf16>, vector<8x256xbf16>, vector<4x256xf32> -> vector<4x256xf32>
    %425 = arith.truncf %424 : vector<4x256xf32> to vector<4x256xbf16>
    %c3_361 = arith.constant 3 : index
    %c0_362 = arith.constant 0 : index
    %c0_363 = arith.constant 0 : index
    %426 = vector.load %arg17[%c3_361, %c0_362, %c0_363] : memref<4x256x256xbf16, #tpu.memory_space<vmem>>, vector<1x256x256xbf16>
    %427 = vector.shape_cast %426 : vector<1x256x256xbf16> to vector<256x256xbf16>
    %cst_364 = arith.constant dense<0.000000e+00> : vector<4x256xf32>
    %428 = tpu.matmul %425, %427, %cst_364 {dimension_numbers = #tpu.dot_dimension_numbers<[1], [0], [0], [1], [0, 0, 1, 1], [], []>} : vector<4x256xbf16>, vector<256x256xbf16>, vector<4x256xf32> -> vector<4x256xf32>
    %429 = arith.addf %421, %428 : vector<4x256xf32>
    %cst_365 = arith.constant 0.000000e+00 : f32
    %430 = vector.broadcast %cst_365 : f32 to vector<1x256xf32>
    %cst_366 = arith.constant 0.000000e+00 : f32
    %431 = vector.broadcast %cst_366 : f32 to vector<1x256xf32>
    %cst_367 = arith.constant dense<0.000000e+00> : vector<256xf32>
    %432 = vector.multi_reduction <add>, %394, %cst_367 [0] : vector<4x256xf32> to vector<256xf32>
    %433 = vector.shape_cast %432 : vector<256xf32> to vector<1x256xf32>
    %434 = arith.addf %430, %433 : vector<1x256xf32>
    %435 = arith.mulf %394, %394 : vector<4x256xf32>
    %cst_368 = arith.constant dense<0.000000e+00> : vector<256xf32>
    %436 = vector.multi_reduction <add>, %435, %cst_368 [0] : vector<4x256xf32> to vector<256xf32>
    %437 = vector.shape_cast %436 : vector<256xf32> to vector<1x256xf32>
    %438 = arith.addf %431, %437 : vector<1x256xf32>
    %cst_369 = arith.constant dense<0.000000e+00> : vector<256xf32>
    %439 = vector.multi_reduction <add>, %429, %cst_369 [0] : vector<4x256xf32> to vector<256xf32>
    %440 = vector.shape_cast %439 : vector<256xf32> to vector<1x256xf32>
    %441 = arith.addf %434, %440 : vector<1x256xf32>
    %442 = arith.mulf %429, %429 : vector<4x256xf32>
    %cst_370 = arith.constant dense<0.000000e+00> : vector<256xf32>
    %443 = vector.multi_reduction <add>, %442, %cst_370 [0] : vector<4x256xf32> to vector<256xf32>
    %444 = vector.shape_cast %443 : vector<256xf32> to vector<1x256xf32>
    %445 = arith.addf %438, %444 : vector<1x256xf32>
    %c0_371 = arith.constant 0 : index
    %c0_372 = arith.constant 0 : index
    %446 = vector.load %arg18[%c0_371, %c0_372] : memref<256x64xf32, #tpu.memory_space<vmem>>, vector<256x64xf32>
    %cst_373 = arith.constant dense<0.000000e+00> : vector<1x64xf32>
    %447 = tpu.matmul %441, %446, %cst_373 {dimension_numbers = #tpu.dot_dimension_numbers<[1], [0], [0], [1], [0, 0, 1, 1], [], []>} : vector<1x256xf32>, vector<256x64xf32>, vector<1x64xf32> -> vector<1x64xf32>
    %c0_374 = arith.constant 0 : index
    %c0_375 = arith.constant 0 : index
    %448 = vector.load %arg18[%c0_374, %c0_375] : memref<256x64xf32, #tpu.memory_space<vmem>>, vector<256x64xf32>
    %cst_376 = arith.constant dense<0.000000e+00> : vector<1x64xf32>
    %449 = tpu.matmul %445, %448, %cst_376 {dimension_numbers = #tpu.dot_dimension_numbers<[1], [0], [0], [1], [0, 0, 1, 1], [], []>} : vector<1x256xf32>, vector<256x64xf32>, vector<1x64xf32> -> vector<1x64xf32>
    %cst_377 = arith.constant 3.125000e-02 : f32
    %450 = vector.broadcast %cst_377 : f32 to vector<1x64xf32>
    %451 = arith.mulf %447, %450 : vector<1x64xf32>
    %cst_378 = arith.constant 3.125000e-02 : f32
    %452 = vector.broadcast %cst_378 : f32 to vector<1x64xf32>
    %453 = arith.mulf %449, %452 : vector<1x64xf32>
    %454 = arith.mulf %451, %451 : vector<1x64xf32>
    %455 = arith.subf %453, %454 : vector<1x64xf32>
    %cst_379 = arith.constant 0.000000e+00 : f32
    %456 = vector.broadcast %cst_379 : f32 to vector<1x64xf32>
    %457 = arith.maximumf %455, %456 : vector<1x64xf32>
    %cst_380 = arith.constant 9.99999974E-6 : f32
    %458 = vector.broadcast %cst_380 : f32 to vector<1x64xf32>
    %459 = arith.addf %457, %458 : vector<1x64xf32>
    %460 = math.rsqrt %459 : vector<1x64xf32>
    %c0_381 = arith.constant 0 : index
    %c0_382 = arith.constant 0 : index
    %461 = vector.load %arg19[%c0_381, %c0_382] : memref<64x256xf32, #tpu.memory_space<vmem>>, vector<64x256xf32>
    %cst_383 = arith.constant dense<0.000000e+00> : vector<1x256xf32>
    %462 = tpu.matmul %451, %461, %cst_383 {dimension_numbers = #tpu.dot_dimension_numbers<[1], [0], [0], [1], [0, 0, 1, 1], [], []>} : vector<1x64xf32>, vector<64x256xf32>, vector<1x256xf32> -> vector<1x256xf32>
    %c0_384 = arith.constant 0 : index
    %c0_385 = arith.constant 0 : index
    %463 = vector.load %arg19[%c0_384, %c0_385] : memref<64x256xf32, #tpu.memory_space<vmem>>, vector<64x256xf32>
    %cst_386 = arith.constant dense<0.000000e+00> : vector<1x256xf32>
    %464 = tpu.matmul %460, %463, %cst_386 {dimension_numbers = #tpu.dot_dimension_numbers<[1], [0], [0], [1], [0, 0, 1, 1], [], []>} : vector<1x64xf32>, vector<64x256xf32>, vector<1x256xf32> -> vector<1x256xf32>
    %c0_387 = arith.constant 0 : index
    %c0_388 = arith.constant 0 : index
    %465 = vector.load %arg20[%c0_387, %c0_388] : memref<1x256xf32, #tpu.memory_space<vmem>>, vector<1x256xf32>
    %466 = arith.mulf %465, %464 : vector<1x256xf32>
    %c0_389 = arith.constant 0 : index
    %c0_390 = arith.constant 0 : index
    %467 = vector.load %arg21[%c0_389, %c0_390] : memref<1x256xf32, #tpu.memory_space<vmem>>, vector<1x256xf32>
    %468 = arith.mulf %462, %466 : vector<1x256xf32>
    %469 = arith.subf %467, %468 : vector<1x256xf32>
    %470 = vector.broadcast %466 : vector<1x256xf32> to vector<4x256xf32>
    %471 = arith.mulf %394, %470 : vector<4x256xf32>
    %472 = vector.broadcast %469 : vector<1x256xf32> to vector<4x256xf32>
    %473 = arith.addf %471, %472 : vector<4x256xf32>
    %cst_391 = arith.constant 0.000000e+00 : f32
    %474 = vector.broadcast %cst_391 : f32 to vector<4x256xf32>
    %475 = arith.cmpf ogt, %473, %474 : vector<4x256xf32>
    %cst_392 = arith.constant 2.000000e-01 : f32
    %476 = vector.broadcast %cst_392 : f32 to vector<4x256xf32>
    %477 = arith.mulf %476, %473 : vector<4x256xf32>
    %478 = arith.select %475, %473, %477 : vector<4x256xi1>, vector<4x256xf32>
    %479 = arith.truncf %478 : vector<4x256xf32> to vector<4x256xbf16>
    %c0_393 = arith.constant 0 : index
    %c0_394 = arith.constant 0 : index
    %c0_395 = arith.constant 0 : index
    %480 = vector.load %arg27[%c0_393, %c0_394, %c0_395] : memref<2x4x256xbf16, #tpu.memory_space<vmem>>, vector<1x4x256xbf16>
    %481 = vector.shape_cast %480 : vector<1x4x256xbf16> to vector<4x256xbf16>
    %482 = vector.shape_cast %479 : vector<4x256xbf16> to vector<1x4x256xbf16>
    tpu.vector_store %arg27[%c0_393, %c0_394, %c0_395], %482 {strides = array<i32>} : memref<2x4x256xbf16, #tpu.memory_space<vmem>>, vector<1x4x256xbf16>,
    %483 = vector.broadcast %466 : vector<1x256xf32> to vector<4x256xf32>
    %484 = arith.mulf %429, %483 : vector<4x256xf32>
    %485 = vector.broadcast %469 : vector<1x256xf32> to vector<4x256xf32>
    %486 = arith.addf %484, %485 : vector<4x256xf32>
    %cst_396 = arith.constant 0.000000e+00 : f32
    %487 = vector.broadcast %cst_396 : f32 to vector<4x256xf32>
    %488 = arith.cmpf ogt, %486, %487 : vector<4x256xf32>
    %cst_397 = arith.constant 2.000000e-01 : f32
    %489 = vector.broadcast %cst_397 : f32 to vector<4x256xf32>
    %490 = arith.mulf %489, %486 : vector<4x256xf32>
    %491 = arith.select %488, %486, %490 : vector<4x256xi1>, vector<4x256xf32>
    %492 = arith.truncf %491 : vector<4x256xf32> to vector<4x256xbf16>
    %c1_398 = arith.constant 1 : index
    %c0_399 = arith.constant 0 : index
    %c0_400 = arith.constant 0 : index
    %493 = vector.load %arg27[%c1_398, %c0_399, %c0_400] : memref<2x4x256xbf16, #tpu.memory_space<vmem>>, vector<1x4x256xbf16>
    %494 = vector.shape_cast %493 : vector<1x4x256xbf16> to vector<4x256xbf16>
    %495 = vector.shape_cast %492 : vector<4x256xbf16> to vector<1x4x256xbf16>
    tpu.vector_store %arg27[%c1_398, %c0_399, %c0_400], %495 {strides = array<i32>} : memref<2x4x256xbf16, #tpu.memory_space<vmem>>, vector<1x4x256xbf16>,
    %c0_401 = arith.constant 0 : index
    %c0_402 = arith.constant 0 : index
    %496 = vector.load %arg22[%c0_401, %c0_402] : memref<4x256xf32, #tpu.memory_space<vmem>>, vector<4x256xf32>
    %c0_403 = arith.constant 0 : index
    %c0_404 = arith.constant 0 : index
    %c0_405 = arith.constant 0 : index
    %497 = vector.load %arg27[%c0_403, %c0_404, %c0_405] : memref<2x4x256xbf16, #tpu.memory_space<vmem>>, vector<1x4x256xbf16>
    %498 = vector.shape_cast %497 : vector<1x4x256xbf16> to vector<4x256xbf16>
    %499 = arith.extf %498 : vector<4x256xbf16> to vector<4x256xf32>
    %500 = arith.mulf %499, %496 : vector<4x256xf32>
    %cst_406 = arith.constant dense<0.000000e+00> : vector<4xf32>
    %501 = vector.multi_reduction <add>, %500, %cst_406 [1] : vector<4x256xf32> to vector<4xf32>
    %502 = vector.shape_cast %501 : vector<4xf32> to vector<4x1xf32>
    %cst_407 = arith.constant dense<0.000000e+00> : vector<1xf32>
    %503 = vector.multi_reduction <add>, %502, %cst_407 [0] : vector<4x1xf32> to vector<1xf32>
    %504 = vector.shape_cast %503 : vector<1xf32> to vector<1x1xf32>
    %cst_408 = arith.constant 0.000000e+00 : f32
    %505 = vector.broadcast %cst_408 : f32 to vector<1x1xf32>
    %506 = arith.subf %505, %504 : vector<1x1xf32>
    %507 = math.exp %506 : vector<1x1xf32>
    %cst_409 = arith.constant 1.000000e+00 : f32
    %508 = vector.broadcast %cst_409 : f32 to vector<1x1xf32>
    %509 = arith.addf %508, %507 : vector<1x1xf32>
    %cst_410 = arith.constant 1.000000e+00 : f32
    %510 = vector.broadcast %cst_410 : f32 to vector<1x1xf32>
    %511 = arith.divf %510, %509 : vector<1x1xf32>
    %c0_411 = arith.constant 0 : index
    %c0_412 = arith.constant 0 : index
    %512 = vector.load %arg23[%c0_411, %c0_412] : memref<2x1xf32, #tpu.memory_space<vmem>>, vector<1x1xf32>
    tpu.vector_store %arg23[%c0_411, %c0_412], %511 {strides = array<i32>} : memref<2x1xf32, #tpu.memory_space<vmem>>, vector<1x1xf32>,
    %c1_413 = arith.constant 1 : index
    %c0_414 = arith.constant 0 : index
    %c0_415 = arith.constant 0 : index
    %513 = vector.load %arg27[%c1_413, %c0_414, %c0_415] : memref<2x4x256xbf16, #tpu.memory_space<vmem>>, vector<1x4x256xbf16>
    %514 = vector.shape_cast %513 : vector<1x4x256xbf16> to vector<4x256xbf16>
    %515 = arith.extf %514 : vector<4x256xbf16> to vector<4x256xf32>
    %516 = arith.mulf %515, %496 : vector<4x256xf32>
    %cst_416 = arith.constant dense<0.000000e+00> : vector<4xf32>
    %517 = vector.multi_reduction <add>, %516, %cst_416 [1] : vector<4x256xf32> to vector<4xf32>
    %518 = vector.shape_cast %517 : vector<4xf32> to vector<4x1xf32>
    %cst_417 = arith.constant dense<0.000000e+00> : vector<1xf32>
    %519 = vector.multi_reduction <add>, %518, %cst_417 [0] : vector<4x1xf32> to vector<1xf32>
    %520 = vector.shape_cast %519 : vector<1xf32> to vector<1x1xf32>
    %cst_418 = arith.constant 0.000000e+00 : f32
    %521 = vector.broadcast %cst_418 : f32 to vector<1x1xf32>
    %522 = arith.subf %521, %520 : vector<1x1xf32>
    %523 = math.exp %522 : vector<1x1xf32>
    %cst_419 = arith.constant 1.000000e+00 : f32
    %524 = vector.broadcast %cst_419 : f32 to vector<1x1xf32>
    %525 = arith.addf %524, %523 : vector<1x1xf32>
    %cst_420 = arith.constant 1.000000e+00 : f32
    %526 = vector.broadcast %cst_420 : f32 to vector<1x1xf32>
    %527 = arith.divf %526, %525 : vector<1x1xf32>
    %c1_421 = arith.constant 1 : index
    %c0_422 = arith.constant 0 : index
    %528 = vector.load %arg23[%c1_421, %c0_422] : memref<2x1xf32, #tpu.memory_space<vmem>>, vector<1x1xf32>
    tpu.vector_store %arg23[%c1_421, %c0_422], %527 {strides = array<i32>} : memref<2x1xf32, #tpu.memory_space<vmem>>, vector<1x1xf32>,
    return
  }
  func.func @transform_0(%arg0: i32) -> (i32, i32, i32) {
    %c0_i32 = arith.constant 0 : i32
    %c0_i32_0 = arith.constant 0 : i32
    %c0_i32_1 = arith.constant 0 : i32
    %c0_i32_2 = arith.constant 0 : i32
    return %c0_i32, %c0_i32_0, %c0_i32_1 : i32, i32, i32
  }
  func.func @transform_1(%arg0: i32) -> (i32, i32, i32) {
    %c0_i32 = arith.constant 0 : i32
    %c0_i32_0 = arith.constant 0 : i32
    %c0_i32_1 = arith.constant 0 : i32
    %c0_i32_2 = arith.constant 0 : i32
    return %c0_i32, %c0_i32_0, %c0_i32_1 : i32, i32, i32
  }
  func.func @transform_2(%arg0: i32) -> (i32, i32, i32) {
    %c0_i32 = arith.constant 0 : i32
    %c0_i32_0 = arith.constant 0 : i32
    %c0_i32_1 = arith.constant 0 : i32
    %c0_i32_2 = arith.constant 0 : i32
    return %c0_i32, %c0_i32_0, %c0_i32_1 : i32, i32, i32
  }
  func.func @transform_3(%arg0: i32) -> (i32, i32, i32) {
    %c0_i32 = arith.constant 0 : i32
    %c0_i32_0 = arith.constant 0 : i32
    %c0_i32_1 = arith.constant 0 : i32
    %c0_i32_2 = arith.constant 0 : i32
    return %c0_i32, %c0_i32_0, %c0_i32_1 : i32, i32, i32
  }
  func.func @transform_4(%arg0: i32) -> (i32, i32, i32) {
    %c0_i32 = arith.constant 0 : i32
    %c0_i32_0 = arith.constant 0 : i32
    %c0_i32_1 = arith.constant 0 : i32
    %c0_i32_2 = arith.constant 0 : i32
    return %c0_i32, %c0_i32_0, %c0_i32_1 : i32, i32, i32
  }
  func.func @transform_5(%arg0: i32) -> (i32, i32) {
    %c0_i32 = arith.constant 0 : i32
    %c0_i32_0 = arith.constant 0 : i32
    %c0_i32_1 = arith.constant 0 : i32
    return %c0_i32, %c0_i32_0 : i32, i32
  }
  func.func @transform_6(%arg0: i32) -> (i32, i32) {
    %c0_i32 = arith.constant 0 : i32
    %c0_i32_0 = arith.constant 0 : i32
    %c0_i32_1 = arith.constant 0 : i32
    return %c0_i32, %c0_i32_0 : i32, i32
  }
  func.func @transform_7(%arg0: i32) -> (i32, i32) {
    %c0_i32 = arith.constant 0 : i32
    %c0_i32_0 = arith.constant 0 : i32
    %c0_i32_1 = arith.constant 0 : i32
    return %c0_i32, %c0_i32_0 : i32, i32
  }
  func.func @transform_8(%arg0: i32) -> (i32, i32) {
    %c0_i32 = arith.constant 0 : i32
    %c0_i32_0 = arith.constant 0 : i32
    %c0_i32_1 = arith.constant 0 : i32
    return %c0_i32, %c0_i32_0 : i32, i32
  }
  func.func @transform_9(%arg0: i32) -> (i32, i32, i32) {
    %c0_i32 = arith.constant 0 : i32
    %c0_i32_0 = arith.constant 0 : i32
    %c0_i32_1 = arith.constant 0 : i32
    %c0_i32_2 = arith.constant 0 : i32
    return %c0_i32, %c0_i32_0, %c0_i32_1 : i32, i32, i32
  }
  func.func @transform_10(%arg0: i32) -> (i32, i32, i32) {
    %c0_i32 = arith.constant 0 : i32
    %c0_i32_0 = arith.constant 0 : i32
    %c0_i32_1 = arith.constant 0 : i32
    %c0_i32_2 = arith.constant 0 : i32
    return %c0_i32, %c0_i32_0, %c0_i32_1 : i32, i32, i32
  }
  func.func @transform_11(%arg0: i32) -> (i32, i32) {
    %c0_i32 = arith.constant 0 : i32
    %c0_i32_0 = arith.constant 0 : i32
    %c0_i32_1 = arith.constant 0 : i32
    return %c0_i32, %c0_i32_0 : i32, i32
  }
  func.func @transform_12(%arg0: i32) -> (i32, i32) {
    %c0_i32 = arith.constant 0 : i32
    %c0_i32_0 = arith.constant 0 : i32
    %c0_i32_1 = arith.constant 0 : i32
    return %c0_i32, %c0_i32_0 : i32, i32
  }
  func.func @transform_13(%arg0: i32) -> (i32, i32) {
    %c0_i32 = arith.constant 0 : i32
    %c0_i32_0 = arith.constant 0 : i32
    %c0_i32_1 = arith.constant 0 : i32
    return %c0_i32, %c0_i32_0 : i32, i32
  }
  func.func @transform_14(%arg0: i32) -> (i32, i32) {
    %c0_i32 = arith.constant 0 : i32
    %c0_i32_0 = arith.constant 0 : i32
    %c0_i32_1 = arith.constant 0 : i32
    return %c0_i32, %c0_i32_0 : i32, i32
  }
  func.func @transform_15(%arg0: i32) -> (i32, i32, i32) {
    %c0_i32 = arith.constant 0 : i32
    %c0_i32_0 = arith.constant 0 : i32
    %c0_i32_1 = arith.constant 0 : i32
    %c0_i32_2 = arith.constant 0 : i32
    return %c0_i32, %c0_i32_0, %c0_i32_1 : i32, i32, i32
  }
  func.func @transform_16(%arg0: i32) -> (i32, i32, i32) {
    %c0_i32 = arith.constant 0 : i32
    %c0_i32_0 = arith.constant 0 : i32
    %c0_i32_1 = arith.constant 0 : i32
    %c0_i32_2 = arith.constant 0 : i32
    return %c0_i32, %c0_i32_0, %c0_i32_1 : i32, i32, i32
  }
  func.func @transform_17(%arg0: i32) -> (i32, i32) {
    %c0_i32 = arith.constant 0 : i32
    %c0_i32_0 = arith.constant 0 : i32
    %c0_i32_1 = arith.constant 0 : i32
    return %c0_i32, %c0_i32_0 : i32, i32
  }
  func.func @transform_18(%arg0: i32) -> (i32, i32) {
    %c0_i32 = arith.constant 0 : i32
    %c0_i32_0 = arith.constant 0 : i32
    %c0_i32_1 = arith.constant 0 : i32
    return %c0_i32, %c0_i32_0 : i32, i32
  }
  func.func @transform_19(%arg0: i32) -> (i32, i32) {
    %c0_i32 = arith.constant 0 : i32
    %c0_i32_0 = arith.constant 0 : i32
    %c0_i32_1 = arith.constant 0 : i32
    return %c0_i32, %c0_i32_0 : i32, i32
  }
  func.func @transform_20(%arg0: i32) -> (i32, i32) {
    %c0_i32 = arith.constant 0 : i32
    %c0_i32_0 = arith.constant 0 : i32
    %c0_i32_1 = arith.constant 0 : i32
    return %c0_i32, %c0_i32_0 : i32, i32
  }
  func.func @transform_21(%arg0: i32) -> (i32, i32) {
    %c0_i32 = arith.constant 0 : i32
    %c0_i32_0 = arith.constant 0 : i32
    %c0_i32_1 = arith.constant 0 : i32
    return %c0_i32, %c0_i32_0 : i32, i32
  }
  func.func @transform_22(%arg0: i32) -> (i32, i32) {
    %c0_i32 = arith.constant 0 : i32
    %c0_i32_0 = arith.constant 0 : i32
    %c0_i32_1 = arith.constant 0 : i32
    return %c0_i32, %c0_i32_0 : i32, i32
  }
}

</mosaic_0001>

<bundles_post_ra>
// kernel: discriminator_forward.1
= control target key start
LH: loop header
LB: loop body
LE: loop exit
PB: predicated region body
PF: predicated region fallthrough
CT: control target
= control target key end

     0   :  { %s15480_s0 = inlined_call_operand.vmem [shape: bf16[2,64,256], index: 0, kind: input, shape index: {}]   ;;  %s15481_s1 = inlined_call_operand.vmem [shape: bf16[4,32,64], index: 1, kind: input, shape index: {}]   ;;  %s15482_s2 = inlined_call_operand.vmem [shape: bf16[4,256,256], index: 2, kind: input, shape index: {}]   ;;  %s15483_s3 = inlined_call_operand.vmem [shape: bf16[4,16,32], index: 3, kind: input, shape index: {}]   ;;  %s15484_s4 = inlined_call_operand.vmem [shape: bf16[4,256,256], index: 4, kind: input, shape index: {}]   ;;  %s15485_s5 = inlined_call_operand.vmem [shape: f32[256,16], index: 5, kind: input, shape index: {}]   ;;  %s15486_s6 = inlined_call_operand.vmem [shape: f32[16,256], index: 6, kind: input, shape index: {}]   ;;  %s15487_s7 = inlined_call_operand.vmem [shape: f32[1,256], index: 7, kind: input, shape index: {}]   ;;  %s15488_s8 = inlined_call_operand.vmem [shape: f32[1,256], index: 8, kind: input, shape index: {}]   ;;  %s15489_s9 = inlined_call_operand.vmem [shape: bf16[4,8,16], index: 9, kind: input, shape index: {}]   ;;  %s15490_s10 = inlined_call_operand.hbm [shape: bf16[4,256,256], index: 10, kind: input, shape index: {}]   ;;  %s15491_s11 = inlined_call_operand.vmem [shape: f32[256,32], index: 11, kind: input, shape index: {}]   ;;  %s15492_s12 = inlined_call_operand.vmem [shape: f32[32,256], index: 12, kind: input, shape index: {}]   ;;  %s15493_s13 = inlined_call_operand.vmem [shape: f32[1,256], index: 13, kind: input, shape index: {}]   ;;  %s15494_s14 = inlined_call_operand.vmem [shape: f32[1,256], index: 14, kind: input, shape index: {}]   ;;  %s15495_s15 = inlined_call_operand.vmem [shape: bf16[4,4,8], index: 15, kind: input, shape index: {}]   ;;  %s15496_s16 = inlined_call_operand.hbm [shape: bf16[4,256,256], index: 16, kind: input, shape index: {}]   ;;  %s15497_s17 = inlined_call_operand.vmem [shape: f32[256,64], index: 17, kind: input, shape index: {}]   ;;  %s15498_s18 = inlined_call_operand.vmem [shape: f32[64,256], index: 18, kind: input, shape index: {}]   ;;  %s15499_s19 = inlined_call_operand.vmem [shape: f32[1,256], index: 19, kind: input, shape index: {}]   ;;  %s15500_s20 = inlined_call_operand.vmem [shape: f32[1,256], index: 20, kind: input, shape index: {}]   ;;  %s15501_s21 = inlined_call_operand.vmem [shape: f32[4,256], index: 21, kind: input, shape index: {}]   ;;  %s15502_s22 = inlined_call_operand.vmem [shape: f32[2,1], index: 22, kind: output, shape index: {}]  }
   0x1   :  { %15788 = sst [smem:[#allocation102_spill]] %s15480_s0 }
   0x2   :  { %15789 = sst [smem:[#allocation103_spill]] %s15481_s1 }
   0x3   :  { %15790 = sst [smem:[#allocation104_spill]] %s15482_s2 }
   0x4   :  { %15791 = sst [smem:[#allocation105_spill]] %s15483_s3 }
   0x5   :  { %15792 = sst [smem:[#allocation106_spill]] %s15484_s4 }
   0x6   :  { %15793 = sst [smem:[#allocation107_spill]] %s15485_s5 }
   0x7   :  { %15794 = sst [smem:[#allocation108_spill]] %s15486_s6 }
   0x8   :  { %27 = vsyncpa [#allocation7], 0 }
   0x9   :  { %28 = vsyncpa [#allocation9], 0  ;;  %s11520_s3 = smov [#allocation6]  }
   0xa   :  { %s54_s28 = sshll.u32 %s11520_s3, 4  ;;  %s55_s28 = int_to_ptr.vmem [resolvable:$true] %s54_s28 }
   0xb   :  { %s11484_s29 = scalar_lea.vmem %s55_s28, 16384  ;;  %p11489_p1 = scmp.lt.s32.totalorder %s55_s28, %s55_s28 }
   0xc   :  { %p11485_p0 = scmp.ne.s32.totalorder %s55_s28, %s11484_s29  ;;  %p11490_p2 = scmp.lt.s32.totalorder %s11484_s29, %s11484_s29 }
   0xe   :  { %p11491_p3 = por %p11490_p2, %p11489_p1 }
  0x10   :  { %p11492_p4 = pnand %p11491_p3, %p11485_p0 }
  0x12   :  { %11495 = shalt.err (!%p11492_p4)
}
  0x13   :  { %s11521_s30 = smov 128   ;;  %s11522_s4 = smov 8  }
  0x14   :  { %60 = dma.hbm_to_vmem [thread:$0]  %s15490_s10, 16384, %s55_s28, [#allocation7], %s11521_s30, %s11521_s30, %s11522_s4  }
  0x15   :  { %s11523_s1 = smov [#allocation8]  }
  0x16   :  { %s76_s5 = sshll.u32 %s11523_s1, 4  ;;  %s77_s5 = int_to_ptr.vmem [resolvable:$true] %s76_s5 }
  0x17   :  { %s11504_s24 = scalar_lea.vmem %s77_s5, 16384  ;;  %p11509_p6 = scmp.lt.s32.totalorder %s77_s5, %s77_s5 }
  0x18   :  { %p11505_p5 = scmp.ne.s32.totalorder %s77_s5, %s11504_s24  ;;  %p11510_p7 = scmp.lt.s32.totalorder %s11504_s24, %s11504_s24 }
  0x1a   :  { %p11511_p8 = por %p11510_p7, %p11509_p6 }
  0x1c   :  { %p11512_p9 = pnand %p11511_p8, %p11505_p5 }
  0x1e   :  { %11515 = shalt.err (!%p11512_p9)
}
  0x1f   :  { %82 = dma.hbm_to_vmem [thread:$0]  %s15496_s16, 16384, %s77_s5, [#allocation9], %s11521_s30, %s11521_s30, %s11522_s4  }
  0x20   :  { %11516 = dma.done.wait [#allocation7], 16384  }
  0x21   :  { %11517 = vsyncadd [#allocation7], 4294950912 }
  0x22   :  { %11518 = dma.done.wait [#allocation9], 16384  }
  0x23   :  { %11519 = vsyncadd [#allocation9], 4294950912  ;;  %v15510_v0 = vmov 0   ;;  %s15795_s2 = sld [smem:[#allocation102_spill]]  ;;  %vm162_vm0 = vcmask 523264   ;;  %vm2948_vm9 = vcmask 261120  }
  0x24   :  { %201 = vmatprep.mubr.bf16.mxu0 %v15510_v0  ;;  %311 = vmatprep.mubr.bf16.mxu1 %v15510_v0  ;;  %s15796_s27 = sld [smem:[#allocation104_spill]] }
  0x25   :  { %s15797_s30 = sld [smem:[#allocation103_spill]] }
  0x26   :  { %s15798_s5 = sld [smem:[#allocation106_spill]] }
  0x27   :  { %s15799_s6 = sld [smem:[#allocation105_spill]] }
  0x28   :  { %s15981_s24 = sld [smem:[#allocation107_spill]] }
  0x29   :  { %v11653_v1 = vld [vmem:[%s15795_s2 + $0x34] ss:$8 sps:$4 sm:$0xff]   ;;  %v10452_v2 = vld [vmem:[%s15795_s2 + $0x30] ss:$8 sps:$4 sm:$0xff]   ;;  %v10453_v3 = vld [vmem:[%s15795_s2 + $0x24] ss:$8 sps:$4 sm:$0xff]  }
  0x2a   :  { %177 = vmatprep.subr.bf16.mxu0 %v11653_v1  ;;  %287 = vmatprep.subr.bf16.mxu1 %v11653_v1  ;;  %v10455_v4 = vld [vmem:[%s15795_s2 + $0x20] ss:$8 sps:$4 sm:$0xff]   ;;  %v10456_v5 = vld [vmem:[%s15795_s2 + $0x14] ss:$8 sps:$4 sm:$0xff]   ;;  %v10458_v6 = vld [vmem:[%s15795_s2 + $0x10] ss:$8 sps:$4 sm:$0xff]  }
  0x2b   :  { %178 = vmatpush1.bf16.msra.mxu0 %v10452_v2  ;;  %288 = vmatpush1.bf16.msra.mxu1 %v10452_v2  ;;  %v10459_v7 = vld [vmem:[%s15795_s2 + $0x4] ss:$8 sps:$4 sm:$0xff]   ;;  %v10461_v8 = vld [vmem:[%s15795_s2] ss:$8 sps:$4 sm:$0xff]   ;;  %v10468_v9 = vld [vmem:[%s15796_s27 + $0x174] ss:$8 sps:$4 sm:$0xff]  }
  0x2c   :  { %179 = vmatprep.subr.bf16.mxu0 %v10453_v3  ;;  %289 = vmatprep.subr.bf16.mxu1 %v10453_v3  ;;  %v10471_v10 = vld [vmem:[%s15796_s27 + $0x74] ss:$8 sps:$4 sm:$0xff]   ;;  %v10462_v11 = vld [vmem:[%s15797_s30] sm:$0xff]   ;;  %v10466_v13 = vld [vmem:[%s15796_s27 + $0x170] ss:$8 sps:$4 sm:$0xff]  }
  0x2d   :  { %v10463_v12 = vld [vmem:[%s15797_s30 + $0x10] sm:$0xff]   ;;  %v10474_v15 = vld [vmem:[%s15796_s27 + $0x164] ss:$8 sps:$4 sm:$0xff]   ;;  %v10472_v17 = vld [vmem:[%s15796_s27 + $0x160] ss:$8 sps:$4 sm:$0xff]  }
  0x2e   :  { %v10469_v14 = vld [vmem:[%s15796_s27 + $0x70] ss:$8 sps:$4 sm:$0xff]   ;;  %v10477_v16 = vld [vmem:[%s15796_s27 + $0x64] ss:$8 sps:$4 sm:$0xff]   ;;  %v10475_v18 = vld [vmem:[%s15796_s27 + $0x60] ss:$8 sps:$4 sm:$0xff]  }
  0x2f   :  { %180 = vmatpush1.bf16.msra.mxu0 %v10455_v4  ;;  %290 = vmatpush1.bf16.msra.mxu1 %v10455_v4  ;;  %v10480_v19 = vld [vmem:[%s15796_s27 + $0x154] ss:$8 sps:$4 sm:$0xff]   ;;  %v10464_v21 = vld [vmem:[%s15797_s30 + $0x8] sm:$0xff]   ;;  %v10478_v23 = vld [vmem:[%s15796_s27 + $0x150] ss:$8 sps:$4 sm:$0xff]  }
  0x30   :  { %181 = vmatprep.subr.bf16.mxu0 %v10456_v5  ;;  %291 = vmatprep.subr.bf16.mxu1 %v10456_v5  ;;  %v10483_v20 = vld [vmem:[%s15796_s27 + $0x54] ss:$8 sps:$4 sm:$0xff]   ;;  %v10481_v24 = vld [vmem:[%s15796_s27 + $0x50] ss:$8 sps:$4 sm:$0xff]   ;;  %v10486_v25 = vld [vmem:[%s15796_s27 + $0x144] ss:$8 sps:$4 sm:$0xff]  }
  0x31   :  { %v10465_v22 = vld [vmem:[%s15797_s30 + $0x18] sm:$0xff]   ;;  %v10489_v26 = vld [vmem:[%s15796_s27 + $0x44] ss:$8 sps:$4 sm:$0xff]   ;;  %v10484_v27 = vld [vmem:[%s15796_s27 + $0x140] ss:$8 sps:$4 sm:$0xff]  }
  0x32   :  { %v10487_v28 = vld [vmem:[%s15796_s27 + $0x40] ss:$8 sps:$4 sm:$0xff]   ;;  %v10492_v29 = vld [vmem:[%s15796_s27 + $0x134] ss:$8 sps:$4 sm:$0xff]   ;;  %v10490_v31 = vld [vmem:[%s15796_s27 + $0x130] ss:$8 sps:$4 sm:$0xff]  }
  0x33   :  { %182 = vmatpush1.bf16.msra.mxu0 %v10458_v6  ;;  %292 = vmatpush1.bf16.msra.mxu1 %v10458_v6  ;;  %v10495_v30 = vld [vmem:[%s15796_s27 + $0x34] ss:$8 sps:$4 sm:$0xff]   ;;  %v10493_v32 = vld [vmem:[%s15796_s27 + $0x30] ss:$8 sps:$4 sm:$0xff]   ;;  %v10498_v33 = vld [vmem:[%s15796_s27 + $0x124] ss:$8 sps:$4 sm:$0xff]  }
  0x34   :  { %183 = vmatprep.subr.bf16.mxu0 %v10459_v7  ;;  %293 = vmatprep.subr.bf16.mxu1 %v10459_v7  ;;  %v10501_v34 = vld [vmem:[%s15796_s27 + $0x24] ss:$8 sps:$4 sm:$0xff]   ;;  %v10496_v35 = vld [vmem:[%s15796_s27 + $0x120] ss:$8 sps:$4 sm:$0xff]   ;;  %v10504_v37 = vld [vmem:[%s15796_s27 + $0x114] ss:$8 sps:$4 sm:$0xff]  }
  0x35   :  { %v10499_v36 = vld [vmem:[%s15796_s27 + $0x20] ss:$8 sps:$4 sm:$0xff]   ;;  %v10507_v38 = vld [vmem:[%s15796_s27 + $0x14] ss:$8 sps:$4 sm:$0xff]   ;;  %v10502_v39 = vld [vmem:[%s15796_s27 + $0x110] ss:$8 sps:$4 sm:$0xff]  }
  0x36   :  { %v10505_v40 = vld [vmem:[%s15796_s27 + $0x10] ss:$8 sps:$4 sm:$0xff]   ;;  %v10510_v41 = vld [vmem:[%s15796_s27 + $0x104] ss:$8 sps:$4 sm:$0xff]   ;;  %v10508_v43 = vld [vmem:[%s15796_s27 + $0x100] ss:$8 sps:$4 sm:$0xff]  }
  0x37   :  { %184 = vmatpush1.bf16.msra.mxu0 %v10461_v8  ;;  %294 = vmatpush1.bf16.msra.mxu1 %v10461_v8  ;;  %v10513_v42 = vld [vmem:[%s15796_s27 + $0x4] ss:$8 sps:$4 sm:$0xff]   ;;  %v10511_v44 = vld [vmem:[%s15796_s27] ss:$8 sps:$4 sm:$0xff]   ;;  %v10516_v45 = vld [vmem:[%s15796_s27 + $0x1f4] ss:$8 sps:$4 sm:$0xff]  }
  0x38   :  { %529 = vmatprep.subr.bf16.mxu0 %v10468_v9  ;;  %742 = vmatprep.subr.bf16.mxu1 %v10471_v10  ;;  %v10519_v46 = vld [vmem:[%s15796_s27 + $0xf4] ss:$8 sps:$4 sm:$0xff]   ;;  %v10514_v47 = vld [vmem:[%s15796_s27 + $0x1f0] ss:$8 sps:$4 sm:$0xff]   ;;  %v10522_v49 = vld [vmem:[%s15796_s27 + $0x1e4] ss:$8 sps:$4 sm:$0xff]  }
  0x39   :  { %v10517_v48 = vld [vmem:[%s15796_s27 + $0xf0] ss:$8 sps:$4 sm:$0xff]   ;;  %v10525_v50 = vld [vmem:[%s15796_s27 + $0xe4] ss:$8 sps:$4 sm:$0xff]   ;;  %v10520_v51 = vld [vmem:[%s15796_s27 + $0x1e0] ss:$8 sps:$4 sm:$0xff]  }
  0x3a   :  { %9117 = vmatmul.mubr.msk.bf16.vlgmr.msra.gmra.mxu0 %vm162_vm0, %v10462_v11  ;;  %9125 = vmatmul.mubr.msk.bf16.vlgmr.msra.gmra.mxu1 %vm162_vm0, %v10463_v12  ;;  %v10523_v52 = vld [vmem:[%s15796_s27 + $0xe0] ss:$8 sps:$4 sm:$0xff]   ;;  %v10528_v53 = vld [vmem:[%s15796_s27 + $0x1d4] ss:$8 sps:$4 sm:$0xff]   ;;  %v10526_v55 = vld [vmem:[%s15796_s27 + $0x1d0] ss:$8 sps:$4 sm:$0xff]  }
  0x3b   :  { %211 = vmatprep.mubr.bf16.mxu0 %v15510_v0  ;;  %321 = vmatprep.mubr.bf16.mxu1 %v15510_v0  ;;  %v10531_v54 = vld [vmem:[%s15796_s27 + $0xd4] ss:$8 sps:$4 sm:$0xff]   ;;  %v10529_v56 = vld [vmem:[%s15796_s27 + $0xd0] ss:$8 sps:$4 sm:$0xff]   ;;  %v10534_v57 = vld [vmem:[%s15796_s27 + $0x1c4] ss:$8 sps:$4 sm:$0xff]  }
  0x3c   :  { %530 = vmatpush1.bf16.msra.mxu0 %v10466_v13  ;;  %743 = vmatpush1.bf16.msra.mxu1 %v10469_v14  ;;  %v10537_v58 = vld [vmem:[%s15796_s27 + $0xc4] ss:$8 sps:$4 sm:$0xff]   ;;  %v10532_v59 = vld [vmem:[%s15796_s27 + $0x1c0] ss:$8 sps:$4 sm:$0xff]   ;;  %v10540_v61 = vld [vmem:[%s15796_s27 + $0x1b4] ss:$8 sps:$4 sm:$0xff]  }
  0x3d   :  { %531 = vmatprep.subr.bf16.mxu0 %v10474_v15  ;;  %744 = vmatprep.subr.bf16.mxu1 %v10477_v16  ;;  %v10535_v60 = vld [vmem:[%s15796_s27 + $0xc0] ss:$8 sps:$4 sm:$0xff]   ;;  %v10543_v62 = vld [vmem:[%s15796_s27 + $0xb4] ss:$8 sps:$4 sm:$0xff]   ;;  %v10538_v63 = vld [vmem:[%s15796_s27 + $0x1b0] ss:$8 sps:$4 sm:$0xff]  }
  0x3e   :  { %v10541_v2 = vld [vmem:[%s15796_s27 + $0xb0] ss:$8 sps:$4 sm:$0xff]   ;;  %v10546_v3 = vld [vmem:[%s15796_s27 + $0x1a4] ss:$8 sps:$4 sm:$0xff]   ;;  %v10544_v5 = vld [vmem:[%s15796_s27 + $0x1a0] ss:$8 sps:$4 sm:$0xff]  }
  0x3f   :  { %v10549_v4 = vld [vmem:[%s15796_s27 + $0xa4] ss:$8 sps:$4 sm:$0xff]   ;;  %v10547_v6 = vld [vmem:[%s15796_s27 + $0xa0] ss:$8 sps:$4 sm:$0xff]   ;;  %v10552_v7 = vld [vmem:[%s15796_s27 + $0x194] ss:$8 sps:$4 sm:$0xff]  }
  0x40   :  { %532 = vmatpush1.bf16.msra.mxu0 %v10472_v17  ;;  %745 = vmatpush1.bf16.msra.mxu1 %v10475_v18  ;;  %v10555_v8 = vld [vmem:[%s15796_s27 + $0x94] ss:$8 sps:$4 sm:$0xff]   ;;  %v10550_v9 = vld [vmem:[%s15796_s27 + $0x190] ss:$8 sps:$4 sm:$0xff]   ;;  %v10558_v11 = vld [vmem:[%s15796_s27 + $0x184] ss:$8 sps:$4 sm:$0xff]  }
  0x41   :  { %533 = vmatprep.subr.bf16.mxu0 %v10480_v19  ;;  %746 = vmatprep.subr.bf16.mxu1 %v10483_v20  ;;  %v10553_v10 = vld [vmem:[%s15796_s27 + $0x90] ss:$8 sps:$4 sm:$0xff]   ;;  %v10561_v12 = vld [vmem:[%s15796_s27 + $0x84] ss:$8 sps:$4 sm:$0xff]   ;;  %v10556_v13 = vld [vmem:[%s15796_s27 + $0x180] ss:$8 sps:$4 sm:$0xff]  }
  0x42   :  { %9118 = vmatmul.mubr.msk.bf16.gmra.mxu0 %vm162_vm0, %v10464_v21  ;;  %9126 = vmatmul.mubr.msk.bf16.gmra.mxu1 %vm162_vm0, %v10465_v22  ;;  %v10559_v14 = vld [vmem:[%s15796_s27 + $0x80] ss:$8 sps:$4 sm:$0xff]   ;;  %v10568_v15 = vld [vmem:[%s15796_s27 + $0x274] ss:$8 sps:$4 sm:$0xff]   ;;  %v10566_v22 = vld [vmem:[%s15796_s27 + $0x270] ss:$8 sps:$4 sm:$0xff]  }
  0x44   :  { %534 = vmatpush1.bf16.msra.mxu0 %v10478_v23  ;;  %747 = vmatpush1.bf16.msra.mxu1 %v10481_v24 }
  0x45   :  { %535 = vmatprep.subr.bf16.mxu0 %v10486_v25  ;;  %748 = vmatprep.subr.bf16.mxu1 %v10489_v26 }
  0x48   :  { %536 = vmatpush1.bf16.msra.mxu0 %v10484_v27  ;;  %749 = vmatpush1.bf16.msra.mxu1 %v10487_v28 }
  0x49   :  { %537 = vmatprep.subr.bf16.mxu0 %v10492_v29  ;;  %750 = vmatprep.subr.bf16.mxu1 %v10495_v30 }
  0x4c   :  { %538 = vmatpush1.bf16.msra.mxu0 %v10490_v31  ;;  %751 = vmatpush1.bf16.msra.mxu1 %v10493_v32  ;;  %v10569_v31 = vld [vmem:[%s15796_s27 + $0x260] ss:$8 sps:$4 sm:$0xff]  }
  0x4d   :  { %539 = vmatprep.subr.bf16.mxu0 %v10498_v33  ;;  %752 = vmatprep.subr.bf16.mxu1 %v10501_v34  ;;  %v10574_v34 = vld [vmem:[%s15796_s27 + $0x254] ss:$8 sps:$4 sm:$0xff]  }
  0x50   :  { %540 = vmatpush1.bf16.msra.mxu0 %v10496_v35  ;;  %753 = vmatpush1.bf16.msra.mxu1 %v10499_v36  ;;  %v11468_v35 = vld [vmem:[%s15795_s2 + $0x30] ss:$8 sps:$4 sm:$0xff]  }
  0x51   :  { %541 = vmatprep.subr.bf16.mxu0 %v10504_v37  ;;  %754 = vmatprep.subr.bf16.mxu1 %v10507_v38  ;;  %v11469_v38 = vld [vmem:[%s15795_s2 + $0x24] ss:$8 sps:$4 sm:$0xff]  }
  0x54   :  { %542 = vmatpush1.bf16.msra.mxu0 %v10502_v39  ;;  %755 = vmatpush1.bf16.msra.mxu1 %v10505_v40 }
  0x55   :  { %543 = vmatprep.subr.bf16.mxu0 %v10510_v41  ;;  %756 = vmatprep.subr.bf16.mxu1 %v10513_v42  ;;  %v10572_v42 = vld [vmem:[%s15796_s27 + $0x250] ss:$8 sps:$4 sm:$0xff]  }
  0x58   :  { %544 = vmatpush1.bf16.msra.mxu0 %v10508_v43  ;;  %757 = vmatpush1.bf16.msra.mxu1 %v10511_v44 }
  0x59   :  { %545 = vmatprep.subr.bf16.mxu0 %v10516_v45  ;;  %758 = vmatprep.subr.bf16.mxu1 %v10519_v46  ;;  %v11470_v45 = vld [vmem:[%s15795_s2 + $0x20] ss:$8 sps:$4 sm:$0xff]   ;;  %v10577_v46 = vld [vmem:[%s15796_s27 + $0x244] ss:$8 sps:$4 sm:$0xff]  }
  0x5c   :  { %546 = vmatpush2.bf16.msra.mxu0 %v10514_v47  ;;  %759 = vmatpush2.bf16.msra.mxu1 %v10517_v48  ;;  %v11471_v48 = vld [vmem:[%s15795_s2 + $0x14] ss:$8 sps:$4 sm:$0xff]  }
  0x5d   :  { %547 = vmatprep.subr.bf16.mxu0 %v10522_v49  ;;  %760 = vmatprep.subr.bf16.mxu1 %v10525_v50  ;;  %v10575_v49 = vld [vmem:[%s15796_s27 + $0x240] ss:$8 sps:$4 sm:$0xff]   ;;  %v11472_v50 = vld [vmem:[%s15795_s2 + $0x10] ss:$8 sps:$4 sm:$0xff]  }
  0x60   :  { %548 = vmatpush2.bf16.msra.mxu0 %v10520_v51  ;;  %761 = vmatpush2.bf16.msra.mxu1 %v10523_v52  ;;  %v10580_v51 = vld [vmem:[%s15796_s27 + $0x234] ss:$8 sps:$4 sm:$0xff]   ;;  %v11473_v52 = vld [vmem:[%s15795_s2 + $0x4] ss:$8 sps:$4 sm:$0xff]  }
  0x61   :  { %549 = vmatprep.subr.bf16.mxu0 %v10528_v53  ;;  %762 = vmatprep.subr.bf16.mxu1 %v10531_v54  ;;  %v10562_v53 = vld [vmem:[%s15797_s30 + $0x20] sm:$0xff]   ;;  %v10578_v54 = vld [vmem:[%s15796_s27 + $0x230] ss:$8 sps:$4 sm:$0xff]  }
  0x64   :  { %550 = vmatpush2.bf16.msra.mxu0 %v10526_v55  ;;  %763 = vmatpush2.bf16.msra.mxu1 %v10529_v56  ;;  %v11474_v55 = vld [vmem:[%s15795_s2] ss:$8 sps:$4 sm:$0xff]   ;;  %v10586_v56 = vld [vmem:[%s15796_s27 + $0x224] ss:$8 sps:$4 sm:$0xff]  }
  0x65   :  { %551 = vmatprep.subr.bf16.mxu0 %v10534_v57  ;;  %764 = vmatprep.subr.bf16.mxu1 %v10537_v58  ;;  %v11475_v57 = vld [vmem:[%s15795_s2 + $0x34] ss:$8 sps:$4 sm:$0xff]   ;;  %v10584_v58 = vld [vmem:[%s15796_s27 + $0x220] ss:$8 sps:$4 sm:$0xff]  }
  0x68   :  { %552 = vmatpush2.bf16.msra.mxu0 %v10532_v59  ;;  %765 = vmatpush2.bf16.msra.mxu1 %v10535_v60  ;;  %v10592_v59 = vld [vmem:[%s15796_s27 + $0x214] ss:$8 sps:$4 sm:$0xff]   ;;  %v10563_v60 = vld [vmem:[%s15797_s30 + $0x28] sm:$0xff]  }
  0x69   :  { %553 = vmatprep.subr.bf16.mxu0 %v10540_v61  ;;  %766 = vmatprep.subr.bf16.mxu1 %v10543_v62  ;;  %v10590_v61 = vld [vmem:[%s15796_s27 + $0x210] ss:$8 sps:$4 sm:$0xff]   ;;  %v10598_v62 = vld [vmem:[%s15796_s27 + $0x204] ss:$8 sps:$4 sm:$0xff]  }
  0x6c   :  { %554 = vmatpush2.bf16.msra.mxu0 %v10538_v63  ;;  %767 = vmatpush2.bf16.msra.mxu1 %v10541_v2  ;;  %v10583_v63 = vld [vmem:[%s15796_s27 + $0x374] ss:$8 sps:$4 sm:$0xff]   ;;  %v10596_v2 = vld [vmem:[%s15796_s27 + $0x200] ss:$8 sps:$4 sm:$0xff]  }
  0x6d   :  { %555 = vmatprep.subr.bf16.mxu0 %v10546_v3  ;;  %768 = vmatprep.subr.bf16.mxu1 %v10549_v4  ;;  %v10604_v3 = vld [vmem:[%s15796_s27 + $0x2f4] ss:$8 sps:$4 sm:$0xff]  }
  0x6e   :  { %v10564_v4 = vld [vmem:[%s15797_s30 + $0x30] sm:$0xff]  }
  0x70   :  { %556 = vmatpush2.bf16.msra.mxu0 %v10544_v5  ;;  %769 = vmatpush2.bf16.msra.mxu1 %v10547_v6  ;;  %v10581_v5 = vld [vmem:[%s15796_s27 + $0x370] ss:$8 sps:$4 sm:$0xff]   ;;  %v10589_v6 = vld [vmem:[%s15796_s27 + $0x364] ss:$8 sps:$4 sm:$0xff]  }
  0x71   :  { %557 = vmatprep.subr.bf16.mxu0 %v10552_v7  ;;  %770 = vmatprep.subr.bf16.mxu1 %v10555_v8  ;;  %v10602_v7 = vld [vmem:[%s15796_s27 + $0x2f0] ss:$8 sps:$4 sm:$0xff]   ;;  %v10610_v8 = vld [vmem:[%s15796_s27 + $0x2e4] ss:$8 sps:$4 sm:$0xff]  }
  0x74   :  { %558 = vmatpush2.bf16.msra.mxu0 %v10550_v9  ;;  %771 = vmatpush2.bf16.msra.mxu1 %v10553_v10  ;;  %v10587_v9 = vld [vmem:[%s15796_s27 + $0x360] ss:$8 sps:$4 sm:$0xff]   ;;  %v10595_v10 = vld [vmem:[%s15796_s27 + $0x354] ss:$8 sps:$4 sm:$0xff]  }
  0x75   :  { %559 = vmatprep.subr.bf16.mxu0 %v10558_v11  ;;  %772 = vmatprep.subr.bf16.mxu1 %v10561_v12  ;;  %v10608_v11 = vld [vmem:[%s15796_s27 + $0x2e0] ss:$8 sps:$4 sm:$0xff]   ;;  %v10565_v12 = vld [vmem:[%s15797_s30 + $0x38] sm:$0xff]  }
  0x78   :  { %560 = vmatpush2.bf16.msra.mxu0 %v10556_v13  ;;  %773 = vmatpush2.bf16.msra.mxu1 %v10559_v14  ;;  %v10593_v13 = vld [vmem:[%s15796_s27 + $0x350] ss:$8 sps:$4 sm:$0xff]   ;;  %v10601_v14 = vld [vmem:[%s15796_s27 + $0x344] ss:$8 sps:$4 sm:$0xff]  }
  0x79   :  { %824 = vmatprep.subr.bf16.mxu0 %v11653_v1  ;;  %1066 = vmatprep.subr.bf16.mxu1 %v10568_v15  ;;  %v10571_v1 = vld [vmem:[%s15796_s27 + $0x264] ss:$8 sps:$4 sm:$0xff]   ;;  %v10599_v15 = vld [vmem:[%s15796_s27 + $0x340] ss:$8 sps:$4 sm:$0xff]  }
  0xfa   :  { %v203_v16 = vpop.f32.mrf.mxu0  ;;  %v313_v17 = vpop.f32.mrf.mxu1 }
  0xfc   :  { %v205_v18 = vpop.f32.mrf.mxu0  ;;  %v315_v19 = vpop.f32.mrf.mxu1 }
  0xfe   :  { %v207_v20 = vpop.f32.mrf.mxu0  ;;  %v317_v21 = vpop.f32.mrf.mxu1 }
  0xff   :  { %v222_v23 = vpack.c.bf16 %v207_v20, %v203_v16  ;;  %v332_v28 = vpack.c.bf16 %v317_v21, %v313_v17  ;;  %v10607_v16 = vld [vmem:[%s15796_s27 + $0x334] ss:$8 sps:$4 sm:$0xff]   ;;  %v10605_v17 = vld [vmem:[%s15796_s27 + $0x330] ss:$8 sps:$4 sm:$0xff]  }
 0x100   :  { %v209_v24 = vpop.f32.mrf.mxu0  ;;  %v319_v25 = vpop.f32.mrf.mxu1  ;;  %v10616_v20 = vld [vmem:[%s15796_s27 + $0x2d4] ss:$8 sps:$4 sm:$0xff]  }
 0x101   :  { %v223_v26 = vpack.c.bf16 %v209_v24, %v205_v18  ;;  %v333_v27 = vpack.c.bf16 %v319_v25, %v315_v19  ;;  %v10613_v18 = vld [vmem:[%s15796_s27 + $0x324] ss:$8 sps:$4 sm:$0xff]   ;;  %v10611_v19 = vld [vmem:[%s15796_s27 + $0x320] ss:$8 sps:$4 sm:$0xff]   ;;  %v10619_v21 = vld [vmem:[%s15796_s27 + $0x314] ss:$8 sps:$4 sm:$0xff]  }
 0x102   :  { %v213_v29 = vpop.f32.mrf.mxu0  ;;  %v323_v30 = vpop.f32.mrf.mxu1  ;;  %v10622_v24 = vld [vmem:[%s15796_s27 + $0x2c4] ss:$8 sps:$4 sm:$0xff]  }
 0x103   :  { %561 = vmatprep.mubr.bf16.mxu0 %v333_v27  ;;  %774 = vmatprep.mubr.bf16.mxu1 %v223_v26  ;;  %v10625_v25 = vld [vmem:[%s15796_s27 + $0x304] ss:$8 sps:$4 sm:$0xff]   ;;  %v10623_v26 = vld [vmem:[%s15796_s27 + $0x300] ss:$8 sps:$4 sm:$0xff]   ;;  %v10628_v27 = vld [vmem:[%s15796_s27 + $0x2b4] ss:$8 sps:$4 sm:$0xff]  }
 0x104   :  { %v215_v32 = vpop.f32.mrf.mxu0  ;;  %v325_v33 = vpop.f32.mrf.mxu1  ;;  %562 = vmatmul.mubr.bf16.vlgmr.msra.gmra.mxu0 %v332_v28  ;;  %775 = vmatmul.mubr.bf16.vlgmr.msra.gmra.mxu1 %v222_v23  ;;  %v10617_v23 = vld [vmem:[%s15796_s27 + $0x310] ss:$8 sps:$4 sm:$0xff]   ;;  %v10631_v28 = vld [vmem:[%s15796_s27 + $0x3f4] ss:$8 sps:$4 sm:$0xff]  }
 0x105   :  { %825 = vmatpush1.bf16.msra.mxu0 %v11468_v35  ;;  %1067 = vmatpush1.bf16.msra.mxu1 %v10566_v22  ;;  %v10614_v22 = vld [vmem:[%s15796_s27 + $0x2d0] ss:$8 sps:$4 sm:$0xff]  }
 0x106   :  { %v217_v36 = vpop.f32.mrf.mxu0  ;;  %v327_v37 = vpop.f32.mrf.mxu1  ;;  %826 = vmatprep.subr.bf16.mxu0 %v11469_v38  ;;  %1068 = vmatprep.subr.bf16.mxu1 %v10571_v1  ;;  %v10620_v1 = vld [vmem:[%s15796_s27 + $0x2c0] ss:$8 sps:$4 sm:$0xff]  }
 0x107   :  { %v224_v39 = vpack.c.bf16 %v217_v36, %v213_v29  ;;  %v334_v47 = vpack.c.bf16 %v327_v37, %v323_v30  ;;  %v10626_v29 = vld [vmem:[%s15796_s27 + $0x2b0] ss:$8 sps:$4 sm:$0xff]   ;;  %v10643_v36 = vld [vmem:[%s15796_s27 + $0x3d4] ss:$8 sps:$4 sm:$0xff]  }
 0x108   :  { %v219_v40 = vpop.f32.mrf.mxu0  ;;  %v329_v41 = vpop.f32.mrf.mxu1  ;;  %v10629_v30 = vld [vmem:[%s15796_s27 + $0x3f0] ss:$8 sps:$4 sm:$0xff]  }
 0x109   :  { %v225_v43 = vpack.c.bf16 %v219_v40, %v215_v32  ;;  %v335_v44 = vpack.c.bf16 %v329_v41, %v325_v33  ;;  %827 = vmatpush1.bf16.msra.mxu0 %v11470_v45  ;;  %1069 = vmatpush1.bf16.msra.mxu1 %v10569_v31  ;;  %v10634_v31 = vld [vmem:[%s15796_s27 + $0x2a4] ss:$8 sps:$4 sm:$0xff]   ;;  %v10632_v33 = vld [vmem:[%s15796_s27 + $0x2a0] ss:$8 sps:$4 sm:$0xff]   ;;  %v10638_v37 = vld [vmem:[%s15796_s27 + $0x290] ss:$8 sps:$4 sm:$0xff]  }
 0x10a   :  { %828 = vmatprep.subr.bf16.mxu0 %v11471_v48  ;;  %1070 = vmatprep.subr.bf16.mxu1 %v10574_v34  ;;  %v10637_v32 = vld [vmem:[%s15796_s27 + $0x3e4] ss:$8 sps:$4 sm:$0xff]   ;;  %v10635_v34 = vld [vmem:[%s15796_s27 + $0x3e0] ss:$8 sps:$4 sm:$0xff]  }
 0x10b   :  { %571 = vmatprep.mubr.bf16.mxu0 %v335_v44  ;;  %784 = vmatprep.mubr.bf16.mxu1 %v225_v43  ;;  %v10649_v40 = vld [vmem:[%s15796_s27 + $0x3c4] ss:$8 sps:$4 sm:$0xff]   ;;  %v10644_v41 = vld [vmem:[%s15796_s27 + $0x280] ss:$8 sps:$4 sm:$0xff]   ;;  %v10652_v43 = vld [vmem:[%s15796_s27 + $0x3b4] ss:$8 sps:$4 sm:$0xff]  }
 0x10c   :  { %572 = vmatmul.mubr.bf16.gmra.mxu0 %v334_v47  ;;  %785 = vmatmul.mubr.bf16.gmra.mxu1 %v224_v39  ;;  %v10646_v39 = vld [vmem:[%s15796_s27 + $0x284] ss:$8 sps:$4 sm:$0xff]   ;;  %v12107_v44 = vld [vmem:[%s15795_s2 + $0x74] ss:$8 sps:$4 sm:$0xff]   ;;  %v10656_v47 = vld [vmem:[%s15796_s27 + $0x3a0] ss:$8 sps:$4 sm:$0xff]  }
 0x10d   :  { %829 = vmatpush1.bf16.msra.mxu0 %v11472_v50  ;;  %848 = vmatprep.mubr.bf16.mxu0 %v15510_v0 }
 0x10e   :  { %830 = vmatprep.subr.bf16.mxu0 %v11473_v52  ;;  %1071 = vmatpush1.bf16.msra.mxu1 %v10572_v42  ;;  %v10647_v42 = vld [vmem:[%s15796_s27 + $0x3c0] ss:$8 sps:$4 sm:$0xff]  }
 0x10f   :  { %1072 = vmatprep.subr.bf16.mxu1 %v10577_v46  ;;  %v10658_v46 = vld [vmem:[%s15796_s27 + $0x3a4] ss:$8 sps:$4 sm:$0xff]  }
 0x111   :  { %831 = vmatpush1.bf16.msra.mxu0 %v11474_v55 }
 0x112   :  { %1156 = vmatprep.subr.bf16.mxu0 %v11475_v57  ;;  %1073 = vmatpush1.bf16.msra.mxu1 %v10575_v49  ;;  %v10662_v49 = vld [vmem:[%s15796_s27 + $0x390] ss:$8 sps:$4 sm:$0xff]  }
 0x113   :  { %1074 = vmatprep.subr.bf16.mxu1 %v10580_v51  ;;  %v10668_v51 = vld [vmem:[%s15796_s27 + $0x380] ss:$8 sps:$4 sm:$0xff]  }
 0x114   :  { %9229 = vmatmul.mubr.msk.bf16.vlgmr.msra.gmra.mxu0 %vm162_vm0, %v10562_v53 }
 0x115   :  { %1157 = vmatpush1.bf16.msra.mxu0 %v11468_v35  ;;  %858 = vmatprep.mubr.bf16.mxu0 %v15510_v0  ;;  %v10640_v35 = vld [vmem:[%s15796_s27 + $0x294] ss:$8 sps:$4 sm:$0xff]  }
 0x116   :  { %1158 = vmatprep.subr.bf16.mxu0 %v11469_v38  ;;  %1075 = vmatpush1.bf16.msra.mxu1 %v10578_v54  ;;  %v10641_v38 = vld [vmem:[%s15796_s27 + $0x3d0] ss:$8 sps:$4 sm:$0xff]  }
 0x117   :  { %1076 = vmatprep.subr.bf16.mxu1 %v10586_v56 }
 0x119   :  { %1159 = vmatpush1.bf16.msra.mxu0 %v11470_v45  ;;  %v10650_v45 = vld [vmem:[%s15796_s27 + $0x3b0] ss:$8 sps:$4 sm:$0xff]  }
 0x11a   :  { %1160 = vmatprep.subr.bf16.mxu0 %v11471_v48  ;;  %1077 = vmatpush1.bf16.msra.mxu1 %v10584_v58  ;;  %v10664_v48 = vld [vmem:[%s15796_s27 + $0x394] ss:$8 sps:$4 sm:$0xff]  }
 0x11b   :  { %1078 = vmatprep.subr.bf16.mxu1 %v10592_v59 }
 0x11c   :  { %9230 = vmatmul.mubr.msk.bf16.gmra.mxu0 %vm162_vm0, %v10563_v60 }
 0x11d   :  { %1161 = vmatpush1.bf16.msra.mxu0 %v11472_v50  ;;  %1180 = vmatprep.mubr.bf16.mxu0 %v15510_v0  ;;  %v10670_v50 = vld [vmem:[%s15796_s27 + $0x384] ss:$8 sps:$4 sm:$0xff]  }
 0x11e   :  { %1162 = vmatprep.subr.bf16.mxu0 %v11473_v52  ;;  %1079 = vmatpush1.bf16.msra.mxu1 %v10590_v61  ;;  %v10695_v52 = vld [vmem:[%s15796_s27 + $0x174] ss:$8 sps:$4 sm:$0xff]  }
 0x11f   :  { %1080 = vmatprep.subr.bf16.mxu1 %v10598_v62 }
 0x121   :  { %1163 = vmatpush1.bf16.msra.mxu0 %v11474_v55 }
 0x122   :  { %1398 = vmatprep.subr.bf16.mxu0 %v10583_v63  ;;  %1081 = vmatpush1.bf16.msra.mxu1 %v10596_v2 }
 0x123   :  { %1082 = vmatprep.subr.bf16.mxu1 %v10604_v3 }
 0x124   :  { %9301 = vmatmul.mubr.msk.bf16.vlgmr.msra.gmra.mxu0 %vm162_vm0, %v10564_v4 }
 0x125   :  { %1190 = vmatprep.mubr.bf16.mxu0 %v15510_v0  ;;  %1399 = vmatpush1.bf16.msra.mxu0 %v10581_v5 }
 0x126   :  { %1400 = vmatprep.subr.bf16.mxu0 %v10589_v6  ;;  %1083 = vmatpush2.bf16.msra.mxu1 %v10602_v7 }
 0x127   :  { %1084 = vmatprep.subr.bf16.mxu1 %v10610_v8 }
 0x129   :  { %1401 = vmatpush1.bf16.msra.mxu0 %v10587_v9 }
 0x12a   :  { %1402 = vmatprep.subr.bf16.mxu0 %v10595_v10  ;;  %1085 = vmatpush2.bf16.msra.mxu1 %v10608_v11 }
 0x12b   :  { %1086 = vmatprep.subr.bf16.mxu1 %v10616_v20 }
 0x12c   :  { %9302 = vmatmul.mubr.msk.bf16.gmra.mxu0 %vm162_vm0, %v10565_v12 }
 0x12d   :  { %1403 = vmatpush1.bf16.msra.mxu0 %v10593_v13 }
 0x12e   :  { %1404 = vmatprep.subr.bf16.mxu0 %v10601_v14  ;;  %1087 = vmatpush2.bf16.msra.mxu1 %v10614_v22 }
 0x12f   :  { %1088 = vmatprep.subr.bf16.mxu1 %v10622_v24 }
 0x131   :  { %1405 = vmatpush1.bf16.msra.mxu0 %v10599_v15 }
 0x132   :  { %1406 = vmatprep.subr.bf16.mxu0 %v10607_v16  ;;  %1089 = vmatpush2.bf16.msra.mxu1 %v10620_v1  ;;  %v12157_v16 = vld [vmem:[%s15795_s2 + $0x70] ss:$8 sps:$4 sm:$0xff]  }
 0x133   :  { %1090 = vmatprep.subr.bf16.mxu1 %v10628_v27  ;;  %v12180_v1 = vld [vmem:[%s15795_s2 + $0x50] ss:$8 sps:$4 sm:$0xff]  }
 0x135   :  { %1407 = vmatpush1.bf16.msra.mxu0 %v10605_v17 }
 0x136   :  { %1408 = vmatprep.subr.bf16.mxu0 %v10613_v18  ;;  %1091 = vmatpush2.bf16.msra.mxu1 %v10626_v29 }
 0x137   :  { %1092 = vmatprep.subr.bf16.mxu1 %v10634_v31 }
 0x139   :  { %1409 = vmatpush1.bf16.msra.mxu0 %v10611_v19  ;;  %v12162_v19 = vld [vmem:[%s15795_s2 + $0x64] ss:$8 sps:$4 sm:$0xff]  }
 0x13a   :  { %1410 = vmatprep.subr.bf16.mxu0 %v10619_v21  ;;  %1093 = vmatpush2.bf16.msra.mxu1 %v10632_v33  ;;  %v12168_v21 = vld [vmem:[%s15795_s2 + $0x60] ss:$8 sps:$4 sm:$0xff]  }
 0x13b   :  { %1094 = vmatprep.subr.bf16.mxu1 %v10640_v35 }
 0x13d   :  { %1411 = vmatpush1.bf16.msra.mxu0 %v10617_v23  ;;  %v12174_v23 = vld [vmem:[%s15795_s2 + $0x54] ss:$8 sps:$4 sm:$0xff]  }
 0x13e   :  { %1412 = vmatprep.subr.bf16.mxu0 %v10625_v25  ;;  %1095 = vmatpush2.bf16.msra.mxu1 %v10638_v37  ;;  %v10693_v37 = vld [vmem:[%s15796_s27 + $0x170] ss:$8 sps:$4 sm:$0xff]  }
 0x13f   :  { %1096 = vmatprep.subr.bf16.mxu1 %v10646_v39 }
 0x141   :  { %1413 = vmatpush1.bf16.msra.mxu0 %v10623_v26 }
 0x142   :  { %1414 = vmatprep.subr.bf16.mxu0 %v10631_v28  ;;  %1097 = vmatpush2.bf16.msra.mxu1 %v10644_v41  ;;  %v12186_v28 = vld [vmem:[%s15795_s2 + $0x44] ss:$8 sps:$4 sm:$0xff]   ;;  %v10699_v41 = vld [vmem:[%s15796_s27 + $0x160] ss:$8 sps:$4 sm:$0xff]  }
 0x143   :  { %1588 = vmatprep.subr.bf16.mxu1 %v12107_v44 }
 0x145   :  { %1415 = vmatpush2.bf16.msra.mxu0 %v10629_v30  ;;  %v12192_v30 = vld [vmem:[%s15795_s2 + $0x40] ss:$8 sps:$4 sm:$0xff]  }
 0x146   :  { %1416 = vmatprep.subr.bf16.mxu0 %v10637_v32 }
 0x149   :  { %1417 = vmatpush2.bf16.msra.mxu0 %v10635_v34  ;;  %v10674_v34 = vld [vmem:[%s15797_s30] sm:$0xff]  }
 0x14a   :  { %1418 = vmatprep.subr.bf16.mxu0 %v10643_v36 }
 0x14d   :  { %1419 = vmatpush2.bf16.msra.mxu0 %v10641_v38  ;;  %v10701_v38 = vld [vmem:[%s15796_s27 + $0x164] ss:$8 sps:$4 sm:$0xff]  }
 0x14e   :  { %1420 = vmatprep.subr.bf16.mxu0 %v10649_v40 }
 0x151   :  { %1421 = vmatpush2.bf16.msra.mxu0 %v10647_v42  ;;  %v10707_v42 = vld [vmem:[%s15796_s27 + $0x154] ss:$8 sps:$4 sm:$0xff]  }
 0x152   :  { %1422 = vmatprep.subr.bf16.mxu0 %v10652_v43 }
 0x155   :  { %1423 = vmatpush2.bf16.msra.mxu0 %v10650_v45 }
 0x156   :  { %1424 = vmatprep.subr.bf16.mxu0 %v10658_v46  ;;  %v10675_v46 = vld [vmem:[%s15797_s30 + $0x8] sm:$0xff]  }
 0x159   :  { %1425 = vmatpush2.bf16.msra.mxu0 %v10656_v47 }
 0x15a   :  { %1426 = vmatprep.subr.bf16.mxu0 %v10664_v48  ;;  %v10705_v48 = vld [vmem:[%s15796_s27 + $0x150] ss:$8 sps:$4 sm:$0xff]  }
 0x15d   :  { %1427 = vmatpush2.bf16.msra.mxu0 %v10662_v49  ;;  %v10713_v49 = vld [vmem:[%s15796_s27 + $0x144] ss:$8 sps:$4 sm:$0xff]  }
 0x15e   :  { %1428 = vmatprep.subr.bf16.mxu0 %v10670_v50  ;;  %v10680_v50 = vld [vmem:[%s15796_s27 + $0x74] ss:$8 sps:$4 sm:$0xff]  }
 0x161   :  { %1429 = vmatpush2.bf16.msra.mxu0 %v10668_v51  ;;  %v10711_v51 = vld [vmem:[%s15796_s27 + $0x140] ss:$8 sps:$4 sm:$0xff]  }
 0x162   :  { %1938 = vmatprep.subr.bf16.mxu0 %v10695_v52  ;;  %v10719_v52 = vld [vmem:[%s15796_s27 + $0x134] ss:$8 sps:$4 sm:$0xff]  }
 0x1c4   :  { %v563_v53 = vpop.f32.mrf.mxu0  ;;  %v776_v54 = vpop.f32.mrf.mxu1 }
 0x1c5   :  { %v12134_v55 = vadd.f32 %v776_v54, %v563_v53  ;;  %v10676_v53 = vld [vmem:[%s15797_s30 + $0x10] sm:$0xff]  }
 0x1c6   :  { %v12136_v56 = vpop.f32.mrf.mxu0  ;;  %v12138_v57 = vpop.f32.mrf.mxu1  ;;  %v10678_v54 = vld [vmem:[%s15796_s27 + $0x70] ss:$8 sps:$4 sm:$0xff]  }
 0x1c8   :  { %v567_v58 = vpop.f32.mrf.mxu0  ;;  %v780_v59 = vpop.f32.mrf.mxu1 }
 0x1c9   :  { %v12140_v60 = vadd.f32 %v780_v59, %v567_v58  ;;  %v10683_v58 = vld [vmem:[%s15796_s27 + $0x64] ss:$8 sps:$4 sm:$0xff]   ;;  %v10717_v59 = vld [vmem:[%s15796_s27 + $0x130] ss:$8 sps:$4 sm:$0xff]  }
 0x1ca   :  { %v569_v61 = vpop.f32.mrf.mxu0  ;;  %v782_v62 = vpop.f32.mrf.mxu1 }
 0x1cb   :  { %v12142_v63 = vadd.f32 %v782_v62, %v569_v61  ;;  %v10725_v61 = vld [vmem:[%s15796_s27 + $0x124] ss:$8 sps:$4 sm:$0xff]   ;;  %v10681_v62 = vld [vmem:[%s15796_s27 + $0x60] ss:$8 sps:$4 sm:$0xff]  }
 0x1cc   :  { %v573_v2 = vpop.f32.mrf.mxu0  ;;  %v786_v3 = vpop.f32.mrf.mxu1 }
 0x1cd   :  { %v12144_v4 = vadd.f32 %v786_v3, %v573_v2  ;;  %v10686_v2 = vld [vmem:[%s15796_s27 + $0x54] ss:$8 sps:$4 sm:$0xff]   ;;  %v10723_v3 = vld [vmem:[%s15796_s27 + $0x120] ss:$8 sps:$4 sm:$0xff]  }
 0x1ce   :  { %v12146_v5 = vpop.f32.mrf.mxu0  ;;  %v12148_v6 = vpop.f32.mrf.mxu1 }
 0x1d0   :  { %v577_v7 = vpop.f32.mrf.mxu0  ;;  %v790_v8 = vpop.f32.mrf.mxu1 }
 0x1d1   :  { %v12150_v9 = vadd.f32 %v790_v8, %v577_v7  ;;  %v10677_v7 = vld [vmem:[%s15797_s30 + $0x18] sm:$0xff]  }
 0x1d2   :  { %v12152_v10 = vpop.f32.mrf.mxu0  ;;  %v10684_v8 = vld [vmem:[%s15796_s27 + $0x50] ss:$8 sps:$4 sm:$0xff]  }
 0x1d4   :  { %v850_v11 = vpop.f32.mrf.mxu0 }
 0x1d6   :  { %v852_v12 = vpop.f32.mrf.mxu0 }
 0x1d8   :  { %v854_v13 = vpop.f32.mrf.mxu0 }
 0x1d9   :  { %v869_v17 = vpack.c.bf16 %v854_v13, %v850_v11  ;;  %v10689_v11 = vld [vmem:[%s15796_s27 + $0x44] ss:$8 sps:$4 sm:$0xff]   ;;  %v10692_v13 = vld [vmem:[%s15796_s27 + $0x34] ss:$8 sps:$4 sm:$0xff]  }
 0x1da   :  { %v856_v14 = vpop.f32.mrf.mxu0 }
 0x1db   :  { %v870_v15 = vpack.c.bf16 %v856_v14, %v852_v12  ;;  %v10687_v12 = vld [vmem:[%s15796_s27 + $0x40] ss:$8 sps:$4 sm:$0xff]   ;;  %v10690_v14 = vld [vmem:[%s15796_s27 + $0x30] ss:$8 sps:$4 sm:$0xff]  }
 0x1dc   :  { %v860_v18 = vpop.f32.mrf.mxu0 }
 0x1dd   :  { %1098 = vmatprep.mubr.bf16.mxu1 %v870_v15  ;;  %v10698_v15 = vld [vmem:[%s15796_s27 + $0x24] ss:$8 sps:$4 sm:$0xff]  }
 0x1de   :  { %v862_v20 = vpop.f32.mrf.mxu0  ;;  %1099 = vmatmul.mubr.bf16.vlgmr.msra.gmra.mxu1 %v869_v17  ;;  %v10696_v17 = vld [vmem:[%s15796_s27 + $0x20] ss:$8 sps:$4 sm:$0xff]  }
 0x1df   :  { %1589 = vmatpush1.bf16.msra.mxu1 %v12157_v16 }
 0x1e0   :  { %v864_v22 = vpop.f32.mrf.mxu0  ;;  %1590 = vmatprep.subr.bf16.mxu1 %v12162_v19 }
 0x1e1   :  { %v871_v26 = vpack.c.bf16 %v864_v22, %v860_v18  ;;  %v10704_v18 = vld [vmem:[%s15796_s27 + $0x14] ss:$8 sps:$4 sm:$0xff]   ;;  %v10710_v22 = vld [vmem:[%s15796_s27 + $0x4] ss:$8 sps:$4 sm:$0xff]  }
 0x1e2   :  { %v866_v24 = vpop.f32.mrf.mxu0 }
 0x1e3   :  { %v872_v25 = vpack.c.bf16 %v866_v24, %v862_v20  ;;  %1591 = vmatpush1.bf16.msra.mxu1 %v12168_v21  ;;  %v10702_v20 = vld [vmem:[%s15796_s27 + $0x10] ss:$8 sps:$4 sm:$0xff]   ;;  %v10708_v24 = vld [vmem:[%s15796_s27] ss:$8 sps:$4 sm:$0xff]  }
 0x1e4   :  { %v1182_v27 = vpop.f32.mrf.mxu0  ;;  %1592 = vmatprep.subr.bf16.mxu1 %v12174_v23 }
 0x1e5   :  { %1108 = vmatprep.mubr.bf16.mxu1 %v872_v25  ;;  %v10716_v25 = vld [vmem:[%s15796_s27 + $0xf4] ss:$8 sps:$4 sm:$0xff]  }
 0x1e6   :  { %1109 = vmatmul.mubr.bf16.gmra.mxu1 %v871_v26  ;;  %v1184_v29 = vpop.f32.mrf.mxu0  ;;  %v10714_v26 = vld [vmem:[%s15796_s27 + $0xf0] ss:$8 sps:$4 sm:$0xff]  }
 0x1e7   :  { %1593 = vmatpush1.bf16.msra.mxu1 %v12180_v1  ;;  %1612 = vmatprep.mubr.bf16.mxu1 %v15510_v0 }
 0x1e8   :  { %v1186_v31 = vpop.f32.mrf.mxu0  ;;  %1594 = vmatprep.subr.bf16.mxu1 %v12186_v28 }
 0x1e9   :  { %v1201_v32 = vpack.c.bf16 %v1186_v31, %v1182_v27  ;;  %v10722_v27 = vld [vmem:[%s15796_s27 + $0xe4] ss:$8 sps:$4 sm:$0xff]   ;;  %v10720_v31 = vld [vmem:[%s15796_s27 + $0xe0] ss:$8 sps:$4 sm:$0xff]  }
 0x1ea   :  { %v1188_v33 = vpop.f32.mrf.mxu0 }
 0x1eb   :  { %v1202_v35 = vpack.c.bf16 %v1188_v33, %v1184_v29  ;;  %1595 = vmatpush1.bf16.msra.mxu1 %v12192_v30  ;;  %v10731_v29 = vld [vmem:[%s15796_s27 + $0x114] ss:$8 sps:$4 sm:$0xff]  }
 0x1ec   :  { %v1192_v36 = vpop.f32.mrf.mxu0  ;;  %1697 = vmatprep.subr.bf16.mxu1 %v12107_v44  ;;  %v10728_v33 = vld [vmem:[%s15796_s27 + $0xd4] ss:$8 sps:$4 sm:$0xff]  }
 0x1ed   :  { %1430 = vmatprep.mubr.bf16.mxu0 %v1202_v35  ;;  %v10726_v35 = vld [vmem:[%s15796_s27 + $0xd0] ss:$8 sps:$4 sm:$0xff]  }
 0x1ee   :  { %v1194_v39 = vpop.f32.mrf.mxu0  ;;  %1431 = vmatmul.mubr.bf16.vlgmr.msra.gmra.mxu0 %v1201_v32  ;;  %9389 = vmatmul.mubr.msk.bf16.vlgmr.msra.gmra.mxu1 %vm162_vm0, %v10674_v34  ;;  %v10729_v32 = vld [vmem:[%s15796_s27 + $0x110] ss:$8 sps:$4 sm:$0xff]   ;;  %v10737_v34 = vld [vmem:[%s15796_s27 + $0x104] ss:$8 sps:$4 sm:$0xff]  }
 0x1ef   :  { %1698 = vmatpush1.bf16.msra.mxu1 %v12157_v16  ;;  %1622 = vmatprep.mubr.bf16.mxu1 %v15510_v0 }
 0x1f0   :  { %v1196_v40 = vpop.f32.mrf.mxu0  ;;  %1699 = vmatprep.subr.bf16.mxu1 %v12162_v19  ;;  %1939 = vmatpush1.bf16.msra.mxu0 %v10693_v37  ;;  %v10734_v37 = vld [vmem:[%s15796_s27 + $0xc4] ss:$8 sps:$4 sm:$0xff]  }
 0x1f1   :  { %1940 = vmatprep.subr.bf16.mxu0 %v10701_v38  ;;  %v1203_v43 = vpack.c.bf16 %v1196_v40, %v1192_v36  ;;  %v10735_v36 = vld [vmem:[%s15796_s27 + $0x100] ss:$8 sps:$4 sm:$0xff]   ;;  %v10743_v38 = vld [vmem:[%s15796_s27 + $0x1f4] ss:$8 sps:$4 sm:$0xff]   ;;  %v10741_v40 = vld [vmem:[%s15796_s27 + $0x1f0] ss:$8 sps:$4 sm:$0xff]  }
 0x1f2   :  { %v1198_v45 = vpop.f32.mrf.mxu0 }
 0x1f3   :  { %v1204_v47 = vpack.c.bf16 %v1198_v45, %v1194_v39  ;;  %1700 = vmatpush1.bf16.msra.mxu1 %v12168_v21  ;;  %v10732_v39 = vld [vmem:[%s15796_s27 + $0xc0] ss:$8 sps:$4 sm:$0xff]  }
 0x1f4   :  { %1701 = vmatprep.subr.bf16.mxu1 %v12174_v23  ;;  %1941 = vmatpush1.bf16.msra.mxu0 %v10699_v41  ;;  %v10740_v41 = vld [vmem:[%s15796_s27 + $0xb4] ss:$8 sps:$4 sm:$0xff]   ;;  %v10747_v45 = vld [vmem:[%s15796_s27 + $0x1e0] ss:$8 sps:$4 sm:$0xff]  }
 0x1f5   :  { %1440 = vmatprep.mubr.bf16.mxu0 %v1204_v47  ;;  %1942 = vmatprep.subr.bf16.mxu0 %v10707_v42  ;;  %v10749_v42 = vld [vmem:[%s15796_s27 + $0x1e4] ss:$8 sps:$4 sm:$0xff]   ;;  %v10755_v47 = vld [vmem:[%s15796_s27 + $0x1d4] ss:$8 sps:$4 sm:$0xff]  }
 0x1f6   :  { %1441 = vmatmul.mubr.bf16.gmra.mxu0 %v1203_v43  ;;  %9390 = vmatmul.mubr.msk.bf16.gmra.mxu1 %vm162_vm0, %v10675_v46  ;;  %v10738_v43 = vld [vmem:[%s15796_s27 + $0xb0] ss:$8 sps:$4 sm:$0xff]   ;;  %v10746_v46 = vld [vmem:[%s15796_s27 + $0xa4] ss:$8 sps:$4 sm:$0xff]  }
 0x1f7   :  { %1702 = vmatpush1.bf16.msra.mxu1 %v12180_v1  ;;  %1721 = vmatprep.mubr.bf16.mxu1 %v15510_v0 }
 0x1f8   :  { %1703 = vmatprep.subr.bf16.mxu1 %v12186_v28  ;;  %1943 = vmatpush1.bf16.msra.mxu0 %v10705_v48  ;;  %v10744_v48 = vld [vmem:[%s15796_s27 + $0xa0] ss:$8 sps:$4 sm:$0xff]  }
 0x1f9   :  { %1944 = vmatprep.subr.bf16.mxu0 %v10713_v49  ;;  %v10753_v49 = vld [vmem:[%s15796_s27 + $0x1d0] ss:$8 sps:$4 sm:$0xff]  }
 0x1fb   :  { %1704 = vmatpush1.bf16.msra.mxu1 %v12192_v30 }
 0x1fc   :  { %2151 = vmatprep.subr.bf16.mxu1 %v10680_v50  ;;  %1945 = vmatpush1.bf16.msra.mxu0 %v10711_v51  ;;  %v10752_v50 = vld [vmem:[%s15796_s27 + $0x94] ss:$8 sps:$4 sm:$0xff]   ;;  %v10750_v51 = vld [vmem:[%s15796_s27 + $0x90] ss:$8 sps:$4 sm:$0xff]  }
 0x1fd   :  { %1946 = vmatprep.subr.bf16.mxu0 %v10719_v52  ;;  %v10761_v52 = vld [vmem:[%s15796_s27 + $0x1c4] ss:$8 sps:$4 sm:$0xff]  }
 0x1fe   :  { %9397 = vmatmul.mubr.msk.bf16.vlgmr.msra.gmra.mxu1 %vm162_vm0, %v10676_v53  ;;  %v10758_v53 = vld [vmem:[%s15796_s27 + $0x84] ss:$8 sps:$4 sm:$0xff]  }
 0x1ff   :  { %1731 = vmatprep.mubr.bf16.mxu1 %v15510_v0  ;;  %2152 = vmatpush1.bf16.msra.mxu1 %v10678_v54  ;;  %v10759_v54 = vld [vmem:[%s15796_s27 + $0x1c0] ss:$8 sps:$4 sm:$0xff]  }
 0x200   :  { %2153 = vmatprep.subr.bf16.mxu1 %v10683_v58  ;;  %1947 = vmatpush1.bf16.msra.mxu0 %v10717_v59  ;;  %v10756_v58 = vld [vmem:[%s15796_s27 + $0x80] ss:$8 sps:$4 sm:$0xff]   ;;  %v10767_v59 = vld [vmem:[%s15796_s27 + $0x1b4] ss:$8 sps:$4 sm:$0xff]  }
 0x201   :  { %1948 = vmatprep.subr.bf16.mxu0 %v10725_v61  ;;  %v10764_v61 = vld [vmem:[%s15796_s27 + $0x274] ss:$8 sps:$4 sm:$0xff]  }
 0x203   :  { %2154 = vmatpush1.bf16.msra.mxu1 %v10681_v62  ;;  %v10765_v62 = vld [vmem:[%s15796_s27 + $0x1b0] ss:$8 sps:$4 sm:$0xff]  }
 0x204   :  { %2155 = vmatprep.subr.bf16.mxu1 %v10686_v2  ;;  %1949 = vmatpush1.bf16.msra.mxu0 %v10723_v3  ;;  %v10773_v2 = vld [vmem:[%s15796_s27 + $0x1a4] ss:$8 sps:$4 sm:$0xff]   ;;  %v10771_v3 = vld [vmem:[%s15796_s27 + $0x1a0] ss:$8 sps:$4 sm:$0xff]  }
 0x205   :  { %1950 = vmatprep.subr.bf16.mxu0 %v10731_v29 }
 0x206   :  { %9398 = vmatmul.mubr.msk.bf16.gmra.mxu1 %vm162_vm0, %v10677_v7  ;;  %v10779_v7 = vld [vmem:[%s15796_s27 + $0x194] ss:$8 sps:$4 sm:$0xff]  }
 0x207   :  { %2156 = vmatpush1.bf16.msra.mxu1 %v10684_v8  ;;  %v10777_v8 = vld [vmem:[%s15796_s27 + $0x190] ss:$8 sps:$4 sm:$0xff]  }
 0x208   :  { %2157 = vmatprep.subr.bf16.mxu1 %v10689_v11  ;;  %1951 = vmatpush1.bf16.msra.mxu0 %v10729_v32  ;;  %v10785_v11 = vld [vmem:[%s15796_s27 + $0x184] ss:$8 sps:$4 sm:$0xff]   ;;  %v779_v32 = vadd.f32 %v12138_v57, %v12136_v56 }
 0x209   :  { %1952 = vmatprep.subr.bf16.mxu0 %v10737_v34 }
 0x20b   :  { %2158 = vmatpush1.bf16.msra.mxu1 %v10687_v12  ;;  %v10783_v12 = vld [vmem:[%s15796_s27 + $0x180] ss:$8 sps:$4 sm:$0xff]  }
 0x20c   :  { %2159 = vmatprep.subr.bf16.mxu1 %v10692_v13  ;;  %1953 = vmatpush1.bf16.msra.mxu0 %v10735_v36  ;;  %v12417_v13 = vpop.f32.mrf.mxu1 }
 0x20d   :  { %1954 = vmatprep.subr.bf16.mxu0 %v10743_v38 }
 0x20f   :  { %2160 = vmatpush1.bf16.msra.mxu1 %v10690_v14 }
 0x210   :  { %2161 = vmatprep.subr.bf16.mxu1 %v10698_v15  ;;  %1955 = vmatpush2.bf16.msra.mxu0 %v10741_v40 }
 0x211   :  { %1956 = vmatprep.subr.bf16.mxu0 %v10749_v42 }
 0x213   :  { %2162 = vmatpush1.bf16.msra.mxu1 %v10696_v17 }
 0x214   :  { %2163 = vmatprep.subr.bf16.mxu1 %v10704_v18  ;;  %1957 = vmatpush2.bf16.msra.mxu0 %v10747_v45 }
 0x215   :  { %1958 = vmatprep.subr.bf16.mxu0 %v10755_v47 }
 0x217   :  { %2164 = vmatpush1.bf16.msra.mxu1 %v10702_v20 }
 0x218   :  { %2165 = vmatprep.subr.bf16.mxu1 %v10710_v22  ;;  %1959 = vmatpush2.bf16.msra.mxu0 %v10753_v49 }
 0x219   :  { %1960 = vmatprep.subr.bf16.mxu0 %v10761_v52 }
 0x21b   :  { %2166 = vmatpush1.bf16.msra.mxu1 %v10708_v24 }
 0x21c   :  { %2167 = vmatprep.subr.bf16.mxu1 %v10716_v25  ;;  %1961 = vmatpush2.bf16.msra.mxu0 %v10759_v54 }
 0x21d   :  { %1962 = vmatprep.subr.bf16.mxu0 %v10767_v59 }
 0x21f   :  { %2168 = vmatpush2.bf16.msra.mxu1 %v10714_v26 }
 0x220   :  { %2169 = vmatprep.subr.bf16.mxu1 %v10722_v27  ;;  %1963 = vmatpush2.bf16.msra.mxu0 %v10765_v62 }
 0x221   :  { %1964 = vmatprep.subr.bf16.mxu0 %v10773_v2 }
 0x223   :  { %2170 = vmatpush2.bf16.msra.mxu1 %v10720_v31 }
 0x224   :  { %2171 = vmatprep.subr.bf16.mxu1 %v10728_v33  ;;  %1965 = vmatpush2.bf16.msra.mxu0 %v10771_v3 }
 0x225   :  { %1966 = vmatprep.subr.bf16.mxu0 %v10779_v7 }
 0x227   :  { %2172 = vmatpush2.bf16.msra.mxu1 %v10726_v35 }
 0x228   :  { %2173 = vmatprep.subr.bf16.mxu1 %v10734_v37  ;;  %1967 = vmatpush2.bf16.msra.mxu0 %v10777_v8  ;;  %v10768_v8 = vld [vmem:[%s15796_s27 + $0x260] ss:$8 sps:$4 sm:$0xff]  }
 0x229   :  { %1968 = vmatprep.subr.bf16.mxu0 %v10785_v11 }
 0x22b   :  { %2174 = vmatpush2.bf16.msra.mxu1 %v10732_v39 }
 0x22c   :  { %2175 = vmatprep.subr.bf16.mxu1 %v10740_v41  ;;  %1969 = vmatpush2.bf16.msra.mxu0 %v10783_v12 }
 0x22d   :  { %2232 = vmatprep.subr.bf16.mxu0 %v12107_v44 }
 0x22f   :  { %2176 = vmatpush2.bf16.msra.mxu1 %v10738_v43 }
 0x230   :  { %2177 = vmatprep.subr.bf16.mxu1 %v10746_v46 }
 0x233   :  { %2178 = vmatpush2.bf16.msra.mxu1 %v10744_v48 }
 0x234   :  { %2179 = vmatprep.subr.bf16.mxu1 %v10752_v50  ;;  %v10762_v50 = vld [vmem:[%s15796_s27 + $0x270] ss:$8 sps:$4 sm:$0xff]  }
 0x237   :  { %2180 = vmatpush2.bf16.msra.mxu1 %v10750_v51 }
 0x238   :  { %2181 = vmatprep.subr.bf16.mxu1 %v10758_v53  ;;  %v10770_v53 = vld [vmem:[%s15796_s27 + $0x264] ss:$8 sps:$4 sm:$0xff]  }
 0x23b   :  { %2182 = vmatpush2.bf16.msra.mxu1 %v10756_v58 }
 0x23c   :  { %2473 = vmatprep.subr.bf16.mxu1 %v10764_v61 }
 0x29e   :  { %v1100_v14 = vpop.f32.mrf.mxu1 }
 0x29f   :  { %v1119_v15 = vadd.f32 %v1100_v14, %v12134_v55  ;;  %v10776_v14 = vld [vmem:[%s15796_s27 + $0x254] ss:$8 sps:$4 sm:$0xff]  }
 0x2a0   :  { %v1102_v17 = vpop.f32.mrf.mxu1 }
 0x2a1   :  { %v1120_v34 = vadd.f32 %v1102_v17, %v779_v32 }
 0x2a2   :  { %v1104_v18 = vpop.f32.mrf.mxu1 }
 0x2a3   :  { %v1121_v20 = vadd.f32 %v1104_v18, %v12140_v60 }
 0x2a4   :  { %v1106_v22 = vpop.f32.mrf.mxu1 }
 0x2a5   :  { %v1122_v40 = vadd.f32 %v1106_v22, %v12142_v63  ;;  %v10774_v22 = vld [vmem:[%s15796_s27 + $0x250] ss:$8 sps:$4 sm:$0xff]  }
 0x2a6   :  { %v1110_v24 = vpop.f32.mrf.mxu1 }
 0x2a7   :  { %v1123_v25 = vadd.f32 %v1110_v24, %v12144_v4 }
 0x2a8   :  { %v12422_v26 = vpop.f32.mrf.mxu1 }
 0x2aa   :  { %v1114_v27 = vpop.f32.mrf.mxu1 }
 0x2ab   :  { %v1125_v29 = vadd.f32 %v1114_v27, %v12150_v9 }
 0x2ac   :  { %v12425_v31 = vpop.f32.mrf.mxu1 }
 0x2ae   :  { %v1432_v33 = vpop.f32.mrf.mxu0  ;;  %v1614_v55 = vpop.f32.mrf.mxu1 }
 0x2af   :  { %v1451_v35 = vadd.f32 %v1432_v33, %v1119_v15 }
 0x2b0   :  { %v1434_v36 = vpop.f32.mrf.mxu0  ;;  %v1616_v60 = vpop.f32.mrf.mxu1 }
 0x2b1   :  { %v1452_v37 = vadd.f32 %v1434_v36, %v1120_v34  ;;  %v1467_v38 = vmul.f32 0.2, %v1451_v35  ;;  %vm1459_vm1 = vcmp.gt.f32.partialorder %v1451_v35, 0.0  ;;  %v10780_v34 = vld [vmem:[%s15796_s27 + $0x240] ss:$8 sps:$4 sm:$0xff]  }
 0x2b2   :  { %v1436_v39 = vpop.f32.mrf.mxu0  ;;  %v1618_v4 = vpop.f32.mrf.mxu1 }
 0x2b3   :  { %v1453_v41 = vadd.f32 %v1436_v39, %v1121_v20  ;;  %v1468_v43 = vmul.f32 0.2, %v1452_v37  ;;  %v1475_v57 = vsel %vm1459_vm1, %v1451_v35, %v1467_v38  ;;  %vm1460_vm3 = vcmp.gt.f32.partialorder %v1452_v37, 0.0  ;;  %v10788_v35 = vld [vmem:[%s15796_s27 + $0x234] ss:$8 sps:$4 sm:$0xff]  }
 0x2b4   :  { %v1438_v9 = vpop.f32.mrf.mxu0  ;;  %v1620_v42 = vpop.f32.mrf.mxu1  ;;  %v1633_v46 = vpack.c.bf16 %v1618_v4, %v1614_v55  ;;  %v10786_v39 = vld [vmem:[%s15796_s27 + $0x230] ss:$8 sps:$4 sm:$0xff]   ;;  %v10791_v4 = vld [vmem:[%s15796_s27 + $0x224] ss:$8 sps:$4 sm:$0xff]  }
 0x2b5   :  { %vm1461_vm2 = vcmp.gt.f32.partialorder %v1453_v41, 0.0  ;;  %v1469_v45 = vmul.f32 0.2, %v1453_v41  ;;  %v1454_v56 = vadd.f32 %v1438_v9, %v1122_v40  ;;  %v1634_v47 = vpack.c.bf16 %v1620_v42, %v1616_v60  ;;  %v10789_v9 = vld [vmem:[%s15796_s27 + $0x220] ss:$8 sps:$4 sm:$0xff]  }
 0x2b6   :  { %v1442_v48 = vpop.f32.mrf.mxu0  ;;  %v1624_v49 = vpop.f32.mrf.mxu1  ;;  %v1476_v61 = vsel %vm1460_vm3, %v1452_v37, %v1468_v43  ;;  %v10794_v42 = vld [vmem:[%s15796_s27 + $0x214] ss:$8 sps:$4 sm:$0xff]   ;;  %vm4755_vm3 = vcmask 130048  }
 0x2b7   :  { %v1477_v51 = vsel %vm1461_vm2, %v1453_v41, %v1469_v45  ;;  %vm1462_vm4 = vcmp.gt.f32.partialorder %v1454_v56, 0.0  ;;  %v1470_v63 = vmul.f32 0.2, %v1454_v56  ;;  %v1455_v52 = vadd.f32 %v1442_v48, %v1123_v25  ;;  %2183 = vmatprep.mubr.bf16.mxu1 %v1634_v47  ;;  %v10795_v47 = vld [vmem:[%s15796_s27 + $0x200] ss:$8 sps:$4 sm:$0xff]  }
 0x2b8   :  { %v12436_v54 = vpack.c.bf16 %v1477_v51, %v1475_v57  ;;  %v12438_v58 = vpop.f32.mrf.mxu0  ;;  %v1626_v59 = vpop.f32.mrf.mxu1  ;;  %2184 = vmatmul.mubr.bf16.vlgmr.msra.gmra.mxu1 %v1633_v46  ;;  %v10792_v57 = vld [vmem:[%s15796_s27 + $0x210] ss:$8 sps:$4 sm:$0xff]   ;;  %v10797_v46 = vld [vmem:[%s15796_s27 + $0x204] ss:$8 sps:$4 sm:$0xff]   ;;  %v10800_v48 = vld [vmem:[%s15796_s27 + $0x2f4] ss:$8 sps:$4 sm:$0xff]  }
 0x2b9   :  { %v1478_v62 = vsel %vm1462_vm4, %v1454_v56, %v1470_v63  ;;  %2474 = vmatpush1.bf16.msra.mxu1 %v10762_v50  ;;  %v1471_v11 = vmul.f32 0.2, %v1455_v52  ;;  %vm1463_vm5 = vcmp.gt.f32.partialorder %v1455_v52, 0.0  ;;  %v10798_v50 = vld [vmem:[%s15796_s27 + $0x2f0] ss:$8 sps:$4 sm:$0xff]  }
 0x2ba   :  { %v12440_v2 = vpack.c.bf16 %v1478_v62, %v1476_v61  ;;  %v1446_v3 = vpop.f32.mrf.mxu0  ;;  %v1628_v7 = vpop.f32.mrf.mxu1  ;;  %2475 = vmatprep.subr.bf16.mxu1 %v10770_v53  ;;  %v10804_v51 = vld [vmem:[%s15796_s27 + $0x2e4] ss:$8 sps:$4 sm:$0xff]   ;;  %v10802_v63 = vld [vmem:[%s15796_s27 + $0x2e0] ss:$8 sps:$4 sm:$0xff]   ;;  %v10814_v53 = vld [vmem:[%s15796_s27 + $0x2b4] ss:$8 sps:$4 sm:$0xff]  }
 0x2bb   :  { %v1457_v12 = vadd.f32 %v1446_v3, %v1125_v29  ;;  %v1479_v24 = vsel %vm1463_vm5, %v1455_v52, %v1471_v11  ;;  %v1635_v27 = vpack.c.bf16 %v1628_v7, %v1624_v49  ;;  %v10782_v29 = vld [vmem:[%s15796_s27 + $0x244] ss:$8 sps:$4 sm:$0xff]   ;;  %v10812_v61 = vld [vmem:[%s15796_s27 + $0x2b0] ss:$8 sps:$4 sm:$0xff]   ;;  %v789_v7 = vadd.f32 %v12148_v6, %v12146_v5  ;;  %v10821_v5 = vld [vmem:[%s15796_s27 + $0x294] ss:$8 sps:$4 sm:$0xff]  }
 0x2bc   :  { %v1630_v15 = vpop.f32.mrf.mxu1  ;;  %v10801_v49 = vld [vmem:[%s15797_s30 + $0x20] sm:$0xff]   ;;  %v10808_v52 = vld [vmem:[%s15797_s30 + $0x28] sm:$0xff]   ;;  %v1448_v3 = vpop.f32.mrf.mxu0 }
 0x2bd   :  { %vm1465_vm6 = vcmp.gt.f32.partialorder %v1457_v12, 0.0  ;;  %v1473_v17 = vmul.f32 0.2, %v1457_v12  ;;  %v1636_v18 = vpack.c.bf16 %v1630_v15, %v1626_v59  ;;  %2476 = vmatpush1.bf16.msra.mxu1 %v10768_v8  ;;  %v10826_v59 = vld [vmem:[%s15796_s27 + $0x370] ss:$8 sps:$4 sm:$0xff]   ;;  %v1124_v8 = vadd.f32 %v12422_v26, %v789_v7 }
 0x2be   :  { %v1723_v20 = vpop.f32.mrf.mxu1  ;;  %2477 = vmatprep.subr.bf16.mxu1 %v10776_v14  ;;  %v10831_v62 = vld [vmem:[%s15796_s27 + $0x364] ss:$8 sps:$4 sm:$0xff]   ;;  %v10819_v14 = vld [vmem:[%s15796_s27 + $0x290] ss:$8 sps:$4 sm:$0xff]  }
 0x2bf   :  { %v1481_v25 = vsel %vm1465_vm6, %v1457_v12, %v1473_v17  ;;  %2193 = vmatprep.mubr.bf16.mxu1 %v1636_v18  ;;  %v10816_v12 = vld [vmem:[%s15796_s27 + $0x2a0] ss:$8 sps:$4 sm:$0xff]   ;;  %v1456_v6 = vadd.f32 %v12438_v58, %v1124_v8  ;;  %v10825_v15 = vld [vmem:[%s15796_s27 + $0x284] ss:$8 sps:$4 sm:$0xff]  }
 0x2c0   :  { %v12454_v32 = vpack.c.bf16 %v1481_v25, %v1479_v24  ;;  %v1725_v33 = vpop.f32.mrf.mxu1  ;;  %2194 = vmatmul.mubr.bf16.gmra.mxu1 %v1635_v27  ;;  %v10823_v18 = vld [vmem:[%s15796_s27 + $0x280] ss:$8 sps:$4 sm:$0xff]   ;;  %v10834_v24 = vld [vmem:[%s15796_s27 + $0x354] ss:$8 sps:$4 sm:$0xff]   ;;  %v10832_v25 = vld [vmem:[%s15796_s27 + $0x350] ss:$8 sps:$4 sm:$0xff]  }
 0x2c1   :  { %2478 = vmatpush1.bf16.msra.mxu1 %v10774_v22  ;;  %v1472_v17 = vmul.f32 0.2, %v1456_v6  ;;  %vm1464_vm8 = vcmp.gt.f32.partialorder %v1456_v6, 0.0  ;;  %v10837_v27 = vld [vmem:[%s15796_s27 + $0x344] ss:$8 sps:$4 sm:$0xff]  }
 0x2c2   :  { %v1727_v55 = vpop.f32.mrf.mxu1  ;;  %2479 = vmatprep.subr.bf16.mxu1 %v10782_v29  ;;  %v10835_v29 = vld [vmem:[%s15796_s27 + $0x340] ss:$8 sps:$4 sm:$0xff]  }
 0x2c3   :  { %v1742_v37 = vpack.c.bf16 %v1727_v55, %v1723_v20  ;;  %v1480_v20 = vsel %vm1464_vm8, %v1456_v6, %v1472_v17  ;;  %v10838_v55 = vld [vmem:[%s15796_s27 + $0x330] ss:$8 sps:$4 sm:$0xff]  }
 0x2c4   :  { %v1729_v36 = vpop.f32.mrf.mxu1 }
 0x2c5   :  { %v1743_v60 = vpack.c.bf16 %v1729_v36, %v1725_v33  ;;  %2480 = vmatpush1.bf16.msra.mxu1 %v10780_v34  ;;  %v10840_v33 = vld [vmem:[%s15796_s27 + $0x334] ss:$8 sps:$4 sm:$0xff]   ;;  %v10843_v34 = vld [vmem:[%s15796_s27 + $0x324] ss:$8 sps:$4 sm:$0xff]  }
 0x2c6   :  { %v1733_v38 = vpop.f32.mrf.mxu1  ;;  %2481 = vmatprep.subr.bf16.mxu1 %v10788_v35  ;;  %v10841_v35 = vld [vmem:[%s15796_s27 + $0x320] ss:$8 sps:$4 sm:$0xff]   ;;  %v10846_v36 = vld [vmem:[%s15796_s27 + $0x314] ss:$8 sps:$4 sm:$0xff]  }
 0x2c7   :  { %1970 = vmatprep.mubr.bf16.mxu0 %v1743_v60  ;;  %v10844_v60 = vld [vmem:[%s15796_s27 + $0x310] ss:$8 sps:$4 sm:$0xff]  }
 0x2c8   :  { %v1735_v40 = vpop.f32.mrf.mxu1  ;;  %1971 = vmatmul.mubr.bf16.vlgmr.msra.gmra.mxu0 %v1742_v37  ;;  %v10849_v37 = vld [vmem:[%s15796_s27 + $0x304] ss:$8 sps:$4 sm:$0xff]  }
 0x2c9   :  { %2233 = vmatpush1.bf16.msra.mxu0 %v12157_v16  ;;  %2482 = vmatpush1.bf16.msra.mxu1 %v10786_v39  ;;  %v10852_v39 = vld [vmem:[%s15796_s27 + $0x3f4] ss:$8 sps:$4 sm:$0xff]  }
 0x2ca   :  { %v1737_v41 = vpop.f32.mrf.mxu1  ;;  %2234 = vmatprep.subr.bf16.mxu0 %v12162_v19  ;;  %2483 = vmatprep.subr.bf16.mxu1 %v10791_v4  ;;  %v10850_v4 = vld [vmem:[%s15796_s27 + $0x3f0] ss:$8 sps:$4 sm:$0xff]  }
 0x2cb   :  { %v1744_v56 = vpack.c.bf16 %v1737_v41, %v1733_v38  ;;  %v10847_v38 = vld [vmem:[%s15796_s27 + $0x300] ss:$8 sps:$4 sm:$0xff]  }
 0x2cc   :  { %v1739_v43 = vpop.f32.mrf.mxu1  ;;  %v10853_v41 = vld [vmem:[%s15796_s27 + $0x3e0] ss:$8 sps:$4 sm:$0xff]  }
 0x2cd   :  { %v1745_v45 = vpack.c.bf16 %v1739_v43, %v1735_v40  ;;  %2235 = vmatpush1.bf16.msra.mxu0 %v12168_v21  ;;  %2484 = vmatpush1.bf16.msra.mxu1 %v10789_v9  ;;  %v10855_v40 = vld [vmem:[%s15796_s27 + $0x3e4] ss:$8 sps:$4 sm:$0xff]   ;;  %v10856_v9 = vld [vmem:[%s15796_s27 + $0x3d0] ss:$8 sps:$4 sm:$0xff]  }
 0x2ce   :  { %2236 = vmatprep.subr.bf16.mxu0 %v12174_v23  ;;  %2485 = vmatprep.subr.bf16.mxu1 %v10794_v42  ;;  %v10858_v42 = vld [vmem:[%s15796_s27 + $0x3d4] ss:$8 sps:$4 sm:$0xff]   ;;  %v10861_v43 = vld [vmem:[%s15796_s27 + $0x3c4] ss:$8 sps:$4 sm:$0xff]  }
 0x2cf   :  { %1980 = vmatprep.mubr.bf16.mxu0 %v1745_v45  ;;  %v10859_v45 = vld [vmem:[%s15796_s27 + $0x3c0] ss:$8 sps:$4 sm:$0xff]  }
 0x2d0   :  { %1981 = vmatmul.mubr.bf16.gmra.mxu0 %v1744_v56  ;;  %v10862_v56 = vld [vmem:[%s15796_s27 + $0x3b0] ss:$8 sps:$4 sm:$0xff]  }
 0x2d1   :  { %2237 = vmatpush1.bf16.msra.mxu0 %v12180_v1  ;;  %2256 = vmatprep.mubr.bf16.mxu0 %v15510_v0 }
 0x2d2   :  { %2486 = vmatpush1.bf16.msra.mxu1 %v10792_v57  ;;  %2238 = vmatprep.subr.bf16.mxu0 %v12186_v28  ;;  %v10864_v57 = vld [vmem:[%s15796_s27 + $0x3b4] ss:$8 sps:$4 sm:$0xff]  }
 0x2d3   :  { %2487 = vmatprep.subr.bf16.mxu1 %v10797_v46  ;;  %v10867_v46 = vld [vmem:[%s15796_s27 + $0x3a4] ss:$8 sps:$4 sm:$0xff]  }
 0x2d5   :  { %2239 = vmatpush1.bf16.msra.mxu0 %v12192_v30 }
 0x2d6   :  { %2488 = vmatpush1.bf16.msra.mxu1 %v10795_v47  ;;  %2562 = vmatprep.subr.bf16.mxu0 %v12107_v44  ;;  %v10807_v44 = vld [vmem:[%s15796_s27 + $0x2d4] ss:$8 sps:$4 sm:$0xff]   ;;  %v10865_v47 = vld [vmem:[%s15796_s27 + $0x3a0] ss:$8 sps:$4 sm:$0xff]  }
 0x2d7   :  { %2489 = vmatprep.subr.bf16.mxu1 %v10800_v48  ;;  %v10868_v48 = vld [vmem:[%s15796_s27 + $0x390] ss:$8 sps:$4 sm:$0xff]  }
 0x2d8   :  { %9501 = vmatmul.mubr.msk.bf16.vlgmr.msra.gmra.mxu0 %vm162_vm0, %v10801_v49  ;;  %v10870_v49 = vld [vmem:[%s15796_s27 + $0x394] ss:$8 sps:$4 sm:$0xff]  }
 0x2d9   :  { %2563 = vmatpush1.bf16.msra.mxu0 %v12157_v16  ;;  %2266 = vmatprep.mubr.bf16.mxu0 %v15510_v0  ;;  %v10805_v16 = vld [vmem:[%s15796_s27 + $0x2d0] ss:$8 sps:$4 sm:$0xff]  }
 0x2da   :  { %2490 = vmatpush2.bf16.msra.mxu1 %v10798_v50  ;;  %2564 = vmatprep.subr.bf16.mxu0 %v12162_v19  ;;  %v10811_v19 = vld [vmem:[%s15796_s27 + $0x2c4] ss:$8 sps:$4 sm:$0xff]  }
 0x2db   :  { %2491 = vmatprep.subr.bf16.mxu1 %v10804_v51  ;;  %v10873_v50 = vld [vmem:[%s15796_s27 + $0x384] ss:$8 sps:$4 sm:$0xff]   ;;  %v10871_v51 = vld [vmem:[%s15796_s27 + $0x380] ss:$8 sps:$4 sm:$0xff]  }
 0x2dd   :  { %2565 = vmatpush1.bf16.msra.mxu0 %v12168_v21  ;;  %v10809_v21 = vld [vmem:[%s15796_s27 + $0x2c0] ss:$8 sps:$4 sm:$0xff]  }
 0x2de   :  { %2492 = vmatpush2.bf16.msra.mxu1 %v10802_v63  ;;  %2566 = vmatprep.subr.bf16.mxu0 %v12174_v23  ;;  %v10828_v23 = vld [vmem:[%s15796_s27 + $0x374] ss:$8 sps:$4 sm:$0xff]  }
 0x2df   :  { %2493 = vmatprep.subr.bf16.mxu1 %v10807_v44  ;;  %v12675_v63 = vld [vmem:[%s15798_s5 + $0x74] ss:$8 sps:$4 sm:$0xff]  }
 0x2e0   :  { %9502 = vmatmul.mubr.msk.bf16.gmra.mxu0 %vm162_vm0, %v10808_v52 }
 0x2e1   :  { %2567 = vmatpush1.bf16.msra.mxu0 %v12180_v1  ;;  %2586 = vmatprep.mubr.bf16.mxu0 %v15510_v0  ;;  %v10815_v1 = vld [vmem:[%s15797_s30 + $0x30] sm:$0xff]  }
 0x2e2   :  { %2494 = vmatpush2.bf16.msra.mxu1 %v10805_v16  ;;  %2568 = vmatprep.subr.bf16.mxu0 %v12186_v28  ;;  %v793_v28 = vadd.f32 %v12417_v13, %v12152_v10  ;;  %v10829_v13 = vld [vmem:[%s15796_s27 + $0x360] ss:$8 sps:$4 sm:$0xff]  }
 0x2e3   :  { %2495 = vmatprep.subr.bf16.mxu1 %v10811_v19 }
 0x2e4   :  { %v1126_v10 = vadd.f32 %v12425_v31, %v793_v28  ;;  %v10822_v31 = vld [vmem:[%s15797_s30 + $0x38] sm:$0xff]  }
 0x2e5   :  { %2569 = vmatpush1.bf16.msra.mxu0 %v12192_v30  ;;  %v10818_v30 = vld [vmem:[%s15796_s27 + $0x2a4] ss:$8 sps:$4 sm:$0xff]  }
 0x2e6   :  { %2496 = vmatpush2.bf16.msra.mxu1 %v10809_v21  ;;  %2803 = vmatprep.subr.bf16.mxu0 %v10828_v23  ;;  %v1458_v11 = vadd.f32 %v1448_v3, %v1126_v10 }
 0x2e7   :  { %2497 = vmatprep.subr.bf16.mxu1 %v10814_v53 }
 0x2e8   :  { %9573 = vmatmul.mubr.msk.bf16.vlgmr.msra.gmra.mxu0 %vm162_vm0, %v10815_v1  ;;  %v1474_v26 = vmul.f32 0.2, %v1458_v11  ;;  %vm1466_vm7 = vcmp.gt.f32.partialorder %v1458_v11, 0.0 }
 0x2e9   :  { %2596 = vmatprep.mubr.bf16.mxu0 %v15510_v0  ;;  %2804 = vmatpush1.bf16.msra.mxu0 %v10826_v59 }
 0x2ea   :  { %2498 = vmatpush2.bf16.msra.mxu1 %v10812_v61  ;;  %2805 = vmatprep.subr.bf16.mxu0 %v10831_v62  ;;  %v1482_v58 = vsel %vm1466_vm7, %v1458_v11, %v1474_v26 }
 0x2eb   :  { %2499 = vmatprep.subr.bf16.mxu1 %v10818_v30  ;;  %v12585_v22 = vpack.c.bf16 %v1482_v58, %v1480_v20 }
 0x2ed   :  { %2806 = vmatpush1.bf16.msra.mxu0 %v10829_v13 }
 0x2ee   :  { %2500 = vmatpush2.bf16.msra.mxu1 %v10816_v12  ;;  %2807 = vmatprep.subr.bf16.mxu0 %v10834_v24 }
 0x2ef   :  { %2501 = vmatprep.subr.bf16.mxu1 %v10821_v5 }
 0x2f0   :  { %9574 = vmatmul.mubr.msk.bf16.gmra.mxu0 %vm162_vm0, %v10822_v31 }
 0x2f1   :  { %2808 = vmatpush1.bf16.msra.mxu0 %v10832_v25 }
 0x2f2   :  { %2502 = vmatpush2.bf16.msra.mxu1 %v10819_v14  ;;  %2809 = vmatprep.subr.bf16.mxu0 %v10837_v27 }
 0x2f3   :  { %2503 = vmatprep.subr.bf16.mxu1 %v10825_v15 }
 0x2f5   :  { %2810 = vmatpush1.bf16.msra.mxu0 %v10835_v29 }
 0x2f6   :  { %2504 = vmatpush2.bf16.msra.mxu1 %v10823_v18  ;;  %2811 = vmatprep.subr.bf16.mxu0 %v10840_v33 }
 0x2f7   :  { %2964 = vmatprep.subr.bf16.mxu1 %v12585_v22 }
 0x2f9   :  { %2812 = vmatpush1.bf16.msra.mxu0 %v10838_v55 }
 0x2fa   :  { %2813 = vmatprep.subr.bf16.mxu0 %v10843_v34 }
 0x2fd   :  { %2814 = vmatpush1.bf16.msra.mxu0 %v10841_v35 }
 0x2fe   :  { %2815 = vmatprep.subr.bf16.mxu0 %v10846_v36  ;;  %v12704_v36 = vld [vmem:[%s15799_s6] sm:$0xff]  }
 0x301   :  { %2816 = vmatpush1.bf16.msra.mxu0 %v10844_v60 }
 0x302   :  { %2817 = vmatprep.subr.bf16.mxu0 %v10849_v37 }
 0x305   :  { %2818 = vmatpush1.bf16.msra.mxu0 %v10847_v38  ;;  %v12709_v38 = vld [vmem:[%s15798_s5 + $0x70] ss:$8 sps:$4 sm:$0xff]  }
 0x306   :  { %2819 = vmatprep.subr.bf16.mxu0 %v10852_v39  ;;  %v12714_v39 = vld [vmem:[%s15798_s5 + $0x64] ss:$8 sps:$4 sm:$0xff]  }
 0x309   :  { %2820 = vmatpush2.bf16.msra.mxu0 %v10850_v4 }
 0x30a   :  { %2821 = vmatprep.subr.bf16.mxu0 %v10855_v40 }
 0x30d   :  { %2822 = vmatpush2.bf16.msra.mxu0 %v10853_v41  ;;  %v12724_v41 = vld [vmem:[%s15798_s5 + $0x174] ss:$8 sps:$4 sm:$0xff]  }
 0x30e   :  { %2823 = vmatprep.subr.bf16.mxu0 %v10858_v42  ;;  %v12736_v42 = vld [vmem:[%s15798_s5 + $0x54] ss:$8 sps:$4 sm:$0xff]  }
 0x311   :  { %2824 = vmatpush2.bf16.msra.mxu0 %v10856_v9  ;;  %v12730_v9 = vld [vmem:[%s15798_s5 + $0x60] ss:$8 sps:$4 sm:$0xff]  }
 0x312   :  { %2825 = vmatprep.subr.bf16.mxu0 %v10861_v43 }
 0x315   :  { %2826 = vmatpush2.bf16.msra.mxu0 %v10859_v45 }
 0x316   :  { %2827 = vmatprep.subr.bf16.mxu0 %v10864_v57 }
 0x319   :  { %2828 = vmatpush2.bf16.msra.mxu0 %v10862_v56  ;;  %v12741_v56 = vld [vmem:[%s15799_s6 + $0x8] sm:$0xff]  }
 0x31a   :  { %2829 = vmatprep.subr.bf16.mxu0 %v10867_v46  ;;  %v12747_v46 = vld [vmem:[%s15798_s5 + $0x170] ss:$8 sps:$4 sm:$0xff]  }
 0x31d   :  { %2830 = vmatpush2.bf16.msra.mxu0 %v10865_v47  ;;  %v12753_v47 = vld [vmem:[%s15798_s5 + $0x164] ss:$8 sps:$4 sm:$0xff]  }
 0x31e   :  { %2831 = vmatprep.subr.bf16.mxu0 %v10870_v49  ;;  %v12765_v49 = vld [vmem:[%s15798_s5 + $0x44] ss:$8 sps:$4 sm:$0xff]  }
 0x321   :  { %2832 = vmatpush2.bf16.msra.mxu0 %v10868_v48  ;;  %v12759_v48 = vld [vmem:[%s15798_s5 + $0x50] ss:$8 sps:$4 sm:$0xff]  }
 0x322   :  { %2833 = vmatprep.subr.bf16.mxu0 %v10873_v50  ;;  %v12773_v50 = vld [vmem:[%s15798_s5 + $0x160] ss:$8 sps:$4 sm:$0xff]  }
 0x325   :  { %2834 = vmatpush2.bf16.msra.mxu0 %v10871_v51  ;;  %v12779_v51 = vld [vmem:[%s15798_s5 + $0x154] ss:$8 sps:$4 sm:$0xff]  }
 0x326   :  { %3481 = vmatprep.subr.bf16.mxu0 %v12675_v63 }
 0x378   :  { %v2185_v44 = vpop.f32.mrf.mxu1 }
 0x37a   :  { %v2187_v52 = vpop.f32.mrf.mxu1 }
 0x37c   :  { %v2189_v16 = vpop.f32.mrf.mxu1 }
 0x37e   :  { %v12678_v19 = vpop.f32.mrf.mxu1 }
 0x380   :  { %v2195_v59 = vpop.f32.mrf.mxu1 }
 0x382   :  { %v2197_v3 = vpop.f32.mrf.mxu1 }
 0x384   :  { %v2199_v8 = vpop.f32.mrf.mxu1 }
 0x388   :  { %v1972_v21 = vpop.f32.mrf.mxu0 }
 0x389   :  { %v12680_v23 = vadd.f32 %v2185_v44, %v1972_v21  ;;  %v12785_v44 = vld [vmem:[%s15798_s5 + $0x40] ss:$8 sps:$4 sm:$0xff]   ;;  %v12803_v21 = vld [vmem:[%s15798_s5 + $0x144] ss:$8 sps:$4 sm:$0xff]  }
 0x38a   :  { %v1974_v53 = vpop.f32.mrf.mxu0 }
 0x38b   :  { %v12682_v1 = vadd.f32 %v2187_v52, %v1974_v53  ;;  %v12791_v52 = vld [vmem:[%s15798_s5 + $0x34] ss:$8 sps:$4 sm:$0xff]   ;;  %v12809_v53 = vld [vmem:[%s15798_s5 + $0x30] ss:$8 sps:$4 sm:$0xff]  }
 0x38c   :  { %v1976_v28 = vpop.f32.mrf.mxu0 }
 0x38d   :  { %v12684_v61 = vadd.f32 %v2189_v16, %v1976_v28  ;;  %v12797_v16 = vld [vmem:[%s15798_s5 + $0x150] ss:$8 sps:$4 sm:$0xff]   ;;  %v12821_v28 = vld [vmem:[%s15798_s5 + $0x140] ss:$8 sps:$4 sm:$0xff]  }
 0x38e   :  { %v12686_v62 = vpop.f32.mrf.mxu0 }
 0x390   :  { %v1982_v30 = vpop.f32.mrf.mxu0 }
 0x391   :  { %v12688_v7 = vadd.f32 %v2195_v59, %v1982_v30  ;;  %v12815_v59 = vld [vmem:[%s15798_s5 + $0x24] ss:$8 sps:$4 sm:$0xff]   ;;  %v12833_v30 = vld [vmem:[%s15798_s5 + $0x20] ss:$8 sps:$4 sm:$0xff]  }
 0x392   :  { %v1984_v10 = vpop.f32.mrf.mxu0 }
 0x393   :  { %v12690_v13 = vadd.f32 %v2197_v3, %v1984_v10  ;;  %v12827_v3 = vld [vmem:[%s15798_s5 + $0x134] ss:$8 sps:$4 sm:$0xff]  }
 0x394   :  { %v1986_v11 = vpop.f32.mrf.mxu0  ;;  %v12839_v10 = vld [vmem:[%s15798_s5 + $0x14] ss:$8 sps:$4 sm:$0xff]  }
 0x395   :  { %v12692_v12 = vadd.f32 %v2199_v8, %v1986_v11  ;;  %v12845_v8 = vld [vmem:[%s15798_s5 + $0x130] ss:$8 sps:$4 sm:$0xff]   ;;  %v12851_v11 = vld [vmem:[%s15798_s5 + $0x124] ss:$8 sps:$4 sm:$0xff]  }
 0x396   :  { %v12694_v5 = vpop.f32.mrf.mxu0 }
 0x398   :  { %v2258_v6 = vpop.f32.mrf.mxu0 }
 0x39a   :  { %v2260_v31 = vpop.f32.mrf.mxu0 }
 0x39c   :  { %v2262_v26 = vpop.f32.mrf.mxu0 }
 0x39d   :  { %v2277_v17 = vpack.c.bf16 %v2262_v26, %v2258_v6  ;;  %v12857_v6 = vld [vmem:[%s15798_s5 + $0x10] ss:$8 sps:$4 sm:$0xff]   ;;  %v12869_v26 = vld [vmem:[%s15798_s5 + $0x120] ss:$8 sps:$4 sm:$0xff]  }
 0x39e   :  { %v2264_v14 = vpop.f32.mrf.mxu0  ;;  %15801 = vst [vmem:[#allocation13_spill] sm:$0xff] %v12869_v26 }
 0x39f   :  { %v2278_v15 = vpack.c.bf16 %v2264_v14, %v2260_v31  ;;  %v12863_v31 = vld [vmem:[%s15798_s5 + $0x4] ss:$8 sps:$4 sm:$0xff]   ;;  %v12875_v14 = vld [vmem:[%s15798_s5 + $0x114] ss:$8 sps:$4 sm:$0xff]  }
 0x3a0   :  { %v2268_v58 = vpop.f32.mrf.mxu0  ;;  %15800 = vst [vmem:[#allocation12_spill] sm:$0xff] %v12863_v31  ;;  %15802 = vst [vmem:[#allocation14_spill] sm:$0xff] %v12875_v14 }
 0x3a1   :  { %2505 = vmatprep.mubr.bf16.mxu1 %v2278_v15  ;;  %v12881_v15 = vld [vmem:[%s15798_s5] ss:$8 sps:$4 sm:$0xff]  }
 0x3a2   :  { %v2270_v18 = vpop.f32.mrf.mxu0  ;;  %2506 = vmatmul.mubr.bf16.vlgmr.msra.gmra.mxu1 %v2277_v17  ;;  %15803 = vst [vmem:[#allocation15_spill] sm:$0xff] %v12881_v15  ;;  %v12887_v17 = vld [vmem:[%s15798_s5 + $0xf4] ss:$8 sps:$4 sm:$0xff]  }
 0x3a3   :  { %2965 = vmatpush1.bf16.msra.mxu1 %v12454_v32  ;;  %15804 = vst [vmem:[#allocation16_spill] sm:$0xff] %v12887_v17 }
 0x3a4   :  { %2966 = vmatprep.subr.bf16.mxu1 %v12440_v2  ;;  %v2272_v20 = vpop.f32.mrf.mxu0 }
 0x3a5   :  { %v2279_v27 = vpack.c.bf16 %v2272_v20, %v2268_v58  ;;  %v12893_v58 = vld [vmem:[%s15798_s5 + $0x110] ss:$8 sps:$4 sm:$0xff]  }
 0x3a6   :  { %v2274_v24 = vpop.f32.mrf.mxu0  ;;  %15805 = vst [vmem:[#allocation17_spill] sm:$0xff] %v12893_v58  ;;  %v12905_v20 = vld [vmem:[%s15798_s5 + $0xf0] ss:$8 sps:$4 sm:$0xff]  }
 0x3a7   :  { %v2280_v25 = vpack.c.bf16 %v2274_v24, %v2270_v18  ;;  %2967 = vmatpush1.bf16.msra.mxu1 %v12436_v54  ;;  %v12899_v18 = vld [vmem:[%s15798_s5 + $0x104] ss:$8 sps:$4 sm:$0xff]   ;;  %15807 = vst [vmem:[#allocation19_spill] sm:$0xff] %v12905_v20 }
 0x3a8   :  { %3052 = vmatprep.subr.bf16.mxu1 %v12585_v22  ;;  %v2588_v29 = vpop.f32.mrf.mxu0  ;;  %15806 = vst [vmem:[#allocation18_spill] sm:$0xff] %v12899_v18  ;;  %v12911_v24 = vld [vmem:[%s15798_s5 + $0xe4] ss:$8 sps:$4 sm:$0xff]  }
 0x3a9   :  { %2515 = vmatprep.mubr.bf16.mxu1 %v2280_v25  ;;  %15808 = vst [vmem:[#allocation20_spill] sm:$0xff] %v12911_v24  ;;  %v12917_v25 = vld [vmem:[%s15798_s5 + $0x100] ss:$8 sps:$4 sm:$0xff]  }
 0x3aa   :  { %2516 = vmatmul.mubr.bf16.gmra.mxu1 %v2279_v27  ;;  %v2590_v33 = vpop.f32.mrf.mxu0  ;;  %15809 = vst [vmem:[#allocation21_spill] sm:$0xff] %v12917_v25  ;;  %v12923_v27 = vld [vmem:[%s15798_s5 + $0x1f4] ss:$8 sps:$4 sm:$0xff]  }
 0x3ab   :  { %2984 = vmatprep.mubr.bf16.mxu1 %v15510_v0  ;;  %15810 = vst [vmem:[#allocation22_spill] sm:$0xff] %v12923_v27 }
 0x3ac   :  { %v2592_v55 = vpop.f32.mrf.mxu0 }
 0x3ad   :  { %v2607_v34 = vpack.c.bf16 %v2592_v55, %v2588_v29  ;;  %v12929_v29 = vld [vmem:[%s15798_s5 + $0xe0] ss:$8 sps:$4 sm:$0xff]   ;;  %v12942_v55 = vld [vmem:[%s15798_s5 + $0x1e4] ss:$8 sps:$4 sm:$0xff]  }
 0x3ae   :  { %v2594_v35 = vpop.f32.mrf.mxu0  ;;  %15811 = vst [vmem:[#allocation23_spill] sm:$0xff] %v12929_v29  ;;  %15813 = vst [vmem:[#allocation25_spill] sm:$0xff] %v12942_v55 }
 0x3af   :  { %v2608_v60 = vpack.c.bf16 %v2594_v35, %v2590_v33  ;;  %v12936_v33 = vld [vmem:[%s15798_s5 + $0x1f0] ss:$8 sps:$4 sm:$0xff]   ;;  %v12955_v35 = vld [vmem:[%s15798_s5 + $0x1d4] ss:$8 sps:$4 sm:$0xff]  }
 0x3b0   :  { %v2598_v37 = vpop.f32.mrf.mxu0  ;;  %15812 = vst [vmem:[#allocation24_spill] sm:$0xff] %v12936_v33  ;;  %15815 = vst [vmem:[#allocation27_spill] sm:$0xff] %v12955_v35 }
 0x3b1   :  { %2835 = vmatprep.mubr.bf16.mxu0 %v2608_v60  ;;  %v12961_v60 = vld [vmem:[%s15798_s5 + $0x1d0] ss:$8 sps:$4 sm:$0xff]  }
 0x3b2   :  { %v2600_v4 = vpop.f32.mrf.mxu0  ;;  %2836 = vmatmul.mubr.bf16.vlgmr.msra.gmra.mxu0 %v2607_v34  ;;  %9648 = vmatmul.mubr.msk.bf16.vlgmr.msra.gmra.mxu1 %vm2948_vm9, %v12704_v36  ;;  %v12949_v34 = vld [vmem:[%s15798_s5 + $0x1e0] ss:$8 sps:$4 sm:$0xff]   ;;  %15816 = vst [vmem:[#allocation28_spill] sm:$0xff] %v12961_v60 }
 0x3b3   :  { %3053 = vmatpush1.bf16.msra.mxu1 %v12454_v32  ;;  %3072 = vmatprep.mubr.bf16.mxu1 %v15510_v0  ;;  %15814 = vst [vmem:[#allocation26_spill] sm:$0xff] %v12949_v34  ;;  %v13002_v0 = vld [vmem:[%s15798_s5 + $0xc0] ss:$8 sps:$4 sm:$0xff]  }
 0x3b4   :  { %3054 = vmatprep.subr.bf16.mxu1 %v12440_v2  ;;  %v2602_v40 = vpop.f32.mrf.mxu0  ;;  %3482 = vmatpush1.bf16.msra.mxu0 %v12709_v38  ;;  %15823 = vst [vmem:[#allocation35_spill] sm:$0xff] %v13002_v0 }
 0x3b5   :  { %3483 = vmatprep.subr.bf16.mxu0 %v12714_v39  ;;  %v2609_v43 = vpack.c.bf16 %v2602_v40, %v2598_v37  ;;  %v12967_v37 = vld [vmem:[%s15798_s5 + $0x1c4] ss:$8 sps:$4 sm:$0xff]   ;;  %v12978_v40 = vld [vmem:[%s15798_s5 + $0xd0] ss:$8 sps:$4 sm:$0xff]  }
 0x3b6   :  { %v2604_v45 = vpop.f32.mrf.mxu0  ;;  %15817 = vst [vmem:[#allocation29_spill] sm:$0xff] %v12967_v37  ;;  %15819 = vst [vmem:[#allocation31_spill] sm:$0xff] %v12978_v40 }
 0x3b7   :  { %v2610_v57 = vpack.c.bf16 %v2604_v45, %v2600_v4  ;;  %3055 = vmatpush1.bf16.msra.mxu1 %v12436_v54  ;;  %v12973_v4 = vld [vmem:[%s15798_s5 + $0x1c0] ss:$8 sps:$4 sm:$0xff]   ;;  %v12989_v45 = vld [vmem:[%s15798_s5 + $0x1b4] ss:$8 sps:$4 sm:$0xff]  }
 0x3b8   :  { %3278 = vmatprep.subr.bf16.mxu1 %v12724_v41  ;;  %3484 = vmatpush1.bf16.msra.mxu0 %v12730_v9  ;;  %15818 = vst [vmem:[#allocation30_spill] sm:$0xff] %v12973_v4  ;;  %15821 = vst [vmem:[#allocation33_spill] sm:$0xff] %v12989_v45 }
 0x3b9   :  { %2845 = vmatprep.mubr.bf16.mxu0 %v2610_v57  ;;  %3485 = vmatprep.subr.bf16.mxu0 %v12736_v42  ;;  %v12997_v57 = vld [vmem:[%s15798_s5 + $0x1b0] ss:$8 sps:$4 sm:$0xff]  }
 0x3ba   :  { %2846 = vmatmul.mubr.bf16.gmra.mxu0 %v2609_v43  ;;  %9652 = vmatmul.mubr.msk.bf16.vlgmr.msra.gmra.mxu1 %vm2948_vm9, %v12741_v56  ;;  %v12983_v43 = vld [vmem:[%s15798_s5 + $0xd4] ss:$8 sps:$4 sm:$0xff]   ;;  %15822 = vst [vmem:[#allocation34_spill] sm:$0xff] %v12997_v57 }
 0x3bb   :  { %3279 = vmatpush1.bf16.msra.mxu1 %v12747_v46  ;;  %15820 = vst [vmem:[#allocation32_spill] sm:$0xff] %v12983_v43 }
 0x3bc   :  { %3280 = vmatprep.subr.bf16.mxu1 %v12753_v47  ;;  %3486 = vmatpush1.bf16.msra.mxu0 %v12759_v48 }
 0x3bd   :  { %3487 = vmatprep.subr.bf16.mxu0 %v12765_v49 }
 0x3bf   :  { %3281 = vmatpush1.bf16.msra.mxu1 %v12773_v50 }
 0x3c0   :  { %3282 = vmatprep.subr.bf16.mxu1 %v12779_v51  ;;  %3488 = vmatpush1.bf16.msra.mxu0 %v12785_v44 }
 0x3c1   :  { %3489 = vmatprep.subr.bf16.mxu0 %v12791_v52 }
 0x3c3   :  { %3283 = vmatpush1.bf16.msra.mxu1 %v12797_v16 }
 0x3c4   :  { %3284 = vmatprep.subr.bf16.mxu1 %v12803_v21  ;;  %3490 = vmatpush1.bf16.msra.mxu0 %v12809_v53 }
 0x3c5   :  { %3491 = vmatprep.subr.bf16.mxu0 %v12815_v59 }
 0x3c7   :  { %3285 = vmatpush1.bf16.msra.mxu1 %v12821_v28 }
 0x3c8   :  { %3286 = vmatprep.subr.bf16.mxu1 %v12827_v3  ;;  %3492 = vmatpush1.bf16.msra.mxu0 %v12833_v30 }
 0x3c9   :  { %3493 = vmatprep.subr.bf16.mxu0 %v12839_v10 }
 0x3cb   :  { %3287 = vmatpush1.bf16.msra.mxu1 %v12845_v8 }
 0x3cc   :  { %3288 = vmatprep.subr.bf16.mxu1 %v12851_v11  ;;  %3494 = vmatpush1.bf16.msra.mxu0 %v12857_v6 }
 0x3cd   :  { %3495 = vmatprep.subr.bf16.mxu0 %v12863_v31 }
 0x3cf   :  { %3289 = vmatpush1.bf16.msra.mxu1 %v12869_v26 }
 0x3d0   :  { %3290 = vmatprep.subr.bf16.mxu1 %v12875_v14  ;;  %3496 = vmatpush1.bf16.msra.mxu0 %v12881_v15 }
 0x3d1   :  { %3497 = vmatprep.subr.bf16.mxu0 %v12887_v17 }
 0x3d3   :  { %3291 = vmatpush1.bf16.msra.mxu1 %v12893_v58 }
 0x3d4   :  { %3292 = vmatprep.subr.bf16.mxu1 %v12899_v18  ;;  %3498 = vmatpush2.bf16.msra.mxu0 %v12905_v20 }
 0x3d5   :  { %3499 = vmatprep.subr.bf16.mxu0 %v12911_v24 }
 0x3d7   :  { %3293 = vmatpush1.bf16.msra.mxu1 %v12917_v25 }
 0x3d8   :  { %3294 = vmatprep.subr.bf16.mxu1 %v12923_v27  ;;  %3500 = vmatpush2.bf16.msra.mxu0 %v12929_v29 }
 0x3d9   :  { %3501 = vmatprep.subr.bf16.mxu0 %v12983_v43 }
 0x3db   :  { %3295 = vmatpush2.bf16.msra.mxu1 %v12936_v33 }
 0x3dc   :  { %3296 = vmatprep.subr.bf16.mxu1 %v12942_v55  ;;  %3502 = vmatpush2.bf16.msra.mxu0 %v12978_v40 }
 0x3df   :  { %3297 = vmatpush2.bf16.msra.mxu1 %v12949_v34  ;;  %v13055_v34 = vld [vmem:[%s15798_s5 + $0xa4] ss:$8 sps:$4 sm:$0xff]  }
 0x3e0   :  { %3298 = vmatprep.subr.bf16.mxu1 %v12955_v35  ;;  %v13031_v35 = vld [vmem:[%s15798_s5 + $0xb4] ss:$8 sps:$4 sm:$0xff]   ;;  %15832 = vst [vmem:[#allocation44_spill] sm:$0xff] %v13055_v34 }
 0x3e1   :  { %15828 = vst [vmem:[#allocation40_spill] sm:$0xff] %v13031_v35 }
 0x3e3   :  { %3299 = vmatpush2.bf16.msra.mxu1 %v12961_v60  ;;  %v13021_v60 = vld [vmem:[%s15798_s5 + $0x1a0] ss:$8 sps:$4 sm:$0xff]  }
 0x3e4   :  { %3300 = vmatprep.subr.bf16.mxu1 %v12967_v37  ;;  %v13007_v37 = vld [vmem:[%s15798_s5 + $0xc4] ss:$8 sps:$4 sm:$0xff]   ;;  %15826 = vst [vmem:[#allocation38_spill] sm:$0xff] %v13021_v60 }
 0x3e5   :  { %15824 = vst [vmem:[#allocation36_spill] sm:$0xff] %v13007_v37  ;;  %3503 = vmatprep.subr.bf16.mxu0 %v13007_v37 }
 0x3e6   :  { %3504 = vmatpush2.bf16.msra.mxu0 %v13002_v0  ;;  %v13045_v0 = vld [vmem:[%s15798_s5 + $0x190] ss:$8 sps:$4 sm:$0xff]  }
 0x3e7   :  { %3301 = vmatpush2.bf16.msra.mxu1 %v12973_v4  ;;  %v13013_v4 = vld [vmem:[%s15798_s5 + $0x1a4] ss:$8 sps:$4 sm:$0xff]   ;;  %3505 = vmatprep.subr.bf16.mxu0 %v13031_v35  ;;  %15830 = vst [vmem:[#allocation42_spill] sm:$0xff] %v13045_v0 }
 0x3e8   :  { %3302 = vmatprep.subr.bf16.mxu1 %v12989_v45  ;;  %15825 = vst [vmem:[#allocation37_spill] sm:$0xff] %v13013_v4  ;;  %v13026_v45 = vld [vmem:[%s15798_s5 + $0xb0] ss:$8 sps:$4 sm:$0xff]  }
 0x3e9   :  { %15827 = vst [vmem:[#allocation39_spill] sm:$0xff] %v13026_v45 }
 0x3ea   :  { %3506 = vmatpush2.bf16.msra.mxu0 %v13026_v45  ;;  %v13069_v45 = vld [vmem:[%s15798_s5 + $0x180] ss:$8 sps:$4 sm:$0xff]  }
 0x3eb   :  { %3303 = vmatpush2.bf16.msra.mxu1 %v12997_v57  ;;  %v13037_v57 = vld [vmem:[%s15798_s5 + $0x194] ss:$8 sps:$4 sm:$0xff]   ;;  %3507 = vmatprep.subr.bf16.mxu0 %v13055_v34  ;;  %15834 = vst [vmem:[#allocation46_spill] sm:$0xff] %v13069_v45  ;;  %v13080_v34 = vld [vmem:[%s15798_s5 + $0x90] ss:$8 sps:$4 sm:$0xff]  }
 0x3ec   :  { %3304 = vmatprep.subr.bf16.mxu1 %v13013_v4  ;;  %15829 = vst [vmem:[#allocation41_spill] sm:$0xff] %v13037_v57  ;;  %v13050_v4 = vld [vmem:[%s15798_s5 + $0xa0] ss:$8 sps:$4 sm:$0xff]   ;;  %15836 = vst [vmem:[#allocation48_spill] sm:$0xff] %v13080_v34 }
 0x3ed   :  { %15831 = vst [vmem:[#allocation43_spill] sm:$0xff] %v13050_v4 }
 0x3ee   :  { %3508 = vmatpush2.bf16.msra.mxu0 %v13050_v4 }
 0x3ef   :  { %3305 = vmatpush2.bf16.msra.mxu1 %v13021_v60  ;;  %v13061_v60 = vld [vmem:[%s15798_s5 + $0x184] ss:$8 sps:$4 sm:$0xff]  }
 0x3f0   :  { %3306 = vmatprep.subr.bf16.mxu1 %v13037_v57  ;;  %15833 = vst [vmem:[#allocation45_spill] sm:$0xff] %v13061_v60  ;;  %v13074_v57 = vld [vmem:[%s15798_s5 + $0x94] ss:$8 sps:$4 sm:$0xff]  }
 0x3f1   :  { %15835 = vst [vmem:[#allocation47_spill] sm:$0xff] %v13074_v57  ;;  %3509 = vmatprep.subr.bf16.mxu0 %v13074_v57 }
 0x3f2   :  { %3510 = vmatpush2.bf16.msra.mxu0 %v13080_v34  ;;  %v13104_v34 = vpop.f32.mrf.mxu1 }
 0x3f3   :  { %3307 = vmatpush2.bf16.msra.mxu1 %v13045_v0  ;;  %v13088_v0 = vld [vmem:[%s15798_s5 + $0x84] ss:$8 sps:$4 sm:$0xff]  }
 0x3f4   :  { %3308 = vmatprep.subr.bf16.mxu1 %v13061_v60  ;;  %15837 = vst [vmem:[#allocation49_spill] sm:$0xff] %v13088_v0  ;;  %v13094_v60 = vld [vmem:[%s15798_s5 + $0x80] ss:$8 sps:$4 sm:$0xff]   ;;  %3511 = vmatprep.subr.bf16.mxu0 %v13088_v0 }
 0x3f5   :  { %15838 = vst [vmem:[#allocation50_spill] sm:$0xff] %v13094_v60 }
 0x3f6   :  { %3512 = vmatpush2.bf16.msra.mxu0 %v13094_v60 }
 0x3f7   :  { %3309 = vmatpush2.bf16.msra.mxu1 %v13069_v45  ;;  %v13101_v45 = vld [vmem:[%s15798_s5 + $0x274] ss:$8 sps:$4 sm:$0xff]  }
 0x3f8   :  { %3547 = vmatprep.subr.bf16.mxu1 %v12585_v22  ;;  %15839 = vst [vmem:[#allocation51_spill] sm:$0xff] %v13101_v45  ;;  %3773 = vmatprep.subr.bf16.mxu0 %v13101_v45 }
 0x462   :  { %v2507_v57 = vpop.f32.mrf.mxu1 }
 0x463   :  { %v2526_v4 = vadd.f32 %v2507_v57, %v12680_v23 }
 0x464   :  { %v2509_v35 = vpop.f32.mrf.mxu1 }
 0x465   :  { %v2527_v37 = vadd.f32 %v2509_v35, %v12682_v1  ;;  %v2192_v1 = vadd.f32 %v12678_v19, %v12686_v62  ;;  %v13120_v19 = vld [vmem:[%s15798_s5 + $0x270] ss:$8 sps:$4 sm:$0xff]  }
 0x466   :  { %v2511_v40 = vpop.f32.mrf.mxu1 }
 0x467   :  { %v2528_v0 = vadd.f32 %v2511_v40, %v12684_v61 }
 0x468   :  { %v2513_v55 = vpop.f32.mrf.mxu1 }
 0x46a   :  { %v2517_v60 = vpop.f32.mrf.mxu1 }
 0x46b   :  { %v2530_v33 = vadd.f32 %v2517_v60, %v12688_v7  ;;  %v2529_v7 = vadd.f32 %v2513_v55, %v2192_v1 }
 0x46c   :  { %v13110_v43 = vpop.f32.mrf.mxu1 }
 0x46e   :  { %v2521_v29 = vpop.f32.mrf.mxu1 }
 0x46f   :  { %v2532_v45 = vadd.f32 %v2521_v29, %v12692_v12 }
 0x470   :  { %v13113_v27 = vpop.f32.mrf.mxu1 }
 0x472   :  { %v2837_v25 = vpop.f32.mrf.mxu0  ;;  %v2986_v24 = vpop.f32.mrf.mxu1 }
 0x473   :  { %v2856_v23 = vadd.f32 %v2837_v25, %v2526_v4 }
 0x474   :  { %v2839_v57 = vpop.f32.mrf.mxu0  ;;  %v2988_v20 = vpop.f32.mrf.mxu1 }
 0x475   :  { %v2857_v61 = vadd.f32 %v2839_v57, %v2527_v37  ;;  %v2872_v35 = vmul.f32 0.2, %v2856_v23  ;;  %vm2864_vm10 = vcmp.gt.f32.partialorder %v2856_v23, 0.0  ;;  %v13125_v37 = vld [vmem:[%s15798_s5 + $0x264] ss:$8 sps:$4 sm:$0xff]  }
 0x476   :  { %v2841_v40 = vpop.f32.mrf.mxu0  ;;  %v2990_v18 = vpop.f32.mrf.mxu1 }
 0x477   :  { %v2858_v60 = vadd.f32 %v2841_v40, %v2528_v0  ;;  %v2873_v12 = vmul.f32 0.2, %v2857_v61  ;;  %v2880_v14 = vsel %vm2864_vm10, %v2856_v23, %v2872_v35  ;;  %vm2865_vm12 = vcmp.gt.f32.partialorder %v2857_v61, 0.0 }
 0x478   :  { %v2843_v58 = vpop.f32.mrf.mxu0  ;;  %v2992_v17 = vpop.f32.mrf.mxu1  ;;  %v2995_v25 = vpack.c.bf16 %v2990_v18, %v2986_v24 }
 0x479   :  { %vm2866_vm11 = vcmp.gt.f32.partialorder %v2858_v60, 0.0  ;;  %v2874_v29 = vmul.f32 0.2, %v2858_v60  ;;  %v2859_v15 = vadd.f32 %v2843_v58, %v2529_v7  ;;  %v2996_v4 = vpack.c.bf16 %v2992_v17, %v2988_v20  ;;  %v13149_v7 = vld [vmem:[%s15798_s5 + $0x250] ss:$8 sps:$4 sm:$0xff]  }
 0x47a   :  { %v2847_v26 = vpop.f32.mrf.mxu0  ;;  %v3074_v31 = vpop.f32.mrf.mxu1  ;;  %v2881_v20 = vsel %vm2865_vm12, %v2857_v61, %v2873_v12 }
 0x47b   :  { %v2882_v62 = vsel %vm2866_vm11, %v2858_v60, %v2874_v29  ;;  %vm2867_vm13 = vcmp.gt.f32.partialorder %v2859_v15, 0.0  ;;  %v2875_v0 = vmul.f32 0.2, %v2859_v15  ;;  %v2860_v55 = vadd.f32 %v2847_v26, %v2530_v33  ;;  %3513 = vmatprep.mubr.bf16.mxu0 %v2996_v4  ;;  %v13137_v33 = vld [vmem:[%s15798_s5 + $0x260] ss:$8 sps:$4 sm:$0xff]  }
 0x47c   :  { %v13127_v58 = vpack.c.bf16 %v2882_v62, %v2880_v14  ;;  %v13129_v17 = vpop.f32.mrf.mxu0  ;;  %v3076_v18 = vpop.f32.mrf.mxu1  ;;  %3514 = vmatmul.mubr.bf16.vlgmr.msra.gmra.mxu0 %v2995_v25  ;;  %v13155_v29 = vld [vmem:[%s15798_s5 + $0x244] ss:$8 sps:$4 sm:$0xff]   ;;  %v13164_v4 = vld [vmem:[%s15798_s5 + $0x240] ss:$8 sps:$4 sm:$0xff]   ;;  %v15840_v62 = vmov 0  }
 0x47d   :  { %v2883_v24 = vsel %vm2867_vm13, %v2859_v15, %v2875_v0  ;;  %3774 = vmatpush1.bf16.msra.mxu0 %v13120_v19  ;;  %v2876_v14 = vmul.f32 0.2, %v2860_v55  ;;  %v13143_v15 = vld [vmem:[%s15798_s5 + $0x254] ss:$8 sps:$4 sm:$0xff]   ;;  %vm2868_vm14 = vcmp.gt.f32.partialorder %v2860_v55, 0.0 }
 0x47e   :  { %v13131_v23 = vpack.c.bf16 %v2883_v24, %v2881_v20  ;;  %v2851_v57 = vpop.f32.mrf.mxu0  ;;  %v3078_v26 = vpop.f32.mrf.mxu1  ;;  %3775 = vmatprep.subr.bf16.mxu0 %v13125_v37  ;;  %v13177_v0 = vld [vmem:[%s15799_s6 + $0x10] sm:$0xff]   ;;  %v13200_v20 = vld [vmem:[%s15798_s5 + $0x220] ss:$8 sps:$4 sm:$0xff]  }
 0x47f   :  { %v2862_v1 = vadd.f32 %v2851_v57, %v2532_v45  ;;  %v2884_v45 = vsel %vm2868_vm14, %v2860_v55, %v2876_v14  ;;  %v3083_v12 = vpack.c.bf16 %v3078_v26, %v3074_v31  ;;  %v13171_v31 = vld [vmem:[%s15798_s5 + $0x234] ss:$8 sps:$4 sm:$0xff]   ;;  %v13184_v55 = vld [vmem:[%s15798_s5 + $0x230] ss:$8 sps:$4 sm:$0xff]   ;;  %15843 = vst [vmem:[#allocation54_spill] sm:$0xff] %v13200_v20  ;;  %vm7040_vm14 = vcmask 1043456  }
 0x480   :  { %v3080_v61 = vpop.f32.mrf.mxu1  ;;  %15841 = vst [vmem:[#allocation52_spill] sm:$0xff] %v13184_v55  ;;  %v13212_v24 = vld [vmem:[%s15798_s5 + $0x374] ss:$8 sps:$4 sm:$0xff]   ;;  %v13230_v57 = vld [vmem:[%s15798_s5 + $0x370] ss:$8 sps:$4 sm:$0xff]  }
 0x481   :  { %vm2870_vm15 = vcmp.gt.f32.partialorder %v2862_v1, 0.0  ;;  %v2878_v35 = vmul.f32 0.2, %v2862_v1  ;;  %v3084_v40 = vpack.c.bf16 %v3080_v61, %v3076_v18  ;;  %3776 = vmatpush1.bf16.msra.mxu0 %v13137_v33  ;;  %v13191_v18 = vld [vmem:[%s15798_s5 + $0x224] ss:$8 sps:$4 sm:$0xff]  }
 0x482   :  { %3777 = vmatprep.subr.bf16.mxu0 %v13143_v15  ;;  %15842 = vst [vmem:[#allocation53_spill] sm:$0xff] %v13191_v18  ;;  %v13237_v26 = vld [vmem:[%s15798_s5 + $0x204] ss:$8 sps:$4 sm:$0xff]   ;;  %v13251_v14 = vld [vmem:[%s15798_s5 + $0x200] ss:$8 sps:$4 sm:$0xff]  }
 0x483   :  { %v2886_v60 = vsel %vm2870_vm15, %v2862_v1, %v2878_v35  ;;  %3310 = vmatprep.mubr.bf16.mxu1 %v3084_v40  ;;  %15846 = vst [vmem:[#allocation57_spill] sm:$0xff] %v13237_v26  ;;  %15847 = vst [vmem:[#allocation58_spill] sm:$0xff] %v13251_v14  ;;  %v13256_v1 = vld [vmem:[%s15798_s5 + $0x360] ss:$8 sps:$4 sm:$0xff]   ;;  %v13263_v61 = vld [vmem:[%s15798_s5 + $0x2f4] ss:$8 sps:$4 sm:$0xff]  }
 0x484   :  { %v13157_v25 = vpack.c.bf16 %v2886_v60, %v2884_v45  ;;  %3311 = vmatmul.mubr.bf16.vlgmr.msra.gmra.mxu1 %v3083_v12  ;;  %15848 = vst [vmem:[#allocation59_spill] sm:$0xff] %v13263_v61  ;;  %v13268_v35 = vld [vmem:[%s15798_s5 + $0x354] ss:$8 sps:$4 sm:$0xff]   ;;  %v13275_v40 = vld [vmem:[%s15798_s5 + $0x2f0] ss:$8 sps:$4 sm:$0xff]   ;;  %vm7036_vm15 = vcmask 64512  }
 0x485   :  { %3548 = vmatpush1.bf16.msra.mxu1 %v12454_v32  ;;  %3778 = vmatpush1.bf16.msra.mxu0 %v13149_v7  ;;  %15849 = vst [vmem:[#allocation60_spill] sm:$0xff] %v13275_v40  ;;  %v13280_v45 = vld [vmem:[%s15798_s5 + $0x350] ss:$8 sps:$4 sm:$0xff]   ;;  %v13287_v60 = vld [vmem:[%s15798_s5 + $0x2e4] ss:$8 sps:$4 sm:$0xff]  }
 0x486   :  { %3549 = vmatprep.subr.bf16.mxu1 %v12440_v2  ;;  %3779 = vmatprep.subr.bf16.mxu0 %v13155_v29  ;;  %15850 = vst [vmem:[#allocation61_spill] sm:$0xff] %v13280_v45  ;;  %15851 = vst [vmem:[#allocation62_spill] sm:$0xff] %v13287_v60  ;;  %v13292_v12 = vld [vmem:[%s15798_s5 + $0x344] ss:$8 sps:$4 sm:$0xff]  }
 0x487   :  { %3567 = vmatprep.mubr.bf16.mxu1 %v15840_v62  ;;  %15852 = vst [vmem:[#allocation63_spill] sm:$0xff] %v13292_v12 }
 0x489   :  { %3550 = vmatpush1.bf16.msra.mxu1 %v12436_v54  ;;  %3780 = vmatpush1.bf16.msra.mxu0 %v13164_v4 }
 0x48a   :  { %3843 = vmatprep.subr.bf16.mxu1 %v12585_v22  ;;  %3781 = vmatprep.subr.bf16.mxu0 %v13171_v31  ;;  %v13207_v22 = vld [vmem:[%s15798_s5 + $0x214] ss:$8 sps:$4 sm:$0xff]  }
 0x48b   :  { %15844 = vst [vmem:[#allocation55_spill] sm:$0xff] %v13207_v22 }
 0x48c   :  { %9752 = vmatmul.mubr.msk.bf16.vlgmr.msra.gmra.mxu1 %vm2948_vm9, %v13177_v0 }
 0x48d   :  { %3782 = vmatpush1.bf16.msra.mxu0 %v13184_v55  ;;  %3844 = vmatpush1.bf16.msra.mxu1 %v12454_v32  ;;  %v13218_v32 = vld [vmem:[%s15799_s6 + $0x18] sm:$0xff]   ;;  %s15982_s6 = sld [smem:[#allocation108_spill]] }
 0x48e   :  { %3845 = vmatprep.subr.bf16.mxu1 %v12440_v2  ;;  %3783 = vmatprep.subr.bf16.mxu0 %v13191_v18  ;;  %v13225_v2 = vld [vmem:[%s15798_s5 + $0x210] ss:$8 sps:$4 sm:$0xff]  }
 0x48f   :  { %3863 = vmatprep.mubr.bf16.mxu1 %v15840_v62  ;;  %15845 = vst [vmem:[#allocation56_spill] sm:$0xff] %v13225_v2 }
 0x491   :  { %3784 = vmatpush1.bf16.msra.mxu0 %v13200_v20  ;;  %3846 = vmatpush1.bf16.msra.mxu1 %v12436_v54  ;;  %v13242_v54 = vld [vmem:[%s15798_s5 + $0x364] ss:$8 sps:$4 sm:$0xff]   ;;  %v13352_v20 = vld [vmem:[%s15798_s5 + $0x320] ss:$8 sps:$4 sm:$0xff]  }
 0x492   :  { %3785 = vmatprep.subr.bf16.mxu0 %v13207_v22  ;;  %4069 = vmatprep.subr.bf16.mxu1 %v13212_v24  ;;  %v13340_v22 = vld [vmem:[%s15798_s5 + $0x324] ss:$8 sps:$4 sm:$0xff]   ;;  %15862 = vst [vmem:[#allocation73_spill] sm:$0xff] %v13352_v20 }
 0x493   :  { %15860 = vst [vmem:[#allocation71_spill] sm:$0xff] %v13340_v22 }
 0x494   :  { %9820 = vmatmul.mubr.msk.bf16.vlgmr.msra.gmra.mxu1 %vm2948_vm9, %v13218_v32 }
 0x495   :  { %3786 = vmatpush1.bf16.msra.mxu0 %v13225_v2  ;;  %4070 = vmatpush1.bf16.msra.mxu1 %v13230_v57  ;;  %v13328_v2 = vld [vmem:[%s15798_s5 + $0x330] ss:$8 sps:$4 sm:$0xff]  }
 0x496   :  { %3787 = vmatprep.subr.bf16.mxu0 %v13237_v26  ;;  %4071 = vmatprep.subr.bf16.mxu1 %v13242_v54  ;;  %v13316_v26 = vld [vmem:[%s15798_s5 + $0x334] ss:$8 sps:$4 sm:$0xff]   ;;  %15858 = vst [vmem:[#allocation69_spill] sm:$0xff] %v13328_v2 }
 0x497   :  { %15856 = vst [vmem:[#allocation67_spill] sm:$0xff] %v13316_v26 }
 0x499   :  { %3788 = vmatpush1.bf16.msra.mxu0 %v13251_v14  ;;  %4072 = vmatpush1.bf16.msra.mxu1 %v13256_v1  ;;  %v13304_v14 = vld [vmem:[%s15798_s5 + $0x340] ss:$8 sps:$4 sm:$0xff]  }
 0x49a   :  { %3789 = vmatprep.subr.bf16.mxu0 %v13263_v61  ;;  %4073 = vmatprep.subr.bf16.mxu1 %v13268_v35  ;;  %v13299_v61 = vld [vmem:[%s15798_s5 + $0x2e0] ss:$8 sps:$4 sm:$0xff]   ;;  %15854 = vst [vmem:[#allocation65_spill] sm:$0xff] %v13304_v14 }
 0x49b   :  { %15853 = vst [vmem:[#allocation64_spill] sm:$0xff] %v13299_v61 }
 0x49d   :  { %3790 = vmatpush2.bf16.msra.mxu0 %v13275_v40  ;;  %4074 = vmatpush1.bf16.msra.mxu1 %v13280_v45  ;;  %v13311_v40 = vld [vmem:[%s15798_s5 + $0x2d4] ss:$8 sps:$4 sm:$0xff]  }
 0x49e   :  { %3791 = vmatprep.subr.bf16.mxu0 %v13287_v60  ;;  %4075 = vmatprep.subr.bf16.mxu1 %v13292_v12  ;;  %15855 = vst [vmem:[#allocation66_spill] sm:$0xff] %v13311_v40  ;;  %v13323_v60 = vld [vmem:[%s15798_s5 + $0x2d0] ss:$8 sps:$4 sm:$0xff]  }
 0x49f   :  { %15857 = vst [vmem:[#allocation68_spill] sm:$0xff] %v13323_v60 }
 0x4a1   :  { %3792 = vmatpush2.bf16.msra.mxu0 %v13299_v61  ;;  %4076 = vmatpush1.bf16.msra.mxu1 %v13304_v14  ;;  %v13335_v61 = vld [vmem:[%s15798_s5 + $0x2c4] ss:$8 sps:$4 sm:$0xff]   ;;  %v2853_v14 = vpop.f32.mrf.mxu0 }
 0x4a2   :  { %3793 = vmatprep.subr.bf16.mxu0 %v13311_v40  ;;  %4077 = vmatprep.subr.bf16.mxu1 %v13316_v26  ;;  %15859 = vst [vmem:[#allocation70_spill] sm:$0xff] %v13335_v61  ;;  %v13347_v40 = vld [vmem:[%s15798_s5 + $0x2c0] ss:$8 sps:$4 sm:$0xff]   ;;  %v2202_v26 = vadd.f32 %v13104_v34, %v12694_v5  ;;  %v13385_v5 = vld [vmem:[%s15798_s5 + $0x2a4] ss:$8 sps:$4 sm:$0xff]  }
 0x4a3   :  { %15861 = vst [vmem:[#allocation72_spill] sm:$0xff] %v13347_v40  ;;  %15867 = vst [vmem:[#allocation78_spill] sm:$0xff] %v13385_v5  ;;  %v13390_v34 = vld [vmem:[%s15798_s5 + $0x304] ss:$8 sps:$4 sm:$0xff]  }
 0x4a4   :  { %15868 = vst [vmem:[#allocation79_spill] sm:$0xff] %v13390_v34 }
 0x4a5   :  { %3794 = vmatpush2.bf16.msra.mxu0 %v13323_v60  ;;  %4078 = vmatpush1.bf16.msra.mxu1 %v13328_v2  ;;  %v13359_v60 = vld [vmem:[%s15798_s5 + $0x2b4] ss:$8 sps:$4 sm:$0xff]  }
 0x4a6   :  { %3795 = vmatprep.subr.bf16.mxu0 %v13335_v61  ;;  %4079 = vmatprep.subr.bf16.mxu1 %v13340_v22  ;;  %15863 = vst [vmem:[#allocation74_spill] sm:$0xff] %v13359_v60  ;;  %v13364_v2 = vld [vmem:[%s15798_s5 + $0x314] ss:$8 sps:$4 sm:$0xff]   ;;  %v13373_v61 = vld [vmem:[%s15798_s5 + $0x2b0] ss:$8 sps:$4 sm:$0xff]  }
 0x4a7   :  { %15864 = vst [vmem:[#allocation75_spill] sm:$0xff] %v13364_v2  ;;  %15865 = vst [vmem:[#allocation76_spill] sm:$0xff] %v13373_v61  ;;  %v13378_v22 = vld [vmem:[%s15798_s5 + $0x310] ss:$8 sps:$4 sm:$0xff]  }
 0x4a8   :  { %15866 = vst [vmem:[#allocation77_spill] sm:$0xff] %v13378_v22 }
 0x4a9   :  { %3796 = vmatpush2.bf16.msra.mxu0 %v13347_v40  ;;  %4080 = vmatpush1.bf16.msra.mxu1 %v13352_v20  ;;  %v2533_v40 = vadd.f32 %v13113_v27, %v2202_v26  ;;  %v2531_v20 = vadd.f32 %v13110_v43, %v12690_v13  ;;  %v13412_v13 = vld [vmem:[%s15798_s5 + $0x294] ss:$8 sps:$4 sm:$0xff]  }
 0x4aa   :  { %3797 = vmatprep.subr.bf16.mxu0 %v13359_v60  ;;  %4081 = vmatprep.subr.bf16.mxu1 %v13364_v2  ;;  %v13400_v60 = vld [vmem:[%s15798_s5 + $0x2a0] ss:$8 sps:$4 sm:$0xff]   ;;  %15871 = vst [vmem:[#allocation82_spill] sm:$0xff] %v13412_v13  ;;  %v13417_v27 = vld [vmem:[%s15798_s5 + $0x3f4] ss:$8 sps:$4 sm:$0xff]  }
 0x4ab   :  { %v2863_v18 = vadd.f32 %v2853_v14, %v2533_v40  ;;  %15869 = vst [vmem:[#allocation80_spill] sm:$0xff] %v13400_v60  ;;  %v13405_v2 = vld [vmem:[%s15798_s5 + $0x300] ss:$8 sps:$4 sm:$0xff]   ;;  %15872 = vst [vmem:[#allocation83_spill] sm:$0xff] %v13417_v27  ;;  %v2861_v43 = vadd.f32 %v13129_v17, %v2531_v20  ;;  %v13425_v14 = vld [vmem:[%s15798_s5 + $0x290] ss:$8 sps:$4 sm:$0xff]  }
 0x4ac   :  { %15870 = vst [vmem:[#allocation81_spill] sm:$0xff] %v13405_v2  ;;  %15873 = vst [vmem:[#allocation84_spill] sm:$0xff] %v13425_v14  ;;  %v13430_v40 = vld [vmem:[%s15798_s5 + $0x3f0] ss:$8 sps:$4 sm:$0xff]   ;;  %v13437_v17 = vld [vmem:[%s15798_s5 + $0x284] ss:$8 sps:$4 sm:$0xff]  }
 0x4ad   :  { %3798 = vmatpush2.bf16.msra.mxu0 %v13373_v61  ;;  %4082 = vmatpush1.bf16.msra.mxu1 %v13378_v22  ;;  %v2879_v26 = vmul.f32 0.2, %v2863_v18  ;;  %15874 = vst [vmem:[#allocation85_spill] sm:$0xff] %v13430_v40  ;;  %vm2871_vm1 = vcmp.gt.f32.partialorder %v2863_v18, 0.0  ;;  %15875 = vst [vmem:[#allocation86_spill] sm:$0xff] %v13437_v17  ;;  %vm2869_vm2 = vcmp.gt.f32.partialorder %v2861_v43, 0.0 }
 0x4ae   :  { %3799 = vmatprep.subr.bf16.mxu0 %v13385_v5  ;;  %4083 = vmatprep.subr.bf16.mxu1 %v13390_v34  ;;  %v13442_v20 = vld [vmem:[%s15798_s5 + $0x3e4] ss:$8 sps:$4 sm:$0xff]   ;;  %v13454_v61 = vld [vmem:[%s15798_s5 + $0x3e0] ss:$8 sps:$4 sm:$0xff]  }
 0x4af   :  { %15876 = vst [vmem:[#allocation87_spill] sm:$0xff] %v13442_v20  ;;  %v2887_v5 = vsel %vm2871_vm1, %v2863_v18, %v2879_v26  ;;  %15878 = vst [vmem:[#allocation89_spill] sm:$0xff] %v13454_v61  ;;  %v13461_v18 = vld [vmem:[%s15798_s5 + $0x3d4] ss:$8 sps:$4 sm:$0xff]  }
 0x4b0   :  { %15879 = vst [vmem:[#allocation90_spill] sm:$0xff] %v13461_v18 }
 0x4b1   :  { %3800 = vmatpush2.bf16.msra.mxu0 %v13400_v60  ;;  %4084 = vmatpush1.bf16.msra.mxu1 %v13405_v2  ;;  %v2877_v60 = vmul.f32 0.2, %v2861_v43 }
 0x4b2   :  { %3801 = vmatprep.subr.bf16.mxu0 %v13412_v13  ;;  %4085 = vmatprep.subr.bf16.mxu1 %v13417_v27  ;;  %v13449_v13 = vld [vmem:[%s15798_s5 + $0x280] ss:$8 sps:$4 sm:$0xff]  }
 0x4b3   :  { %15877 = vst [vmem:[#allocation88_spill] sm:$0xff] %v13449_v13  ;;  %v2885_v26 = vsel %vm2869_vm2, %v2861_v43, %v2877_v60  ;;  %v13483_v60 = vld [vmem:[%s15798_s5 + $0x3c0] ss:$8 sps:$4 sm:$0xff]   ;;  %v13495_v43 = vld [vmem:[%s15798_s5 + $0x3b0] ss:$8 sps:$4 sm:$0xff]  }
 0x4b4   :  { %15882 = vst [vmem:[#allocation93_spill] sm:$0xff] %v13483_v60  ;;  %15884 = vst [vmem:[#allocation95_spill] sm:$0xff] %v13495_v43 }
 0x4b5   :  { %3802 = vmatpush2.bf16.msra.mxu0 %v13425_v14  ;;  %4086 = vmatpush2.bf16.msra.mxu1 %v13430_v40  ;;  %v13463_v14 = vpack.c.bf16 %v2887_v5, %v2885_v26  ;;  %v13470_v40 = vld [vmem:[%s15798_s5 + $0x3d0] ss:$8 sps:$4 sm:$0xff]   ;;  %v13489_v5 = vld [vmem:[%s15798_s5 + $0x3b4] ss:$8 sps:$4 sm:$0xff]   ;;  %v13501_v26 = vld [vmem:[%s15798_s5 + $0x3a4] ss:$8 sps:$4 sm:$0xff]  }
 0x4b6   :  { %3803 = vmatprep.subr.bf16.mxu0 %v13437_v17  ;;  %4087 = vmatprep.subr.bf16.mxu1 %v13442_v20  ;;  %15880 = vst [vmem:[#allocation91_spill] sm:$0xff] %v13470_v40  ;;  %v13477_v17 = vld [vmem:[%s15798_s5 + $0x3c4] ss:$8 sps:$4 sm:$0xff]   ;;  %15883 = vst [vmem:[#allocation94_spill] sm:$0xff] %v13489_v5 }
 0x4b7   :  { %15881 = vst [vmem:[#allocation92_spill] sm:$0xff] %v13477_v17  ;;  %15885 = vst [vmem:[#allocation96_spill] sm:$0xff] %v13501_v26 }
 0x4b9   :  { %3804 = vmatpush2.bf16.msra.mxu0 %v13449_v13  ;;  %4088 = vmatpush2.bf16.msra.mxu1 %v13454_v61  ;;  %v13507_v13 = vld [vmem:[%s15798_s5 + $0x3a0] ss:$8 sps:$4 sm:$0xff]  }
 0x4ba   :  { %4197 = vmatprep.subr.bf16.mxu0 %v13463_v14  ;;  %4089 = vmatprep.subr.bf16.mxu1 %v13461_v18  ;;  %15886 = vst [vmem:[#allocation97_spill] sm:$0xff] %v13507_v13 }
 0x4bd   :  { %4090 = vmatpush2.bf16.msra.mxu1 %v13470_v40 }
 0x4be   :  { %4091 = vmatprep.subr.bf16.mxu1 %v13477_v17 }
 0x4c1   :  { %4092 = vmatpush2.bf16.msra.mxu1 %v13483_v60  ;;  %v13513_v60 = vld [vmem:[%s15798_s5 + $0x394] ss:$8 sps:$4 sm:$0xff]  }
 0x4c2   :  { %4093 = vmatprep.subr.bf16.mxu1 %v13489_v5  ;;  %15887 = vst [vmem:[#allocation98_spill] sm:$0xff] %v13513_v60  ;;  %v13519_v5 = vld [vmem:[%s15798_s5 + $0x390] ss:$8 sps:$4 sm:$0xff]  }
 0x4c3   :  { %15888 = vst [vmem:[#allocation99_spill] sm:$0xff] %v13519_v5 }
 0x4c5   :  { %4094 = vmatpush2.bf16.msra.mxu1 %v13495_v43  ;;  %v13525_v43 = vld [vmem:[%s15798_s5 + $0x384] ss:$8 sps:$4 sm:$0xff]  }
 0x4c6   :  { %4095 = vmatprep.subr.bf16.mxu1 %v13501_v26  ;;  %15889 = vst [vmem:[#allocation100_spill] sm:$0xff] %v13525_v43  ;;  %v13531_v26 = vld [vmem:[%s15798_s5 + $0x380] ss:$8 sps:$4 sm:$0xff]  }
 0x4c7   :  { %15890 = vst [vmem:[#allocation101_spill] sm:$0xff] %v13531_v26 }
 0x4c9   :  { %4096 = vmatpush2.bf16.msra.mxu1 %v13507_v13 }
 0x4ca   :  { %4097 = vmatprep.subr.bf16.mxu1 %v13513_v60 }
 0x4cd   :  { %4098 = vmatpush2.bf16.msra.mxu1 %v13519_v5 }
 0x4ce   :  { %4099 = vmatprep.subr.bf16.mxu1 %v13525_v43 }
 0x4d1   :  { %4100 = vmatpush2.bf16.msra.mxu1 %v13531_v26 }
 0x4d2   :  { %4152 = vmatprep.subr.bf16.mxu1 %v13463_v14 }
 0x53c   :  { %v3515_v13 = vpop.f32.mrf.mxu0 }
 0x53e   :  { %v3517_v60 = vpop.f32.mrf.mxu0 }
 0x540   :  { %v3519_v5 = vpop.f32.mrf.mxu0 }
 0x544   :  { %v3312_v17 = vpop.f32.mrf.mxu1 }
 0x545   :  { %v13536_v40 = vadd.f32 %v3515_v13, %v3312_v17 }
 0x546   :  { %v3314_v18 = vpop.f32.mrf.mxu1 }
 0x547   :  { %v13538_v61 = vadd.f32 %v3517_v60, %v3314_v18 }
 0x548   :  { %v3316_v20 = vpop.f32.mrf.mxu1 }
 0x549   :  { %v13540_v27 = vadd.f32 %v3519_v5, %v3316_v20  ;;  %v15923_v5 = vld [vmem:[#allocation49_spill] sm:$0xff] }
 0x54a   :  { %v13542_v2 = vpop.f32.mrf.mxu1 }
 0x54c   :  { %v3569_v34 = vpop.f32.mrf.mxu1 }
 0x54e   :  { %v3571_v43 = vpop.f32.mrf.mxu1 }
 0x550   :  { %v3573_v22 = vpop.f32.mrf.mxu1 }
 0x551   :  { %v3578_v12 = vpack.c.bf16 %v3573_v22, %v3569_v34  ;;  %v15919_v22 = vld [vmem:[#allocation47_spill] sm:$0xff]  ;;  %v15922_v34 = vld [vmem:[#allocation48_spill] sm:$0xff] }
 0x552   :  { %v3575_v26 = vpop.f32.mrf.mxu1 }
 0x553   :  { %v3579_v55 = vpack.c.bf16 %v3575_v26, %v3571_v43  ;;  %v15924_v43 = vld [vmem:[#allocation38_spill] sm:$0xff]  ;;  %v15925_v26 = vld [vmem:[#allocation41_spill] sm:$0xff] }
 0x554   :  { %v3865_v45 = vpop.f32.mrf.mxu1 }
 0x555   :  { %3805 = vmatprep.mubr.bf16.mxu0 %v3579_v55  ;;  %v15918_v55 = vld [vmem:[#allocation43_spill] sm:$0xff] }
 0x556   :  { %3806 = vmatmul.mubr.bf16.vlgmr.msra.gmra.mxu0 %v3578_v12  ;;  %v3867_v13 = vpop.f32.mrf.mxu1  ;;  %v15921_v12 = vld [vmem:[#allocation37_spill] sm:$0xff] }
 0x557   :  { %4198 = vmatpush1.bf16.msra.mxu0 %v13157_v25  ;;  %4217 = vmatprep.mubr.bf16.mxu0 %v15840_v62 }
 0x558   :  { %4199 = vmatprep.subr.bf16.mxu0 %v13131_v23  ;;  %v3869_v17 = vpop.f32.mrf.mxu1 }
 0x559   :  { %v3874_v20 = vpack.c.bf16 %v3869_v17, %v3865_v45  ;;  %v15920_v45 = vld [vmem:[#allocation34_spill] sm:$0xff]  ;;  %v15927_v17 = vld [vmem:[#allocation51_spill] sm:$0xff] }
 0x55a   :  { %v3871_v18 = vpop.f32.mrf.mxu1 }
 0x55b   :  { %v3875_v60 = vpack.c.bf16 %v3871_v18, %v3867_v13  ;;  %4200 = vmatpush1.bf16.msra.mxu0 %v13127_v58  ;;  %v15926_v13 = vld [vmem:[#allocation50_spill] sm:$0xff]  ;;  %v15929_v18 = vld [vmem:[#allocation45_spill] sm:$0xff] }
 0x55c   :  { %4273 = vmatprep.subr.bf16.mxu0 %v12675_v63  ;;  %v15891_v63 = vld [vmem:[#allocation12_spill] sm:$0xff] }
 0x55d   :  { %4101 = vmatprep.mubr.bf16.mxu1 %v3875_v60  ;;  %v15930_v60 = vld [vmem:[#allocation46_spill] sm:$0xff] }
 0x55e   :  { %4102 = vmatmul.mubr.bf16.vlgmr.msra.gmra.mxu1 %v3874_v20  ;;  %9890 = vmatmul.mubr.msk.bf16.vlgmr.msra.gmra.mxu0 %vm2948_vm9, %v12741_v56  ;;  %v15898_v56 = vld [vmem:[#allocation19_spill] sm:$0xff]  ;;  %v15928_v20 = vld [vmem:[#allocation42_spill] sm:$0xff] }
 0x55f   :  { %4153 = vmatpush1.bf16.msra.mxu1 %v13157_v25  ;;  %4172 = vmatprep.mubr.bf16.mxu1 %v15840_v62 }
 0x560   :  { %4154 = vmatprep.subr.bf16.mxu1 %v13131_v23  ;;  %4274 = vmatpush1.bf16.msra.mxu0 %v12709_v38  ;;  %v15893_v38 = vld [vmem:[#allocation14_spill] sm:$0xff] }
 0x561   :  { %4275 = vmatprep.subr.bf16.mxu0 %v12714_v39  ;;  %v15894_v39 = vld [vmem:[#allocation15_spill] sm:$0xff] }
 0x563   :  { %4155 = vmatpush1.bf16.msra.mxu1 %v13127_v58 }
 0x564   :  { %4230 = vmatprep.subr.bf16.mxu1 %v12724_v41  ;;  %4276 = vmatpush1.bf16.msra.mxu0 %v12730_v9  ;;  %v15895_v41 = vld [vmem:[#allocation16_spill] sm:$0xff]  ;;  %v15896_v9 = vld [vmem:[#allocation17_spill] sm:$0xff] }
 0x565   :  { %4277 = vmatprep.subr.bf16.mxu0 %v12736_v42  ;;  %v15897_v42 = vld [vmem:[#allocation18_spill] sm:$0xff] }
 0x566   :  { %9889 = vmatmul.mubr.msk.bf16.vlgmr.msra.gmra.mxu1 %vm2948_vm9, %v12704_v36  ;;  %v15892_v36 = vld [vmem:[#allocation13_spill] sm:$0xff] }
 0x567   :  { %4231 = vmatpush1.bf16.msra.mxu1 %v12747_v46  ;;  %v15899_v46 = vld [vmem:[#allocation20_spill] sm:$0xff] }
 0x568   :  { %4232 = vmatprep.subr.bf16.mxu1 %v12753_v47  ;;  %4278 = vmatpush1.bf16.msra.mxu0 %v12759_v48  ;;  %v15900_v47 = vld [vmem:[#allocation21_spill] sm:$0xff]  ;;  %v15901_v48 = vld [vmem:[#allocation22_spill] sm:$0xff] }
 0x569   :  { %4279 = vmatprep.subr.bf16.mxu0 %v12765_v49  ;;  %v15902_v49 = vld [vmem:[#allocation23_spill] sm:$0xff] }
 0x56b   :  { %4233 = vmatpush1.bf16.msra.mxu1 %v12773_v50  ;;  %v15903_v50 = vld [vmem:[#allocation32_spill] sm:$0xff] }
 0x56c   :  { %4234 = vmatprep.subr.bf16.mxu1 %v12779_v51  ;;  %4280 = vmatpush1.bf16.msra.mxu0 %v12785_v44  ;;  %v15904_v51 = vld [vmem:[#allocation24_spill] sm:$0xff]  ;;  %v15905_v44 = vld [vmem:[#allocation25_spill] sm:$0xff] }
 0x56d   :  { %4281 = vmatprep.subr.bf16.mxu0 %v12791_v52  ;;  %v15906_v52 = vld [vmem:[#allocation31_spill] sm:$0xff] }
 0x56f   :  { %4235 = vmatpush1.bf16.msra.mxu1 %v12797_v16  ;;  %v15907_v16 = vld [vmem:[#allocation36_spill] sm:$0xff] }
 0x570   :  { %4236 = vmatprep.subr.bf16.mxu1 %v12803_v21  ;;  %4282 = vmatpush1.bf16.msra.mxu0 %v12809_v53  ;;  %v15908_v21 = vld [vmem:[#allocation26_spill] sm:$0xff]  ;;  %v15909_v53 = vld [vmem:[#allocation27_spill] sm:$0xff] }
 0x571   :  { %4283 = vmatprep.subr.bf16.mxu0 %v12815_v59  ;;  %v15910_v59 = vld [vmem:[#allocation35_spill] sm:$0xff] }
 0x573   :  { %4237 = vmatpush1.bf16.msra.mxu1 %v12821_v28  ;;  %v15911_v28 = vld [vmem:[#allocation40_spill] sm:$0xff] }
 0x574   :  { %4238 = vmatprep.subr.bf16.mxu1 %v12827_v3  ;;  %4284 = vmatpush1.bf16.msra.mxu0 %v12833_v30  ;;  %v15912_v3 = vld [vmem:[#allocation28_spill] sm:$0xff]  ;;  %v15913_v30 = vld [vmem:[#allocation29_spill] sm:$0xff] }
 0x575   :  { %4285 = vmatprep.subr.bf16.mxu0 %v12839_v10  ;;  %v15914_v10 = vld [vmem:[#allocation39_spill] sm:$0xff] }
 0x577   :  { %4239 = vmatpush1.bf16.msra.mxu1 %v12845_v8  ;;  %v15915_v8 = vld [vmem:[#allocation44_spill] sm:$0xff] }
 0x578   :  { %4240 = vmatprep.subr.bf16.mxu1 %v12851_v11  ;;  %4286 = vmatpush1.bf16.msra.mxu0 %v12857_v6  ;;  %v15916_v11 = vld [vmem:[#allocation30_spill] sm:$0xff]  ;;  %v15917_v6 = vld [vmem:[#allocation33_spill] sm:$0xff] }
 0x579   :  { %4287 = vmatprep.subr.bf16.mxu0 %v15891_v63  ;;  %v3521_v63 = vpop.f32.mrf.mxu0 }
 0x57b   :  { %4241 = vmatpush1.bf16.msra.mxu1 %v15892_v36 }
 0x57c   :  { %4242 = vmatprep.subr.bf16.mxu1 %v15893_v38  ;;  %4288 = vmatpush1.bf16.msra.mxu0 %v15894_v39 }
 0x57d   :  { %4289 = vmatprep.subr.bf16.mxu0 %v15895_v41 }
 0x57f   :  { %4243 = vmatpush1.bf16.msra.mxu1 %v15896_v9 }
 0x580   :  { %4244 = vmatprep.subr.bf16.mxu1 %v15897_v42  ;;  %4290 = vmatpush2.bf16.msra.mxu0 %v15898_v56  ;;  %v3522_v42 = vadd.f32 %v3521_v63, %v13542_v2  ;;  %v15964_v63 = vld [vmem:[#allocation92_spill] sm:$0xff] }
 0x581   :  { %4291 = vmatprep.subr.bf16.mxu0 %v15899_v46 }
 0x583   :  { %4245 = vmatpush1.bf16.msra.mxu1 %v15900_v47 }
 0x584   :  { %4246 = vmatprep.subr.bf16.mxu1 %v15901_v48  ;;  %4292 = vmatpush2.bf16.msra.mxu0 %v15902_v49 }
 0x585   :  { %4293 = vmatprep.subr.bf16.mxu0 %v15903_v50 }
 0x587   :  { %4247 = vmatpush2.bf16.msra.mxu1 %v15904_v51 }
 0x588   :  { %4248 = vmatprep.subr.bf16.mxu1 %v15905_v44  ;;  %4294 = vmatpush2.bf16.msra.mxu0 %v15906_v52 }
 0x589   :  { %4295 = vmatprep.subr.bf16.mxu0 %v15907_v16 }
 0x58b   :  { %4249 = vmatpush2.bf16.msra.mxu1 %v15908_v21 }
 0x58c   :  { %4250 = vmatprep.subr.bf16.mxu1 %v15909_v53  ;;  %4296 = vmatpush2.bf16.msra.mxu0 %v15910_v59 }
 0x58d   :  { %4297 = vmatprep.subr.bf16.mxu0 %v15911_v28 }
 0x58f   :  { %4251 = vmatpush2.bf16.msra.mxu1 %v15912_v3 }
 0x590   :  { %4252 = vmatprep.subr.bf16.mxu1 %v15913_v30  ;;  %4298 = vmatpush2.bf16.msra.mxu0 %v15914_v10 }
 0x591   :  { %4299 = vmatprep.subr.bf16.mxu0 %v15915_v8 }
 0x593   :  { %4253 = vmatpush2.bf16.msra.mxu1 %v15916_v11 }
 0x594   :  { %4254 = vmatprep.subr.bf16.mxu1 %v15917_v6  ;;  %4300 = vmatpush2.bf16.msra.mxu0 %v15918_v55  ;;  %v15950_v6 = vld [vmem:[#allocation62_spill] sm:$0xff]  ;;  %v15951_v55 = vld [vmem:[#allocation81_spill] sm:$0xff] }
 0x595   :  { %4301 = vmatprep.subr.bf16.mxu0 %v15919_v22  ;;  %v15952_v22 = vld [vmem:[#allocation83_spill] sm:$0xff] }
 0x597   :  { %4255 = vmatpush2.bf16.msra.mxu1 %v15920_v45  ;;  %v15953_v45 = vld [vmem:[#allocation64_spill] sm:$0xff] }
 0x598   :  { %4256 = vmatprep.subr.bf16.mxu1 %v15921_v12  ;;  %4302 = vmatpush2.bf16.msra.mxu0 %v15922_v34  ;;  %v15954_v12 = vld [vmem:[#allocation66_spill] sm:$0xff]  ;;  %v15955_v34 = vld [vmem:[#allocation85_spill] sm:$0xff] }
 0x599   :  { %4303 = vmatprep.subr.bf16.mxu0 %v15923_v5  ;;  %v15956_v5 = vld [vmem:[#allocation87_spill] sm:$0xff] }
 0x59b   :  { %4257 = vmatpush2.bf16.msra.mxu1 %v15924_v43  ;;  %v15957_v43 = vld [vmem:[#allocation68_spill] sm:$0xff] }
 0x59c   :  { %4258 = vmatprep.subr.bf16.mxu1 %v15925_v26  ;;  %4304 = vmatpush2.bf16.msra.mxu0 %v15926_v13  ;;  %v15958_v26 = vld [vmem:[#allocation70_spill] sm:$0xff]  ;;  %v15959_v13 = vld [vmem:[#allocation89_spill] sm:$0xff] }
 0x59d   :  { %4361 = vmatprep.subr.bf16.mxu0 %v15927_v17  ;;  %v15960_v17 = vld [vmem:[#allocation90_spill] sm:$0xff] }
 0x59f   :  { %4259 = vmatpush2.bf16.msra.mxu1 %v15928_v20  ;;  %v15961_v20 = vld [vmem:[#allocation72_spill] sm:$0xff] }
 0x5a0   :  { %4260 = vmatprep.subr.bf16.mxu1 %v15929_v18  ;;  %v15962_v18 = vld [vmem:[#allocation74_spill] sm:$0xff] }
 0x5a3   :  { %4261 = vmatpush2.bf16.msra.mxu1 %v15930_v60  ;;  %v15963_v60 = vld [vmem:[#allocation91_spill] sm:$0xff] }
 0x5a4   :  { %4328 = vmatprep.subr.bf16.mxu1 %v13463_v14 }
 0x616   :  { %v3807_v36 = vpop.f32.mrf.mxu0 }
 0x617   :  { %v3816_v38 = vadd.f32 %v3807_v36, %v13536_v40  ;;  %v15965_v36 = vld [vmem:[#allocation76_spill] sm:$0xff] }
 0x618   :  { %v3809_v39 = vpop.f32.mrf.mxu0 }
 0x619   :  { %v3817_v41 = vadd.f32 %v3809_v39, %v13538_v61  ;;  %v15967_v39 = vld [vmem:[#allocation93_spill] sm:$0xff] }
 0x61a   :  { %v3811_v9 = vpop.f32.mrf.mxu0 }
 0x61b   :  { %v3818_v56 = vadd.f32 %v3811_v9, %v13540_v27  ;;  %v15969_v9 = vld [vmem:[#allocation80_spill] sm:$0xff] }
 0x61c   :  { %v3813_v46 = vpop.f32.mrf.mxu0 }
 0x61d   :  { %v3819_v47 = vadd.f32 %v3813_v46, %v3522_v42  ;;  %v15970_v42 = vld [vmem:[#allocation82_spill] sm:$0xff]  ;;  %v15972_v46 = vld [vmem:[#allocation96_spill] sm:$0xff] }
 0x61e   :  { %v4103_v48 = vpop.f32.mrf.mxu1  ;;  %v4219_v49 = vpop.f32.mrf.mxu0 }
 0x61f   :  { %v13626_v50 = vadd.f32 %v4103_v48, %v3816_v38  ;;  %v15966_v38 = vld [vmem:[#allocation78_spill] sm:$0xff] }
 0x620   :  { %v4105_v51 = vpop.f32.mrf.mxu1  ;;  %v4221_v44 = vpop.f32.mrf.mxu0  ;;  %v15974_v48 = vld [vmem:[#allocation86_spill] sm:$0xff] }
 0x621   :  { %v13628_v52 = vadd.f32 %v4105_v51, %v3817_v41  ;;  %v15968_v41 = vld [vmem:[#allocation94_spill] sm:$0xff] }
 0x622   :  { %v4107_v16 = vpop.f32.mrf.mxu1  ;;  %v4223_v40 = vpop.f32.mrf.mxu0  ;;  %v15976_v51 = vld [vmem:[#allocation98_spill] sm:$0xff] }
 0x623   :  { %v13630_v21 = vadd.f32 %v4107_v16, %v3818_v56  ;;  %v4228_v27 = vpack.c.bf16 %v4223_v40, %v4219_v49  ;;  %v15971_v56 = vld [vmem:[#allocation95_spill] sm:$0xff]  ;;  %v15975_v49 = vld [vmem:[#allocation97_spill] sm:$0xff]  ;;  %v15979_v40 = vld [vmem:[#allocation100_spill] sm:$0xff] }
 0x624   :  { %v4109_v61 = vpop.f32.mrf.mxu1  ;;  %v4225_v53 = vpop.f32.mrf.mxu0  ;;  %v15978_v16 = vld [vmem:[#allocation99_spill] sm:$0xff] }
 0x625   :  { %v13632_v59 = vadd.f32 %v4109_v61, %v3819_v47  ;;  %v4229_v2 = vpack.c.bf16 %v4225_v53, %v4221_v44  ;;  %v15973_v47 = vld [vmem:[#allocation84_spill] sm:$0xff]  ;;  %v15980_v61 = vld [vmem:[#allocation101_spill] sm:$0xff] }
 0x626   :  { %v4174_v28 = vpop.f32.mrf.mxu1  ;;  %v15977_v44 = vld [vmem:[#allocation88_spill] sm:$0xff] }
 0x627   :  { %4262 = vmatprep.mubr.bf16.mxu1 %v4229_v2 }
 0x628   :  { %v4176_v3 = vpop.f32.mrf.mxu1  ;;  %4263 = vmatmul.mubr.bf16.vlgmr.msra.gmra.mxu1 %v4228_v27 }
 0x629   :  { %4329 = vmatpush1.bf16.msra.mxu1 %v13157_v25  ;;  %4348 = vmatprep.mubr.bf16.mxu1 %v15840_v62 }
 0x62a   :  { %4330 = vmatprep.subr.bf16.mxu1 %v13131_v23  ;;  %v4178_v30 = vpop.f32.mrf.mxu1 }
 0x62b   :  { %v4183_v8 = vpack.c.bf16 %v4178_v30, %v4174_v28 }
 0x62c   :  { %v4180_v10 = vpop.f32.mrf.mxu1 }
 0x62d   :  { %4331 = vmatpush1.bf16.msra.mxu1 %v13127_v58  ;;  %v4184_v11 = vpack.c.bf16 %v4180_v10, %v4176_v3 }
 0x62e   :  { %4420 = vmatprep.subr.bf16.mxu1 %v13463_v14  ;;  %v15949_v14 = vld [vmem:[#allocation60_spill] sm:$0xff] }
 0x62f   :  { %4305 = vmatprep.mubr.bf16.mxu0 %v4184_v11 }
 0x630   :  { %9891 = vmatmul.mubr.msk.bf16.vlgmr.msra.gmra.mxu1 %vm2948_vm9, %v13177_v0  ;;  %4306 = vmatmul.mubr.bf16.vlgmr.msra.gmra.mxu0 %v4183_v8  ;;  %v15942_v0 = vld [vmem:[#allocation57_spill] sm:$0xff] }
 0x631   :  { %4421 = vmatpush1.bf16.msra.mxu1 %v13157_v25  ;;  %4440 = vmatprep.mubr.bf16.mxu1 %v15840_v62  ;;  %v15939_v25 = vld [vmem:[#allocation69_spill] sm:$0xff] }
 0x632   :  { %4422 = vmatprep.subr.bf16.mxu1 %v13131_v23  ;;  %4362 = vmatpush1.bf16.msra.mxu0 %v13120_v19  ;;  %v15931_v19 = vld [vmem:[#allocation61_spill] sm:$0xff] }
 0x633   :  { %4363 = vmatprep.subr.bf16.mxu0 %v13125_v37  ;;  %v15932_v37 = vld [vmem:[#allocation63_spill] sm:$0xff]  ;;  %v15934_v23 = vld [vmem:[#allocation53_spill] sm:$0xff] }
 0x635   :  { %4423 = vmatpush1.bf16.msra.mxu1 %v13127_v58  ;;  %v15933_v58 = vld [vmem:[#allocation52_spill] sm:$0xff] }
 0x636   :  { %4453 = vmatprep.subr.bf16.mxu1 %v13212_v24  ;;  %4364 = vmatpush1.bf16.msra.mxu0 %v13137_v33  ;;  %v15935_v33 = vld [vmem:[#allocation65_spill] sm:$0xff] }
 0x637   :  { %4365 = vmatprep.subr.bf16.mxu0 %v13143_v15  ;;  %v15936_v15 = vld [vmem:[#allocation67_spill] sm:$0xff]  ;;  %v15943_v24 = vld [vmem:[#allocation73_spill] sm:$0xff] }
 0x638   :  { %9892 = vmatmul.mubr.msk.bf16.vlgmr.msra.gmra.mxu1 %vm2948_vm9, %v13218_v32  ;;  %v15944_v32 = vld [vmem:[#allocation75_spill] sm:$0xff] }
 0x639   :  { %4454 = vmatpush1.bf16.msra.mxu1 %v13230_v57  ;;  %v15945_v57 = vld [vmem:[#allocation58_spill] sm:$0xff] }
 0x63a   :  { %4455 = vmatprep.subr.bf16.mxu1 %v13242_v54  ;;  %4366 = vmatpush1.bf16.msra.mxu0 %v13149_v7  ;;  %v15937_v7 = vld [vmem:[#allocation54_spill] sm:$0xff]  ;;  %v15946_v54 = vld [vmem:[#allocation59_spill] sm:$0xff] }
 0x63b   :  { %4367 = vmatprep.subr.bf16.mxu0 %v13155_v29  ;;  %v15938_v29 = vld [vmem:[#allocation55_spill] sm:$0xff] }
 0x63d   :  { %4456 = vmatpush1.bf16.msra.mxu1 %v13256_v1  ;;  %v15947_v1 = vld [vmem:[#allocation77_spill] sm:$0xff] }
 0x63e   :  { %4457 = vmatprep.subr.bf16.mxu1 %v13268_v35  ;;  %4368 = vmatpush1.bf16.msra.mxu0 %v13164_v4  ;;  %v15940_v4 = vld [vmem:[#allocation71_spill] sm:$0xff] }
 0x63f   :  { %4369 = vmatprep.subr.bf16.mxu0 %v13171_v31  ;;  %v15941_v31 = vld [vmem:[#allocation56_spill] sm:$0xff]  ;;  %v15948_v35 = vld [vmem:[#allocation79_spill] sm:$0xff] }
 0x641   :  { %4458 = vmatpush1.bf16.msra.mxu1 %v15931_v19 }
 0x642   :  { %4459 = vmatprep.subr.bf16.mxu1 %v15932_v37  ;;  %4370 = vmatpush1.bf16.msra.mxu0 %v15933_v58 }
 0x643   :  { %4371 = vmatprep.subr.bf16.mxu0 %v15934_v23 }
 0x645   :  { %4460 = vmatpush1.bf16.msra.mxu1 %v15935_v33 }
 0x646   :  { %4461 = vmatprep.subr.bf16.mxu1 %v15936_v15  ;;  %4372 = vmatpush1.bf16.msra.mxu0 %v15937_v7 }
 0x647   :  { %4373 = vmatprep.subr.bf16.mxu0 %v15938_v29  ;;  %v4603_v29 = vld [vmem:[%s15981_s24 + $0xf8] sm:$0xff] }
 0x649   :  { %4462 = vmatpush1.bf16.msra.mxu1 %v15939_v25  ;;  %v4587_v25 = vld [vmem:[%s15981_s24 + $0x78] sm:$0xff] }
 0x64a   :  { %4463 = vmatprep.subr.bf16.mxu1 %v15940_v4  ;;  %4374 = vmatpush1.bf16.msra.mxu0 %v15941_v31  ;;  %v4602_v4 = vld [vmem:[%s15981_s24 + $0xf0] sm:$0xff] }
 0x64b   :  { %4375 = vmatprep.subr.bf16.mxu0 %v15942_v0  ;;  %v4586_v31 = vld [vmem:[%s15981_s24 + $0x70] sm:$0xff]  ;;  %v4601_v0 = vld [vmem:[%s15981_s24 + $0xe8] sm:$0xff] }
 0x64d   :  { %4464 = vmatpush1.bf16.msra.mxu1 %v15943_v24  ;;  %v4585_v24 = vld [vmem:[%s15981_s24 + $0x68] sm:$0xff] }
 0x64e   :  { %4465 = vmatprep.subr.bf16.mxu1 %v15944_v32  ;;  %4376 = vmatpush1.bf16.msra.mxu0 %v15945_v57  ;;  %v4600_v32 = vld [vmem:[%s15981_s24 + $0xe0] sm:$0xff] }
 0x64f   :  { %4377 = vmatprep.subr.bf16.mxu0 %v15946_v54  ;;  %v4584_v57 = vld [vmem:[%s15981_s24 + $0x60] sm:$0xff]  ;;  %v4599_v54 = vld [vmem:[%s15981_s24 + $0xd8] sm:$0xff] }
 0x651   :  { %4466 = vmatpush1.bf16.msra.mxu1 %v15947_v1  ;;  %v4583_v1 = vld [vmem:[%s15981_s24 + $0x58] sm:$0xff] }
 0x652   :  { %4467 = vmatprep.subr.bf16.mxu1 %v15948_v35  ;;  %4378 = vmatpush2.bf16.msra.mxu0 %v15949_v14  ;;  %v4598_v35 = vld [vmem:[%s15981_s24 + $0xd0] sm:$0xff] }
 0x653   :  { %4379 = vmatprep.subr.bf16.mxu0 %v15950_v6  ;;  %v4582_v14 = vld [vmem:[%s15981_s24 + $0x50] sm:$0xff]  ;;  %v4597_v6 = vld [vmem:[%s15981_s24 + $0xc8] sm:$0xff] }
 0x655   :  { %4468 = vmatpush1.bf16.msra.mxu1 %v15951_v55  ;;  %v4581_v55 = vld [vmem:[%s15981_s24 + $0x48] sm:$0xff] }
 0x656   :  { %4469 = vmatprep.subr.bf16.mxu1 %v15952_v22  ;;  %4380 = vmatpush2.bf16.msra.mxu0 %v15953_v45  ;;  %v4596_v22 = vld [vmem:[%s15981_s24 + $0xc0] sm:$0xff] }
 0x657   :  { %4381 = vmatprep.subr.bf16.mxu0 %v15954_v12  ;;  %v4580_v45 = vld [vmem:[%s15981_s24 + $0x40] sm:$0xff]  ;;  %v4595_v12 = vld [vmem:[%s15981_s24 + $0xb8] sm:$0xff] }
 0x659   :  { %4470 = vmatpush2.bf16.msra.mxu1 %v15955_v34  ;;  %v4579_v34 = vld [vmem:[%s15981_s24 + $0x38] sm:$0xff] }
 0x65a   :  { %4471 = vmatprep.subr.bf16.mxu1 %v15956_v5  ;;  %4382 = vmatpush2.bf16.msra.mxu0 %v15957_v43  ;;  %v4594_v5 = vld [vmem:[%s15981_s24 + $0xb0] sm:$0xff] }
 0x65b   :  { %4383 = vmatprep.subr.bf16.mxu0 %v15958_v26  ;;  %v4578_v43 = vld [vmem:[%s15981_s24 + $0x30] sm:$0xff]  ;;  %v4593_v26 = vld [vmem:[%s15981_s24 + $0xa8] sm:$0xff] }
 0x65d   :  { %4472 = vmatpush2.bf16.msra.mxu1 %v15959_v13  ;;  %v4577_v13 = vld [vmem:[%s15981_s24 + $0x28] sm:$0xff] }
 0x65e   :  { %4473 = vmatprep.subr.bf16.mxu1 %v15960_v17  ;;  %4384 = vmatpush2.bf16.msra.mxu0 %v15961_v20  ;;  %v4592_v17 = vld [vmem:[%s15981_s24 + $0xa0] sm:$0xff] }
 0x65f   :  { %4385 = vmatprep.subr.bf16.mxu0 %v15962_v18  ;;  %v4576_v20 = vld [vmem:[%s15981_s24 + $0x20] sm:$0xff]  ;;  %v4591_v18 = vld [vmem:[%s15981_s24 + $0x98] sm:$0xff] }
 0x661   :  { %4474 = vmatpush2.bf16.msra.mxu1 %v15963_v60  ;;  %v4575_v60 = vld [vmem:[%s15981_s24 + $0x18] sm:$0xff] }
 0x662   :  { %4475 = vmatprep.subr.bf16.mxu1 %v15964_v63  ;;  %4386 = vmatpush2.bf16.msra.mxu0 %v15965_v36  ;;  %v4590_v63 = vld [vmem:[%s15981_s24 + $0x90] sm:$0xff] }
 0x663   :  { %4387 = vmatprep.subr.bf16.mxu0 %v15966_v38  ;;  %v4574_v36 = vld [vmem:[%s15981_s24 + $0x10] sm:$0xff]  ;;  %v4589_v38 = vld [vmem:[%s15981_s24 + $0x88] sm:$0xff] }
 0x665   :  { %4476 = vmatpush2.bf16.msra.mxu1 %v15967_v39  ;;  %v4573_v39 = vld [vmem:[%s15981_s24 + $0x8] sm:$0xff] }
 0x666   :  { %4477 = vmatprep.subr.bf16.mxu1 %v15968_v41  ;;  %4388 = vmatpush2.bf16.msra.mxu0 %v15969_v9  ;;  %v4588_v41 = vld [vmem:[%s15981_s24 + $0x80] sm:$0xff] }
 0x667   :  { %4389 = vmatprep.subr.bf16.mxu0 %v15970_v42  ;;  %v4572_v9 = vld [vmem:[%s15981_s24] sm:$0xff] }
 0x669   :  { %4478 = vmatpush2.bf16.msra.mxu1 %v15971_v56 }
 0x66a   :  { %4479 = vmatprep.subr.bf16.mxu1 %v15972_v46  ;;  %4390 = vmatpush2.bf16.msra.mxu0 %v15973_v47 }
 0x66b   :  { %4391 = vmatprep.subr.bf16.mxu0 %v15974_v48 }
 0x66d   :  { %4480 = vmatpush2.bf16.msra.mxu1 %v15975_v49  ;;  %v4519_v49 = vmul.f32 %v13632_v59, %v13632_v59 }
 0x66e   :  { %4481 = vmatprep.subr.bf16.mxu1 %v15976_v51  ;;  %4392 = vmatpush2.bf16.msra.mxu0 %v15977_v44  ;;  %v4517_v44 = vmul.f32 %v13628_v52, %v13628_v52 }
 0x66f   :  { %10233 = vmatprep.subr.mxu0 %v4603_v29 }
 0x671   :  { %4482 = vmatpush2.bf16.msra.mxu1 %v15978_v16  ;;  %v4518_v16 = vmul.f32 %v13630_v21, %v13630_v21 }
 0x672   :  { %4483 = vmatprep.subr.bf16.mxu1 %v15979_v40  ;;  %v4507_v40 = vadd.f32 %v13632_v59, %v13628_v52 }
 0x675   :  { %4484 = vmatpush2.bf16.msra.mxu1 %v15980_v61  ;;  %v4516_v61 = vmul.f32 %v13626_v50, %v13626_v50 }
 0x676   :  { %10268 = vmatprep.subr.mxu1 %v4603_v29 }
 0x6e8   :  { %v13710_v53 = vpop.f32.mrf.mxu1 }
 0x6ea   :  { %v13712_v2 = vpop.f32.mrf.mxu1 }
 0x6ec   :  { %v13714_v27 = vpop.f32.mrf.mxu1 }
 0x6ee   :  { %v13716_v28 = vpop.f32.mrf.mxu1 }
 0x6f0   :  { %v4350_v3 = vpop.f32.mrf.mxu1  ;;  %v4307_v42 = vpop.f32.mrf.mxu0 }
 0x6f2   :  { %v4352_v30 = vpop.f32.mrf.mxu1  ;;  %v4309_v56 = vpop.f32.mrf.mxu0 }
 0x6f4   :  { %v4354_v10 = vpop.f32.mrf.mxu1  ;;  %v4311_v46 = vpop.f32.mrf.mxu0 }
 0x6f5   :  { %v4359_v19 = vpack.c.bf16 %v4354_v10, %v4350_v3  ;;  %v4500_v3 = vadd.f32 %v13630_v21, %v13626_v50 }
 0x6f6   :  { %v4356_v8 = vpop.f32.mrf.mxu1  ;;  %v4313_v47 = vpop.f32.mrf.mxu0 }
 0x6f7   :  { %v4360_v11 = vpack.c.bf16 %v4356_v8, %v4352_v30  ;;  %v4527_v30 = vadd.f32 %v4519_v49, %v4517_v44  ;;  %v4308_v8 = vadd.f32 %v4307_v42, %v13710_v53 }
 0x6f8   :  { %v4442_v37 = vpop.f32.mrf.mxu1 }
 0x6f9   :  { %4393 = vmatprep.mubr.bf16.mxu0 %v4360_v11  ;;  %v4520_v11 = vadd.f32 %v4518_v16, %v4516_v61 }
 0x6fa   :  { %4394 = vmatmul.mubr.bf16.vlgmr.msra.gmra.mxu0 %v4359_v19  ;;  %v4444_v58 = vpop.f32.mrf.mxu1  ;;  %v4508_v19 = vrot.slane %v4507_v40, 4 }
 0x6fb   :  { %10234 = vmatpush3.msra.mxu0 %v4587_v25 }
 0x6fc   :  { %v4446_v23 = vpop.f32.mrf.mxu1  ;;  %10235 = vmatprep.subr.mxu0 %v4602_v4  ;;  %v4509_v53 = vadd.f32 %v4508_v19, %v4507_v40 }
 0x6fd   :  { %v4451_v7 = vpack.c.bf16 %v4446_v23, %v4442_v37  ;;  %10236 = vmatpush3.msra.mxu0 %v4586_v31  ;;  %v4310_v37 = vadd.f32 %v4309_v56, %v13712_v2  ;;  %v4312_v23 = vadd.f32 %v4311_v46, %v13714_v27 }
 0x6fe   :  { %v4448_v33 = vpop.f32.mrf.mxu1  ;;  %10237 = vmatprep.subr.mxu0 %v4601_v0 }
 0x6ff   :  { %v4452_v15 = vpack.c.bf16 %v4448_v33, %v4444_v58  ;;  %10238 = vmatpush3.msra.mxu0 %v4585_v24 }
 0x700   :  { %10239 = vmatprep.subr.mxu0 %v4600_v32 }
 0x701   :  { %4485 = vmatprep.mubr.bf16.mxu1 %v4452_v15  ;;  %10240 = vmatpush3.msra.mxu0 %v4584_v57  ;;  %v4501_v15 = vrot.slane %v4500_v3, 4 }
 0x702   :  { %4486 = vmatmul.mubr.bf16.vlgmr.msra.gmra.mxu1 %v4451_v7  ;;  %10241 = vmatprep.subr.mxu0 %v4599_v54  ;;  %v4528_v7 = vrot.slane %v4527_v30, 4 }
 0x703   :  { %10269 = vmatpush3.msra.mxu1 %v4587_v25  ;;  %10242 = vmatpush3.msra.mxu0 %v4583_v1  ;;  %v4502_v27 = vadd.f32 %v4501_v15, %v4500_v3 }
 0x704   :  { %10270 = vmatprep.subr.mxu1 %v4602_v4  ;;  %10243 = vmatprep.subr.mxu0 %v4598_v35 }
 0x705   :  { %10271 = vmatpush3.msra.mxu1 %v4586_v31  ;;  %10244 = vmatpush3.msra.mxu0 %v4582_v14  ;;  %v4314_v31 = vadd.f32 %v4313_v47, %v13716_v28 }
 0x706   :  { %10272 = vmatprep.subr.mxu1 %v4601_v0  ;;  %10245 = vmatprep.subr.mxu0 %v4597_v6 }
 0x707   :  { %10273 = vmatpush3.msra.mxu1 %v4585_v24  ;;  %10246 = vmatpush3.msra.mxu0 %v4581_v55 }
 0x708   :  { %10274 = vmatprep.subr.mxu1 %v4600_v32  ;;  %10247 = vmatprep.subr.mxu0 %v4596_v22  ;;  %v4521_v32 = vrot.slane %v4520_v11, 4 }
 0x709   :  { %10275 = vmatpush3.msra.mxu1 %v4584_v57  ;;  %10248 = vmatpush3.msra.mxu0 %v4580_v45 }
 0x70a   :  { %10276 = vmatprep.subr.mxu1 %v4599_v54  ;;  %10249 = vmatprep.subr.mxu0 %v4595_v12 }
 0x70b   :  { %10277 = vmatpush3.msra.mxu1 %v4583_v1  ;;  %10250 = vmatpush3.msra.mxu0 %v4579_v34 }
 0x70c   :  { %10278 = vmatprep.subr.mxu1 %v4598_v35  ;;  %10251 = vmatprep.subr.mxu0 %v4594_v5  ;;  %v4529_v35 = vadd.f32 %v4528_v7, %v4527_v30 }
 0x70d   :  { %10279 = vmatpush3.msra.mxu1 %v4582_v14  ;;  %10252 = vmatpush3.msra.mxu0 %v4578_v43 }
 0x70e   :  { %10280 = vmatprep.subr.mxu1 %v4597_v6  ;;  %10253 = vmatprep.subr.mxu0 %v4593_v26 }
 0x70f   :  { %10281 = vmatpush3.msra.mxu1 %v4581_v55  ;;  %10254 = vmatpush3.msra.mxu0 %v4577_v13 }
 0x710   :  { %10282 = vmatprep.subr.mxu1 %v4596_v22  ;;  %10255 = vmatprep.subr.mxu0 %v4592_v17 }
 0x711   :  { %10283 = vmatpush3.msra.mxu1 %v4580_v45  ;;  %10256 = vmatpush3.msra.mxu0 %v4576_v20  ;;  %v4522_v45 = vadd.f32 %v4521_v32, %v4520_v11 }
 0x712   :  { %10284 = vmatprep.subr.mxu1 %v4595_v12  ;;  %10257 = vmatprep.subr.mxu0 %v4591_v18  ;;  %v4510_v12 = vrot.slane %v4509_v53, 2 }
 0x713   :  { %10285 = vmatpush3.msra.mxu1 %v4579_v34  ;;  %10258 = vmatpush3.msra.mxu0 %v4575_v60 }
 0x714   :  { %10286 = vmatprep.subr.mxu1 %v4594_v5  ;;  %10259 = vmatprep.subr.mxu0 %v4590_v63 }
 0x715   :  { %10287 = vmatpush3.msra.mxu1 %v4578_v43  ;;  %10260 = vmatpush3.msra.mxu0 %v4574_v36 }
 0x716   :  { %10288 = vmatprep.subr.mxu1 %v4593_v26  ;;  %10261 = vmatprep.subr.mxu0 %v4589_v38 }
 0x717   :  { %10289 = vmatpush3.msra.mxu1 %v4577_v13  ;;  %10262 = vmatpush3.msra.mxu0 %v4573_v39 }
 0x718   :  { %10290 = vmatprep.subr.mxu1 %v4592_v17  ;;  %10263 = vmatprep.subr.mxu0 %v4588_v41  ;;  %v4503_v17 = vrot.slane %v4502_v27, 2 }
 0x719   :  { %10291 = vmatpush3.msra.mxu1 %v4576_v20  ;;  %10264 = vmatpush3.msra.mxu0 %v4572_v9  ;;  %v4530_v20 = vrot.slane %v4529_v35, 2 }
 0x71a   :  { %10292 = vmatprep.subr.mxu1 %v4591_v18  ;;  %v4504_v46 = vadd.f32 %v4503_v17, %v4502_v27 }
 0x71b   :  { %10293 = vmatpush3.msra.mxu1 %v4575_v60  ;;  %v4531_v47 = vadd.f32 %v4530_v20, %v4529_v35  ;;  %v4754_v35 = vld [vmem:[%s15982_s6 + $0x18] sm:$0xff] }
 0x71c   :  { %10294 = vmatprep.subr.mxu1 %v4590_v63  ;;  %4787 = vmatprep.subr.mxu0 %v4754_v35 }
 0x71d   :  { %10295 = vmatpush3.msra.mxu1 %v4574_v36  ;;  %v4532_v19 = vrot.slane %v4531_v47, 1 }
 0x71e   :  { %10296 = vmatprep.subr.mxu1 %v4589_v38  ;;  %v4523_v38 = vrot.slane %v4522_v45, 2 }
 0x71f   :  { %10297 = vmatpush3.msra.mxu1 %v4573_v39  ;;  %v4511_v39 = vadd.f32 %v4510_v12, %v4509_v53 }
 0x720   :  { %10298 = vmatprep.subr.mxu1 %v4588_v41  ;;  %v4524_v16 = vadd.f32 %v4523_v38, %v4522_v45  ;;  %v11526_v38 = vmov 1966171168  }
 0x721   :  { %10299 = vmatpush3.msra.mxu1 %v4572_v9  ;;  %v4512_v40 = vrot.slane %v4511_v39, 1 }
 0x723   :  { %v4513_v15 = vadd.f32 %v4512_v40, %v4511_v39  ;;  %v4909_v39 = vunpack.c.l.s4 %v11526_v38  ;;  %v13916_v38 = vld [vmem:[%s15489_s9 + $0x4] sm:$0xf] }
 0x7ba   :  { %v4395_v48 = vpop.f32.mrf.mxu0 }
 0x7bb   :  { %v4404_v33 = vadd.f32 %v4395_v48, %v4308_v8  ;;  %v4505_v8 = vrot.slane %v4504_v46, 1 }
 0x7bc   :  { %v4397_v51 = vpop.f32.mrf.mxu0 }
 0x7bd   :  { %v4405_v29 = vadd.f32 %v4397_v51, %v4310_v37 }
 0x7be   :  { %v4399_v10 = vpop.f32.mrf.mxu0 }
 0x7bf   :  { %v4406_v0 = vadd.f32 %v4399_v10, %v4312_v23 }
 0x7c0   :  { %v4401_v25 = vpop.f32.mrf.mxu0 }
 0x7c1   :  { %v4407_v2 = vadd.f32 %v4401_v25, %v4314_v31  ;;  %v4506_v25 = vadd.f32 %v4505_v8, %v4504_v46 }
 0x7c2   :  { %v4487_v58 = vpop.f32.mrf.mxu1 }
 0x7c3   :  { %v13830_v24 = vadd.f32 %v4487_v58, %v4404_v33  ;;  %v4525_v33 = vrot.slane %v4524_v16, 1 }
 0x7c4   :  { %v4489_v4 = vpop.f32.mrf.mxu1 }
 0x7c5   :  { %v13832_v57 = vadd.f32 %v4489_v4, %v4405_v29  ;;  %v4552_v6 = vmul.f32 %v13830_v24, %v13830_v24 }
 0x7c6   :  { %v4491_v54 = vpop.f32.mrf.mxu1 }
 0x7c7   :  { %v13834_v1 = vadd.f32 %v4491_v54, %v4406_v0  ;;  %v4553_v34 = vmul.f32 %v13832_v57, %v13832_v57  ;;  %v4533_v0 = vadd.f32 %v4532_v19, %v4531_v47  ;;  %v4526_v54 = vadd.f32 %v4525_v33, %v4524_v16  ;;  %v4904_v16 = vld [vmem:[%s15487_s7] sm:$0x3] }
 0x7c8   :  { %v4493_v14 = vpop.f32.mrf.mxu1 }
 0x7c9   :  { %v4536_v28 = vadd.f32 %v13834_v1, %v13830_v24  ;;  %v4554_v55 = vmul.f32 %v13834_v1, %v13834_v1  ;;  %v13842_v22 = vadd.f32 %v4493_v14, %v4407_v2  ;;  %v4753_v14 = vld [vmem:[%s15982_s6 + $0x10] sm:$0xff] }
 0x7cb   :  { %v4537_v5 = vrot.slane %v4536_v28, 4  ;;  %v4556_v43 = vadd.f32 %v4554_v55, %v4552_v6  ;;  %v4543_v26 = vadd.f32 %v13842_v22, %v13832_v57  ;;  %v4555_v13 = vmul.f32 %v13842_v22, %v13842_v22  ;;  %v4752_v6 = vld [vmem:[%s15982_s6 + $0x8] sm:$0xff] }
 0x7cc   :  { %v15602_v55 = vmov 0.0  }
 0x7cd   :  { %v4538_v18 = vadd.f32 %v4537_v5, %v4536_v28  ;;  %v4557_v60 = vrot.slane %v4556_v43, 4  ;;  %v4544_v63 = vrot.slane %v4543_v26, 4  ;;  %v4563_v36 = vadd.f32 %v4555_v13, %v4553_v34  ;;  %v4751_v28 = vld [vmem:[%s15982_s6] sm:$0xff] }
 0x7cf   :  { %v4539_v41 = vrot.slane %v4538_v18, 2  ;;  %v4558_v9 = vadd.f32 %v4557_v60, %v4556_v43  ;;  %v4545_v42 = vadd.f32 %v4544_v63, %v4543_v26  ;;  %v4564_v56 = vrot.slane %v4563_v36, 4 }
 0x7d1   :  { %v4540_v48 = vadd.f32 %v4539_v41, %v4538_v18  ;;  %v4559_v49 = vrot.slane %v4558_v9, 2  ;;  %v4546_v51 = vrot.slane %v4545_v42, 2  ;;  %v4565_v44 = vadd.f32 %v4564_v56, %v4563_v36 }
 0x7d2   :  { %v4911_v41 = vlaneseq }
 0x7d3   :  { %v4541_v61 = vrot.slane %v4540_v48, 1  ;;  %v4560_v3 = vadd.f32 %v4559_v49, %v4558_v9  ;;  %v4547_v30 = vadd.f32 %v4546_v51, %v4545_v42  ;;  %v4566_v10 = vrot.slane %v4565_v44, 2 }
 0x7d4   :  { %v4910_v42 = vunpack.c.0.s8 %v4909_v39  ;;  %v4912_v56 = vshrl.u32 %v4911_v41, 7  ;;  %v13918_v39 = vld [vmem:[#allocation6 + $0x170] ss:$8 sps:$4 sm:$0xff]  }
 0x7d5   :  { %v4548_v11 = vrot.slane %v4547_v30, 1  ;;  %v4567_v37 = vadd.f32 %v4566_v10, %v4565_v44  ;;  %v4561_v58 = vrot.slane %v4560_v3, 1  ;;  %v4542_v23 = vadd.f32 %v4541_v61, %v4540_v48  ;;  %v13920_v41 = vld [vmem:[#allocation6 + $0x70] ss:$8 sps:$4 sm:$0xff]  }
 0x7d6   :  { %v13868_v48 = vsub.s32 %v4910_v42, %v4912_v56  ;;  %v13875_v61 = vsub.s32 0, %v4912_v56  ;;  %v13924_v42 = vld [vmem:[#allocation6 + $0x164] ss:$8 sps:$4 sm:$0xff]  }
 0x7d7   :  { %v4549_v7 = vadd.f32 %v4548_v11, %v4547_v30  ;;  %v4568_v29 = vrot.slane %v4567_v37, 1  ;;  %v4562_v4 = vadd.f32 %v4561_v58, %v4560_v3  ;;  %v4550_v53 = vadd.f32 %v4542_v23, %v4506_v25  ;;  %v4924_v23 = vld [vmem:[%s15488_s8] sm:$0x3] }
 0x7d8   :  { %15983 = vst [vmem:[#allocation12_spill] sm:$0xff] %v13868_v48  ;;  %15984 = vst [vmem:[#allocation13_spill] sm:$0xff] %v13875_v61  ;;  %v13877_v3 = vsub.s32 1, %v4912_v56  ;;  %v13927_v56 = vld [vmem:[#allocation6 + $0x64] ss:$8 sps:$4 sm:$0xff]  }
 0x7d9   :  { %v4551_v31 = vadd.f32 %v4549_v7, %v4513_v15  ;;  %v4569_v32 = vadd.f32 %v4568_v29, %v4567_v37  ;;  %v4570_v27 = vadd.f32 %v4562_v4, %v4526_v54 }
 0x7da   :  { %15985 = vst [vmem:[#allocation14_spill] sm:$0xff] %v13877_v3 }
 0x7db   :  { %4668 = vmatprep.mubr.f32.mxu0 %v4551_v31  ;;  %v4571_v2 = vadd.f32 %v4569_v32, %v4533_v0 }
 0x7dc   :  { %4669 = vmatmul.mubr.f32.vlgmr.msra.gmra.mxu0 %v4550_v53 }
 0x7dd   :  { %4738 = vmatprep.mubr.f32.mxu1 %v4571_v2  ;;  %4788 = vmatpush1.msra.mxu0 %v4753_v14 }
 0x7de   :  { %4739 = vmatmul.mubr.f32.vlgmr.msra.gmra.mxu1 %v4570_v27  ;;  %4789 = vmatprep.subr.mxu0 %v4752_v6 }
 0x7df   :  { %5165 = vmatprep.mubr.bf16.mxu1 %v15840_v62  ;;  %4790 = vmatpush1.msra.mxu0 %v4751_v28 }
 0x7e0   :  { %4823 = vmatprep.mubr.f32.mxu0 %v15602_v55  ;;  %4861 = vmatprep.subr.mxu0 %v4754_v35 }
 0x89c   :  { %v10265_v45 = vpop.f32.mrf.mxu0 }
 0x89e   :  { %v10266_v12 = vpop.f32.mrf.mxu0  ;;  %v10300_v34 = vpop.f32.mrf.mxu1 }
 0x89f   :  { %v10267_v5 = vadd.f32 %v10266_v12, %v10265_v45 }
 0x8a0   :  { %v10301_v43 = vpop.f32.mrf.mxu1 }
 0x8a1   :  { %v4744_v26 = vmul.f32 0.001953125, %v10267_v5  ;;  %v10302_v13 = vadd.f32 %v10301_v43, %v10300_v34  ;;  %v13898_v43 = vld [vmem:[#allocation6 + $0x174] ss:$8 sps:$4 sm:$0xff]  }
 0x8a3   :  { %v4746_v17 = vmul.f32 %v4744_v26, %v4744_v26  ;;  %v4745_v20 = vmul.f32 0.001953125, %v10302_v13  ;;  %9893 = vmatmul.mubr.msk.f32.vlgmr.msra.gmra.mxu0 %vm4755_vm3, %v4744_v26  ;;  %v13900_v26 = vld [vmem:[#allocation6 + $0x74] ss:$8 sps:$4 sm:$0xff]  }
 0x8a4   :  { %4862 = vmatpush1.msra.mxu0 %v4753_v14  ;;  %4897 = vmatprep.mubr.f32.mxu0 %v15602_v55  ;;  %v14081_v55 = vld [vmem:[#allocation6 + $0xa4] ss:$8 sps:$4 sm:$0xff]  }
 0x8a5   :  { %v4747_v18 = vsub.f32 %v4745_v20, %v4746_v17  ;;  %4863 = vmatprep.subr.mxu0 %v4752_v6  ;;  %15996 = vst [vmem:[#allocation24_spill] sm:$0xff] %v14081_v55 }
 0x8a6   :  { %4864 = vmatpush1.msra.mxu0 %v4751_v28 }
 0x8a7   :  { %v4748_v60 = vmax.f32 %v4747_v18, 0.0  ;;  %v13909_v18 = vld [vmem:[%s15489_s9] sm:$0xf] }
 0x8a9   :  { %v4749_v63 = vadd.f32 1e-05, %v4748_v60 }
 0x8ab   :  { %11454 = vrsqrt.f32 %v4749_v63 }
 0x8b8   :  { %v11455_v36 = vpop.eup %11454 }
 0x8b9   :  { %9894 = vmatmul.mubr.msk.f32.vlgmr.msra.gmra.mxu0 %vm4755_vm3, %v11455_v36 }
 0x8ba   :  { %5085 = vmatprep.mubr.bf16.mxu0 %v15840_v62 }
 0x963   :  { %v4825_v9 = vpop.f32.mrf.mxu0 }
 0x965   :  { %v4827_v46 = vpop.f32.mrf.mxu0 }
 0x979   :  { %v4899_v47 = vpop.f32.mrf.mxu0 }
 0x97b   :  { %v4901_v49 = vpop.f32.mrf.mxu0 }
 0x97c   :  { %v4907_v51 = vcombine.low %v4899_v47, %v4901_v49 }
 0x97e   :  { %v4914_v44 = vrot.slane %v4907_v51, %v13868_v48 }
 0x980   :  { %v4921_v40 = vrot.slane %v4914_v44, %v13868_v48  ;;  %v13940_v44 = vld [vmem:[#allocation6 + $0x160] ss:$8 sps:$4 sm:$0xff]  }
 0x982   :  { %v4923_v30 = vmul.f32 %v4921_v40, %v4904_v16  ;;  %v13943_v16 = vld [vmem:[#allocation6 + $0x60] ss:$8 sps:$4 sm:$0xff]   ;;  %v13946_v40 = vld [vmem:[#allocation6 + $0x154] ss:$8 sps:$4 sm:$0xff]  }
 0x984   :  { %v4929_v10 = vrot.slane %v4923_v30, %v13875_v61  ;;  %v4933_v8 = vrot.slane %v4923_v30, %v13877_v3  ;;  %v13949_v30 = vld [vmem:[#allocation6 + $0x54] ss:$8 sps:$4 sm:$0xff]  }
 0x986   :  { %v4936_v11 = vmul.f32 %v4929_v10, %v4825_v9  ;;  %v4937_v19 = vmul.f32 %v4933_v8, %v4827_v46  ;;  %v4958_v7 = vmul.f32 %v4933_v8, %v13628_v52  ;;  %v4960_v29 = vmul.f32 %v4933_v8, %v13632_v59 }
 0x987   :  { %v4957_v4 = vmul.f32 %v4929_v10, %v13626_v50  ;;  %v4959_v31 = vmul.f32 %v4929_v10, %v13630_v21  ;;  %v5003_v32 = vmul.f32 %v4933_v8, %v13832_v57  ;;  %v5005_v53 = vmul.f32 %v4933_v8, %v13842_v22  ;;  %v13955_v8 = vld [vmem:[#allocation6 + $0x50] ss:$8 sps:$4 sm:$0xff]  }
 0x988   :  { %v4940_v37 = vcombine.low %v4936_v11, %v4937_v19  ;;  %v5002_v54 = vmul.f32 %v4929_v10, %v13830_v24  ;;  %v5004_v2 = vmul.f32 %v4929_v10, %v13834_v1  ;;  %v13952_v10 = vld [vmem:[#allocation6 + $0x150] ss:$8 sps:$4 sm:$0xff]   ;;  %v13958_v11 = vld [vmem:[#allocation6 + $0x144] ss:$8 sps:$4 sm:$0xff]  }
 0x989   :  { %v13961_v19 = vld [vmem:[#allocation6 + $0x44] ss:$8 sps:$4 sm:$0xff]  }
 0x98a   :  { %v4947_v58 = vrot.slane %v4940_v37, %v13868_v48  ;;  %v13964_v37 = vld [vmem:[#allocation6 + $0x140] ss:$8 sps:$4 sm:$0xff]  }
 0x98c   :  { %v4954_v33 = vrot.slane %v4947_v58, %v13868_v48  ;;  %v13967_v58 = vld [vmem:[#allocation6 + $0x40] ss:$8 sps:$4 sm:$0xff]   ;;  %v14090_v48 = vld [vmem:[#allocation6 + $0x194] ss:$8 sps:$4 sm:$0xff]  }
 0x98d   :  { %15999 = vst [vmem:[#allocation36_spill] sm:$0xff] %v14090_v48 }
 0x98e   :  { %v4956_v15 = vsub.f32 %v4924_v23, %v4954_v33  ;;  %v13970_v23 = vld [vmem:[#allocation6 + $0x134] ss:$8 sps:$4 sm:$0xff]  }
 0x98f   :  { %v13973_v33 = vld [vmem:[#allocation6 + $0x34] ss:$8 sps:$4 sm:$0xff]  }
 0x990   :  { %v4969_v25 = vrot.slane %v4956_v15, %v13877_v3  ;;  %v4965_v0 = vrot.slane %v4956_v15, %v13875_v61  ;;  %v13976_v15 = vld [vmem:[#allocation6 + $0x130] ss:$8 sps:$4 sm:$0xff]   ;;  %v14084_v3 = vld [vmem:[#allocation6 + $0x1a0] ss:$8 sps:$4 sm:$0xff]  }
 0x991   :  { %15997 = vst [vmem:[#allocation25_spill] sm:$0xff] %v14084_v3  ;;  %v14087_v61 = vld [vmem:[#allocation6 + $0xa0] ss:$8 sps:$4 sm:$0xff]  }
 0x992   :  { %v4973_v27 = vadd.f32 %v4969_v25, %v4958_v7  ;;  %v4975_v52 = vadd.f32 %v4969_v25, %v4960_v29  ;;  %v4972_v35 = vadd.f32 %v4965_v0, %v4957_v4  ;;  %v4974_v59 = vadd.f32 %v4965_v0, %v4959_v31  ;;  %v13979_v7 = vld [vmem:[#allocation6 + $0x30] ss:$8 sps:$4 sm:$0xff]   ;;  %v13982_v29 = vld [vmem:[#allocation6 + $0x124] ss:$8 sps:$4 sm:$0xff]   ;;  %v13988_v4 = vld [vmem:[#allocation6 + $0x120] ss:$8 sps:$4 sm:$0xff]  }
 0x993   :  { %v5007_v14 = vadd.f32 %v5003_v32, %v4969_v25  ;;  %v5009_v6 = vadd.f32 %v5005_v53, %v4969_v25  ;;  %v5006_v28 = vadd.f32 %v5002_v54, %v4965_v0  ;;  %v5008_v50 = vadd.f32 %v5004_v2, %v4965_v0  ;;  %v13985_v25 = vld [vmem:[#allocation6 + $0x24] ss:$8 sps:$4 sm:$0xff]   ;;  %v13991_v31 = vld [vmem:[#allocation6 + $0x20] ss:$8 sps:$4 sm:$0xff]   ;;  %v13994_v0 = vld [vmem:[#allocation6 + $0x114] ss:$8 sps:$4 sm:$0xff]  }
 0x994   :  { %vm4977_vm4 = vcmp.gt.f32.partialorder %v4973_v27, 0.0  ;;  %vm4979_vm5 = vcmp.gt.f32.partialorder %v4975_v52, 0.0  ;;  %v4981_v21 = vmul.f32 0.2, %v4973_v27  ;;  %v4983_v45 = vmul.f32 0.2, %v4975_v52 }
 0x995   :  { %vm4976_vm6 = vcmp.gt.f32.partialorder %v4972_v35, 0.0  ;;  %vm4978_vm7 = vcmp.gt.f32.partialorder %v4974_v59, 0.0  ;;  %v4980_v57 = vmul.f32 0.2, %v4972_v35  ;;  %v4982_v22 = vmul.f32 0.2, %v4974_v59 }
 0x996   :  { %v4985_v12 = vsel %vm4977_vm4, %v4973_v27, %v4981_v21  ;;  %v4987_v24 = vsel %vm4979_vm5, %v4975_v52, %v4983_v45  ;;  %vm5011_vm8 = vcmp.gt.f32.partialorder %v5007_v14, 0.0  ;;  %vm5013_vm10 = vcmp.gt.f32.partialorder %v5009_v6, 0.0  ;;  %v13997_v32 = vld [vmem:[#allocation6 + $0x14] ss:$8 sps:$4 sm:$0xff]   ;;  %v14000_v53 = vld [vmem:[#allocation6 + $0x110] ss:$8 sps:$4 sm:$0xff]  }
 0x997   :  { %v13896_v1 = vpack.c.bf16 %v4987_v24, %v4985_v12  ;;  %v4984_v34 = vsel %vm4976_vm6, %v4972_v35, %v4980_v57  ;;  %v4986_v5 = vsel %vm4978_vm7, %v4974_v59, %v4982_v22  ;;  %v5015_v13 = vmul.f32 0.2, %v5007_v14  ;;  %v14003_v54 = vld [vmem:[#allocation6 + $0x10] ss:$8 sps:$4 sm:$0xff]   ;;  %v14006_v2 = vld [vmem:[#allocation6 + $0x104] ss:$8 sps:$4 sm:$0xff]  }
 0x998   :  { %v13902_v17 = vpack.c.bf16 %v4986_v5, %v4984_v34  ;;  %v5017_v20 = vmul.f32 0.2, %v5009_v6  ;;  %vm5010_vm11 = vcmp.gt.f32.partialorder %v5006_v28, 0.0  ;;  %vm5012_vm12 = vcmp.gt.f32.partialorder %v5008_v50, 0.0  ;;  %v14009_v27 = vld [vmem:[#allocation6 + $0x4] ss:$8 sps:$4 sm:$0xff]  }
 0x999   :  { %5067 = vmatprep.subr.bf16.mxu0 %v13896_v1  ;;  %5147 = vmatprep.subr.bf16.mxu1 %v13896_v1  ;;  %v5019_v60 = vsel %vm5011_vm8, %v5007_v14, %v5015_v13  ;;  %v5014_v63 = vmul.f32 0.2, %v5006_v28  ;;  %v5016_v36 = vmul.f32 0.2, %v5008_v50  ;;  %v14012_v52 = vld [vmem:[#allocation6 + $0x100] ss:$8 sps:$4 sm:$0xff]  }
 0x99a   :  { %5068 = vmatpush1.bf16.msra.mxu0 %v13902_v17  ;;  %5148 = vmatpush1.bf16.msra.mxu1 %v13902_v17  ;;  %v5021_v9 = vsel %vm5013_vm10, %v5009_v6, %v5017_v20  ;;  %v14015_v35 = vld [vmem:[#allocation6] ss:$8 sps:$4 sm:$0xff]   ;;  %v14018_v59 = vld [vmem:[#allocation6 + $0x1f4] ss:$8 sps:$4 sm:$0xff]   ;;  %v14024_v6 = vld [vmem:[#allocation6 + $0x1f0] ss:$8 sps:$4 sm:$0xff]  }
 0x99b   :  { %5369 = vmatprep.subr.bf16.mxu0 %v13898_v43  ;;  %5570 = vmatprep.subr.bf16.mxu1 %v13900_v26  ;;  %v13929_v46 = vpack.c.bf16 %v5021_v9, %v5019_v60  ;;  %v5018_v47 = vsel %vm5010_vm11, %v5006_v28, %v5014_v63  ;;  %v5020_v49 = vsel %vm5012_vm12, %v5008_v50, %v5016_v36  ;;  %v14021_v14 = vld [vmem:[#allocation6 + $0xf4] ss:$8 sps:$4 sm:$0xff]   ;;  %v14027_v28 = vld [vmem:[#allocation6 + $0xf0] ss:$8 sps:$4 sm:$0xff]   ;;  %v14030_v50 = vld [vmem:[#allocation6 + $0x1e4] ss:$8 sps:$4 sm:$0xff]  }
 0x99c   :  { %v13933_v51 = vpack.c.bf16 %v5020_v49, %v5018_v47  ;;  %v14033_v21 = vld [vmem:[#allocation6 + $0xe4] ss:$8 sps:$4 sm:$0xff]   ;;  %v14036_v45 = vld [vmem:[#allocation6 + $0x1e0] ss:$8 sps:$4 sm:$0xff]   ;;  %v14042_v22 = vld [vmem:[#allocation6 + $0x1d4] ss:$8 sps:$4 sm:$0xff]  }
 0x99d   :  { %9901 = vmatmul.mubr.msk.bf16.vlgmr.msra.gmra.mxu0 %vm4755_vm3, %v13909_v18  ;;  %9903 = vmatmul.mubr.msk.bf16.vlgmr.msra.gmra.mxu1 %vm4755_vm3, %v13916_v38  ;;  %v14039_v57 = vld [vmem:[#allocation6 + $0xe0] ss:$8 sps:$4 sm:$0xff]   ;;  %v14045_v12 = vld [vmem:[#allocation6 + $0xd4] ss:$8 sps:$4 sm:$0xff]   ;;  %v14048_v24 = vld [vmem:[#allocation6 + $0x1d0] ss:$8 sps:$4 sm:$0xff]  }
 0x99e   :  { %5370 = vmatpush1.bf16.msra.mxu0 %v13918_v39  ;;  %5571 = vmatpush1.bf16.msra.mxu1 %v13920_v41  ;;  %15986 = vst [vmem:[#allocation15_spill] sm:$0xff] %v14039_v57  ;;  %15987 = vst [vmem:[#allocation16_spill] sm:$0xff] %v14045_v12  ;;  %v14051_v34 = vld [vmem:[#allocation6 + $0xd0] ss:$8 sps:$4 sm:$0xff]   ;;  %v14054_v5 = vld [vmem:[#allocation6 + $0x1c4] ss:$8 sps:$4 sm:$0xff]  }
 0x99f   :  { %5371 = vmatprep.subr.bf16.mxu0 %v13924_v42  ;;  %5572 = vmatprep.subr.bf16.mxu1 %v13927_v56  ;;  %15988 = vst [vmem:[#allocation17_spill] sm:$0xff] %v14051_v34  ;;  %v14057_v13 = vld [vmem:[#allocation6 + $0xc4] ss:$8 sps:$4 sm:$0xff]   ;;  %v14060_v20 = vld [vmem:[#allocation6 + $0x1c0] ss:$8 sps:$4 sm:$0xff]   ;;  %15998 = vst [vmem:[#allocation31_spill] sm:$0xff] %v14087_v61 }
 0x9a0   :  { %15989 = vst [vmem:[#allocation18_spill] sm:$0xff] %v14057_v13  ;;  %v14063_v60 = vld [vmem:[#allocation6 + $0xc0] ss:$8 sps:$4 sm:$0xff]   ;;  %v14066_v63 = vld [vmem:[#allocation6 + $0x1b4] ss:$8 sps:$4 sm:$0xff]   ;;  %vm9074_vm6 = vcmask 0  }
 0x9a1   :  { %15990 = vst [vmem:[#allocation19_spill] sm:$0xff] %v14063_v60  ;;  %15991 = vst [vmem:[#allocation20_spill] sm:$0xff] %v14066_v63  ;;  %v14069_v36 = vld [vmem:[#allocation6 + $0xb4] ss:$8 sps:$4 sm:$0xff]   ;;  %v14072_v9 = vld [vmem:[#allocation6 + $0x1b0] ss:$8 sps:$4 sm:$0xff]  }
 0x9a2   :  { %5372 = vmatpush1.bf16.msra.mxu0 %v13940_v44  ;;  %5573 = vmatpush1.bf16.msra.mxu1 %v13943_v16  ;;  %15992 = vst [vmem:[#allocation21_spill] sm:$0xff] %v14069_v36  ;;  %15993 = vst [vmem:[#allocation22_spill] sm:$0xff] %v14072_v9  ;;  %v14075_v47 = vld [vmem:[#allocation6 + $0xb0] ss:$8 sps:$4 sm:$0xff]   ;;  %v14078_v49 = vld [vmem:[#allocation6 + $0x1a4] ss:$8 sps:$4 sm:$0xff]  }
 0x9a3   :  { %5373 = vmatprep.subr.bf16.mxu0 %v13946_v40  ;;  %5574 = vmatprep.subr.bf16.mxu1 %v13949_v30  ;;  %15994 = vst [vmem:[#allocation23_spill] sm:$0xff] %v14075_v47  ;;  %15995 = vst [vmem:[#allocation32_spill] sm:$0xff] %v14078_v49 }
 0x9a6   :  { %5374 = vmatpush1.bf16.msra.mxu0 %v13952_v10  ;;  %5575 = vmatpush1.bf16.msra.mxu1 %v13955_v8 }
 0x9a7   :  { %5375 = vmatprep.subr.bf16.mxu0 %v13958_v11  ;;  %5576 = vmatprep.subr.bf16.mxu1 %v13961_v19 }
 0x9aa   :  { %5376 = vmatpush1.bf16.msra.mxu0 %v13964_v37  ;;  %5577 = vmatpush1.bf16.msra.mxu1 %v13967_v58 }
 0x9ab   :  { %5377 = vmatprep.subr.bf16.mxu0 %v13970_v23  ;;  %5578 = vmatprep.subr.bf16.mxu1 %v13973_v33 }
 0x9ae   :  { %5378 = vmatpush1.bf16.msra.mxu0 %v13976_v15  ;;  %5579 = vmatpush1.bf16.msra.mxu1 %v13979_v7 }
 0x9af   :  { %5379 = vmatprep.subr.bf16.mxu0 %v13982_v29  ;;  %5580 = vmatprep.subr.bf16.mxu1 %v13985_v25 }
 0x9b2   :  { %5380 = vmatpush1.bf16.msra.mxu0 %v13988_v4  ;;  %5581 = vmatpush1.bf16.msra.mxu1 %v13991_v31 }
 0x9b3   :  { %5381 = vmatprep.subr.bf16.mxu0 %v13994_v0  ;;  %5582 = vmatprep.subr.bf16.mxu1 %v13997_v32 }
 0x9b6   :  { %5382 = vmatpush1.bf16.msra.mxu0 %v14000_v53  ;;  %5583 = vmatpush1.bf16.msra.mxu1 %v14003_v54 }
 0x9b7   :  { %5383 = vmatprep.subr.bf16.mxu0 %v14006_v2  ;;  %5584 = vmatprep.subr.bf16.mxu1 %v14009_v27 }
 0x9ba   :  { %5384 = vmatpush1.bf16.msra.mxu0 %v14012_v52  ;;  %5585 = vmatpush1.bf16.msra.mxu1 %v14015_v35 }
 0x9bb   :  { %5385 = vmatprep.subr.bf16.mxu0 %v14018_v59  ;;  %5586 = vmatprep.subr.bf16.mxu1 %v14021_v14 }
 0x9be   :  { %5386 = vmatpush2.bf16.msra.mxu0 %v14024_v6  ;;  %5587 = vmatpush2.bf16.msra.mxu1 %v14027_v28 }
 0x9bf   :  { %5387 = vmatprep.subr.bf16.mxu0 %v14030_v50  ;;  %5588 = vmatprep.subr.bf16.mxu1 %v14033_v21 }
 0x9c2   :  { %5388 = vmatpush2.bf16.msra.mxu0 %v14036_v45  ;;  %5589 = vmatpush2.bf16.msra.mxu1 %v14039_v57  ;;  %v14123_v57 = vld [vmem:[#allocation6 + $0x264] ss:$8 sps:$4 sm:$0xff]  }
 0x9c3   :  { %5389 = vmatprep.subr.bf16.mxu0 %v14042_v22  ;;  %5590 = vmatprep.subr.bf16.mxu1 %v14045_v12  ;;  %16009 = vst [vmem:[#allocation33_spill] sm:$0xff] %v14123_v57 }
 0x9c6   :  { %5390 = vmatpush2.bf16.msra.mxu0 %v14048_v24  ;;  %5591 = vmatpush2.bf16.msra.mxu1 %v14051_v34 }
 0x9c7   :  { %5391 = vmatprep.subr.bf16.mxu0 %v14054_v5  ;;  %5592 = vmatprep.subr.bf16.mxu1 %v14057_v13  ;;  %v14099_v13 = vld [vmem:[#allocation6 + $0x90] ss:$8 sps:$4 sm:$0xff]  }
 0x9c8   :  { %16002 = vst [vmem:[#allocation35_spill] sm:$0xff] %v14099_v13 }
 0x9ca   :  { %5392 = vmatpush2.bf16.msra.mxu0 %v14060_v20  ;;  %5593 = vmatpush2.bf16.msra.mxu1 %v14063_v60  ;;  %v14093_v60 = vld [vmem:[#allocation6 + $0x94] ss:$8 sps:$4 sm:$0xff]  }
 0x9cb   :  { %5393 = vmatprep.subr.bf16.mxu0 %v14066_v63  ;;  %5594 = vmatprep.subr.bf16.mxu1 %v14069_v36  ;;  %16000 = vst [vmem:[#allocation26_spill] sm:$0xff] %v14093_v60  ;;  %v14096_v36 = vld [vmem:[#allocation6 + $0x190] ss:$8 sps:$4 sm:$0xff]  }
 0x9cc   :  { %16001 = vst [vmem:[#allocation27_spill] sm:$0xff] %v14096_v36 }
 0x9ce   :  { %5394 = vmatpush2.bf16.msra.mxu0 %v14072_v9  ;;  %5595 = vmatpush2.bf16.msra.mxu1 %v14075_v47  ;;  %v14102_v47 = vld [vmem:[#allocation6 + $0x184] ss:$8 sps:$4 sm:$0xff]   ;;  %v14121_v9 = vld [vmem:[#allocation6 + $0x270] ss:$8 sps:$4 sm:$0xff]  }
 0x9cf   :  { %5395 = vmatprep.subr.bf16.mxu0 %v14078_v49  ;;  %5596 = vmatprep.subr.bf16.mxu1 %v14081_v55  ;;  %16003 = vst [vmem:[#allocation40_spill] sm:$0xff] %v14102_v47  ;;  %v14106_v49 = vld [vmem:[#allocation6 + $0x180] ss:$8 sps:$4 sm:$0xff]   ;;  %16008 = vst [vmem:[#allocation30_spill] sm:$0xff] %v14121_v9 }
 0x9d0   :  { %16004 = vst [vmem:[#allocation28_spill] sm:$0xff] %v14106_v49  ;;  %v14114_v55 = vld [vmem:[#allocation6 + $0x80] ss:$8 sps:$4 sm:$0xff]  }
 0x9d1   :  { %16006 = vst [vmem:[#allocation39_spill] sm:$0xff] %v14114_v55 }
 0x9d2   :  { %5396 = vmatpush2.bf16.msra.mxu0 %v14084_v3  ;;  %5597 = vmatpush2.bf16.msra.mxu1 %v14087_v61  ;;  %v14112_v61 = vld [vmem:[#allocation6 + $0x84] ss:$8 sps:$4 sm:$0xff]  }
 0x9d3   :  { %5397 = vmatprep.subr.bf16.mxu0 %v14090_v48  ;;  %5598 = vmatprep.subr.bf16.mxu1 %v14093_v60  ;;  %16005 = vst [vmem:[#allocation29_spill] sm:$0xff] %v14112_v61  ;;  %v14118_v60 = vld [vmem:[#allocation6 + $0x274] ss:$8 sps:$4 sm:$0xff]  }
 0x9d4   :  { %16007 = vst [vmem:[#allocation44_spill] sm:$0xff] %v14118_v60 }
 0x9d6   :  { %5398 = vmatpush2.bf16.msra.mxu0 %v14096_v36  ;;  %5599 = vmatpush2.bf16.msra.mxu1 %v14099_v13 }
 0x9d7   :  { %5399 = vmatprep.subr.bf16.mxu0 %v14102_v47  ;;  %5600 = vmatprep.subr.bf16.mxu1 %v14112_v61 }
 0x9da   :  { %5400 = vmatpush2.bf16.msra.mxu0 %v14106_v49  ;;  %5601 = vmatpush2.bf16.msra.mxu1 %v14114_v55 }
 0x9db   :  { %5630 = vmatprep.subr.bf16.mxu0 %v13896_v1  ;;  %5852 = vmatprep.subr.bf16.mxu1 %v14118_v60 }
 0xa5d   :  { %v5087_v36 = vpop.f32.mrf.mxu0  ;;  %v5167_v13 = vpop.f32.mrf.mxu1 }
 0xa5e   :  { %v5094_v48 = vpack.c.bf16 %v5087_v36, %v5087_v36  ;;  %v5174_v12 = vpack.c.bf16 %v5167_v13, %v5167_v13  ;;  %v14127_v36 = vld [vmem:[#allocation6 + $0x260] ss:$8 sps:$4 sm:$0xff]   ;;  %v14159_v13 = vld [vmem:[#allocation6 + $0x230] ss:$8 sps:$4 sm:$0xff]  }
 0xa5f   :  { %v5089_v47 = vpop.f32.mrf.mxu0  ;;  %v5169_v3 = vpop.f32.mrf.mxu1  ;;  %16010 = vst [vmem:[#allocation43_spill] sm:$0xff] %v14127_v36  ;;  %16018 = vst [vmem:[#allocation50_spill] sm:$0xff] %v14159_v13 }
 0xa60   :  { %v5095_v49 = vpack.c.bf16 %v5089_v47, %v5089_v47  ;;  %v5175_v34 = vpack.c.bf16 %v5169_v3, %v5169_v3  ;;  %v14131_v3 = vld [vmem:[#allocation6 + $0x254] ss:$8 sps:$4 sm:$0xff]   ;;  %v14171_v47 = vld [vmem:[#allocation6 + $0x364] ss:$8 sps:$4 sm:$0xff]  }
 0xa61   :  { %v5171_v63 = vpop.f32.mrf.mxu1  ;;  %v5091_v61 = vpop.f32.mrf.mxu0  ;;  %16011 = vst [vmem:[#allocation47_spill] sm:$0xff] %v14131_v3  ;;  %16022 = vst [vmem:[#allocation46_spill] sm:$0xff] %v14171_v47 }
 0xa62   :  { %5401 = vmatprep.mubr.bf16.mxu0 %v5175_v34  ;;  %5602 = vmatprep.mubr.bf16.mxu1 %v5095_v49  ;;  %v14143_v61 = vld [vmem:[#allocation6 + $0x244] ss:$8 sps:$4 sm:$0xff]   ;;  %v14154_v34 = vld [vmem:[#allocation6 + $0x234] ss:$8 sps:$4 sm:$0xff]   ;;  %v14176_v49 = vld [vmem:[#allocation6 + $0x220] ss:$8 sps:$4 sm:$0xff]  }
 0xa63   :  { %v5172_v55 = vpop.f32.mrf.mxu1  ;;  %5402 = vmatmul.mubr.bf16.vlgmr.msra.gmra.mxu0 %v5174_v12  ;;  %5603 = vmatmul.mubr.bf16.vlgmr.msra.gmra.mxu1 %v5094_v48  ;;  %v5092_v60 = vpop.f32.mrf.mxu0  ;;  %v14140_v48 = vld [vmem:[%s15489_s9 + $0x8] sm:$0xf]  ;;  %16014 = vst [vmem:[#allocation48_spill] sm:$0xff] %v14143_v61  ;;  %16017 = vst [vmem:[#allocation41_spill] sm:$0xff] %v14154_v34  ;;  %v14169_v63 = vld [vmem:[#allocation6 + $0x224] ss:$8 sps:$4 sm:$0xff]  }
 0xa64   :  { %5631 = vmatpush1.bf16.msra.mxu0 %v13902_v17  ;;  %5853 = vmatpush1.bf16.msra.mxu1 %v14121_v9  ;;  %v14135_v55 = vld [vmem:[#allocation6 + $0x250] ss:$8 sps:$4 sm:$0xff]   ;;  %16013 = vst [vmem:[#allocation37_spill] sm:$0xff] %v14140_v48  ;;  %v14151_v12 = vld [vmem:[#allocation6 + $0x240] ss:$8 sps:$4 sm:$0xff]   ;;  %16021 = vst [vmem:[#allocation45_spill] sm:$0xff] %v14169_v63 }
 0xa65   :  { %5914 = vmatprep.subr.bf16.mxu0 %v13896_v1  ;;  %5854 = vmatprep.subr.bf16.mxu1 %v14123_v57  ;;  %16012 = vst [vmem:[#allocation34_spill] sm:$0xff] %v14135_v55  ;;  %v14145_v1 = vld [vmem:[#allocation6 + $0x374] ss:$8 sps:$4 sm:$0xff]   ;;  %16016 = vst [vmem:[#allocation38_spill] sm:$0xff] %v14151_v12  ;;  %v14164_v60 = vld [vmem:[%s15489_s9 + $0xc] sm:$0xf] }
 0xa66   :  { %5648 = vmatprep.mubr.bf16.mxu0 %v15840_v62  ;;  %16015 = vst [vmem:[#allocation49_spill] sm:$0xff] %v14145_v1  ;;  %16019 = vst [vmem:[#allocation51_spill] sm:$0xff] %v14164_v60 }
 0xa67   :  { %16023 = vst [vmem:[#allocation61_spill] sm:$0xff] %v14176_v49 }
 0xa68   :  { %5855 = vmatpush1.bf16.msra.mxu1 %v14127_v36 }
 0xa69   :  { %5856 = vmatprep.subr.bf16.mxu1 %v14131_v3 }
 0xa6b   :  { %9969 = vmatmul.mubr.msk.bf16.vlgmr.msra.gmra.mxu0 %vm4755_vm3, %v14140_v48  ;;  %v14182_v48 = vld [vmem:[#allocation6 + $0x214] ss:$8 sps:$4 sm:$0xff]  }
 0xa6c   :  { %5857 = vmatpush1.bf16.msra.mxu1 %v14135_v55  ;;  %5915 = vmatpush1.bf16.msra.mxu0 %v13902_v17  ;;  %v14166_v17 = vld [vmem:[#allocation6 + $0x370] ss:$8 sps:$4 sm:$0xff]   ;;  %16025 = vst [vmem:[#allocation52_spill] sm:$0xff] %v14182_v48 }
 0xa6d   :  { %5858 = vmatprep.subr.bf16.mxu1 %v14143_v61  ;;  %5932 = vmatprep.mubr.bf16.mxu0 %v15840_v62  ;;  %16020 = vst [vmem:[#allocation42_spill] sm:$0xff] %v14166_v17 }
 0xa6e   :  { %6136 = vmatprep.subr.bf16.mxu0 %v14145_v1  ;;  %v14179_v1 = vld [vmem:[#allocation6 + $0x360] ss:$8 sps:$4 sm:$0xff]  }
 0xa6f   :  { %16024 = vst [vmem:[#allocation63_spill] sm:$0xff] %v14179_v1 }
 0xa70   :  { %5859 = vmatpush1.bf16.msra.mxu1 %v14151_v12  ;;  %v14188_v12 = vld [vmem:[#allocation6 + $0x210] ss:$8 sps:$4 sm:$0xff]  }
 0xa71   :  { %5860 = vmatprep.subr.bf16.mxu1 %v14154_v34  ;;  %v14185_v34 = vld [vmem:[#allocation6 + $0x354] ss:$8 sps:$4 sm:$0xff]   ;;  %16027 = vst [vmem:[#allocation65_spill] sm:$0xff] %v14188_v12 }
 0xa72   :  { %16026 = vst [vmem:[#allocation53_spill] sm:$0xff] %v14185_v34 }
 0xa73   :  { %10003 = vmatmul.mubr.msk.bf16.vlgmr.msra.gmra.mxu0 %vm4755_vm3, %v14164_v60  ;;  %v14191_v60 = vld [vmem:[#allocation6 + $0x350] ss:$8 sps:$4 sm:$0xff]  }
 0xa74   :  { %5861 = vmatpush1.bf16.msra.mxu1 %v14159_v13  ;;  %6137 = vmatpush1.bf16.msra.mxu0 %v14166_v17  ;;  %16028 = vst [vmem:[#allocation67_spill] sm:$0xff] %v14191_v60  ;;  %v14194_v17 = vld [vmem:[#allocation6 + $0x204] ss:$8 sps:$4 sm:$0xff]  }
 0xa75   :  { %5862 = vmatprep.subr.bf16.mxu1 %v14169_v63  ;;  %6138 = vmatprep.subr.bf16.mxu0 %v14171_v47  ;;  %16029 = vst [vmem:[#allocation54_spill] sm:$0xff] %v14194_v17  ;;  %v14197_v63 = vld [vmem:[#allocation6 + $0x344] ss:$8 sps:$4 sm:$0xff]   ;;  %v14200_v47 = vld [vmem:[#allocation6 + $0x200] ss:$8 sps:$4 sm:$0xff]  }
 0xa76   :  { %16030 = vst [vmem:[#allocation55_spill] sm:$0xff] %v14197_v63  ;;  %16031 = vst [vmem:[#allocation69_spill] sm:$0xff] %v14200_v47 }
 0xa78   :  { %5863 = vmatpush1.bf16.msra.mxu1 %v14176_v49  ;;  %6139 = vmatpush1.bf16.msra.mxu0 %v14179_v1  ;;  %v14203_v49 = vld [vmem:[#allocation6 + $0x340] ss:$8 sps:$4 sm:$0xff]   ;;  %v14206_v1 = vld [vmem:[#allocation6 + $0x2f4] ss:$8 sps:$4 sm:$0xff]  }
 0xa79   :  { %5864 = vmatprep.subr.bf16.mxu1 %v14182_v48  ;;  %6140 = vmatprep.subr.bf16.mxu0 %v14185_v34  ;;  %16032 = vst [vmem:[#allocation71_spill] sm:$0xff] %v14203_v49  ;;  %16033 = vst [vmem:[#allocation56_spill] sm:$0xff] %v14206_v1  ;;  %v14209_v48 = vld [vmem:[#allocation6 + $0x334] ss:$8 sps:$4 sm:$0xff]   ;;  %v14212_v34 = vld [vmem:[#allocation6 + $0x2f0] ss:$8 sps:$4 sm:$0xff]  }
 0xa7a   :  { %16034 = vst [vmem:[#allocation57_spill] sm:$0xff] %v14209_v48  ;;  %16035 = vst [vmem:[#allocation73_spill] sm:$0xff] %v14212_v34 }
 0xa7c   :  { %5865 = vmatpush1.bf16.msra.mxu1 %v14188_v12  ;;  %6141 = vmatpush1.bf16.msra.mxu0 %v14191_v60  ;;  %v14215_v12 = vld [vmem:[#allocation6 + $0x330] ss:$8 sps:$4 sm:$0xff]   ;;  %v14218_v60 = vld [vmem:[#allocation6 + $0x2e4] ss:$8 sps:$4 sm:$0xff]  }
 0xa7d   :  { %5866 = vmatprep.subr.bf16.mxu1 %v14194_v17  ;;  %6142 = vmatprep.subr.bf16.mxu0 %v14197_v63  ;;  %16036 = vst [vmem:[#allocation75_spill] sm:$0xff] %v14215_v12  ;;  %16037 = vst [vmem:[#allocation58_spill] sm:$0xff] %v14218_v60  ;;  %v14221_v17 = vld [vmem:[#allocation6 + $0x324] ss:$8 sps:$4 sm:$0xff]   ;;  %v14224_v63 = vld [vmem:[#allocation6 + $0x2e0] ss:$8 sps:$4 sm:$0xff]  }
 0xa7e   :  { %16038 = vst [vmem:[#allocation59_spill] sm:$0xff] %v14221_v17  ;;  %16039 = vst [vmem:[#allocation77_spill] sm:$0xff] %v14224_v63 }
 0xa80   :  { %5867 = vmatpush1.bf16.msra.mxu1 %v14200_v47  ;;  %6143 = vmatpush1.bf16.msra.mxu0 %v14203_v49  ;;  %v14227_v47 = vld [vmem:[#allocation6 + $0x320] ss:$8 sps:$4 sm:$0xff]   ;;  %v14230_v49 = vld [vmem:[#allocation6 + $0x2d4] ss:$8 sps:$4 sm:$0xff]  }
 0xa81   :  { %5868 = vmatprep.subr.bf16.mxu1 %v14206_v1  ;;  %6144 = vmatprep.subr.bf16.mxu0 %v14209_v48  ;;  %16040 = vst [vmem:[#allocation79_spill] sm:$0xff] %v14227_v47  ;;  %16041 = vst [vmem:[#allocation60_spill] sm:$0xff] %v14230_v49  ;;  %v14233_v1 = vld [vmem:[#allocation6 + $0x314] ss:$8 sps:$4 sm:$0xff]   ;;  %v14236_v48 = vld [vmem:[#allocation6 + $0x2d0] ss:$8 sps:$4 sm:$0xff]  }
 0xa82   :  { %16042 = vst [vmem:[#allocation62_spill] sm:$0xff] %v14233_v1  ;;  %16043 = vst [vmem:[#allocation81_spill] sm:$0xff] %v14236_v48 }
 0xa84   :  { %5869 = vmatpush2.bf16.msra.mxu1 %v14212_v34  ;;  %6145 = vmatpush1.bf16.msra.mxu0 %v14215_v12  ;;  %v14239_v34 = vld [vmem:[#allocation6 + $0x310] ss:$8 sps:$4 sm:$0xff]   ;;  %v14242_v12 = vld [vmem:[#allocation6 + $0x2c4] ss:$8 sps:$4 sm:$0xff]  }
 0xa85   :  { %5870 = vmatprep.subr.bf16.mxu1 %v14218_v60  ;;  %6146 = vmatprep.subr.bf16.mxu0 %v14221_v17  ;;  %16044 = vst [vmem:[#allocation83_spill] sm:$0xff] %v14239_v34  ;;  %16045 = vst [vmem:[#allocation64_spill] sm:$0xff] %v14242_v12  ;;  %v14245_v60 = vld [vmem:[#allocation6 + $0x304] ss:$8 sps:$4 sm:$0xff]   ;;  %v14248_v17 = vld [vmem:[#allocation6 + $0x2c0] ss:$8 sps:$4 sm:$0xff]  }
 0xa86   :  { %16046 = vst [vmem:[#allocation66_spill] sm:$0xff] %v14245_v60  ;;  %16047 = vst [vmem:[#allocation85_spill] sm:$0xff] %v14248_v17 }
 0xa88   :  { %5871 = vmatpush2.bf16.msra.mxu1 %v14224_v63  ;;  %6147 = vmatpush1.bf16.msra.mxu0 %v14227_v47  ;;  %v14251_v63 = vld [vmem:[#allocation6 + $0x300] ss:$8 sps:$4 sm:$0xff]   ;;  %v14254_v47 = vld [vmem:[#allocation6 + $0x2b4] ss:$8 sps:$4 sm:$0xff]  }
 0xa89   :  { %5872 = vmatprep.subr.bf16.mxu1 %v14230_v49  ;;  %6148 = vmatprep.subr.bf16.mxu0 %v14233_v1  ;;  %16048 = vst [vmem:[#allocation87_spill] sm:$0xff] %v14251_v63  ;;  %16049 = vst [vmem:[#allocation68_spill] sm:$0xff] %v14254_v47  ;;  %v14257_v49 = vld [vmem:[#allocation6 + $0x3f4] ss:$8 sps:$4 sm:$0xff]   ;;  %v14260_v1 = vld [vmem:[#allocation6 + $0x2b0] ss:$8 sps:$4 sm:$0xff]  }
 0xa8a   :  { %16050 = vst [vmem:[#allocation70_spill] sm:$0xff] %v14257_v49  ;;  %16051 = vst [vmem:[#allocation89_spill] sm:$0xff] %v14260_v1 }
 0xa8c   :  { %5873 = vmatpush2.bf16.msra.mxu1 %v14236_v48  ;;  %6149 = vmatpush1.bf16.msra.mxu0 %v14239_v34  ;;  %v14263_v48 = vld [vmem:[#allocation6 + $0x3f0] ss:$8 sps:$4 sm:$0xff]   ;;  %v14266_v34 = vld [vmem:[#allocation6 + $0x2a4] ss:$8 sps:$4 sm:$0xff]  }
 0xa8d   :  { %5874 = vmatprep.subr.bf16.mxu1 %v14242_v12  ;;  %6150 = vmatprep.subr.bf16.mxu0 %v14245_v60  ;;  %16052 = vst [vmem:[#allocation90_spill] sm:$0xff] %v14263_v48  ;;  %16053 = vst [vmem:[#allocation72_spill] sm:$0xff] %v14266_v34  ;;  %v14269_v12 = vld [vmem:[#allocation6 + $0x3e4] ss:$8 sps:$4 sm:$0xff]   ;;  %v14272_v60 = vld [vmem:[#allocation6 + $0x2a0] ss:$8 sps:$4 sm:$0xff]  }
 0xa8e   :  { %16054 = vst [vmem:[#allocation74_spill] sm:$0xff] %v14269_v12  ;;  %16055 = vst [vmem:[#allocation91_spill] sm:$0xff] %v14272_v60 }
 0xa90   :  { %5875 = vmatpush2.bf16.msra.mxu1 %v14248_v17  ;;  %6151 = vmatpush1.bf16.msra.mxu0 %v14251_v63  ;;  %v14275_v17 = vld [vmem:[#allocation6 + $0x3e0] ss:$8 sps:$4 sm:$0xff]   ;;  %v14278_v63 = vld [vmem:[#allocation6 + $0x294] ss:$8 sps:$4 sm:$0xff]  }
 0xa91   :  { %5876 = vmatprep.subr.bf16.mxu1 %v14254_v47  ;;  %6152 = vmatprep.subr.bf16.mxu0 %v14257_v49  ;;  %16056 = vst [vmem:[#allocation92_spill] sm:$0xff] %v14275_v17  ;;  %16057 = vst [vmem:[#allocation76_spill] sm:$0xff] %v14278_v63  ;;  %v14281_v47 = vld [vmem:[#allocation6 + $0x3d4] ss:$8 sps:$4 sm:$0xff]   ;;  %v14284_v49 = vld [vmem:[#allocation6 + $0x290] ss:$8 sps:$4 sm:$0xff]  }
 0xa92   :  { %16058 = vst [vmem:[#allocation78_spill] sm:$0xff] %v14281_v47  ;;  %16059 = vst [vmem:[#allocation93_spill] sm:$0xff] %v14284_v49 }
 0xa94   :  { %5877 = vmatpush2.bf16.msra.mxu1 %v14260_v1  ;;  %6153 = vmatpush2.bf16.msra.mxu0 %v14263_v48  ;;  %v14287_v1 = vld [vmem:[#allocation6 + $0x3d0] ss:$8 sps:$4 sm:$0xff]   ;;  %v14290_v48 = vld [vmem:[#allocation6 + $0x284] ss:$8 sps:$4 sm:$0xff]  }
 0xa95   :  { %5878 = vmatprep.subr.bf16.mxu1 %v14266_v34  ;;  %6154 = vmatprep.subr.bf16.mxu0 %v14269_v12  ;;  %16060 = vst [vmem:[#allocation94_spill] sm:$0xff] %v14287_v1  ;;  %16061 = vst [vmem:[#allocation80_spill] sm:$0xff] %v14290_v48  ;;  %v14294_v34 = vld [vmem:[#allocation6 + $0x280] ss:$8 sps:$4 sm:$0xff]   ;;  %v14302_v12 = vld [vmem:[#allocation6 + $0x3c4] ss:$8 sps:$4 sm:$0xff]  }
 0xa96   :  { %16062 = vst [vmem:[#allocation82_spill] sm:$0xff] %v14294_v34  ;;  %16064 = vst [vmem:[#allocation96_spill] sm:$0xff] %v14302_v12 }
 0xa98   :  { %5879 = vmatpush2.bf16.msra.mxu1 %v14272_v60  ;;  %6155 = vmatpush2.bf16.msra.mxu0 %v14275_v17  ;;  %v14300_v17 = vld [vmem:[#allocation6 + $0x3c0] ss:$8 sps:$4 sm:$0xff]  }
 0xa99   :  { %5880 = vmatprep.subr.bf16.mxu1 %v14278_v63  ;;  %6156 = vmatprep.subr.bf16.mxu0 %v14281_v47  ;;  %16063 = vst [vmem:[#allocation95_spill] sm:$0xff] %v14300_v17  ;;  %v14306_v47 = vld [vmem:[#allocation6 + $0x3b0] ss:$8 sps:$4 sm:$0xff]  }
 0xa9a   :  { %16065 = vst [vmem:[#allocation84_spill] sm:$0xff] %v14306_v47 }
 0xa9c   :  { %5881 = vmatpush2.bf16.msra.mxu1 %v14284_v49  ;;  %6157 = vmatpush2.bf16.msra.mxu0 %v14287_v1  ;;  %v14308_v49 = vld [vmem:[#allocation6 + $0x3b4] ss:$8 sps:$4 sm:$0xff]   ;;  %v14312_v1 = vld [vmem:[#allocation6 + $0x3a0] ss:$8 sps:$4 sm:$0xff]  }
 0xa9d   :  { %5882 = vmatprep.subr.bf16.mxu1 %v14290_v48  ;;  %6158 = vmatprep.subr.bf16.mxu0 %v14302_v12  ;;  %16066 = vst [vmem:[#allocation86_spill] sm:$0xff] %v14308_v49  ;;  %16067 = vst [vmem:[#allocation97_spill] sm:$0xff] %v14312_v1  ;;  %v14318_v48 = vld [vmem:[#allocation6 + $0x390] ss:$8 sps:$4 sm:$0xff]   ;;  %v14320_v12 = vld [vmem:[#allocation6 + $0x394] ss:$8 sps:$4 sm:$0xff]  }
 0xa9e   :  { %16069 = vst [vmem:[#allocation88_spill] sm:$0xff] %v14318_v48  ;;  %16070 = vst [vmem:[#allocation99_spill] sm:$0xff] %v14320_v12 }
 0xaa0   :  { %5883 = vmatpush2.bf16.msra.mxu1 %v14294_v34  ;;  %6159 = vmatpush2.bf16.msra.mxu0 %v14300_v17  ;;  %v14314_v34 = vld [vmem:[#allocation6 + $0x3a4] ss:$8 sps:$4 sm:$0xff]   ;;  %v14324_v17 = vld [vmem:[#allocation6 + $0x380] ss:$8 sps:$4 sm:$0xff]  }
 0xaa1   :  { %6205 = vmatprep.subr.bf16.mxu1 %v13929_v46  ;;  %6160 = vmatprep.subr.bf16.mxu0 %v14308_v49  ;;  %16068 = vst [vmem:[#allocation98_spill] sm:$0xff] %v14314_v34  ;;  %16071 = vst [vmem:[#allocation100_spill] sm:$0xff] %v14324_v17  ;;  %v14326_v49 = vld [vmem:[#allocation6 + $0x384] ss:$8 sps:$4 sm:$0xff]  }
 0xaa2   :  { %16072 = vst [vmem:[#allocation101_spill] sm:$0xff] %v14326_v49 }
 0xaa4   :  { %6161 = vmatpush2.bf16.msra.mxu0 %v14306_v47 }
 0xaa5   :  { %6162 = vmatprep.subr.bf16.mxu0 %v14314_v34 }
 0xaa8   :  { %6163 = vmatpush2.bf16.msra.mxu0 %v14312_v1 }
 0xaa9   :  { %6164 = vmatprep.subr.bf16.mxu0 %v14320_v12 }
 0xaac   :  { %6165 = vmatpush2.bf16.msra.mxu0 %v14318_v48 }
 0xaad   :  { %6166 = vmatprep.subr.bf16.mxu0 %v14326_v49 }
 0xab0   :  { %6167 = vmatpush2.bf16.msra.mxu0 %v14324_v17 }
 0xab1   :  { %6277 = vmatprep.subr.bf16.mxu0 %v13898_v43 }
 0xb23   :  { %v5403_v34 = vpop.f32.mrf.mxu0  ;;  %v5604_v1 = vpop.f32.mrf.mxu1 }
 0xb24   :  { %v14331_v47 = vadd.f32 %v5604_v1, %v5403_v34  ;;  %v16098_v34 = vld [vmem:[#allocation47_spill] sm:$0xff] }
 0xb25   :  { %v5405_v63 = vpop.f32.mrf.mxu0  ;;  %v5606_v60 = vpop.f32.mrf.mxu1 }
 0xb26   :  { %v14333_v13 = vadd.f32 %v5606_v60, %v5405_v63  ;;  %v16099_v60 = vld [vmem:[#allocation34_spill] sm:$0xff] }
 0xb27   :  { %v5407_v12 = vpop.f32.mrf.mxu0  ;;  %v5608_v48 = vpop.f32.mrf.mxu1  ;;  %v16101_v63 = vld [vmem:[#allocation38_spill] sm:$0xff] }
 0xb29   :  { %v5408_v61 = vpop.f32.mrf.mxu0  ;;  %v5609_v55 = vpop.f32.mrf.mxu1 }
 0xb2b   :  { %v5650_v3 = vpop.f32.mrf.mxu0 }
 0xb2c   :  { %v5657_v49 = vpack.c.bf16 %v5650_v3, %v5650_v3 }
 0xb2d   :  { %v5652_v36 = vpop.f32.mrf.mxu0 }
 0xb2e   :  { %v5658_v57 = vpack.c.bf16 %v5652_v36, %v5652_v36  ;;  %v16097_v36 = vld [vmem:[#allocation43_spill] sm:$0xff] }
 0xb2f   :  { %v5654_v9 = vpop.f32.mrf.mxu0 }
 0xb30   :  { %5884 = vmatprep.mubr.bf16.mxu1 %v5658_v57  ;;  %v16095_v57 = vld [vmem:[#allocation30_spill] sm:$0xff] }
 0xb31   :  { %v5655_v17 = vpop.f32.mrf.mxu0  ;;  %5885 = vmatmul.mubr.bf16.vlgmr.msra.gmra.mxu1 %v5657_v49  ;;  %v16103_v49 = vld [vmem:[#allocation37_spill] sm:$0xff] }
 0xb32   :  { %6206 = vmatpush1.bf16.msra.mxu1 %v13933_v51  ;;  %6223 = vmatprep.mubr.bf16.mxu1 %v15840_v62  ;;  %v16100_v17 = vld [vmem:[#allocation48_spill] sm:$0xff] }
 0xb33   :  { %6248 = vmatprep.subr.bf16.mxu1 %v13929_v46  ;;  %v5934_v43 = vpop.f32.mrf.mxu0 }
 0xb34   :  { %v5941_v1 = vpack.c.bf16 %v5934_v43, %v5934_v43  ;;  %v16104_v43 = vld [vmem:[#allocation49_spill] sm:$0xff] }
 0xb35   :  { %v5936_v12 = vpop.f32.mrf.mxu0 }
 0xb36   :  { %v5942_v48 = vpack.c.bf16 %v5936_v12, %v5936_v12  ;;  %v16107_v12 = vld [vmem:[#allocation61_spill] sm:$0xff] }
 0xb37   :  { %v5938_v61 = vpop.f32.mrf.mxu0 }
 0xb38   :  { %6168 = vmatprep.mubr.bf16.mxu0 %v5942_v48  ;;  %v16108_v48 = vld [vmem:[#allocation52_spill] sm:$0xff]  ;;  %v16109_v61 = vld [vmem:[#allocation51_spill] sm:$0xff] }
 0xb39   :  { %6169 = vmatmul.mubr.bf16.vlgmr.msra.gmra.mxu0 %v5941_v1  ;;  %10038 = vmatmul.mubr.msk.bf16.vlgmr.msra.gmra.mxu1 %vm4755_vm3, %v13909_v18  ;;  %v5939_v9 = vpop.f32.mrf.mxu0  ;;  %v16074_v18 = vld [vmem:[#allocation20_spill] sm:$0xff]  ;;  %v16105_v1 = vld [vmem:[#allocation50_spill] sm:$0xff] }
 0xb3a   :  { %6249 = vmatpush1.bf16.msra.mxu1 %v13933_v51  ;;  %6278 = vmatpush1.bf16.msra.mxu0 %v13918_v39  ;;  %v16076_v39 = vld [vmem:[#allocation22_spill] sm:$0xff] }
 0xb3b   :  { %6279 = vmatprep.subr.bf16.mxu0 %v13924_v42  ;;  %6266 = vmatprep.mubr.bf16.mxu1 %v15840_v62  ;;  %v16078_v42 = vld [vmem:[#allocation32_spill] sm:$0xff]  ;;  %v16110_v9 = vld [vmem:[#allocation42_spill] sm:$0xff] }
 0xb3c   :  { %6318 = vmatprep.subr.bf16.mxu1 %v13900_v26  ;;  %v16073_v26 = vld [vmem:[#allocation15_spill] sm:$0xff] }
 0xb3e   :  { %6280 = vmatpush1.bf16.msra.mxu0 %v13940_v44  ;;  %v16080_v44 = vld [vmem:[#allocation25_spill] sm:$0xff] }
 0xb3f   :  { %6281 = vmatprep.subr.bf16.mxu0 %v13946_v40  ;;  %v16082_v40 = vld [vmem:[#allocation36_spill] sm:$0xff] }
 0xb41   :  { %10039 = vmatmul.mubr.msk.bf16.vlgmr.msra.gmra.mxu1 %vm4755_vm3, %v13916_v38  ;;  %v16075_v38 = vld [vmem:[#allocation16_spill] sm:$0xff] }
 0xb42   :  { %6282 = vmatpush1.bf16.msra.mxu0 %v13952_v10  ;;  %6319 = vmatpush1.bf16.msra.mxu1 %v13920_v41  ;;  %v16077_v41 = vld [vmem:[#allocation17_spill] sm:$0xff]  ;;  %v16084_v10 = vld [vmem:[#allocation27_spill] sm:$0xff] }
 0xb43   :  { %6283 = vmatprep.subr.bf16.mxu0 %v13958_v11  ;;  %6320 = vmatprep.subr.bf16.mxu1 %v13927_v56  ;;  %v16079_v56 = vld [vmem:[#allocation18_spill] sm:$0xff]  ;;  %v16086_v11 = vld [vmem:[#allocation40_spill] sm:$0xff] }
 0xb46   :  { %6284 = vmatpush1.bf16.msra.mxu0 %v13964_v37  ;;  %6321 = vmatpush1.bf16.msra.mxu1 %v13943_v16  ;;  %v16081_v16 = vld [vmem:[#allocation19_spill] sm:$0xff]  ;;  %v16088_v37 = vld [vmem:[#allocation28_spill] sm:$0xff] }
 0xb47   :  { %6285 = vmatprep.subr.bf16.mxu0 %v13970_v23  ;;  %6322 = vmatprep.subr.bf16.mxu1 %v13949_v30  ;;  %v16083_v30 = vld [vmem:[#allocation21_spill] sm:$0xff]  ;;  %v16090_v23 = vld [vmem:[#allocation26_spill] sm:$0xff] }
 0xb4a   :  { %6286 = vmatpush1.bf16.msra.mxu0 %v13976_v15  ;;  %6323 = vmatpush1.bf16.msra.mxu1 %v13955_v8  ;;  %v16085_v8 = vld [vmem:[#allocation23_spill] sm:$0xff]  ;;  %v16092_v15 = vld [vmem:[#allocation29_spill] sm:$0xff] }
 0xb4b   :  { %6287 = vmatprep.subr.bf16.mxu0 %v13982_v29  ;;  %6324 = vmatprep.subr.bf16.mxu1 %v13961_v19  ;;  %v16087_v19 = vld [vmem:[#allocation24_spill] sm:$0xff] }
 0xb4c   :  { %v16094_v29 = vld [vmem:[#allocation44_spill] sm:$0xff] }
 0xb4e   :  { %6288 = vmatpush1.bf16.msra.mxu0 %v13988_v4  ;;  %6325 = vmatpush1.bf16.msra.mxu1 %v13967_v58  ;;  %v16089_v58 = vld [vmem:[#allocation31_spill] sm:$0xff] }
 0xb4f   :  { %6289 = vmatprep.subr.bf16.mxu0 %v13994_v0  ;;  %6326 = vmatprep.subr.bf16.mxu1 %v13973_v33  ;;  %v16091_v33 = vld [vmem:[#allocation35_spill] sm:$0xff] }
 0xb52   :  { %6290 = vmatpush1.bf16.msra.mxu0 %v14000_v53  ;;  %6327 = vmatpush1.bf16.msra.mxu1 %v13979_v7  ;;  %v16093_v7 = vld [vmem:[#allocation39_spill] sm:$0xff] }
 0xb53   :  { %6291 = vmatprep.subr.bf16.mxu0 %v14006_v2  ;;  %6328 = vmatprep.subr.bf16.mxu1 %v13985_v25 }
 0xb56   :  { %6292 = vmatpush1.bf16.msra.mxu0 %v14012_v52  ;;  %6329 = vmatpush1.bf16.msra.mxu1 %v13991_v31 }
 0xb57   :  { %6293 = vmatprep.subr.bf16.mxu0 %v14018_v59  ;;  %6330 = vmatprep.subr.bf16.mxu1 %v13997_v32 }
 0xb5a   :  { %6294 = vmatpush2.bf16.msra.mxu0 %v14024_v6  ;;  %6331 = vmatpush1.bf16.msra.mxu1 %v14003_v54 }
 0xb5b   :  { %6295 = vmatprep.subr.bf16.mxu0 %v14030_v50  ;;  %6332 = vmatprep.subr.bf16.mxu1 %v14009_v27 }
 0xb5e   :  { %6296 = vmatpush2.bf16.msra.mxu0 %v14036_v45  ;;  %6333 = vmatpush1.bf16.msra.mxu1 %v14015_v35 }
 0xb5f   :  { %6297 = vmatprep.subr.bf16.mxu0 %v14042_v22  ;;  %6334 = vmatprep.subr.bf16.mxu1 %v14021_v14 }
 0xb62   :  { %6298 = vmatpush2.bf16.msra.mxu0 %v14048_v24  ;;  %6335 = vmatpush2.bf16.msra.mxu1 %v14027_v28  ;;  %v16096_v24 = vld [vmem:[#allocation33_spill] sm:$0xff] }
 0xb63   :  { %6299 = vmatprep.subr.bf16.mxu0 %v14054_v5  ;;  %6336 = vmatprep.subr.bf16.mxu1 %v14033_v21 }
 0xb66   :  { %6300 = vmatpush2.bf16.msra.mxu0 %v14060_v20  ;;  %6337 = vmatpush2.bf16.msra.mxu1 %v16073_v26  ;;  %v16111_v26 = vld [vmem:[#allocation46_spill] sm:$0xff] }
 0xb67   :  { %6301 = vmatprep.subr.bf16.mxu0 %v16074_v18  ;;  %6338 = vmatprep.subr.bf16.mxu1 %v16075_v38  ;;  %v16113_v18 = vld [vmem:[#allocation54_spill] sm:$0xff]  ;;  %v16114_v38 = vld [vmem:[#allocation63_spill] sm:$0xff] }
 0xb6a   :  { %6302 = vmatpush2.bf16.msra.mxu0 %v16076_v39  ;;  %6339 = vmatpush2.bf16.msra.mxu1 %v16077_v41  ;;  %v16115_v39 = vld [vmem:[#allocation53_spill] sm:$0xff] }
 0xb6b   :  { %6303 = vmatprep.subr.bf16.mxu0 %v16078_v42  ;;  %6340 = vmatprep.subr.bf16.mxu1 %v16079_v56  ;;  %v16116_v41 = vld [vmem:[#allocation69_spill] sm:$0xff]  ;;  %v16117_v42 = vld [vmem:[#allocation56_spill] sm:$0xff]  ;;  %v16118_v56 = vld [vmem:[#allocation67_spill] sm:$0xff] }
 0xb6e   :  { %6304 = vmatpush2.bf16.msra.mxu0 %v16080_v44  ;;  %6341 = vmatpush2.bf16.msra.mxu1 %v16081_v16  ;;  %v16119_v44 = vld [vmem:[#allocation55_spill] sm:$0xff]  ;;  %v16120_v16 = vld [vmem:[#allocation73_spill] sm:$0xff] }
 0xb6f   :  { %6305 = vmatprep.subr.bf16.mxu0 %v16082_v40  ;;  %6342 = vmatprep.subr.bf16.mxu1 %v16083_v30  ;;  %v16121_v40 = vld [vmem:[#allocation58_spill] sm:$0xff]  ;;  %v16122_v30 = vld [vmem:[#allocation71_spill] sm:$0xff] }
 0xb72   :  { %6306 = vmatpush2.bf16.msra.mxu0 %v16084_v10  ;;  %6343 = vmatpush2.bf16.msra.mxu1 %v16085_v8  ;;  %v16123_v10 = vld [vmem:[#allocation57_spill] sm:$0xff] }
 0xb73   :  { %6307 = vmatprep.subr.bf16.mxu0 %v16086_v11  ;;  %6344 = vmatprep.subr.bf16.mxu1 %v16087_v19  ;;  %v16124_v8 = vld [vmem:[#allocation77_spill] sm:$0xff]  ;;  %v16125_v11 = vld [vmem:[#allocation60_spill] sm:$0xff]  ;;  %v16126_v19 = vld [vmem:[#allocation75_spill] sm:$0xff] }
 0xb76   :  { %6308 = vmatpush2.bf16.msra.mxu0 %v16088_v37  ;;  %6345 = vmatpush2.bf16.msra.mxu1 %v16089_v58  ;;  %v16127_v37 = vld [vmem:[#allocation59_spill] sm:$0xff]  ;;  %v16128_v58 = vld [vmem:[#allocation81_spill] sm:$0xff] }
 0xb77   :  { %6373 = vmatprep.subr.bf16.mxu0 %v13929_v46  ;;  %6346 = vmatprep.subr.bf16.mxu1 %v16090_v23  ;;  %v16129_v23 = vld [vmem:[#allocation64_spill] sm:$0xff] }
 0xb7a   :  { %6347 = vmatpush2.bf16.msra.mxu1 %v16091_v33  ;;  %v16130_v33 = vld [vmem:[#allocation79_spill] sm:$0xff] }
 0xb7b   :  { %6348 = vmatprep.subr.bf16.mxu1 %v16092_v15  ;;  %v16131_v15 = vld [vmem:[#allocation62_spill] sm:$0xff] }
 0xb7e   :  { %6349 = vmatpush2.bf16.msra.mxu1 %v16093_v7  ;;  %v16132_v7 = vld [vmem:[#allocation85_spill] sm:$0xff] }
 0xb7f   :  { %6402 = vmatprep.subr.bf16.mxu1 %v16094_v29  ;;  %v16133_v29 = vld [vmem:[#allocation68_spill] sm:$0xff] }
 0xbf1   :  { %v5886_v25 = vpop.f32.mrf.mxu1 }
 0xbf2   :  { %v5893_v4 = vadd.f32 %v5886_v25, %v14331_v47  ;;  %v16102_v47 = vld [vmem:[#allocation41_spill] sm:$0xff]  ;;  %v16134_v25 = vld [vmem:[#allocation83_spill] sm:$0xff] }
 0xbf3   :  { %v5888_v31 = vpop.f32.mrf.mxu1 }
 0xbf4   :  { %v5894_v0 = vadd.f32 %v5888_v31, %v14333_v13  ;;  %v16136_v31 = vld [vmem:[#allocation89_spill] sm:$0xff] }
 0xbf5   :  { %v5890_v32 = vpop.f32.mrf.mxu1 }
 0xbf6   :  { %v16138_v32 = vld [vmem:[#allocation87_spill] sm:$0xff] }
 0xbf7   :  { %v5891_v53 = vpop.f32.mrf.mxu1 }
 0xbf8   :  { %v16139_v53 = vld [vmem:[#allocation70_spill] sm:$0xff] }
 0xbf9   :  { %v6170_v54 = vpop.f32.mrf.mxu0  ;;  %v6225_v2 = vpop.f32.mrf.mxu1 }
 0xbfa   :  { %v14411_v27 = vadd.f32 %v6170_v54, %v5893_v4  ;;  %v6232_v6 = vpack.c.bf16 %v6225_v2, %v6225_v2  ;;  %v16135_v4 = vld [vmem:[#allocation66_spill] sm:$0xff]  ;;  %v16140_v54 = vld [vmem:[#allocation91_spill] sm:$0xff]  ;;  %v16141_v2 = vld [vmem:[#allocation76_spill] sm:$0xff] }
 0xbfb   :  { %v6172_v52 = vpop.f32.mrf.mxu0  ;;  %v6227_v35 = vpop.f32.mrf.mxu1 }
 0xbfc   :  { %v14413_v59 = vadd.f32 %v6172_v52, %v5894_v0  ;;  %v6233_v14 = vpack.c.bf16 %v6227_v35, %v6227_v35  ;;  %v16137_v0 = vld [vmem:[#allocation72_spill] sm:$0xff]  ;;  %v16142_v52 = vld [vmem:[#allocation90_spill] sm:$0xff] }
 0xbfd   :  { %v6229_v28 = vpop.f32.mrf.mxu1  ;;  %v6174_v50 = vpop.f32.mrf.mxu0  ;;  %v16143_v35 = vld [vmem:[#allocation74_spill] sm:$0xff] }
 0xbfe   :  { %6350 = vmatprep.mubr.bf16.mxu1 %v6233_v14  ;;  %v16144_v14 = vld [vmem:[#allocation93_spill] sm:$0xff]  ;;  %v16146_v28 = vld [vmem:[#allocation92_spill] sm:$0xff]  ;;  %v16147_v50 = vld [vmem:[#allocation78_spill] sm:$0xff] }
 0xbff   :  { %v6230_v21 = vpop.f32.mrf.mxu1  ;;  %6351 = vmatmul.mubr.bf16.vlgmr.msra.gmra.mxu1 %v6232_v6  ;;  %v6175_v45 = vpop.f32.mrf.mxu0  ;;  %v16145_v6 = vld [vmem:[#allocation80_spill] sm:$0xff] }
 0xc00   :  { %6403 = vmatpush1.bf16.msra.mxu1 %v16095_v57  ;;  %v16148_v21 = vld [vmem:[#allocation82_spill] sm:$0xff]  ;;  %v16150_v57 = vld [vmem:[#allocation96_spill] sm:$0xff] }
 0xc01   :  { %v6268_v22 = vpop.f32.mrf.mxu1  ;;  %6404 = vmatprep.subr.bf16.mxu1 %v16096_v24  ;;  %v16149_v45 = vld [vmem:[#allocation94_spill] sm:$0xff] }
 0xc02   :  { %v6275_v3 = vpack.c.bf16 %v6268_v22, %v6268_v22  ;;  %v16151_v22 = vld [vmem:[#allocation95_spill] sm:$0xff]  ;;  %v16152_v24 = vld [vmem:[#allocation86_spill] sm:$0xff] }
 0xc03   :  { %v6270_v5 = vpop.f32.mrf.mxu1 }
 0xc04   :  { %v6276_v20 = vpack.c.bf16 %v6270_v5, %v6270_v5  ;;  %6405 = vmatpush1.bf16.msra.mxu1 %v16097_v36  ;;  %v16153_v5 = vld [vmem:[#allocation84_spill] sm:$0xff]  ;;  %v16155_v36 = vld [vmem:[#allocation97_spill] sm:$0xff] }
 0xc05   :  { %v6272_v55 = vpop.f32.mrf.mxu1  ;;  %6406 = vmatprep.subr.bf16.mxu1 %v16098_v34  ;;  %v16158_v34 = vld [vmem:[#allocation101_spill] sm:$0xff] }
 0xc06   :  { %6309 = vmatprep.mubr.bf16.mxu0 %v6276_v20  ;;  %v16154_v20 = vld [vmem:[#allocation98_spill] sm:$0xff]  ;;  %v16157_v55 = vld [vmem:[#allocation88_spill] sm:$0xff] }
 0xc07   :  { %v6273_v13 = vpop.f32.mrf.mxu1  ;;  %6310 = vmatmul.mubr.bf16.vlgmr.msra.gmra.mxu0 %v6275_v3  ;;  %v16156_v3 = vld [vmem:[#allocation99_spill] sm:$0xff] }
 0xc08   :  { %6374 = vmatpush1.bf16.msra.mxu0 %v13933_v51  ;;  %6391 = vmatprep.mubr.bf16.mxu0 %v15840_v62  ;;  %v16159_v13 = vld [vmem:[#allocation100_spill] sm:$0xff] }
 0xc09   :  { %6459 = vmatprep.subr.bf16.mxu0 %v13929_v46  ;;  %6407 = vmatpush1.bf16.msra.mxu1 %v16099_v60  ;;  %v16106_v46 = vld [vmem:[#allocation45_spill] sm:$0xff]  ;;  %v6622_v60 = vld [vmem:[%s15491_s11 + $0xf8] sm:$0xff] }
 0xc0a   :  { %6408 = vmatprep.subr.bf16.mxu1 %v16100_v17 }
 0xc0d   :  { %6409 = vmatpush1.bf16.msra.mxu1 %v16101_v63 }
 0xc0e   :  { %6410 = vmatprep.subr.bf16.mxu1 %v16102_v47 }
 0xc0f   :  { %10040 = vmatmul.mubr.msk.bf16.vlgmr.msra.gmra.mxu0 %vm4755_vm3, %v16103_v49 }
 0xc10   :  { %6460 = vmatpush1.bf16.msra.mxu0 %v13933_v51  ;;  %6477 = vmatprep.mubr.bf16.mxu0 %v15840_v62  ;;  %v16112_v51 = vld [vmem:[#allocation65_spill] sm:$0xff] }
 0xc11   :  { %6488 = vmatprep.subr.bf16.mxu0 %v16104_v43  ;;  %6411 = vmatpush1.bf16.msra.mxu1 %v16105_v1 }
 0xc12   :  { %6412 = vmatprep.subr.bf16.mxu1 %v16106_v46 }
 0xc15   :  { %6413 = vmatpush1.bf16.msra.mxu1 %v16107_v12 }
 0xc16   :  { %6414 = vmatprep.subr.bf16.mxu1 %v16108_v48 }
 0xc17   :  { %10041 = vmatmul.mubr.msk.bf16.vlgmr.msra.gmra.mxu0 %vm4755_vm3, %v16109_v61 }
 0xc18   :  { %6489 = vmatpush1.bf16.msra.mxu0 %v16110_v9 }
 0xc19   :  { %6490 = vmatprep.subr.bf16.mxu0 %v16111_v26  ;;  %6415 = vmatpush1.bf16.msra.mxu1 %v16112_v51 }
 0xc1a   :  { %6416 = vmatprep.subr.bf16.mxu1 %v16113_v18 }
 0xc1c   :  { %6491 = vmatpush1.bf16.msra.mxu0 %v16114_v38 }
 0xc1d   :  { %6492 = vmatprep.subr.bf16.mxu0 %v16115_v39  ;;  %6417 = vmatpush1.bf16.msra.mxu1 %v16116_v41  ;;  %v6606_v39 = vld [vmem:[%s15491_s11 + $0x78] sm:$0xff]  ;;  %v6621_v41 = vld [vmem:[%s15491_s11 + $0xf0] sm:$0xff] }
 0xc1e   :  { %6418 = vmatprep.subr.bf16.mxu1 %v16117_v42 }
 0xc20   :  { %6493 = vmatpush1.bf16.msra.mxu0 %v16118_v56  ;;  %v6605_v56 = vld [vmem:[%s15491_s11 + $0x70] sm:$0xff] }
 0xc21   :  { %6494 = vmatprep.subr.bf16.mxu0 %v16119_v44  ;;  %6419 = vmatpush2.bf16.msra.mxu1 %v16120_v16 }
 0xc22   :  { %6420 = vmatprep.subr.bf16.mxu1 %v16121_v40 }
 0xc24   :  { %6495 = vmatpush1.bf16.msra.mxu0 %v16122_v30 }
 0xc25   :  { %6496 = vmatprep.subr.bf16.mxu0 %v16123_v10  ;;  %6421 = vmatpush2.bf16.msra.mxu1 %v16124_v8 }
 0xc26   :  { %6422 = vmatprep.subr.bf16.mxu1 %v16125_v11  ;;  %v6620_v11 = vld [vmem:[%s15491_s11 + $0xe8] sm:$0xff] }
 0xc28   :  { %6497 = vmatpush1.bf16.msra.mxu0 %v16126_v19  ;;  %v6604_v19 = vld [vmem:[%s15491_s11 + $0x68] sm:$0xff] }
 0xc29   :  { %6498 = vmatprep.subr.bf16.mxu0 %v16127_v37  ;;  %6423 = vmatpush2.bf16.msra.mxu1 %v16128_v58  ;;  %v6619_v37 = vld [vmem:[%s15491_s11 + $0xe0] sm:$0xff] }
 0xc2a   :  { %6424 = vmatprep.subr.bf16.mxu1 %v16129_v23  ;;  %v6603_v58 = vld [vmem:[%s15491_s11 + $0x60] sm:$0xff]  ;;  %v6618_v23 = vld [vmem:[%s15491_s11 + $0xd8] sm:$0xff] }
 0xc2c   :  { %6499 = vmatpush1.bf16.msra.mxu0 %v16130_v33  ;;  %v6602_v33 = vld [vmem:[%s15491_s11 + $0x58] sm:$0xff] }
 0xc2d   :  { %6500 = vmatprep.subr.bf16.mxu0 %v16131_v15  ;;  %6425 = vmatpush2.bf16.msra.mxu1 %v16132_v7  ;;  %v6617_v15 = vld [vmem:[%s15491_s11 + $0xd0] sm:$0xff] }
 0xc2e   :  { %6426 = vmatprep.subr.bf16.mxu1 %v16133_v29  ;;  %v6601_v7 = vld [vmem:[%s15491_s11 + $0x50] sm:$0xff]  ;;  %v6616_v29 = vld [vmem:[%s15491_s11 + $0xc8] sm:$0xff] }
 0xc30   :  { %6501 = vmatpush1.bf16.msra.mxu0 %v16134_v25  ;;  %v6600_v25 = vld [vmem:[%s15491_s11 + $0x48] sm:$0xff] }
 0xc31   :  { %6502 = vmatprep.subr.bf16.mxu0 %v16135_v4  ;;  %6427 = vmatpush2.bf16.msra.mxu1 %v16136_v31  ;;  %v6615_v4 = vld [vmem:[%s15491_s11 + $0xc0] sm:$0xff] }
 0xc32   :  { %6428 = vmatprep.subr.bf16.mxu1 %v16137_v0  ;;  %v6599_v31 = vld [vmem:[%s15491_s11 + $0x40] sm:$0xff]  ;;  %v6614_v0 = vld [vmem:[%s15491_s11 + $0xb8] sm:$0xff] }
 0xc34   :  { %6503 = vmatpush1.bf16.msra.mxu0 %v16138_v32  ;;  %v6598_v32 = vld [vmem:[%s15491_s11 + $0x38] sm:$0xff] }
 0xc35   :  { %6504 = vmatprep.subr.bf16.mxu0 %v16139_v53  ;;  %6429 = vmatpush2.bf16.msra.mxu1 %v16140_v54  ;;  %v6613_v53 = vld [vmem:[%s15491_s11 + $0xb0] sm:$0xff] }
 0xc36   :  { %6430 = vmatprep.subr.bf16.mxu1 %v16141_v2  ;;  %v6597_v54 = vld [vmem:[%s15491_s11 + $0x30] sm:$0xff]  ;;  %v6612_v2 = vld [vmem:[%s15491_s11 + $0xa8] sm:$0xff] }
 0xc38   :  { %6505 = vmatpush2.bf16.msra.mxu0 %v16142_v52  ;;  %v6596_v52 = vld [vmem:[%s15491_s11 + $0x28] sm:$0xff] }
 0xc39   :  { %6506 = vmatprep.subr.bf16.mxu0 %v16143_v35  ;;  %6431 = vmatpush2.bf16.msra.mxu1 %v16144_v14  ;;  %v6611_v35 = vld [vmem:[%s15491_s11 + $0xa0] sm:$0xff] }
 0xc3a   :  { %6432 = vmatprep.subr.bf16.mxu1 %v16145_v6  ;;  %v6595_v14 = vld [vmem:[%s15491_s11 + $0x20] sm:$0xff]  ;;  %v6610_v6 = vld [vmem:[%s15491_s11 + $0x98] sm:$0xff] }
 0xc3c   :  { %6507 = vmatpush2.bf16.msra.mxu0 %v16146_v28  ;;  %v6594_v28 = vld [vmem:[%s15491_s11 + $0x18] sm:$0xff] }
 0xc3d   :  { %6508 = vmatprep.subr.bf16.mxu0 %v16147_v50  ;;  %6433 = vmatpush2.bf16.msra.mxu1 %v16148_v21  ;;  %v6609_v50 = vld [vmem:[%s15491_s11 + $0x90] sm:$0xff] }
 0xc3e   :  { %10303 = vmatprep.subr.mxu1 %v6622_v60  ;;  %v6593_v21 = vld [vmem:[%s15491_s11 + $0x10] sm:$0xff] }
 0xc40   :  { %6509 = vmatpush2.bf16.msra.mxu0 %v16149_v45  ;;  %v6608_v45 = vld [vmem:[%s15491_s11 + $0x88] sm:$0xff] }
 0xc41   :  { %6510 = vmatprep.subr.bf16.mxu0 %v16150_v57  ;;  %v6592_v57 = vld [vmem:[%s15491_s11 + $0x8] sm:$0xff] }
 0xc44   :  { %6511 = vmatpush2.bf16.msra.mxu0 %v16151_v22  ;;  %v6607_v22 = vld [vmem:[%s15491_s11 + $0x80] sm:$0xff] }
 0xc45   :  { %6512 = vmatprep.subr.bf16.mxu0 %v16152_v24  ;;  %v6591_v24 = vld [vmem:[%s15491_s11] sm:$0xff] }
 0xc48   :  { %6513 = vmatpush2.bf16.msra.mxu0 %v16153_v5  ;;  %v14590_v5 = vld [vmem:[%s15492_s12 + $0x38] sm:$0xff] }
 0xc49   :  { %6514 = vmatprep.subr.bf16.mxu0 %v16154_v20  ;;  %v6546_v20 = vmul.f32 %v14413_v59, %v14413_v59 }
 0xc4c   :  { %6515 = vmatpush2.bf16.msra.mxu0 %v16155_v36 }
 0xc4d   :  { %6516 = vmatprep.subr.bf16.mxu0 %v16156_v3  ;;  %v6545_v3 = vmul.f32 %v14411_v27, %v14411_v27 }
 0xc50   :  { %6517 = vmatpush2.bf16.msra.mxu0 %v16157_v55  ;;  %v6537_v55 = vrot.slane %v14413_v59, 4 }
 0xc51   :  { %6518 = vmatprep.subr.bf16.mxu0 %v16158_v34 }
 0xc54   :  { %6519 = vmatpush2.bf16.msra.mxu0 %v16159_v13  ;;  %v6531_v13 = vrot.slane %v14411_v27, 4 }
 0xc55   :  { %10338 = vmatprep.subr.mxu0 %v6622_v60  ;;  %v6553_v60 = vrot.slane %v6546_v20, 4 }
 0xcbf   :  { %v6352_v17 = vpop.f32.mrf.mxu1 }
 0xcc1   :  { %v6354_v63 = vpop.f32.mrf.mxu1 }
 0xcc3   :  { %v6356_v47 = vpop.f32.mrf.mxu1 }
 0xcc4   :  { %v6538_v47 = vadd.f32 %v6537_v55, %v14413_v59 }
 0xcc5   :  { %v6357_v49 = vpop.f32.mrf.mxu1 }
 0xcc7   :  { %v6311_v43 = vpop.f32.mrf.mxu0 }
 0xcc8   :  { %v14490_v1 = vadd.f32 %v6352_v17, %v6311_v43 }
 0xcc9   :  { %v6313_v46 = vpop.f32.mrf.mxu0 }
 0xcca   :  { %v14492_v12 = vadd.f32 %v6354_v63, %v6313_v46  ;;  %v6547_v63 = vrot.slane %v6545_v3, 4  ;;  %v6532_v46 = vadd.f32 %v6531_v13, %v14411_v27 }
 0xccb   :  { %v6315_v48 = vpop.f32.mrf.mxu0 }
 0xccd   :  { %v6316_v61 = vpop.f32.mrf.mxu0 }
 0xcce   :  { %v6554_v61 = vadd.f32 %v6553_v60, %v6546_v20 }
 0xccf   :  { %v6393_v9 = vpop.f32.mrf.mxu0 }
 0xcd0   :  { %v6400_v18 = vpack.c.bf16 %v6393_v9, %v6393_v9 }
 0xcd1   :  { %v6395_v26 = vpop.f32.mrf.mxu0 }
 0xcd2   :  { %v6401_v51 = vpack.c.bf16 %v6395_v26, %v6395_v26 }
 0xcd3   :  { %v6397_v38 = vpop.f32.mrf.mxu0 }
 0xcd4   :  { %6434 = vmatprep.mubr.bf16.mxu1 %v6401_v51  ;;  %v6548_v51 = vadd.f32 %v6547_v63, %v6545_v3  ;;  %v6539_v38 = vrot.slane %v6538_v47, 2  ;;  %v16160_v63 = vmov 0.0  }
 0xcd5   :  { %v6398_v42 = vpop.f32.mrf.mxu0  ;;  %6435 = vmatmul.mubr.bf16.vlgmr.msra.gmra.mxu1 %v6400_v18 }
 0xcd6   :  { %10304 = vmatpush3.msra.mxu1 %v6606_v39 }
 0xcd7   :  { %v6479_v44 = vpop.f32.mrf.mxu0  ;;  %10305 = vmatprep.subr.mxu1 %v6621_v41 }
 0xcd8   :  { %10306 = vmatpush3.msra.mxu1 %v6605_v56  ;;  %v6486_v30 = vpack.c.bf16 %v6479_v44, %v6479_v44  ;;  %v6555_v44 = vrot.slane %v6554_v61, 2 }
 0xcd9   :  { %v6481_v16 = vpop.f32.mrf.mxu0  ;;  %10307 = vmatprep.subr.mxu1 %v6620_v11 }
 0xcda   :  { %v6487_v40 = vpack.c.bf16 %v6481_v16, %v6481_v16  ;;  %10308 = vmatpush3.msra.mxu1 %v6604_v19 }
 0xcdb   :  { %v6483_v10 = vpop.f32.mrf.mxu0  ;;  %10309 = vmatprep.subr.mxu1 %v6619_v37 }
 0xcdc   :  { %6520 = vmatprep.mubr.bf16.mxu0 %v6487_v40  ;;  %10310 = vmatpush3.msra.mxu1 %v6603_v58  ;;  %v6549_v10 = vrot.slane %v6548_v51, 2 }
 0xcdd   :  { %v6484_v8 = vpop.f32.mrf.mxu0  ;;  %6521 = vmatmul.mubr.bf16.vlgmr.msra.gmra.mxu0 %v6486_v30  ;;  %10311 = vmatprep.subr.mxu1 %v6618_v23 }
 0xcde   :  { %10339 = vmatpush3.msra.mxu0 %v6606_v39  ;;  %10312 = vmatpush3.msra.mxu1 %v6602_v33 }
 0xcdf   :  { %10340 = vmatprep.subr.mxu0 %v6621_v41  ;;  %10313 = vmatprep.subr.mxu1 %v6617_v15 }
 0xce0   :  { %10341 = vmatpush3.msra.mxu0 %v6605_v56  ;;  %10314 = vmatpush3.msra.mxu1 %v6601_v7  ;;  %v6533_v56 = vrot.slane %v6532_v46, 2 }
 0xce1   :  { %10342 = vmatprep.subr.mxu0 %v6620_v11  ;;  %10315 = vmatprep.subr.mxu1 %v6616_v29  ;;  %v6540_v11 = vadd.f32 %v6539_v38, %v6538_v47  ;;  %v6776_v47 = vld [vmem:[%s15492_s12 + $0x30] sm:$0xff] }
 0xce2   :  { %10343 = vmatpush3.msra.mxu0 %v6604_v19  ;;  %10316 = vmatpush3.msra.mxu1 %v6600_v25 }
 0xce3   :  { %10344 = vmatprep.subr.mxu0 %v6619_v37  ;;  %10317 = vmatprep.subr.mxu1 %v6615_v4 }
 0xce4   :  { %10345 = vmatpush3.msra.mxu0 %v6603_v58  ;;  %10318 = vmatpush3.msra.mxu1 %v6599_v31 }
 0xce5   :  { %10346 = vmatprep.subr.mxu0 %v6618_v23  ;;  %10319 = vmatprep.subr.mxu1 %v6614_v0 }
 0xce6   :  { %10347 = vmatpush3.msra.mxu0 %v6602_v33  ;;  %10320 = vmatpush3.msra.mxu1 %v6598_v32  ;;  %v6534_v33 = vadd.f32 %v6533_v56, %v6532_v46  ;;  %v6773_v46 = vld [vmem:[%s15492_s12 + $0x18] sm:$0xff] }
 0xce7   :  { %10348 = vmatprep.subr.mxu0 %v6617_v15  ;;  %10321 = vmatprep.subr.mxu1 %v6613_v53  ;;  %v6556_v15 = vadd.f32 %v6555_v44, %v6554_v61  ;;  %v6771_v61 = vld [vmem:[%s15492_s12 + $0x8] sm:$0xff] }
 0xce8   :  { %10349 = vmatpush3.msra.mxu0 %v6601_v7  ;;  %10322 = vmatpush3.msra.mxu1 %v6597_v54 }
 0xce9   :  { %10350 = vmatprep.subr.mxu0 %v6616_v29  ;;  %10323 = vmatprep.subr.mxu1 %v6612_v2 }
 0xcea   :  { %10351 = vmatpush3.msra.mxu0 %v6600_v25  ;;  %10324 = vmatpush3.msra.mxu1 %v6596_v52 }
 0xceb   :  { %10352 = vmatprep.subr.mxu0 %v6615_v4  ;;  %10325 = vmatprep.subr.mxu1 %v6611_v35 }
 0xcec   :  { %10353 = vmatpush3.msra.mxu0 %v6599_v31  ;;  %10326 = vmatpush3.msra.mxu1 %v6595_v14  ;;  %v6550_v31 = vadd.f32 %v6549_v10, %v6548_v51 }
 0xced   :  { %10354 = vmatprep.subr.mxu0 %v6614_v0  ;;  %10327 = vmatprep.subr.mxu1 %v6610_v6  ;;  %v6541_v0 = vrot.slane %v6540_v11, 1 }
 0xcee   :  { %10355 = vmatpush3.msra.mxu0 %v6598_v32  ;;  %10328 = vmatpush3.msra.mxu1 %v6594_v28 }
 0xcef   :  { %10356 = vmatprep.subr.mxu0 %v6613_v53  ;;  %10329 = vmatprep.subr.mxu1 %v6609_v50 }
 0xcf0   :  { %10357 = vmatpush3.msra.mxu0 %v6597_v54  ;;  %10330 = vmatpush3.msra.mxu1 %v6593_v21 }
 0xcf1   :  { %10358 = vmatprep.subr.mxu0 %v6612_v2  ;;  %10331 = vmatprep.subr.mxu1 %v6608_v45 }
 0xcf2   :  { %10359 = vmatpush3.msra.mxu0 %v6596_v52  ;;  %10332 = vmatpush3.msra.mxu1 %v6592_v57  ;;  %v6535_v52 = vrot.slane %v6534_v33, 1 }
 0xcf3   :  { %10360 = vmatprep.subr.mxu0 %v6611_v35  ;;  %10333 = vmatprep.subr.mxu1 %v6607_v22 }
 0xcf4   :  { %10361 = vmatpush3.msra.mxu0 %v6595_v14  ;;  %10334 = vmatpush3.msra.mxu1 %v6591_v24 }
 0xcf5   :  { %10362 = vmatprep.subr.mxu0 %v6610_v6  ;;  %6805 = vmatprep.subr.mxu1 %v14590_v5  ;;  %v6557_v6 = vrot.slane %v6556_v15, 1 }
 0xcf6   :  { %10363 = vmatpush3.msra.mxu0 %v6594_v28 }
 0xcf7   :  { %10364 = vmatprep.subr.mxu0 %v6609_v50  ;;  %v6551_v50 = vrot.slane %v6550_v31, 1  ;;  %v6558_v3 = vadd.f32 %v6557_v6, %v6556_v15 }
 0xcf8   :  { %10365 = vmatpush3.msra.mxu0 %v6593_v21 }
 0xcf9   :  { %10366 = vmatprep.subr.mxu0 %v6608_v45  ;;  %v6542_v45 = vadd.f32 %v6541_v0, %v6540_v11  ;;  %v6552_v13 = vadd.f32 %v6551_v50, %v6550_v31 }
 0xcfa   :  { %10367 = vmatpush3.msra.mxu0 %v6592_v57 }
 0xcfb   :  { %10368 = vmatprep.subr.mxu0 %v6607_v22 }
 0xcfc   :  { %10369 = vmatpush3.msra.mxu0 %v6591_v24  ;;  %v6536_v24 = vadd.f32 %v6535_v52, %v6534_v33  ;;  %v6926_v33 = vld [vmem:[%s15493_s13] sm:$0x3] }
 0xd95   :  { %v6436_v36 = vpop.f32.mrf.mxu1 }
 0xd96   :  { %v6443_v43 = vadd.f32 %v6436_v36, %v14490_v1 }
 0xd97   :  { %v6438_v34 = vpop.f32.mrf.mxu1 }
 0xd98   :  { %v6444_v9 = vadd.f32 %v6438_v34, %v14492_v12 }
 0xd99   :  { %v6440_v17 = vpop.f32.mrf.mxu1 }
 0xd9b   :  { %v6441_v49 = vpop.f32.mrf.mxu1 }
 0xd9c   :  { %v6775_v49 = vld [vmem:[%s15492_s12 + $0x28] sm:$0xff] }
 0xd9d   :  { %v6522_v48 = vpop.f32.mrf.mxu0 }
 0xd9e   :  { %v14603_v26 = vadd.f32 %v6522_v48, %v6443_v43  ;;  %v6774_v43 = vld [vmem:[%s15492_s12 + $0x20] sm:$0xff]  ;;  %v6772_v48 = vld [vmem:[%s15492_s12 + $0x10] sm:$0xff] }
 0xd9f   :  { %v6524_v18 = vpop.f32.mrf.mxu0 }
 0xda0   :  { %v6561_v39 = vrot.slane %v14603_v26, 4  ;;  %v6575_v41 = vmul.f32 %v14603_v26, %v14603_v26  ;;  %v14608_v42 = vadd.f32 %v6524_v18, %v6444_v9  ;;  %v6770_v9 = vld [vmem:[%s15492_s12] sm:$0xff] }
 0xda1   :  { %v6526_v1 = vpop.f32.mrf.mxu0 }
 0xda2   :  { %v6562_v16 = vadd.f32 %v6561_v39, %v14603_v26  ;;  %v6577_v40 = vrot.slane %v6575_v41, 4  ;;  %v6567_v12 = vrot.slane %v14608_v42, 4  ;;  %v6576_v30 = vmul.f32 %v14608_v42, %v14608_v42 }
 0xda3   :  { %v6527_v8 = vpop.f32.mrf.mxu0 }
 0xda4   :  { %v6563_v19 = vrot.slane %v6562_v16, 2  ;;  %v6578_v37 = vadd.f32 %v6577_v40, %v6575_v41  ;;  %v6568_v58 = vadd.f32 %v6567_v12, %v14608_v42  ;;  %v6583_v23 = vrot.slane %v6576_v30, 4 }
 0xda6   :  { %v6564_v7 = vadd.f32 %v6563_v19, %v6562_v16  ;;  %v6579_v29 = vrot.slane %v6578_v37, 2  ;;  %v6569_v25 = vrot.slane %v6568_v58, 2  ;;  %v6584_v4 = vadd.f32 %v6583_v23, %v6576_v30 }
 0xda8   :  { %v6565_v32 = vrot.slane %v6564_v7, 1  ;;  %v6580_v53 = vadd.f32 %v6579_v29, %v6578_v37  ;;  %v6570_v54 = vadd.f32 %v6569_v25, %v6568_v58  ;;  %v6585_v2 = vrot.slane %v6584_v4, 2  ;;  %v16161_v58 = vld [vmem:[#allocation12_spill] sm:$0xff]  ;;  %v16162_v29 = vld [vmem:[#allocation13_spill] sm:$0xff] }
 0xdaa   :  { %v6581_v35 = vrot.slane %v6580_v53, 1  ;;  %v6571_v14 = vrot.slane %v6570_v54, 1  ;;  %v6586_v28 = vadd.f32 %v6585_v2, %v6584_v4  ;;  %v6566_v21 = vadd.f32 %v6565_v32, %v6564_v7  ;;  %v16163_v4 = vld [vmem:[#allocation14_spill] sm:$0xff]  ;;  %v6946_v2 = vld [vmem:[%s15494_s14] sm:$0x3] }
 0xdac   :  { %v6572_v57 = vadd.f32 %v6571_v14, %v6570_v54  ;;  %v6587_v22 = vrot.slane %v6586_v28, 1  ;;  %v6582_v20 = vadd.f32 %v6581_v35, %v6580_v53  ;;  %v6573_v34 = vadd.f32 %v6566_v21, %v6536_v24 }
 0xdae   :  { %v6574_v36 = vadd.f32 %v6572_v57, %v6542_v45  ;;  %v6588_v55 = vadd.f32 %v6587_v22, %v6586_v28  ;;  %v6589_v17 = vadd.f32 %v6582_v20, %v6552_v13  ;;  %v14669_v13 = vld [vmem:[#allocation8 + $0x74] ss:$8 sps:$4 sm:$0xff]  }
 0xdb0   :  { %6687 = vmatprep.mubr.f32.mxu1 %v6574_v36  ;;  %v6590_v60 = vadd.f32 %v6588_v55, %v6558_v3 }
 0xdb1   :  { %6688 = vmatmul.mubr.f32.vlgmr.msra.gmra.mxu1 %v6573_v34  ;;  %v14667_v34 = vld [vmem:[#allocation8 + $0x174] ss:$8 sps:$4 sm:$0xff]  }
 0xdb2   :  { %6757 = vmatprep.mubr.f32.mxu0 %v6590_v60  ;;  %6845 = vmatprep.mubr.f32.mxu1 %v16160_v63  ;;  %v14681_v60 = vld [vmem:[%s15495_s15] sm:$0x3] }
 0xdb3   :  { %6758 = vmatmul.mubr.f32.vlgmr.msra.gmra.mxu0 %v6589_v17  ;;  %6806 = vmatpush1.msra.mxu1 %v6776_v47  ;;  %v14688_v17 = vld [vmem:[%s15495_s15 + $0x2] sm:$0x3] }
 0xdb4   :  { %7079 = vmatprep.mubr.bf16.mxu0 %v15840_v62  ;;  %6807 = vmatprep.subr.mxu1 %v6775_v49 }
 0xdb5   :  { %6808 = vmatpush1.msra.mxu1 %v6774_v43 }
 0xdb6   :  { %6809 = vmatprep.subr.mxu1 %v6773_v46 }
 0xdb7   :  { %6810 = vmatpush1.msra.mxu1 %v6772_v48 }
 0xdb8   :  { %6811 = vmatprep.subr.mxu1 %v6771_v61 }
 0xdb9   :  { %6812 = vmatpush1.msra.mxu1 %v6770_v9 }
 0xdba   :  { %6879 = vmatprep.subr.mxu1 %v14590_v5 }
 0xe71   :  { %v10335_v51 = vpop.f32.mrf.mxu1 }
 0xe73   :  { %v10336_v18 = vpop.f32.mrf.mxu1  ;;  %v10370_v38 = vpop.f32.mrf.mxu0 }
 0xe74   :  { %v10337_v39 = vadd.f32 %v10336_v18, %v10335_v51  ;;  %v14714_v51 = vld [vmem:[#allocation8 + $0x54] ss:$8 sps:$4 sm:$0xff]   ;;  %v14717_v18 = vld [vmem:[#allocation8 + $0x150] ss:$8 sps:$4 sm:$0xff]  }
 0xe75   :  { %v10371_v41 = vpop.f32.mrf.mxu0 }
 0xe76   :  { %v6763_v56 = vmul.f32 0.0078125, %v10337_v39  ;;  %v10372_v1 = vadd.f32 %v10371_v41, %v10370_v38  ;;  %v14720_v38 = vld [vmem:[#allocation8 + $0x50] ss:$8 sps:$4 sm:$0xff]   ;;  %v14723_v39 = vld [vmem:[#allocation8 + $0x144] ss:$8 sps:$4 sm:$0xff]  }
 0xe77   :  { %v14726_v41 = vld [vmem:[#allocation8 + $0x44] ss:$8 sps:$4 sm:$0xff]  }
 0xe78   :  { %v6765_v44 = vmul.f32 %v6763_v56, %v6763_v56  ;;  %v6764_v16 = vmul.f32 0.0078125, %v10372_v1  ;;  %10042 = vmatmul.mubr.msk.f32.vlgmr.msra.gmra.mxu1 %vm2948_vm9, %v6763_v56  ;;  %v14729_v56 = vld [vmem:[#allocation8 + $0x140] ss:$8 sps:$4 sm:$0xff]  }
 0xe79   :  { %6880 = vmatpush1.msra.mxu1 %v6776_v47  ;;  %6919 = vmatprep.mubr.f32.mxu1 %v16160_v63  ;;  %v14690_v47 = vld [vmem:[#allocation8 + $0x170] ss:$8 sps:$4 sm:$0xff]   ;;  %v14732_v1 = vld [vmem:[#allocation8 + $0x40] ss:$8 sps:$4 sm:$0xff]   ;;  %v14855_v63 = vld [vmem:[#allocation8 + $0x194] ss:$8 sps:$4 sm:$0xff]  }
 0xe7a   :  { %v6766_v40 = vsub.f32 %v6764_v16, %v6765_v44  ;;  %6881 = vmatprep.subr.mxu1 %v6775_v49  ;;  %v14692_v49 = vld [vmem:[#allocation8 + $0x70] ss:$8 sps:$4 sm:$0xff]   ;;  %v14735_v44 = vld [vmem:[#allocation8 + $0x134] ss:$8 sps:$4 sm:$0xff]   ;;  %16177 = vst [vmem:[#allocation40_spill] sm:$0xff] %v14855_v63 }
 0xe7b   :  { %6882 = vmatpush1.msra.mxu1 %v6774_v43  ;;  %v14695_v43 = vld [vmem:[#allocation8 + $0x164] ss:$8 sps:$4 sm:$0xff]   ;;  %v14738_v16 = vld [vmem:[#allocation8 + $0x34] ss:$8 sps:$4 sm:$0xff]  }
 0xe7c   :  { %v6767_v12 = vmax.f32 %v6766_v40, 0.0  ;;  %6883 = vmatprep.subr.mxu1 %v6773_v46  ;;  %v14698_v46 = vld [vmem:[#allocation8 + $0x64] ss:$8 sps:$4 sm:$0xff]   ;;  %v14741_v40 = vld [vmem:[#allocation8 + $0x130] ss:$8 sps:$4 sm:$0xff]  }
 0xe7d   :  { %6884 = vmatpush1.msra.mxu1 %v6772_v48  ;;  %v14705_v48 = vld [vmem:[#allocation8 + $0x160] ss:$8 sps:$4 sm:$0xff]  }
 0xe7e   :  { %v6768_v5 = vadd.f32 1e-05, %v6767_v12  ;;  %6885 = vmatprep.subr.mxu1 %v6771_v61  ;;  %v14708_v61 = vld [vmem:[#allocation8 + $0x60] ss:$8 sps:$4 sm:$0xff]   ;;  %v14744_v12 = vld [vmem:[#allocation8 + $0x30] ss:$8 sps:$4 sm:$0xff]  }
 0xe7f   :  { %6886 = vmatpush1.msra.mxu1 %v6770_v9  ;;  %v14711_v9 = vld [vmem:[#allocation8 + $0x154] ss:$8 sps:$4 sm:$0xff]  }
 0xe80   :  { %11456 = vrsqrt.f32 %v6768_v5  ;;  %v14747_v5 = vld [vmem:[#allocation8 + $0x124] ss:$8 sps:$4 sm:$0xff]  }
 0xe8d   :  { %v11457_v30 = vpop.eup %11456 }
 0xe8e   :  { %10043 = vmatmul.mubr.msk.f32.vlgmr.msra.gmra.mxu1 %vm2948_vm9, %v11457_v30  ;;  %v14750_v30 = vld [vmem:[#allocation8 + $0x24] ss:$8 sps:$4 sm:$0xff]  }
 0xe8f   :  { %7159 = vmatprep.mubr.bf16.mxu1 %v15840_v62 }
 0xf38   :  { %v6847_v10 = vpop.f32.mrf.mxu1 }
 0xf3a   :  { %v6849_v8 = vpop.f32.mrf.mxu1 }
 0xf4e   :  { %v6921_v11 = vpop.f32.mrf.mxu1 }
 0xf50   :  { %v6923_v19 = vpop.f32.mrf.mxu1 }
 0xf51   :  { %v6929_v37 = vcombine.low %v6921_v11, %v6923_v19  ;;  %v14759_v11 = vld [vmem:[#allocation8 + $0x114] ss:$8 sps:$4 sm:$0xff]  }
 0xf52   :  { %v14762_v19 = vld [vmem:[#allocation8 + $0x14] ss:$8 sps:$4 sm:$0xff]  }
 0xf53   :  { %v6936_v23 = vrot.slane %v6929_v37, %v16161_v58  ;;  %v14765_v37 = vld [vmem:[#allocation8 + $0x110] ss:$8 sps:$4 sm:$0xff]  }
 0xf55   :  { %v6943_v15 = vrot.slane %v6936_v23, %v16161_v58  ;;  %v14768_v23 = vld [vmem:[#allocation8 + $0x10] ss:$8 sps:$4 sm:$0xff]  }
 0xf57   :  { %v6945_v7 = vmul.f32 %v6943_v15, %v6926_v33  ;;  %v14771_v33 = vld [vmem:[#allocation8 + $0x104] ss:$8 sps:$4 sm:$0xff]  }
 0xf58   :  { %v14774_v15 = vld [vmem:[#allocation8 + $0x4] ss:$8 sps:$4 sm:$0xff]  }
 0xf59   :  { %v6951_v25 = vrot.slane %v6945_v7, %v16162_v29  ;;  %v6955_v31 = vrot.slane %v6945_v7, %v16163_v4  ;;  %v14777_v7 = vld [vmem:[#allocation8 + $0x100] ss:$8 sps:$4 sm:$0xff]  }
 0xf5b   :  { %v6958_v0 = vmul.f32 %v6951_v25, %v6847_v10  ;;  %v6959_v32 = vmul.f32 %v6955_v31, %v6849_v8  ;;  %v6980_v14 = vmul.f32 %v6955_v31, %v14413_v59  ;;  %v7010_v6 = vmul.f32 %v6955_v31, %v14608_v42  ;;  %v14753_v10 = vld [vmem:[#allocation8 + $0x120] ss:$8 sps:$4 sm:$0xff]   ;;  %v14783_v31 = vld [vmem:[#allocation8 + $0x1f4] ss:$8 sps:$4 sm:$0xff]  }
 0xf5c   :  { %v6979_v50 = vmul.f32 %v6951_v25, %v14411_v27  ;;  %v7009_v45 = vmul.f32 %v6951_v25, %v14603_v26  ;;  %v14756_v8 = vld [vmem:[#allocation8 + $0x20] ss:$8 sps:$4 sm:$0xff]  }
 0xf5d   :  { %v6962_v53 = vcombine.low %v6958_v0, %v6959_v32  ;;  %v14780_v25 = vld [vmem:[#allocation8] ss:$8 sps:$4 sm:$0xff]   ;;  %v14786_v0 = vld [vmem:[#allocation8 + $0xf4] ss:$8 sps:$4 sm:$0xff]   ;;  %v14789_v32 = vld [vmem:[#allocation8 + $0x1f0] ss:$8 sps:$4 sm:$0xff]  }
 0xf5f   :  { %v6969_v54 = vrot.slane %v6962_v53, %v16161_v58  ;;  %v14792_v53 = vld [vmem:[#allocation8 + $0xf0] ss:$8 sps:$4 sm:$0xff]  }
 0xf61   :  { %v6976_v52 = vrot.slane %v6969_v54, %v16161_v58  ;;  %v14795_v54 = vld [vmem:[#allocation8 + $0x1e4] ss:$8 sps:$4 sm:$0xff]   ;;  %v14852_v58 = vld [vmem:[#allocation8 + $0xa0] ss:$8 sps:$4 sm:$0xff]  }
 0xf62   :  { %16176 = vst [vmem:[#allocation23_spill] sm:$0xff] %v14852_v58 }
 0xf63   :  { %v6978_v35 = vsub.f32 %v6946_v2, %v6976_v52  ;;  %v14798_v2 = vld [vmem:[#allocation8 + $0xe4] ss:$8 sps:$4 sm:$0xff]   ;;  %v14801_v52 = vld [vmem:[#allocation8 + $0x1e0] ss:$8 sps:$4 sm:$0xff]  }
 0xf65   :  { %v6989_v28 = vrot.slane %v6978_v35, %v16163_v4  ;;  %v6985_v21 = vrot.slane %v6978_v35, %v16162_v29  ;;  %v14804_v35 = vld [vmem:[#allocation8 + $0xe0] ss:$8 sps:$4 sm:$0xff]   ;;  %v14846_v4 = vld [vmem:[#allocation8 + $0xa4] ss:$8 sps:$4 sm:$0xff]  }
 0xf66   :  { %16164 = vst [vmem:[#allocation15_spill] sm:$0xff] %v14804_v35  ;;  %16174 = vst [vmem:[#allocation21_spill] sm:$0xff] %v14846_v4  ;;  %v14849_v29 = vld [vmem:[#allocation8 + $0x1a0] ss:$8 sps:$4 sm:$0xff]  }
 0xf67   :  { %v6993_v57 = vadd.f32 %v6989_v28, %v6980_v14  ;;  %v6992_v22 = vadd.f32 %v6985_v21, %v6979_v50  ;;  %v14661_v24 = vadd.f32 %v7010_v6, %v6989_v28  ;;  %v14663_v20 = vadd.f32 %v7009_v45, %v6985_v21  ;;  %v14807_v14 = vld [vmem:[#allocation8 + $0x1d4] ss:$8 sps:$4 sm:$0xff]   ;;  %v14813_v28 = vld [vmem:[#allocation8 + $0x1d0] ss:$8 sps:$4 sm:$0xff]   ;;  %v14819_v21 = vld [vmem:[#allocation8 + $0x1c4] ss:$8 sps:$4 sm:$0xff]  }
 0xf68   :  { %v14810_v6 = vld [vmem:[#allocation8 + $0xd4] ss:$8 sps:$4 sm:$0xff]   ;;  %v14816_v50 = vld [vmem:[#allocation8 + $0xd0] ss:$8 sps:$4 sm:$0xff]   ;;  %v14822_v45 = vld [vmem:[#allocation8 + $0xc4] ss:$8 sps:$4 sm:$0xff]  }
 0xf69   :  { %vm6995_vm9 = vcmp.gt.f32.partialorder %v6993_v57, 0.0  ;;  %v6997_v36 = vmul.f32 0.2, %v6993_v57  ;;  %vm6994_vm13 = vcmp.gt.f32.partialorder %v6992_v22, 0.0  ;;  %v6996_v59 = vmul.f32 0.2, %v6992_v22 }
 0xf6a   :  { %16165 = vst [vmem:[#allocation20_spill] sm:$0xff] %v14810_v6  ;;  %16166 = vst [vmem:[#allocation16_spill] sm:$0xff] %v14816_v50  ;;  %vm7014_vm1 = vcmp.gt.f32.partialorder %v14661_v24, 0.0  ;;  %vm7013_vm2 = vcmp.gt.f32.partialorder %v14663_v20, 0.0 }
 0xf6b   :  { %v6999_v3 = vsel %vm6995_vm9, %v6993_v57, %v6997_v36  ;;  %v6998_v42 = vsel %vm6994_vm13, %v6992_v22, %v6996_v59  ;;  %16167 = vst [vmem:[#allocation22_spill] sm:$0xff] %v14822_v45  ;;  %v14825_v57 = vld [vmem:[#allocation8 + $0x1c0] ss:$8 sps:$4 sm:$0xff]   ;;  %v14831_v36 = vld [vmem:[#allocation8 + $0x1b4] ss:$8 sps:$4 sm:$0xff]   ;;  %16175 = vst [vmem:[#allocation27_spill] sm:$0xff] %v14849_v29 }
 0xf6c   :  { %v14665_v55 = vpack.c.bf16 %v6999_v3, %v6999_v3  ;;  %v10229_v27 = vpack.c.bf16 %v6998_v42, %v6998_v42  ;;  %v14828_v22 = vld [vmem:[#allocation8 + $0xc0] ss:$8 sps:$4 sm:$0xff]   ;;  %16169 = vst [vmem:[#allocation32_spill] sm:$0xff] %v14831_v36  ;;  %v14834_v59 = vld [vmem:[#allocation8 + $0xb4] ss:$8 sps:$4 sm:$0xff]  }
 0xf6d   :  { %16168 = vst [vmem:[#allocation17_spill] sm:$0xff] %v14828_v22  ;;  %16170 = vst [vmem:[#allocation18_spill] sm:$0xff] %v14834_v59  ;;  %v14837_v3 = vld [vmem:[#allocation8 + $0x1b0] ss:$8 sps:$4 sm:$0xff]  }
 0xf6e   :  { %10048 = vmatprep.subr.msk.bf16.mxu0 %vm7040_vm14, %v14665_v55  ;;  %10051 = vmatprep.subr.msk.bf16.mxu1 %vm7040_vm14, %v14665_v55  ;;  %v14676_v26 = vsel %vm7040_vm14, %v10229_v27, 0  ;;  %16171 = vst [vmem:[#allocation25_spill] sm:$0xff] %v14837_v3  ;;  %v14840_v42 = vld [vmem:[#allocation8 + $0xb0] ss:$8 sps:$4 sm:$0xff]   ;;  %v14843_v27 = vld [vmem:[#allocation8 + $0x1a4] ss:$8 sps:$4 sm:$0xff]  }
 0xf6f   :  { %7062 = vmatpush1.bf16.msra.mxu0 %v14676_v26  ;;  %7142 = vmatpush1.bf16.msra.mxu1 %v14676_v26  ;;  %16172 = vst [vmem:[#allocation19_spill] sm:$0xff] %v14840_v42  ;;  %16173 = vst [vmem:[#allocation36_spill] sm:$0xff] %v14843_v27 }
 0xf70   :  { %7363 = vmatprep.subr.bf16.mxu0 %v14667_v34  ;;  %7564 = vmatprep.subr.bf16.mxu1 %v14669_v13 }
 0xf72   :  { %10049 = vmatmul.mubr.msk.bf16.vlgmr.msra.gmra.mxu0 %vm7036_vm15, %v14681_v60  ;;  %10052 = vmatmul.mubr.msk.bf16.vlgmr.msra.gmra.mxu1 %vm7036_vm15, %v14688_v17 }
 0xf73   :  { %7364 = vmatpush1.bf16.msra.mxu0 %v14690_v47  ;;  %7565 = vmatpush1.bf16.msra.mxu1 %v14692_v49 }
 0xf74   :  { %7365 = vmatprep.subr.bf16.mxu0 %v14695_v43  ;;  %7566 = vmatprep.subr.bf16.mxu1 %v14698_v46 }
 0xf77   :  { %7366 = vmatpush1.bf16.msra.mxu0 %v14705_v48  ;;  %7567 = vmatpush1.bf16.msra.mxu1 %v14708_v61 }
 0xf78   :  { %7367 = vmatprep.subr.bf16.mxu0 %v14711_v9  ;;  %7568 = vmatprep.subr.bf16.mxu1 %v14714_v51 }
 0xf7b   :  { %7368 = vmatpush1.bf16.msra.mxu0 %v14717_v18  ;;  %7569 = vmatpush1.bf16.msra.mxu1 %v14720_v38 }
 0xf7c   :  { %7369 = vmatprep.subr.bf16.mxu0 %v14723_v39  ;;  %7570 = vmatprep.subr.bf16.mxu1 %v14726_v41 }
 0xf7f   :  { %7370 = vmatpush1.bf16.msra.mxu0 %v14729_v56  ;;  %7571 = vmatpush1.bf16.msra.mxu1 %v14732_v1 }
 0xf80   :  { %7371 = vmatprep.subr.bf16.mxu0 %v14735_v44  ;;  %7572 = vmatprep.subr.bf16.mxu1 %v14738_v16 }
 0xf83   :  { %7372 = vmatpush1.bf16.msra.mxu0 %v14741_v40  ;;  %7573 = vmatpush1.bf16.msra.mxu1 %v14744_v12 }
 0xf84   :  { %7373 = vmatprep.subr.bf16.mxu0 %v14747_v5  ;;  %7574 = vmatprep.subr.bf16.mxu1 %v14750_v30 }
 0xf87   :  { %7374 = vmatpush1.bf16.msra.mxu0 %v14753_v10  ;;  %7575 = vmatpush1.bf16.msra.mxu1 %v14756_v8 }
 0xf88   :  { %7375 = vmatprep.subr.bf16.mxu0 %v14759_v11  ;;  %7576 = vmatprep.subr.bf16.mxu1 %v14762_v19 }
 0xf8b   :  { %7376 = vmatpush1.bf16.msra.mxu0 %v14765_v37  ;;  %7577 = vmatpush1.bf16.msra.mxu1 %v14768_v23 }
 0xf8c   :  { %7377 = vmatprep.subr.bf16.mxu0 %v14771_v33  ;;  %7578 = vmatprep.subr.bf16.mxu1 %v14774_v15 }
 0xf8f   :  { %7378 = vmatpush1.bf16.msra.mxu0 %v14777_v7  ;;  %7579 = vmatpush1.bf16.msra.mxu1 %v14780_v25 }
 0xf90   :  { %7379 = vmatprep.subr.bf16.mxu0 %v14783_v31  ;;  %7580 = vmatprep.subr.bf16.mxu1 %v14786_v0 }
 0xf93   :  { %7380 = vmatpush2.bf16.msra.mxu0 %v14789_v32  ;;  %7581 = vmatpush2.bf16.msra.mxu1 %v14792_v53 }
 0xf94   :  { %7381 = vmatprep.subr.bf16.mxu0 %v14795_v54  ;;  %7582 = vmatprep.subr.bf16.mxu1 %v14798_v2 }
 0xf97   :  { %7382 = vmatpush2.bf16.msra.mxu0 %v14801_v52  ;;  %7583 = vmatpush2.bf16.msra.mxu1 %v14804_v35  ;;  %v14889_v35 = vld [vmem:[#allocation8 + $0x264] ss:$8 sps:$4 sm:$0xff]  }
 0xf98   :  { %7383 = vmatprep.subr.bf16.mxu0 %v14807_v14  ;;  %7584 = vmatprep.subr.bf16.mxu1 %v14810_v6  ;;  %16187 = vst [vmem:[#allocation33_spill] sm:$0xff] %v14889_v35 }
 0xf9b   :  { %7384 = vmatpush2.bf16.msra.mxu0 %v14813_v28  ;;  %7585 = vmatpush2.bf16.msra.mxu1 %v14816_v50 }
 0xf9c   :  { %7385 = vmatprep.subr.bf16.mxu0 %v14819_v21  ;;  %7586 = vmatprep.subr.bf16.mxu1 %v14822_v45  ;;  %v14864_v45 = vld [vmem:[#allocation8 + $0x90] ss:$8 sps:$4 sm:$0xff]  }
 0xf9d   :  { %16180 = vst [vmem:[#allocation31_spill] sm:$0xff] %v14864_v45 }
 0xf9f   :  { %7386 = vmatpush2.bf16.msra.mxu0 %v14825_v57  ;;  %7587 = vmatpush2.bf16.msra.mxu1 %v14828_v22  ;;  %v14858_v22 = vld [vmem:[#allocation8 + $0x94] ss:$8 sps:$4 sm:$0xff]  }
 0xfa0   :  { %7387 = vmatprep.subr.bf16.mxu0 %v14831_v36  ;;  %7588 = vmatprep.subr.bf16.mxu1 %v14834_v59  ;;  %16178 = vst [vmem:[#allocation24_spill] sm:$0xff] %v14858_v22  ;;  %v14861_v59 = vld [vmem:[#allocation8 + $0x190] ss:$8 sps:$4 sm:$0xff]  }
 0xfa1   :  { %16179 = vst [vmem:[#allocation28_spill] sm:$0xff] %v14861_v59 }
 0xfa3   :  { %7388 = vmatpush2.bf16.msra.mxu0 %v14837_v3  ;;  %7589 = vmatpush2.bf16.msra.mxu1 %v14840_v42  ;;  %v14867_v42 = vld [vmem:[#allocation8 + $0x184] ss:$8 sps:$4 sm:$0xff]   ;;  %v14887_v3 = vld [vmem:[#allocation8 + $0x270] ss:$8 sps:$4 sm:$0xff]  }
 0xfa4   :  { %7389 = vmatprep.subr.bf16.mxu0 %v14843_v27  ;;  %7590 = vmatprep.subr.bf16.mxu1 %v14846_v4  ;;  %16181 = vst [vmem:[#allocation26_spill] sm:$0xff] %v14867_v42  ;;  %v14871_v27 = vld [vmem:[#allocation8 + $0x180] ss:$8 sps:$4 sm:$0xff]   ;;  %v14880_v4 = vld [vmem:[#allocation8 + $0x84] ss:$8 sps:$4 sm:$0xff]   ;;  %16186 = vst [vmem:[#allocation30_spill] sm:$0xff] %v14887_v3 }
 0xfa5   :  { %16182 = vst [vmem:[#allocation35_spill] sm:$0xff] %v14871_v27  ;;  %16184 = vst [vmem:[#allocation39_spill] sm:$0xff] %v14880_v4 }
 0xfa7   :  { %7390 = vmatpush2.bf16.msra.mxu0 %v14849_v29  ;;  %7591 = vmatpush2.bf16.msra.mxu1 %v14852_v58  ;;  %v14878_v58 = vld [vmem:[#allocation8 + $0x80] ss:$8 sps:$4 sm:$0xff]  }
 0xfa8   :  { %7391 = vmatprep.subr.bf16.mxu0 %v14855_v63  ;;  %7592 = vmatprep.subr.bf16.mxu1 %v14858_v22  ;;  %16183 = vst [vmem:[#allocation29_spill] sm:$0xff] %v14878_v58  ;;  %v14884_v22 = vld [vmem:[#allocation8 + $0x274] ss:$8 sps:$4 sm:$0xff]  }
 0xfa9   :  { %16185 = vst [vmem:[#allocation44_spill] sm:$0xff] %v14884_v22 }
 0xfab   :  { %7392 = vmatpush2.bf16.msra.mxu0 %v14861_v59  ;;  %7593 = vmatpush2.bf16.msra.mxu1 %v14864_v45 }
 0xfac   :  { %7393 = vmatprep.subr.bf16.mxu0 %v14867_v42  ;;  %7594 = vmatprep.subr.bf16.mxu1 %v14880_v4 }
 0xfaf   :  { %7394 = vmatpush2.bf16.msra.mxu0 %v14871_v27  ;;  %7595 = vmatpush2.bf16.msra.mxu1 %v14878_v58 }
 0xfb0   :  { %10118 = vmatprep.subr.msk.bf16.mxu0 %vm7040_vm14, %v14665_v55  ;;  %7846 = vmatprep.subr.bf16.mxu1 %v14884_v22 }
0x1032   :  { %v7081_v45 = vpop.f32.mrf.mxu0  ;;  %v7161_v59 = vpop.f32.mrf.mxu1 }
0x1033   :  { %v7088_v42 = vpack.c.bf16 %v7081_v45, %v7081_v45  ;;  %v7168_v6 = vpack.c.bf16 %v7161_v59, %v7161_v59  ;;  %v14893_v45 = vld [vmem:[#allocation8 + $0x260] ss:$8 sps:$4 sm:$0xff]   ;;  %v14936_v59 = vld [vmem:[#allocation8 + $0x224] ss:$8 sps:$4 sm:$0xff]  }
0x1034   :  { %v7083_v63 = vpop.f32.mrf.mxu0  ;;  %v7163_v27 = vpop.f32.mrf.mxu1  ;;  %16188 = vst [vmem:[#allocation43_spill] sm:$0xff] %v14893_v45  ;;  %16199 = vst [vmem:[#allocation52_spill] sm:$0xff] %v14936_v59 }
0x1035   :  { %v7089_v29 = vpack.c.bf16 %v7083_v63, %v7083_v63  ;;  %v7169_v50 = vpack.c.bf16 %v7163_v27, %v7163_v27  ;;  %v14898_v63 = vld [vmem:[#allocation8 + $0x254] ss:$8 sps:$4 sm:$0xff]   ;;  %v14943_v27 = vld [vmem:[#allocation8 + $0x220] ss:$8 sps:$4 sm:$0xff]  }
0x1036   :  { %v7165_v36 = vpop.f32.mrf.mxu1  ;;  %v7085_v4 = vpop.f32.mrf.mxu0  ;;  %16189 = vst [vmem:[#allocation47_spill] sm:$0xff] %v14898_v63  ;;  %16201 = vst [vmem:[#allocation42_spill] sm:$0xff] %v14943_v27 }
0x1037   :  { %7395 = vmatprep.mubr.bf16.mxu0 %v7169_v50  ;;  %7596 = vmatprep.mubr.bf16.mxu1 %v7089_v29  ;;  %v14907_v29 = vld [vmem:[%s15495_s15 + $0x4] sm:$0x3]  ;;  %v14910_v4 = vld [vmem:[#allocation8 + $0x244] ss:$8 sps:$4 sm:$0xff]   ;;  %v14931_v36 = vld [vmem:[%s15495_s15 + $0x6] sm:$0x3] }
0x1038   :  { %v7166_v58 = vpop.f32.mrf.mxu1  ;;  %7396 = vmatmul.mubr.bf16.vlgmr.msra.gmra.mxu0 %v7168_v6  ;;  %7597 = vmatmul.mubr.bf16.vlgmr.msra.gmra.mxu1 %v7088_v42  ;;  %v7086_v22 = vpop.f32.mrf.mxu0  ;;  %16191 = vst [vmem:[#allocation48_spill] sm:$0xff] %v14907_v29  ;;  %16192 = vst [vmem:[#allocation38_spill] sm:$0xff] %v14910_v4  ;;  %v14918_v6 = vld [vmem:[#allocation8 + $0x240] ss:$8 sps:$4 sm:$0xff]   ;;  %v14921_v50 = vld [vmem:[#allocation8 + $0x234] ss:$8 sps:$4 sm:$0xff]  }
0x1039   :  { %7625 = vmatpush1.bf16.msra.mxu0 %v14676_v26  ;;  %7847 = vmatpush1.bf16.msra.mxu1 %v14887_v3  ;;  %v14902_v58 = vld [vmem:[#allocation8 + $0x250] ss:$8 sps:$4 sm:$0xff]   ;;  %16194 = vst [vmem:[#allocation37_spill] sm:$0xff] %v14918_v6  ;;  %16195 = vst [vmem:[#allocation49_spill] sm:$0xff] %v14921_v50  ;;  %v14938_v42 = vld [vmem:[#allocation8 + $0x364] ss:$8 sps:$4 sm:$0xff]  }
0x103a   :  { %10153 = vmatprep.subr.msk.bf16.mxu0 %vm7040_vm14, %v14665_v55  ;;  %7848 = vmatprep.subr.bf16.mxu1 %v14889_v35  ;;  %16190 = vst [vmem:[#allocation34_spill] sm:$0xff] %v14902_v58  ;;  %v14912_v55 = vld [vmem:[#allocation8 + $0x374] ss:$8 sps:$4 sm:$0xff]   ;;  %v14926_v22 = vld [vmem:[#allocation8 + $0x230] ss:$8 sps:$4 sm:$0xff]   ;;  %16197 = vst [vmem:[#allocation45_spill] sm:$0xff] %v14931_v36 }
0x103b   :  { %7642 = vmatprep.mubr.bf16.mxu0 %v15840_v62  ;;  %16193 = vst [vmem:[#allocation41_spill] sm:$0xff] %v14912_v55  ;;  %16196 = vst [vmem:[#allocation50_spill] sm:$0xff] %v14926_v22 }
0x103c   :  { %16200 = vst [vmem:[#allocation51_spill] sm:$0xff] %v14938_v42 }
0x103d   :  { %7849 = vmatpush1.bf16.msra.mxu1 %v14893_v45 }
0x103e   :  { %7850 = vmatprep.subr.bf16.mxu1 %v14898_v63 }
0x1040   :  { %10119 = vmatmul.mubr.msk.bf16.vlgmr.msra.gmra.mxu0 %vm7036_vm15, %v14907_v29  ;;  %v14949_v29 = vld [vmem:[#allocation8 + $0x214] ss:$8 sps:$4 sm:$0xff]  }
0x1041   :  { %7851 = vmatpush1.bf16.msra.mxu1 %v14902_v58  ;;  %7909 = vmatpush1.bf16.msra.mxu0 %v14676_v26  ;;  %v14933_v26 = vld [vmem:[#allocation8 + $0x370] ss:$8 sps:$4 sm:$0xff]   ;;  %16203 = vst [vmem:[#allocation65_spill] sm:$0xff] %v14949_v29 }
0x1042   :  { %7852 = vmatprep.subr.bf16.mxu1 %v14910_v4  ;;  %7926 = vmatprep.mubr.bf16.mxu0 %v15840_v62  ;;  %16198 = vst [vmem:[#allocation61_spill] sm:$0xff] %v14933_v26 }
0x1043   :  { %8130 = vmatprep.subr.bf16.mxu0 %v14912_v55  ;;  %v14946_v55 = vld [vmem:[#allocation8 + $0x360] ss:$8 sps:$4 sm:$0xff]  }
0x1044   :  { %16202 = vst [vmem:[#allocation46_spill] sm:$0xff] %v14946_v55 }
0x1045   :  { %7853 = vmatpush1.bf16.msra.mxu1 %v14918_v6  ;;  %v14955_v6 = vld [vmem:[#allocation8 + $0x210] ss:$8 sps:$4 sm:$0xff]  }
0x1046   :  { %7854 = vmatprep.subr.bf16.mxu1 %v14921_v50  ;;  %v14952_v50 = vld [vmem:[#allocation8 + $0x354] ss:$8 sps:$4 sm:$0xff]   ;;  %16205 = vst [vmem:[#allocation63_spill] sm:$0xff] %v14955_v6 }
0x1047   :  { %16204 = vst [vmem:[#allocation54_spill] sm:$0xff] %v14952_v50 }
0x1048   :  { %10154 = vmatmul.mubr.msk.bf16.vlgmr.msra.gmra.mxu0 %vm7036_vm15, %v14931_v36  ;;  %v14958_v36 = vld [vmem:[#allocation8 + $0x350] ss:$8 sps:$4 sm:$0xff]  }
0x1049   :  { %7855 = vmatpush1.bf16.msra.mxu1 %v14926_v22  ;;  %8131 = vmatpush1.bf16.msra.mxu0 %v14933_v26  ;;  %16206 = vst [vmem:[#allocation53_spill] sm:$0xff] %v14958_v36  ;;  %v14961_v26 = vld [vmem:[#allocation8 + $0x204] ss:$8 sps:$4 sm:$0xff]   ;;  %v15055_v22 = vld [vmem:[#allocation8 + $0x3d0] ss:$8 sps:$4 sm:$0xff]  }
0x104a   :  { %7856 = vmatprep.subr.bf16.mxu1 %v14936_v59  ;;  %8132 = vmatprep.subr.bf16.mxu0 %v14938_v42  ;;  %16207 = vst [vmem:[#allocation69_spill] sm:$0xff] %v14961_v26  ;;  %v14964_v59 = vld [vmem:[#allocation8 + $0x344] ss:$8 sps:$4 sm:$0xff]   ;;  %v14967_v42 = vld [vmem:[#allocation8 + $0x200] ss:$8 sps:$4 sm:$0xff]   ;;  %16238 = vst [vmem:[#allocation78_spill] sm:$0xff] %v15055_v22 }
0x104b   :  { %16208 = vst [vmem:[#allocation56_spill] sm:$0xff] %v14964_v59  ;;  %16209 = vst [vmem:[#allocation67_spill] sm:$0xff] %v14967_v42 }
0x104d   :  { %7857 = vmatpush1.bf16.msra.mxu1 %v14943_v27  ;;  %8133 = vmatpush1.bf16.msra.mxu0 %v14946_v55  ;;  %v14970_v27 = vld [vmem:[#allocation8 + $0x340] ss:$8 sps:$4 sm:$0xff]   ;;  %v14973_v55 = vld [vmem:[#allocation8 + $0x2f4] ss:$8 sps:$4 sm:$0xff]  }
0x104e   :  { %7858 = vmatprep.subr.bf16.mxu1 %v14949_v29  ;;  %8134 = vmatprep.subr.bf16.mxu0 %v14952_v50  ;;  %16210 = vst [vmem:[#allocation55_spill] sm:$0xff] %v14970_v27  ;;  %16211 = vst [vmem:[#allocation73_spill] sm:$0xff] %v14973_v55  ;;  %v14976_v29 = vld [vmem:[#allocation8 + $0x334] ss:$8 sps:$4 sm:$0xff]   ;;  %v14979_v50 = vld [vmem:[#allocation8 + $0x2f0] ss:$8 sps:$4 sm:$0xff]  }
0x104f   :  { %16212 = vst [vmem:[#allocation58_spill] sm:$0xff] %v14976_v29  ;;  %16213 = vst [vmem:[#allocation71_spill] sm:$0xff] %v14979_v50 }
0x1051   :  { %7859 = vmatpush1.bf16.msra.mxu1 %v14955_v6  ;;  %8135 = vmatpush1.bf16.msra.mxu0 %v14958_v36  ;;  %v14982_v6 = vld [vmem:[#allocation8 + $0x330] ss:$8 sps:$4 sm:$0xff]   ;;  %v14985_v36 = vld [vmem:[#allocation8 + $0x2e4] ss:$8 sps:$4 sm:$0xff]  }
0x1052   :  { %7860 = vmatprep.subr.bf16.mxu1 %v14961_v26  ;;  %8136 = vmatprep.subr.bf16.mxu0 %v14964_v59  ;;  %16214 = vst [vmem:[#allocation57_spill] sm:$0xff] %v14982_v6  ;;  %16215 = vst [vmem:[#allocation77_spill] sm:$0xff] %v14985_v36  ;;  %v14988_v26 = vld [vmem:[#allocation8 + $0x324] ss:$8 sps:$4 sm:$0xff]   ;;  %v14991_v59 = vld [vmem:[#allocation8 + $0x2e0] ss:$8 sps:$4 sm:$0xff]  }
0x1053   :  { %16216 = vst [vmem:[#allocation60_spill] sm:$0xff] %v14988_v26  ;;  %16217 = vst [vmem:[#allocation75_spill] sm:$0xff] %v14991_v59 }
0x1055   :  { %7861 = vmatpush1.bf16.msra.mxu1 %v14967_v42  ;;  %8137 = vmatpush1.bf16.msra.mxu0 %v14970_v27  ;;  %v14994_v42 = vld [vmem:[#allocation8 + $0x320] ss:$8 sps:$4 sm:$0xff]   ;;  %v14997_v27 = vld [vmem:[#allocation8 + $0x2d4] ss:$8 sps:$4 sm:$0xff]  }
0x1056   :  { %7862 = vmatprep.subr.bf16.mxu1 %v14973_v55  ;;  %8138 = vmatprep.subr.bf16.mxu0 %v14976_v29  ;;  %16218 = vst [vmem:[#allocation59_spill] sm:$0xff] %v14994_v42  ;;  %16219 = vst [vmem:[#allocation81_spill] sm:$0xff] %v14997_v27  ;;  %v15000_v55 = vld [vmem:[#allocation8 + $0x314] ss:$8 sps:$4 sm:$0xff]   ;;  %v15003_v29 = vld [vmem:[#allocation8 + $0x2d0] ss:$8 sps:$4 sm:$0xff]  }
0x1057   :  { %16220 = vst [vmem:[#allocation64_spill] sm:$0xff] %v15000_v55  ;;  %16221 = vst [vmem:[#allocation79_spill] sm:$0xff] %v15003_v29 }
0x1059   :  { %7863 = vmatpush2.bf16.msra.mxu1 %v14979_v50  ;;  %8139 = vmatpush1.bf16.msra.mxu0 %v14982_v6  ;;  %v15006_v50 = vld [vmem:[#allocation8 + $0x310] ss:$8 sps:$4 sm:$0xff]   ;;  %v15009_v6 = vld [vmem:[#allocation8 + $0x2c4] ss:$8 sps:$4 sm:$0xff]  }
0x105a   :  { %7864 = vmatprep.subr.bf16.mxu1 %v14985_v36  ;;  %8140 = vmatprep.subr.bf16.mxu0 %v14988_v26  ;;  %16222 = vst [vmem:[#allocation62_spill] sm:$0xff] %v15006_v50  ;;  %16223 = vst [vmem:[#allocation85_spill] sm:$0xff] %v15009_v6  ;;  %v15012_v36 = vld [vmem:[#allocation8 + $0x304] ss:$8 sps:$4 sm:$0xff]   ;;  %v15015_v26 = vld [vmem:[#allocation8 + $0x2c0] ss:$8 sps:$4 sm:$0xff]  }
0x105b   :  { %16224 = vst [vmem:[#allocation68_spill] sm:$0xff] %v15012_v36  ;;  %16225 = vst [vmem:[#allocation83_spill] sm:$0xff] %v15015_v26 }
0x105d   :  { %7865 = vmatpush2.bf16.msra.mxu1 %v14991_v59  ;;  %8141 = vmatpush1.bf16.msra.mxu0 %v14994_v42  ;;  %v15018_v59 = vld [vmem:[#allocation8 + $0x300] ss:$8 sps:$4 sm:$0xff]   ;;  %v15021_v42 = vld [vmem:[#allocation8 + $0x2b4] ss:$8 sps:$4 sm:$0xff]  }
0x105e   :  { %7866 = vmatprep.subr.bf16.mxu1 %v14997_v27  ;;  %8142 = vmatprep.subr.bf16.mxu0 %v15000_v55  ;;  %16226 = vst [vmem:[#allocation66_spill] sm:$0xff] %v15018_v59  ;;  %16227 = vst [vmem:[#allocation89_spill] sm:$0xff] %v15021_v42  ;;  %v15024_v27 = vld [vmem:[#allocation8 + $0x3f4] ss:$8 sps:$4 sm:$0xff]   ;;  %v15027_v55 = vld [vmem:[#allocation8 + $0x2b0] ss:$8 sps:$4 sm:$0xff]  }
0x105f   :  { %16228 = vst [vmem:[#allocation72_spill] sm:$0xff] %v15024_v27  ;;  %16229 = vst [vmem:[#allocation87_spill] sm:$0xff] %v15027_v55 }
0x1061   :  { %7867 = vmatpush2.bf16.msra.mxu1 %v15003_v29  ;;  %8143 = vmatpush1.bf16.msra.mxu0 %v15006_v50  ;;  %v15030_v29 = vld [vmem:[#allocation8 + $0x3f0] ss:$8 sps:$4 sm:$0xff]   ;;  %v15033_v50 = vld [vmem:[#allocation8 + $0x2a4] ss:$8 sps:$4 sm:$0xff]  }
0x1062   :  { %7868 = vmatprep.subr.bf16.mxu1 %v15009_v6  ;;  %8144 = vmatprep.subr.bf16.mxu0 %v15012_v36  ;;  %16230 = vst [vmem:[#allocation70_spill] sm:$0xff] %v15030_v29  ;;  %16231 = vst [vmem:[#allocation91_spill] sm:$0xff] %v15033_v50  ;;  %v15036_v6 = vld [vmem:[#allocation8 + $0x3e4] ss:$8 sps:$4 sm:$0xff]   ;;  %v15039_v36 = vld [vmem:[#allocation8 + $0x2a0] ss:$8 sps:$4 sm:$0xff]  }
0x1063   :  { %16232 = vst [vmem:[#allocation76_spill] sm:$0xff] %v15036_v6  ;;  %16233 = vst [vmem:[#allocation90_spill] sm:$0xff] %v15039_v36 }
0x1065   :  { %7869 = vmatpush2.bf16.msra.mxu1 %v15015_v26  ;;  %8145 = vmatpush1.bf16.msra.mxu0 %v15018_v59  ;;  %v15042_v26 = vld [vmem:[#allocation8 + $0x3e0] ss:$8 sps:$4 sm:$0xff]   ;;  %v15045_v59 = vld [vmem:[#allocation8 + $0x294] ss:$8 sps:$4 sm:$0xff]  }
0x1066   :  { %7870 = vmatprep.subr.bf16.mxu1 %v15021_v42  ;;  %8146 = vmatprep.subr.bf16.mxu0 %v15024_v27  ;;  %16234 = vst [vmem:[#allocation74_spill] sm:$0xff] %v15042_v26  ;;  %16235 = vst [vmem:[#allocation93_spill] sm:$0xff] %v15045_v59  ;;  %v15048_v42 = vld [vmem:[#allocation8 + $0x3d4] ss:$8 sps:$4 sm:$0xff]   ;;  %v15051_v27 = vld [vmem:[#allocation8 + $0x290] ss:$8 sps:$4 sm:$0xff]  }
0x1067   :  { %16236 = vst [vmem:[#allocation80_spill] sm:$0xff] %v15048_v42  ;;  %16237 = vst [vmem:[#allocation92_spill] sm:$0xff] %v15051_v27 }
0x1069   :  { %7871 = vmatpush2.bf16.msra.mxu1 %v15027_v55  ;;  %8147 = vmatpush2.bf16.msra.mxu0 %v15030_v29  ;;  %v7016_v55 = vmul.f32 0.2, %v14661_v24  ;;  %v15058_v29 = vld [vmem:[#allocation8 + $0x284] ss:$8 sps:$4 sm:$0xff]  }
0x106a   :  { %7872 = vmatprep.subr.bf16.mxu1 %v15033_v50  ;;  %8148 = vmatprep.subr.bf16.mxu0 %v15036_v6  ;;  %16239 = vst [vmem:[#allocation82_spill] sm:$0xff] %v15058_v29  ;;  %v15063_v6 = vld [vmem:[#allocation8 + $0x280] ss:$8 sps:$4 sm:$0xff]  }
0x106b   :  { %16240 = vst [vmem:[#allocation94_spill] sm:$0xff] %v15063_v6 }
0x106d   :  { %7873 = vmatpush2.bf16.msra.mxu1 %v15039_v36  ;;  %8149 = vmatpush2.bf16.msra.mxu0 %v15042_v26  ;;  %v7018_v36 = vsel %vm7014_vm1, %v14661_v24, %v7016_v55  ;;  %v15079_v24 = vld [vmem:[#allocation8 + $0x3b0] ss:$8 sps:$4 sm:$0xff]   ;;  %v15081_v55 = vld [vmem:[#allocation8 + $0x3b4] ss:$8 sps:$4 sm:$0xff]  }
0x106e   :  { %7874 = vmatprep.subr.bf16.mxu1 %v15045_v59  ;;  %8150 = vmatprep.subr.bf16.mxu0 %v15048_v42  ;;  %v15068_v26 = vpack.c.bf16 %v7018_v36, %v7018_v36  ;;  %v15073_v59 = vld [vmem:[#allocation8 + $0x3c0] ss:$8 sps:$4 sm:$0xff]   ;;  %v15075_v42 = vld [vmem:[#allocation8 + $0x3c4] ss:$8 sps:$4 sm:$0xff]   ;;  %16243 = vst [vmem:[#allocation86_spill] sm:$0xff] %v15079_v24  ;;  %16244 = vst [vmem:[#allocation84_spill] sm:$0xff] %v15081_v55 }
0x106f   :  { %16241 = vst [vmem:[#allocation96_spill] sm:$0xff] %v15073_v59  ;;  %16242 = vst [vmem:[#allocation95_spill] sm:$0xff] %v15075_v42  ;;  %v15085_v36 = vld [vmem:[#allocation8 + $0x3a0] ss:$8 sps:$4 sm:$0xff]  }
0x1070   :  { %16245 = vst [vmem:[#allocation98_spill] sm:$0xff] %v15085_v36 }
0x1071   :  { %7875 = vmatpush2.bf16.msra.mxu1 %v15051_v27  ;;  %8151 = vmatpush2.bf16.msra.mxu0 %v15055_v22  ;;  %v15087_v22 = vld [vmem:[#allocation8 + $0x3a4] ss:$8 sps:$4 sm:$0xff]  }
0x1072   :  { %7876 = vmatprep.subr.bf16.mxu1 %v15058_v29  ;;  %8152 = vmatprep.subr.bf16.mxu0 %v15075_v42  ;;  %16246 = vst [vmem:[#allocation97_spill] sm:$0xff] %v15087_v22  ;;  %v15093_v42 = vld [vmem:[#allocation8 + $0x394] ss:$8 sps:$4 sm:$0xff]  }
0x1073   :  { %16248 = vst [vmem:[#allocation88_spill] sm:$0xff] %v15093_v42 }
0x1075   :  { %7877 = vmatpush2.bf16.msra.mxu1 %v15063_v6  ;;  %8153 = vmatpush2.bf16.msra.mxu0 %v15073_v59  ;;  %v15091_v6 = vld [vmem:[#allocation8 + $0x390] ss:$8 sps:$4 sm:$0xff]   ;;  %v15097_v59 = vld [vmem:[#allocation8 + $0x380] ss:$8 sps:$4 sm:$0xff]  }
0x1076   :  { %10189 = vmatprep.subr.msk.bf16.mxu1 %vm7040_vm14, %v15068_v26  ;;  %8154 = vmatprep.subr.bf16.mxu0 %v15081_v55  ;;  %16247 = vst [vmem:[#allocation99_spill] sm:$0xff] %v15091_v6  ;;  %16249 = vst [vmem:[#allocation101_spill] sm:$0xff] %v15097_v59  ;;  %v15099_v55 = vld [vmem:[#allocation8 + $0x384] ss:$8 sps:$4 sm:$0xff]  }
0x1077   :  { %16250 = vst [vmem:[#allocation100_spill] sm:$0xff] %v15099_v55 }
0x1079   :  { %8155 = vmatpush2.bf16.msra.mxu0 %v15079_v24 }
0x107a   :  { %8156 = vmatprep.subr.bf16.mxu0 %v15087_v22 }
0x107d   :  { %8157 = vmatpush2.bf16.msra.mxu0 %v15085_v36 }
0x107e   :  { %8158 = vmatprep.subr.bf16.mxu0 %v15093_v42 }
0x1081   :  { %8159 = vmatpush2.bf16.msra.mxu0 %v15091_v6  ;;  %v7015_v6 = vmul.f32 0.2, %v14663_v20 }
0x1082   :  { %8160 = vmatprep.subr.bf16.mxu0 %v15099_v55 }
0x1085   :  { %8161 = vmatpush2.bf16.msra.mxu0 %v15097_v59  ;;  %v7017_v59 = vsel %vm7013_vm2, %v14663_v20, %v7015_v6 }
0x1086   :  { %8271 = vmatprep.subr.bf16.mxu0 %v14667_v34  ;;  %v10231_v45 = vpack.c.bf16 %v7017_v59, %v7017_v59 }
0x10f8   :  { %v7397_v22 = vpop.f32.mrf.mxu0  ;;  %v7598_v36 = vpop.f32.mrf.mxu1 }
0x10f9   :  { %v15104_v24 = vadd.f32 %v7598_v36, %v7397_v22 }
0x10fa   :  { %v7399_v29 = vpop.f32.mrf.mxu0  ;;  %v7600_v27 = vpop.f32.mrf.mxu1 }
0x10fb   :  { %v15106_v50 = vadd.f32 %v7600_v27, %v7399_v29  ;;  %v15112_v29 = vsel %vm7040_vm14, %v10231_v45, 0  ;;  %v16275_v45 = vld [vmem:[#allocation43_spill] sm:$0xff] }
0x10fc   :  { %v7401_v42 = vpop.f32.mrf.mxu0  ;;  %v7602_v4 = vpop.f32.mrf.mxu1 }
0x10fd   :  { %v16276_v42 = vld [vmem:[#allocation47_spill] sm:$0xff] }
0x10fe   :  { %v7402_v58 = vpop.f32.mrf.mxu0  ;;  %v7603_v55 = vpop.f32.mrf.mxu1 }
0x10ff   :  { %v16278_v55 = vld [vmem:[#allocation38_spill] sm:$0xff] }
0x1100   :  { %v7644_v63 = vpop.f32.mrf.mxu0 }
0x1101   :  { %v7651_v22 = vpack.c.bf16 %v7644_v63, %v7644_v63 }
0x1102   :  { %v7646_v34 = vpop.f32.mrf.mxu0 }
0x1103   :  { %v7652_v35 = vpack.c.bf16 %v7646_v34, %v7646_v34  ;;  %v16279_v34 = vld [vmem:[#allocation37_spill] sm:$0xff] }
0x1104   :  { %v7648_v36 = vpop.f32.mrf.mxu0 }
0x1105   :  { %7878 = vmatprep.mubr.bf16.mxu1 %v7652_v35  ;;  %v16281_v36 = vld [vmem:[#allocation48_spill] sm:$0xff] }
0x1106   :  { %v7649_v3 = vpop.f32.mrf.mxu0  ;;  %7879 = vmatmul.mubr.bf16.vlgmr.msra.gmra.mxu1 %v7651_v22  ;;  %v16280_v22 = vld [vmem:[#allocation49_spill] sm:$0xff] }
0x1107   :  { %8200 = vmatpush1.bf16.msra.mxu1 %v15112_v29  ;;  %8217 = vmatprep.mubr.bf16.mxu1 %v15840_v62 }
0x1108   :  { %10191 = vmatprep.subr.msk.bf16.mxu1 %vm7040_vm14, %v15068_v26  ;;  %v7928_v20 = vpop.f32.mrf.mxu0 }
0x1109   :  { %v7935_v58 = vpack.c.bf16 %v7928_v20, %v7928_v20  ;;  %v16282_v20 = vld [vmem:[#allocation41_spill] sm:$0xff] }
0x110a   :  { %v7930_v4 = vpop.f32.mrf.mxu0 }
0x110b   :  { %v7936_v6 = vpack.c.bf16 %v7930_v4, %v7930_v4  ;;  %v16285_v4 = vld [vmem:[#allocation42_spill] sm:$0xff] }
0x110c   :  { %v7932_v59 = vpop.f32.mrf.mxu0 }
0x110d   :  { %8162 = vmatprep.mubr.bf16.mxu0 %v7936_v6  ;;  %v16286_v6 = vld [vmem:[#allocation65_spill] sm:$0xff] }
0x110e   :  { %8163 = vmatmul.mubr.bf16.vlgmr.msra.gmra.mxu0 %v7935_v58  ;;  %10190 = vmatmul.mubr.msk.bf16.vlgmr.msra.gmra.mxu1 %vm7036_vm15, %v14681_v60  ;;  %v7933_v35 = vpop.f32.mrf.mxu0  ;;  %v16252_v60 = vld [vmem:[#allocation32_spill] sm:$0xff]  ;;  %v16283_v58 = vld [vmem:[#allocation50_spill] sm:$0xff]  ;;  %v16287_v59 = vld [vmem:[#allocation45_spill] sm:$0xff] }
0x110f   :  { %8243 = vmatpush1.bf16.msra.mxu1 %v15112_v29  ;;  %8272 = vmatpush1.bf16.msra.mxu0 %v14690_v47  ;;  %v16254_v47 = vld [vmem:[#allocation25_spill] sm:$0xff] }
0x1110   :  { %8273 = vmatprep.subr.bf16.mxu0 %v14695_v43  ;;  %8260 = vmatprep.mubr.bf16.mxu1 %v15840_v62  ;;  %v16256_v43 = vld [vmem:[#allocation36_spill] sm:$0xff]  ;;  %v16288_v35 = vld [vmem:[#allocation61_spill] sm:$0xff] }
0x1111   :  { %8312 = vmatprep.subr.bf16.mxu1 %v14669_v13  ;;  %v16251_v13 = vld [vmem:[#allocation15_spill] sm:$0xff] }
0x1113   :  { %8274 = vmatpush1.bf16.msra.mxu0 %v14705_v48  ;;  %v16258_v48 = vld [vmem:[#allocation27_spill] sm:$0xff] }
0x1114   :  { %8275 = vmatprep.subr.bf16.mxu0 %v14711_v9  ;;  %v16260_v9 = vld [vmem:[#allocation40_spill] sm:$0xff] }
0x1116   :  { %10192 = vmatmul.mubr.msk.bf16.vlgmr.msra.gmra.mxu1 %vm7036_vm15, %v14688_v17  ;;  %v16253_v17 = vld [vmem:[#allocation20_spill] sm:$0xff] }
0x1117   :  { %8276 = vmatpush1.bf16.msra.mxu0 %v14717_v18  ;;  %8313 = vmatpush1.bf16.msra.mxu1 %v14692_v49  ;;  %v16255_v49 = vld [vmem:[#allocation16_spill] sm:$0xff] }
0x1118   :  { %8277 = vmatprep.subr.bf16.mxu0 %v14723_v39  ;;  %8314 = vmatprep.subr.bf16.mxu1 %v14698_v46  ;;  %v16257_v46 = vld [vmem:[#allocation22_spill] sm:$0xff]  ;;  %v16262_v18 = vld [vmem:[#allocation28_spill] sm:$0xff] }
0x1119   :  { %v16264_v39 = vld [vmem:[#allocation26_spill] sm:$0xff] }
0x111b   :  { %8278 = vmatpush1.bf16.msra.mxu0 %v14729_v56  ;;  %8315 = vmatpush1.bf16.msra.mxu1 %v14708_v61  ;;  %v16259_v61 = vld [vmem:[#allocation17_spill] sm:$0xff]  ;;  %v16266_v56 = vld [vmem:[#allocation35_spill] sm:$0xff] }
0x111c   :  { %8279 = vmatprep.subr.bf16.mxu0 %v14735_v44  ;;  %8316 = vmatprep.subr.bf16.mxu1 %v14714_v51  ;;  %v16261_v51 = vld [vmem:[#allocation18_spill] sm:$0xff]  ;;  %v16268_v44 = vld [vmem:[#allocation24_spill] sm:$0xff] }
0x111f   :  { %8280 = vmatpush1.bf16.msra.mxu0 %v14741_v40  ;;  %8317 = vmatpush1.bf16.msra.mxu1 %v14720_v38  ;;  %v16263_v38 = vld [vmem:[#allocation19_spill] sm:$0xff] }
0x1120   :  { %8281 = vmatprep.subr.bf16.mxu0 %v14747_v5  ;;  %8318 = vmatprep.subr.bf16.mxu1 %v14726_v41  ;;  %v16265_v41 = vld [vmem:[#allocation21_spill] sm:$0xff]  ;;  %v16270_v40 = vld [vmem:[#allocation39_spill] sm:$0xff]  ;;  %v16272_v5 = vld [vmem:[#allocation44_spill] sm:$0xff] }
0x1123   :  { %8282 = vmatpush1.bf16.msra.mxu0 %v14753_v10  ;;  %8319 = vmatpush1.bf16.msra.mxu1 %v14732_v1  ;;  %v16267_v1 = vld [vmem:[#allocation23_spill] sm:$0xff] }
0x1124   :  { %8283 = vmatprep.subr.bf16.mxu0 %v14759_v11  ;;  %8320 = vmatprep.subr.bf16.mxu1 %v14738_v16  ;;  %v16269_v16 = vld [vmem:[#allocation31_spill] sm:$0xff] }
0x1127   :  { %8284 = vmatpush1.bf16.msra.mxu0 %v14765_v37  ;;  %8321 = vmatpush1.bf16.msra.mxu1 %v14744_v12  ;;  %v16271_v12 = vld [vmem:[#allocation29_spill] sm:$0xff] }
0x1128   :  { %8285 = vmatprep.subr.bf16.mxu0 %v14771_v33  ;;  %8322 = vmatprep.subr.bf16.mxu1 %v14750_v30 }
0x112b   :  { %8286 = vmatpush1.bf16.msra.mxu0 %v14777_v7  ;;  %8323 = vmatpush1.bf16.msra.mxu1 %v14756_v8 }
0x112c   :  { %8287 = vmatprep.subr.bf16.mxu0 %v14783_v31  ;;  %8324 = vmatprep.subr.bf16.mxu1 %v14762_v19 }
0x112f   :  { %8288 = vmatpush2.bf16.msra.mxu0 %v14789_v32  ;;  %8325 = vmatpush1.bf16.msra.mxu1 %v14768_v23 }
0x1130   :  { %8289 = vmatprep.subr.bf16.mxu0 %v14795_v54  ;;  %8326 = vmatprep.subr.bf16.mxu1 %v14774_v15 }
0x1133   :  { %8290 = vmatpush2.bf16.msra.mxu0 %v14801_v52  ;;  %8327 = vmatpush1.bf16.msra.mxu1 %v14780_v25 }
0x1134   :  { %8291 = vmatprep.subr.bf16.mxu0 %v14807_v14  ;;  %8328 = vmatprep.subr.bf16.mxu1 %v14786_v0  ;;  %v16273_v14 = vld [vmem:[#allocation30_spill] sm:$0xff] }
0x1137   :  { %8292 = vmatpush2.bf16.msra.mxu0 %v14813_v28  ;;  %8329 = vmatpush2.bf16.msra.mxu1 %v14792_v53 }
0x1138   :  { %8293 = vmatprep.subr.bf16.mxu0 %v14819_v21  ;;  %8330 = vmatprep.subr.bf16.mxu1 %v14798_v2  ;;  %v16274_v21 = vld [vmem:[#allocation33_spill] sm:$0xff] }
0x113b   :  { %8294 = vmatpush2.bf16.msra.mxu0 %v14825_v57  ;;  %8331 = vmatpush2.bf16.msra.mxu1 %v16251_v13  ;;  %v16289_v13 = vld [vmem:[#allocation51_spill] sm:$0xff] }
0x113c   :  { %8295 = vmatprep.subr.bf16.mxu0 %v16252_v60  ;;  %8332 = vmatprep.subr.bf16.mxu1 %v16253_v17  ;;  %v16292_v60 = vld [vmem:[#allocation46_spill] sm:$0xff] }
0x113d   :  { %v16293_v17 = vld [vmem:[#allocation54_spill] sm:$0xff] }
0x113f   :  { %8296 = vmatpush2.bf16.msra.mxu0 %v16254_v47  ;;  %8333 = vmatpush2.bf16.msra.mxu1 %v16255_v49  ;;  %v16294_v47 = vld [vmem:[#allocation67_spill] sm:$0xff]  ;;  %v16295_v49 = vld [vmem:[#allocation73_spill] sm:$0xff] }
0x1140   :  { %8297 = vmatprep.subr.bf16.mxu0 %v16256_v43  ;;  %8334 = vmatprep.subr.bf16.mxu1 %v16257_v46  ;;  %v16296_v43 = vld [vmem:[#allocation53_spill] sm:$0xff]  ;;  %v16297_v46 = vld [vmem:[#allocation56_spill] sm:$0xff] }
0x1143   :  { %8298 = vmatpush2.bf16.msra.mxu0 %v16258_v48  ;;  %8335 = vmatpush2.bf16.msra.mxu1 %v16259_v61  ;;  %v16298_v48 = vld [vmem:[#allocation71_spill] sm:$0xff]  ;;  %v16299_v61 = vld [vmem:[#allocation77_spill] sm:$0xff] }
0x1144   :  { %8299 = vmatprep.subr.bf16.mxu0 %v16260_v9  ;;  %8336 = vmatprep.subr.bf16.mxu1 %v16261_v51  ;;  %v16300_v9 = vld [vmem:[#allocation55_spill] sm:$0xff]  ;;  %v16301_v51 = vld [vmem:[#allocation58_spill] sm:$0xff] }
0x1147   :  { %8300 = vmatpush2.bf16.msra.mxu0 %v16262_v18  ;;  %8337 = vmatpush2.bf16.msra.mxu1 %v16263_v38  ;;  %v16302_v18 = vld [vmem:[#allocation75_spill] sm:$0xff]  ;;  %v16303_v38 = vld [vmem:[#allocation81_spill] sm:$0xff] }
0x1148   :  { %8301 = vmatprep.subr.bf16.mxu0 %v16264_v39  ;;  %8338 = vmatprep.subr.bf16.mxu1 %v16265_v41  ;;  %v16304_v39 = vld [vmem:[#allocation57_spill] sm:$0xff]  ;;  %v16305_v41 = vld [vmem:[#allocation60_spill] sm:$0xff] }
0x114b   :  { %8302 = vmatpush2.bf16.msra.mxu0 %v16266_v56  ;;  %8339 = vmatpush2.bf16.msra.mxu1 %v16267_v1  ;;  %v16306_v56 = vld [vmem:[#allocation79_spill] sm:$0xff]  ;;  %v16307_v1 = vld [vmem:[#allocation85_spill] sm:$0xff] }
0x114c   :  { %10193 = vmatprep.subr.msk.bf16.mxu0 %vm7040_vm14, %v15068_v26  ;;  %8340 = vmatprep.subr.bf16.mxu1 %v16268_v44  ;;  %v16308_v44 = vld [vmem:[#allocation59_spill] sm:$0xff] }
0x114f   :  { %8341 = vmatpush2.bf16.msra.mxu1 %v16269_v16  ;;  %v16309_v16 = vld [vmem:[#allocation64_spill] sm:$0xff] }
0x1150   :  { %8342 = vmatprep.subr.bf16.mxu1 %v16270_v40  ;;  %v16310_v40 = vld [vmem:[#allocation83_spill] sm:$0xff] }
0x1153   :  { %8343 = vmatpush2.bf16.msra.mxu1 %v16271_v12  ;;  %v16311_v12 = vld [vmem:[#allocation89_spill] sm:$0xff] }
0x1154   :  { %8396 = vmatprep.subr.bf16.mxu1 %v16272_v5  ;;  %v16312_v5 = vld [vmem:[#allocation62_spill] sm:$0xff] }
0x11c6   :  { %v7880_v30 = vpop.f32.mrf.mxu1 }
0x11c7   :  { %v7887_v10 = vadd.f32 %v7880_v30, %v15104_v24  ;;  %v16277_v24 = vld [vmem:[#allocation34_spill] sm:$0xff]  ;;  %v16313_v30 = vld [vmem:[#allocation68_spill] sm:$0xff] }
0x11c8   :  { %v7882_v8 = vpop.f32.mrf.mxu1 }
0x11c9   :  { %v7888_v11 = vadd.f32 %v7882_v8, %v15106_v50  ;;  %v16315_v8 = vld [vmem:[#allocation91_spill] sm:$0xff] }
0x11ca   :  { %v7884_v19 = vpop.f32.mrf.mxu1 }
0x11cb   :  { %v16317_v19 = vld [vmem:[#allocation72_spill] sm:$0xff] }
0x11cc   :  { %v7885_v37 = vpop.f32.mrf.mxu1 }
0x11cd   :  { %v16318_v37 = vld [vmem:[#allocation90_spill] sm:$0xff] }
0x11ce   :  { %v8164_v23 = vpop.f32.mrf.mxu0  ;;  %v8219_v33 = vpop.f32.mrf.mxu1 }
0x11cf   :  { %v15192_v15 = vadd.f32 %v8164_v23, %v7887_v10  ;;  %v8226_v32 = vpack.c.bf16 %v8219_v33, %v8219_v33  ;;  %v16314_v10 = vld [vmem:[#allocation87_spill] sm:$0xff]  ;;  %v16319_v23 = vld [vmem:[#allocation93_spill] sm:$0xff]  ;;  %v16320_v33 = vld [vmem:[#allocation70_spill] sm:$0xff] }
0x11d0   :  { %v8166_v7 = vpop.f32.mrf.mxu0  ;;  %v8221_v25 = vpop.f32.mrf.mxu1 }
0x11d1   :  { %v15194_v31 = vadd.f32 %v8166_v7, %v7888_v11  ;;  %v8227_v0 = vpack.c.bf16 %v8221_v25, %v8221_v25  ;;  %v16316_v11 = vld [vmem:[#allocation66_spill] sm:$0xff]  ;;  %v16321_v7 = vld [vmem:[#allocation76_spill] sm:$0xff] }
0x11d2   :  { %v8223_v53 = vpop.f32.mrf.mxu1  ;;  %v8168_v54 = vpop.f32.mrf.mxu0  ;;  %v16322_v25 = vld [vmem:[#allocation92_spill] sm:$0xff] }
0x11d3   :  { %8344 = vmatprep.mubr.bf16.mxu1 %v8227_v0  ;;  %v16323_v0 = vld [vmem:[#allocation82_spill] sm:$0xff]  ;;  %v16325_v53 = vld [vmem:[#allocation80_spill] sm:$0xff] }
0x11d4   :  { %v8224_v2 = vpop.f32.mrf.mxu1  ;;  %8345 = vmatmul.mubr.bf16.vlgmr.msra.gmra.mxu1 %v8226_v32  ;;  %v8169_v52 = vpop.f32.mrf.mxu0  ;;  %v16324_v32 = vld [vmem:[#allocation74_spill] sm:$0xff] }
0x11d5   :  { %8397 = vmatpush1.bf16.msra.mxu1 %v16273_v14  ;;  %v16326_v54 = vld [vmem:[#allocation94_spill] sm:$0xff]  ;;  %v16328_v52 = vld [vmem:[#allocation95_spill] sm:$0xff]  ;;  %v16329_v14 = vld [vmem:[#allocation96_spill] sm:$0xff] }
0x11d6   :  { %v8262_v28 = vpop.f32.mrf.mxu1  ;;  %8398 = vmatprep.subr.bf16.mxu1 %v16274_v21  ;;  %v16327_v2 = vld [vmem:[#allocation78_spill] sm:$0xff] }
0x11d7   :  { %v8269_v63 = vpack.c.bf16 %v8262_v28, %v8262_v28  ;;  %v16330_v28 = vld [vmem:[#allocation84_spill] sm:$0xff]  ;;  %v16331_v21 = vld [vmem:[#allocation86_spill] sm:$0xff] }
0x11d8   :  { %v8264_v57 = vpop.f32.mrf.mxu1 }
0x11d9   :  { %v8270_v3 = vpack.c.bf16 %v8264_v57, %v8264_v57  ;;  %8399 = vmatpush1.bf16.msra.mxu1 %v16275_v45  ;;  %v16332_v57 = vld [vmem:[#allocation97_spill] sm:$0xff]  ;;  %v16334_v45 = vld [vmem:[#allocation88_spill] sm:$0xff] }
0x11da   :  { %v8266_v50 = vpop.f32.mrf.mxu1  ;;  %8400 = vmatprep.subr.bf16.mxu1 %v16276_v42  ;;  %v16337_v42 = vld [vmem:[#allocation101_spill] sm:$0xff] }
0x11db   :  { %8303 = vmatprep.mubr.bf16.mxu0 %v8270_v3  ;;  %v16333_v3 = vld [vmem:[#allocation98_spill] sm:$0xff]  ;;  %v16336_v50 = vld [vmem:[#allocation100_spill] sm:$0xff] }
0x11dc   :  { %v8267_v27 = vpop.f32.mrf.mxu1  ;;  %8304 = vmatmul.mubr.bf16.vlgmr.msra.gmra.mxu0 %v8269_v63  ;;  %v16335_v63 = vld [vmem:[#allocation99_spill] sm:$0xff] }
0x11dd   :  { %8368 = vmatpush1.bf16.msra.mxu0 %v15112_v29  ;;  %8385 = vmatprep.mubr.bf16.mxu0 %v15840_v62  ;;  %v8624_v27 = vld [vmem:[%s15497_s17 + $0xf8] sm:$0xff] }
0x11de   :  { %10195 = vmatprep.subr.msk.bf16.mxu0 %vm7040_vm14, %v15068_v26  ;;  %8401 = vmatpush1.bf16.msra.mxu1 %v16277_v24  ;;  %v16284_v26 = vld [vmem:[#allocation52_spill] sm:$0xff] }
0x11df   :  { %8402 = vmatprep.subr.bf16.mxu1 %v16278_v55 }
0x11e2   :  { %8403 = vmatpush1.bf16.msra.mxu1 %v16279_v34 }
0x11e3   :  { %8404 = vmatprep.subr.bf16.mxu1 %v16280_v22 }
0x11e4   :  { %10194 = vmatmul.mubr.msk.bf16.vlgmr.msra.gmra.mxu0 %vm7036_vm15, %v16281_v36 }
0x11e5   :  { %8454 = vmatpush1.bf16.msra.mxu0 %v15112_v29  ;;  %8471 = vmatprep.mubr.bf16.mxu0 %v15840_v62  ;;  %v16290_v29 = vld [vmem:[#allocation63_spill] sm:$0xff]  ;;  %v16291_v62 = vld [vmem:[#allocation69_spill] sm:$0xff] }
0x11e6   :  { %8482 = vmatprep.subr.bf16.mxu0 %v16282_v20  ;;  %8405 = vmatpush1.bf16.msra.mxu1 %v16283_v58 }
0x11e7   :  { %8406 = vmatprep.subr.bf16.mxu1 %v16284_v26 }
0x11ea   :  { %8407 = vmatpush1.bf16.msra.mxu1 %v16285_v4 }
0x11eb   :  { %8408 = vmatprep.subr.bf16.mxu1 %v16286_v6 }
0x11ec   :  { %10196 = vmatmul.mubr.msk.bf16.vlgmr.msra.gmra.mxu0 %vm7036_vm15, %v16287_v59 }
0x11ed   :  { %8483 = vmatpush1.bf16.msra.mxu0 %v16288_v35 }
0x11ee   :  { %8484 = vmatprep.subr.bf16.mxu0 %v16289_v13  ;;  %8409 = vmatpush1.bf16.msra.mxu1 %v16290_v29 }
0x11ef   :  { %8410 = vmatprep.subr.bf16.mxu1 %v16291_v62 }
0x11f1   :  { %8485 = vmatpush1.bf16.msra.mxu0 %v16292_v60  ;;  %v8608_v60 = vld [vmem:[%s15497_s17 + $0x78] sm:$0xff] }
0x11f2   :  { %8486 = vmatprep.subr.bf16.mxu0 %v16293_v17  ;;  %8411 = vmatpush1.bf16.msra.mxu1 %v16294_v47  ;;  %v8623_v17 = vld [vmem:[%s15497_s17 + $0xf0] sm:$0xff] }
0x11f3   :  { %8412 = vmatprep.subr.bf16.mxu1 %v16295_v49 }
0x11f5   :  { %8487 = vmatpush1.bf16.msra.mxu0 %v16296_v43 }
0x11f6   :  { %8488 = vmatprep.subr.bf16.mxu0 %v16297_v46  ;;  %8413 = vmatpush2.bf16.msra.mxu1 %v16298_v48 }
0x11f7   :  { %8414 = vmatprep.subr.bf16.mxu1 %v16299_v61 }
0x11f9   :  { %8489 = vmatpush1.bf16.msra.mxu0 %v16300_v9 }
0x11fa   :  { %8490 = vmatprep.subr.bf16.mxu0 %v16301_v51  ;;  %8415 = vmatpush2.bf16.msra.mxu1 %v16302_v18  ;;  %v8607_v51 = vld [vmem:[%s15497_s17 + $0x70] sm:$0xff]  ;;  %v8622_v18 = vld [vmem:[%s15497_s17 + $0xe8] sm:$0xff] }
0x11fb   :  { %8416 = vmatprep.subr.bf16.mxu1 %v16303_v38  ;;  %v8606_v38 = vld [vmem:[%s15497_s17 + $0x68] sm:$0xff] }
0x11fd   :  { %8491 = vmatpush1.bf16.msra.mxu0 %v16304_v39  ;;  %v8621_v39 = vld [vmem:[%s15497_s17 + $0xe0] sm:$0xff] }
0x11fe   :  { %8492 = vmatprep.subr.bf16.mxu0 %v16305_v41  ;;  %8417 = vmatpush2.bf16.msra.mxu1 %v16306_v56  ;;  %v8605_v41 = vld [vmem:[%s15497_s17 + $0x60] sm:$0xff]  ;;  %v8620_v56 = vld [vmem:[%s15497_s17 + $0xd8] sm:$0xff] }
0x11ff   :  { %8418 = vmatprep.subr.bf16.mxu1 %v16307_v1  ;;  %v8604_v1 = vld [vmem:[%s15497_s17 + $0x58] sm:$0xff] }
0x1201   :  { %8493 = vmatpush1.bf16.msra.mxu0 %v16308_v44  ;;  %v8619_v44 = vld [vmem:[%s15497_s17 + $0xd0] sm:$0xff] }
0x1202   :  { %8494 = vmatprep.subr.bf16.mxu0 %v16309_v16  ;;  %8419 = vmatpush2.bf16.msra.mxu1 %v16310_v40  ;;  %v8603_v16 = vld [vmem:[%s15497_s17 + $0x50] sm:$0xff]  ;;  %v8618_v40 = vld [vmem:[%s15497_s17 + $0xc8] sm:$0xff] }
0x1203   :  { %8420 = vmatprep.subr.bf16.mxu1 %v16311_v12  ;;  %v8602_v12 = vld [vmem:[%s15497_s17 + $0x48] sm:$0xff] }
0x1205   :  { %8495 = vmatpush1.bf16.msra.mxu0 %v16312_v5  ;;  %v8617_v5 = vld [vmem:[%s15497_s17 + $0xc0] sm:$0xff] }
0x1206   :  { %8496 = vmatprep.subr.bf16.mxu0 %v16313_v30  ;;  %8421 = vmatpush2.bf16.msra.mxu1 %v16314_v10  ;;  %v8601_v30 = vld [vmem:[%s15497_s17 + $0x40] sm:$0xff]  ;;  %v8616_v10 = vld [vmem:[%s15497_s17 + $0xb8] sm:$0xff] }
0x1207   :  { %8422 = vmatprep.subr.bf16.mxu1 %v16315_v8  ;;  %v8600_v8 = vld [vmem:[%s15497_s17 + $0x38] sm:$0xff] }
0x1209   :  { %8497 = vmatpush1.bf16.msra.mxu0 %v16316_v11  ;;  %v8615_v11 = vld [vmem:[%s15497_s17 + $0xb0] sm:$0xff] }
0x120a   :  { %8498 = vmatprep.subr.bf16.mxu0 %v16317_v19  ;;  %8423 = vmatpush2.bf16.msra.mxu1 %v16318_v37  ;;  %v8599_v19 = vld [vmem:[%s15497_s17 + $0x30] sm:$0xff]  ;;  %v8614_v37 = vld [vmem:[%s15497_s17 + $0xa8] sm:$0xff] }
0x120b   :  { %8424 = vmatprep.subr.bf16.mxu1 %v16319_v23  ;;  %v8598_v23 = vld [vmem:[%s15497_s17 + $0x28] sm:$0xff] }
0x120d   :  { %8499 = vmatpush2.bf16.msra.mxu0 %v16320_v33  ;;  %v8613_v33 = vld [vmem:[%s15497_s17 + $0xa0] sm:$0xff] }
0x120e   :  { %8500 = vmatprep.subr.bf16.mxu0 %v16321_v7  ;;  %8425 = vmatpush2.bf16.msra.mxu1 %v16322_v25  ;;  %v8597_v7 = vld [vmem:[%s15497_s17 + $0x20] sm:$0xff]  ;;  %v8612_v25 = vld [vmem:[%s15497_s17 + $0x98] sm:$0xff] }
0x120f   :  { %8426 = vmatprep.subr.bf16.mxu1 %v16323_v0  ;;  %v8596_v0 = vld [vmem:[%s15497_s17 + $0x18] sm:$0xff] }
0x1211   :  { %8501 = vmatpush2.bf16.msra.mxu0 %v16324_v32  ;;  %v8611_v32 = vld [vmem:[%s15497_s17 + $0x90] sm:$0xff] }
0x1212   :  { %8502 = vmatprep.subr.bf16.mxu0 %v16325_v53  ;;  %8427 = vmatpush2.bf16.msra.mxu1 %v16326_v54  ;;  %v8595_v53 = vld [vmem:[%s15497_s17 + $0x10] sm:$0xff]  ;;  %v8610_v54 = vld [vmem:[%s15497_s17 + $0x88] sm:$0xff] }
0x1213   :  { %10373 = vmatprep.subr.mxu1 %v8624_v27 }
0x1215   :  { %8503 = vmatpush2.bf16.msra.mxu0 %v16327_v2  ;;  %v8594_v2 = vld [vmem:[%s15497_s17 + $0x8] sm:$0xff] }
0x1216   :  { %8504 = vmatprep.subr.bf16.mxu0 %v16328_v52  ;;  %v8609_v52 = vld [vmem:[%s15497_s17 + $0x80] sm:$0xff] }
0x1219   :  { %8505 = vmatpush2.bf16.msra.mxu0 %v16329_v14  ;;  %v8593_v14 = vld [vmem:[%s15497_s17] sm:$0xff] }
0x121a   :  { %8506 = vmatprep.subr.bf16.mxu0 %v16330_v28  ;;  %v8787_v28 = vld [vmem:[%s15498_s18 + $0x78] sm:$0xff] }
0x121d   :  { %8507 = vmatpush2.bf16.msra.mxu0 %v16331_v21  ;;  %v8542_v21 = vmul.f32 %v15194_v31, %v15194_v31 }
0x121e   :  { %8508 = vmatprep.subr.bf16.mxu0 %v16332_v57  ;;  %v8541_v57 = vmul.f32 %v15192_v15, %v15192_v15 }
0x1221   :  { %8509 = vmatpush2.bf16.msra.mxu0 %v16333_v3  ;;  %v8532_v3 = vsel %vm7040_vm14, %v15194_v31, 0.0 }
0x1222   :  { %8510 = vmatprep.subr.bf16.mxu0 %v16334_v45 }
0x1225   :  { %8511 = vmatpush2.bf16.msra.mxu0 %v16335_v63  ;;  %v8525_v63 = vsel %vm7040_vm14, %v15192_v15, 0.0 }
0x1226   :  { %8512 = vmatprep.subr.bf16.mxu0 %v16336_v50  ;;  %v8550_v50 = vsel %vm7040_vm14, %v8542_v21, 0.0 }
0x1229   :  { %8513 = vmatpush2.bf16.msra.mxu0 %v16337_v42 }
0x122a   :  { %10408 = vmatprep.subr.mxu0 %v8624_v27  ;;  %v8543_v27 = vsel %vm7040_vm14, %v8541_v57, 0.0 }
0x1294   :  { %v8346_v24 = vpop.f32.mrf.mxu1 }
0x1296   :  { %v8348_v55 = vpop.f32.mrf.mxu1 }
0x1298   :  { %v8350_v34 = vpop.f32.mrf.mxu1 }
0x129a   :  { %v8351_v22 = vpop.f32.mrf.mxu1 }
0x129b   :  { %v8551_v22 = vrot.slane %v8550_v50, 4 }
0x129c   :  { %v8305_v36 = vpop.f32.mrf.mxu0 }
0x129d   :  { %v15272_v20 = vadd.f32 %v8346_v24, %v8305_v36  ;;  %v8533_v24 = vrot.slane %v8532_v3, 4  ;;  %v8544_v36 = vrot.slane %v8543_v27, 4 }
0x129e   :  { %v8307_v58 = vpop.f32.mrf.mxu0 }
0x129f   :  { %v15274_v26 = vadd.f32 %v8348_v55, %v8307_v58  ;;  %v8526_v55 = vrot.slane %v8525_v63, 4 }
0x12a0   :  { %v8309_v4 = vpop.f32.mrf.mxu0 }
0x12a1   :  { %v8534_v4 = vadd.f32 %v8533_v24, %v8532_v3 }
0x12a2   :  { %v8310_v6 = vpop.f32.mrf.mxu0 }
0x12a4   :  { %v8387_v59 = vpop.f32.mrf.mxu0 }
0x12a5   :  { %v8394_v29 = vpack.c.bf16 %v8387_v59, %v8387_v59  ;;  %v8527_v59 = vadd.f32 %v8526_v55, %v8525_v63 }
0x12a6   :  { %v8389_v35 = vpop.f32.mrf.mxu0 }
0x12a7   :  { %v8395_v13 = vpack.c.bf16 %v8389_v35, %v8389_v35 }
0x12a8   :  { %v8391_v62 = vpop.f32.mrf.mxu0 }
0x12a9   :  { %8428 = vmatprep.mubr.bf16.mxu1 %v8395_v13  ;;  %v8552_v13 = vadd.f32 %v8551_v22, %v8550_v50 }
0x12aa   :  { %v8392_v47 = vpop.f32.mrf.mxu0  ;;  %8429 = vmatmul.mubr.bf16.vlgmr.msra.gmra.mxu1 %v8394_v29 }
0x12ab   :  { %10374 = vmatpush3.msra.mxu1 %v8608_v60  ;;  %v8535_v47 = vrot.slane %v8534_v4, 2 }
0x12ac   :  { %v8473_v49 = vpop.f32.mrf.mxu0  ;;  %10375 = vmatprep.subr.mxu1 %v8623_v17 }
0x12ad   :  { %v8480_v48 = vpack.c.bf16 %v8473_v49, %v8473_v49  ;;  %10376 = vmatpush3.msra.mxu1 %v8607_v51 }
0x12ae   :  { %v8475_v43 = vpop.f32.mrf.mxu0  ;;  %10377 = vmatprep.subr.mxu1 %v8622_v18 }
0x12af   :  { %v8481_v46 = vpack.c.bf16 %v8475_v43, %v8475_v43  ;;  %10378 = vmatpush3.msra.mxu1 %v8606_v38 }
0x12b0   :  { %v8477_v61 = vpop.f32.mrf.mxu0  ;;  %10379 = vmatprep.subr.mxu1 %v8621_v39 }
0x12b1   :  { %8514 = vmatprep.mubr.bf16.mxu0 %v8481_v46  ;;  %10380 = vmatpush3.msra.mxu1 %v8605_v41 }
0x12b2   :  { %v8478_v9 = vpop.f32.mrf.mxu0  ;;  %8515 = vmatmul.mubr.bf16.vlgmr.msra.gmra.mxu0 %v8480_v48  ;;  %10381 = vmatprep.subr.mxu1 %v8620_v56  ;;  %v8528_v48 = vrot.slane %v8527_v59, 2 }
0x12b3   :  { %10409 = vmatpush3.msra.mxu0 %v8608_v60  ;;  %10382 = vmatpush3.msra.mxu1 %v8604_v1  ;;  %v8545_v60 = vadd.f32 %v8544_v36, %v8543_v27  ;;  %v8786_v36 = vld [vmem:[%s15498_s18 + $0x70] sm:$0xff] }
0x12b4   :  { %10410 = vmatprep.subr.mxu0 %v8623_v17  ;;  %10383 = vmatprep.subr.mxu1 %v8619_v44 }
0x12b5   :  { %10411 = vmatpush3.msra.mxu0 %v8607_v51  ;;  %10384 = vmatpush3.msra.mxu1 %v8603_v16 }
0x12b6   :  { %10412 = vmatprep.subr.mxu0 %v8622_v18  ;;  %10385 = vmatprep.subr.mxu1 %v8618_v40  ;;  %v8553_v18 = vrot.slane %v8552_v13, 2 }
0x12b7   :  { %10413 = vmatpush3.msra.mxu0 %v8606_v38  ;;  %10386 = vmatpush3.msra.mxu1 %v8602_v12 }
0x12b8   :  { %10414 = vmatprep.subr.mxu0 %v8621_v39  ;;  %10387 = vmatprep.subr.mxu1 %v8617_v5 }
0x12b9   :  { %10415 = vmatpush3.msra.mxu0 %v8605_v41  ;;  %10388 = vmatpush3.msra.mxu1 %v8601_v30 }
0x12ba   :  { %10416 = vmatprep.subr.mxu0 %v8620_v56  ;;  %10389 = vmatprep.subr.mxu1 %v8616_v10 }
0x12bb   :  { %10417 = vmatpush3.msra.mxu0 %v8604_v1  ;;  %10390 = vmatpush3.msra.mxu1 %v8600_v8  ;;  %v8546_v1 = vrot.slane %v8545_v60, 2 }
0x12bc   :  { %10418 = vmatprep.subr.mxu0 %v8619_v44  ;;  %10391 = vmatprep.subr.mxu1 %v8615_v11 }
0x12bd   :  { %10419 = vmatpush3.msra.mxu0 %v8603_v16  ;;  %10392 = vmatpush3.msra.mxu1 %v8599_v19  ;;  %v8536_v16 = vadd.f32 %v8535_v47, %v8534_v4  ;;  %v8785_v4 = vld [vmem:[%s15498_s18 + $0x68] sm:$0xff]  ;;  %v8779_v47 = vld [vmem:[%s15498_s18 + $0x38] sm:$0xff] }
0x12be   :  { %10420 = vmatprep.subr.mxu0 %v8618_v40  ;;  %10393 = vmatprep.subr.mxu1 %v8614_v37 }
0x12bf   :  { %10421 = vmatpush3.msra.mxu0 %v8602_v12  ;;  %10394 = vmatpush3.msra.mxu1 %v8598_v23 }
0x12c0   :  { %10422 = vmatprep.subr.mxu0 %v8617_v5  ;;  %10395 = vmatprep.subr.mxu1 %v8613_v33 }
0x12c1   :  { %10423 = vmatpush3.msra.mxu0 %v8601_v30  ;;  %10396 = vmatpush3.msra.mxu1 %v8597_v7 }
0x12c2   :  { %10424 = vmatprep.subr.mxu0 %v8616_v10  ;;  %10397 = vmatprep.subr.mxu1 %v8612_v25  ;;  %v8529_v10 = vadd.f32 %v8528_v48, %v8527_v59  ;;  %v8784_v59 = vld [vmem:[%s15498_s18 + $0x60] sm:$0xff] }
0x12c3   :  { %10425 = vmatpush3.msra.mxu0 %v8600_v8  ;;  %10398 = vmatpush3.msra.mxu1 %v8596_v0  ;;  %v8554_v8 = vadd.f32 %v8553_v18, %v8552_v13  ;;  %v8782_v13 = vld [vmem:[%s15498_s18 + $0x50] sm:$0xff]  ;;  %v8776_v48 = vld [vmem:[%s15498_s18 + $0x20] sm:$0xff] }
0x12c4   :  { %10426 = vmatprep.subr.mxu0 %v8615_v11  ;;  %10399 = vmatprep.subr.mxu1 %v8611_v32 }
0x12c5   :  { %10427 = vmatpush3.msra.mxu0 %v8599_v19  ;;  %10400 = vmatpush3.msra.mxu1 %v8595_v53 }
0x12c6   :  { %10428 = vmatprep.subr.mxu0 %v8614_v37  ;;  %10401 = vmatprep.subr.mxu1 %v8610_v54 }
0x12c7   :  { %10429 = vmatpush3.msra.mxu0 %v8598_v23  ;;  %10402 = vmatpush3.msra.mxu1 %v8594_v2 }
0x12c8   :  { %10430 = vmatprep.subr.mxu0 %v8613_v33  ;;  %10403 = vmatprep.subr.mxu1 %v8609_v52  ;;  %v8547_v33 = vadd.f32 %v8546_v1, %v8545_v60  ;;  %v16338_v60 = vmov 0.0  }
0x12c9   :  { %10431 = vmatpush3.msra.mxu0 %v8597_v7  ;;  %10404 = vmatpush3.msra.mxu1 %v8593_v14  ;;  %v8537_v7 = vrot.slane %v8536_v16, 1 }
0x12ca   :  { %10432 = vmatprep.subr.mxu0 %v8612_v25  ;;  %8807 = vmatprep.subr.mxu1 %v8787_v28  ;;  %v8548_v21 = vrot.slane %v8547_v33, 1 }
0x12cb   :  { %10433 = vmatpush3.msra.mxu0 %v8596_v0  ;;  %v8538_v3 = vadd.f32 %v8537_v7, %v8536_v16 }
0x12cc   :  { %10434 = vmatprep.subr.mxu0 %v8611_v32 }
0x12cd   :  { %10435 = vmatpush3.msra.mxu0 %v8595_v53 }
0x12ce   :  { %10436 = vmatprep.subr.mxu0 %v8610_v54  ;;  %v8530_v54 = vrot.slane %v8529_v10, 1 }
0x12cf   :  { %10437 = vmatpush3.msra.mxu0 %v8594_v2 }
0x12d0   :  { %10438 = vmatprep.subr.mxu0 %v8609_v52  ;;  %v8531_v50 = vadd.f32 %v8530_v54, %v8529_v10 }
0x12d1   :  { %10439 = vmatpush3.msra.mxu0 %v8593_v14  ;;  %v8555_v14 = vrot.slane %v8554_v8, 1 }
0x12d2   :  { %8881 = vmatprep.subr.mxu0 %v8787_v28 }
0x12d3   :  { %v8556_v24 = vadd.f32 %v8555_v14, %v8554_v8 }
0x136a   :  { %v8430_v45 = vpop.f32.mrf.mxu1 }
0x136b   :  { %v8437_v6 = vadd.f32 %v8430_v45, %v15272_v20 }
0x136c   :  { %v8432_v42 = vpop.f32.mrf.mxu1 }
0x136d   :  { %v8438_v29 = vadd.f32 %v8432_v42, %v15274_v26 }
0x136e   :  { %v8434_v34 = vpop.f32.mrf.mxu1 }
0x136f   :  { %v8549_v34 = vadd.f32 %v8548_v21, %v8547_v33 }
0x1370   :  { %v8435_v58 = vpop.f32.mrf.mxu1 }
0x1372   :  { %v8516_v35 = vpop.f32.mrf.mxu0 }
0x1373   :  { %v15384_v62 = vadd.f32 %v8516_v35, %v8437_v6  ;;  %v8783_v35 = vld [vmem:[%s15498_s18 + $0x58] sm:$0xff] }
0x1374   :  { %v8518_v17 = vpop.f32.mrf.mxu0 }
0x1375   :  { %v8559_v49 = vsel %vm7040_vm14, %v15384_v62, 0.0  ;;  %v8575_v43 = vmul.f32 %v15384_v62, %v15384_v62  ;;  %v15390_v46 = vadd.f32 %v8518_v17, %v8438_v29  ;;  %v8781_v29 = vld [vmem:[%s15498_s18 + $0x48] sm:$0xff]  ;;  %v8780_v17 = vld [vmem:[%s15498_s18 + $0x40] sm:$0xff] }
0x1376   :  { %v8560_v20 = vrot.slane %v8559_v49, 4  ;;  %v8520_v61 = vpop.f32.mrf.mxu0 }
0x1377   :  { %v8577_v9 = vsel %vm7040_vm14, %v8575_v43, 0.0  ;;  %v8566_v26 = vsel %vm7040_vm14, %v15390_v46, 0.0  ;;  %v8576_v51 = vmul.f32 %v15390_v46, %v15390_v46  ;;  %v8777_v43 = vld [vmem:[%s15498_s18 + $0x28] sm:$0xff]  ;;  %v8774_v61 = vld [vmem:[%s15498_s18 + $0x10] sm:$0xff] }
0x1378   :  { %v8561_v38 = vadd.f32 %v8560_v20, %v8559_v49  ;;  %v8578_v39 = vrot.slane %v8577_v9, 4  ;;  %v8567_v41 = vrot.slane %v8566_v26, 4  ;;  %v8521_v56 = vpop.f32.mrf.mxu0  ;;  %v8778_v49 = vld [vmem:[%s15498_s18 + $0x30] sm:$0xff]  ;;  %v8775_v20 = vld [vmem:[%s15498_s18 + $0x18] sm:$0xff] }
0x1379   :  { %v8584_v44 = vsel %vm7040_vm14, %v8576_v51, 0.0 }
0x137a   :  { %v8562_v40 = vrot.slane %v8561_v38, 2  ;;  %v8579_v12 = vadd.f32 %v8578_v39, %v8577_v9  ;;  %v8568_v5 = vadd.f32 %v8567_v41, %v8566_v26  ;;  %v8585_v30 = vrot.slane %v8584_v44, 4  ;;  %v8773_v9 = vld [vmem:[%s15498_s18 + $0x8] sm:$0xff]  ;;  %v8772_v26 = vld [vmem:[%s15498_s18] sm:$0xff] }
0x137c   :  { %v8563_v11 = vadd.f32 %v8562_v40, %v8561_v38  ;;  %v8580_v19 = vrot.slane %v8579_v12, 2  ;;  %v8569_v37 = vrot.slane %v8568_v5, 2  ;;  %v8586_v23 = vadd.f32 %v8585_v30, %v8584_v44 }
0x137e   :  { %v8564_v25 = vrot.slane %v8563_v11, 1  ;;  %v8581_v0 = vadd.f32 %v8580_v19, %v8579_v12  ;;  %v8570_v32 = vadd.f32 %v8569_v37, %v8568_v5  ;;  %v8587_v53 = vrot.slane %v8586_v23, 2  ;;  %v16339_v19 = vld [vmem:[#allocation12_spill] sm:$0xff] }
0x1380   :  { %v8582_v2 = vrot.slane %v8581_v0, 1  ;;  %v8571_v52 = vrot.slane %v8570_v32, 1  ;;  %v8588_v28 = vadd.f32 %v8587_v53, %v8586_v23  ;;  %v8565_v57 = vadd.f32 %v8564_v25, %v8563_v11  ;;  %v8936_v23 = vld [vmem:[%s15499_s19] sm:$0x3]  ;;  %v16341_v53 = vld [vmem:[#allocation14_spill] sm:$0xff] }
0x1382   :  { %v8572_v45 = vadd.f32 %v8571_v52, %v8570_v32  ;;  %v8589_v63 = vrot.slane %v8588_v28, 1  ;;  %v8583_v42 = vadd.f32 %v8582_v2, %v8581_v0  ;;  %v8573_v22 = vadd.f32 %v8565_v57, %v8531_v50  ;;  %v16340_v0 = vld [vmem:[#allocation13_spill] sm:$0xff]  ;;  %v8956_v57 = vld [vmem:[%s15500_s20] sm:$0x3] }
0x1384   :  { %v8574_v27 = vadd.f32 %v8572_v45, %v8538_v3  ;;  %v8590_v55 = vadd.f32 %v8589_v63, %v8588_v28  ;;  %v8591_v6 = vadd.f32 %v8583_v42, %v8549_v34 }
0x1386   :  { %8689 = vmatprep.mubr.f32.mxu1 %v8574_v27  ;;  %v8592_v58 = vadd.f32 %v8590_v55, %v8556_v24 }
0x1387   :  { %8690 = vmatmul.mubr.f32.vlgmr.msra.gmra.mxu1 %v8573_v22 }
0x1388   :  { %8759 = vmatprep.mubr.f32.mxu0 %v8592_v58  ;;  %8808 = vmatpush1.msra.mxu1 %v8786_v36 }
0x1389   :  { %8760 = vmatmul.mubr.f32.vlgmr.msra.gmra.mxu0 %v8591_v6  ;;  %8809 = vmatprep.subr.mxu1 %v8785_v4 }
0x138a   :  { %8810 = vmatpush1.msra.mxu1 %v8784_v59  ;;  %8855 = vmatprep.mubr.f32.mxu1 %v16338_v60 }
0x138b   :  { %8811 = vmatprep.subr.mxu1 %v8783_v35  ;;  %8882 = vmatpush1.msra.mxu0 %v8786_v36 }
0x138c   :  { %8812 = vmatpush1.msra.mxu1 %v8782_v13  ;;  %8883 = vmatprep.subr.mxu0 %v8785_v4 }
0x138d   :  { %8813 = vmatprep.subr.mxu1 %v8781_v29  ;;  %8884 = vmatpush1.msra.mxu0 %v8784_v59 }
0x138e   :  { %8814 = vmatpush1.msra.mxu1 %v8780_v17  ;;  %8885 = vmatprep.subr.mxu0 %v8783_v35 }
0x138f   :  { %8815 = vmatprep.subr.mxu1 %v8779_v47  ;;  %8886 = vmatpush1.msra.mxu0 %v8782_v13 }
0x1390   :  { %8887 = vmatprep.subr.mxu0 %v8781_v29  ;;  %8929 = vmatprep.mubr.f32.mxu0 %v16338_v60 }
0x1391   :  { %8888 = vmatpush1.msra.mxu0 %v8780_v17  ;;  %8816 = vmatpush1.msra.mxu1 %v8778_v49 }
0x1392   :  { %8889 = vmatprep.subr.mxu0 %v8779_v47  ;;  %8817 = vmatprep.subr.mxu1 %v8777_v43 }
0x1393   :  { %8890 = vmatpush1.msra.mxu0 %v8778_v49  ;;  %8818 = vmatpush1.msra.mxu1 %v8776_v48 }
0x1394   :  { %8891 = vmatprep.subr.mxu0 %v8777_v43  ;;  %8819 = vmatprep.subr.mxu1 %v8775_v20 }
0x1395   :  { %8892 = vmatpush1.msra.mxu0 %v8776_v48  ;;  %8820 = vmatpush1.msra.mxu1 %v8774_v61 }
0x1396   :  { %8893 = vmatprep.subr.mxu0 %v8775_v20  ;;  %8821 = vmatprep.subr.mxu1 %v8773_v9 }
0x1397   :  { %8894 = vmatpush1.msra.mxu0 %v8774_v61  ;;  %8822 = vmatpush1.msra.mxu1 %v8772_v26 }
0x1398   :  { %8895 = vmatprep.subr.mxu0 %v8773_v9 }
0x1399   :  { %8896 = vmatpush1.msra.mxu0 %v8772_v26 }
0x1447   :  { %v10405_v51 = vpop.f32.mrf.mxu1 }
0x1449   :  { %v10406_v18 = vpop.f32.mrf.mxu1  ;;  %v10440_v38 = vpop.f32.mrf.mxu0 }
0x144a   :  { %v10407_v39 = vadd.f32 %v10406_v18, %v10405_v51 }
0x144b   :  { %v10441_v41 = vpop.f32.mrf.mxu0 }
0x144c   :  { %v8765_v56 = vmul.f32 0.03125, %v10407_v39  ;;  %v10442_v1 = vadd.f32 %v10441_v41, %v10440_v38 }
0x144e   :  { %v8767_v44 = vmul.f32 %v8765_v56, %v8765_v56  ;;  %v8766_v16 = vmul.f32 0.03125, %v10442_v1  ;;  %10197 = vmatmul.mubr.msk.f32.vlgmr.msra.gmra.mxu1 %vm162_vm0, %v8765_v56 }
0x1450   :  { %v8768_v40 = vsub.f32 %v8766_v16, %v8767_v44 }
0x1452   :  { %v8769_v12 = vmax.f32 %v8768_v40, 0.0 }
0x1454   :  { %v8770_v5 = vadd.f32 1e-05, %v8769_v12 }
0x1456   :  { %11458 = vrsqrt.f32 %v8770_v5 }
0x1463   :  { %v11459_v30 = vpop.eup %11458 }
0x1464   :  { %10198 = vmatmul.mubr.msk.f32.vlgmr.msra.gmra.mxu0 %vm162_vm0, %v11459_v30 }
0x150e   :  { %v8857_v7 = vpop.f32.mrf.mxu1 }
0x1510   :  { %v8859_v2 = vpop.f32.mrf.mxu1 }
0x1524   :  { %v8931_v10 = vpop.f32.mrf.mxu0 }
0x1526   :  { %v8933_v8 = vpop.f32.mrf.mxu0 }
0x1527   :  { %v8939_v11 = vcombine.low %v8931_v10, %v8933_v8 }
0x1529   :  { %v8946_v37 = vrot.slane %v8939_v11, %v16339_v19 }
0x152b   :  { %v8953_v33 = vrot.slane %v8946_v37, %v16339_v19 }
0x152d   :  { %v8955_v25 = vmul.f32 %v8953_v33, %v8936_v23 }
0x152f   :  { %v8961_v32 = vrot.slane %v8955_v25, %v16340_v0  ;;  %v8965_v54 = vrot.slane %v8955_v25, %v16341_v53 }
0x1531   :  { %v8968_v52 = vmul.f32 %v8961_v32, %v8857_v7  ;;  %v8969_v14 = vmul.f32 %v8965_v54, %v8859_v2  ;;  %v8989_v63 = vmul.f32 %v8961_v32, %v15192_v15  ;;  %v8990_v50 = vmul.f32 %v8965_v54, %v15194_v31 }
0x1532   :  { %v9024_v24 = vmul.f32 %v8961_v32, %v15384_v62  ;;  %v9025_v55 = vmul.f32 %v8965_v54, %v15390_v46  ;;  %v9049_v46 = vld [vmem:[%s15501_s21] sm:$0xff] }
0x1533   :  { %v8972_v28 = vcombine.low %v8968_v52, %v8969_v14 }
0x1535   :  { %v8979_v21 = vrot.slane %v8972_v28, %v16339_v19 }
0x1537   :  { %v8986_v3 = vrot.slane %v8979_v21, %v16339_v19 }
0x1539   :  { %v8988_v45 = vsub.f32 %v8956_v57, %v8986_v3 }
0x153b   :  { %v8995_v42 = vrot.slane %v8988_v45, %v16340_v0  ;;  %v8999_v27 = vrot.slane %v8988_v45, %v16341_v53 }
0x153d   :  { %v9002_v34 = vadd.f32 %v8995_v42, %v8989_v63  ;;  %v9003_v22 = vadd.f32 %v8999_v27, %v8990_v50  ;;  %v9026_v36 = vadd.f32 %v9024_v24, %v8995_v42  ;;  %v9027_v58 = vadd.f32 %v9025_v55, %v8999_v27 }
0x153f   :  { %vm9004_vm0 = vcmp.gt.f32.partialorder %v9002_v34, 0.0  ;;  %vm9005_vm3 = vcmp.gt.f32.partialorder %v9003_v22, 0.0  ;;  %v9006_v4 = vmul.f32 0.2, %v9002_v34  ;;  %v9007_v6 = vmul.f32 0.2, %v9003_v22 }
0x1540   :  { %vm9028_vm4 = vcmp.gt.f32.partialorder %v9026_v36, 0.0  ;;  %vm9029_vm5 = vcmp.gt.f32.partialorder %v9027_v58, 0.0  ;;  %v9030_v15 = vmul.f32 0.2, %v9026_v36  ;;  %v9031_v31 = vmul.f32 0.2, %v9027_v58 }
0x1541   :  { %v9008_v59 = vsel %vm9004_vm0, %v9002_v34, %v9006_v4  ;;  %v9009_v35 = vsel %vm9005_vm3, %v9003_v22, %v9007_v6 }
0x1542   :  { %v10199_v13 = vpack.c.bf16 %v9009_v35, %v9008_v59  ;;  %v9032_v29 = vsel %vm9028_vm4, %v9026_v36, %v9030_v15  ;;  %v9033_v60 = vsel %vm9029_vm5, %v9027_v58, %v9031_v31 }
0x1543   :  { %v10201_v62 = vpack.c.bf16 %v9033_v60, %v9032_v29 }
0x1544   :  { %10200 = vst.sshfl [vmem:[#allocation5] sm:$0x33 pattern:$0x76325410] %v10199_v13 }
0x1545   :  { %10202 = vst.sshfl [vmem:[#allocation5 + $0x4] sm:$0x33 pattern:$0x76325410] %v10201_v62 }
0x154c   :  { %v9050_v17 = vld [vmem:[#allocation5] sm:$0xff]  }
0x154d   :  { %v9051_v47 = vunpack.c.l.bf16 %v9050_v17  ;;  %v9077_v49 = vunpack.c.h.bf16 %v9050_v17 }
0x154f   :  { %v9052_v43 = vmul.f32 %v9051_v47, %v9049_v46  ;;  %v9078_v48 = vmul.f32 %v9077_v49, %v9049_v46 }
0x1551   :  { %v9054_v20 = vcombine.high %v9052_v43, %v9052_v43  ;;  %v9080_v61 = vcombine.high %v9078_v48, %v9078_v48  ;;  %v9056_v9 = vsel %vm7040_vm14, %v9052_v43, 0.0  ;;  %v9082_v38 = vsel %vm7040_vm14, %v9078_v48, 0.0 }
0x1553   :  { %v9057_v26 = vsel %vm7040_vm14, %v9054_v20, 0.0  ;;  %v9083_v18 = vsel %vm7040_vm14, %v9080_v61, 0.0 }
0x1554   :  { %v9058_v51 = vadd.f32 %v9057_v26, %v9056_v9  ;;  %v9084_v39 = vadd.f32 %v9083_v18, %v9082_v38 }
0x1556   :  { %9059 = vadd.xlane.f32.xlu0 %v9058_v51 }
0x155a   :  { %9085 = vadd.xlane.f32.xlu0 %v9084_v39 }
0x15df   :  { %v9060_v41 = vpop.xlane.xlu0 %9059 }
0x15e0   :  { %v9061_v56 = vsel %vm7040_vm14, %v9060_v41, 0.0 }
0x15e1   :  { %v9062_v1 = vrot.slane %v9061_v56, 4 }
0x15e3   :  { %v9063_v44 = vadd.f32 %v9062_v1, %v9061_v56  ;;  %v9086_v16 = vpop.xlane.xlu0 %9085 }
0x15e4   :  { %v9087_v40 = vsel %vm7040_vm14, %v9086_v16, 0.0 }
0x15e5   :  { %v9064_v12 = vrot.slane %v9063_v44, 2  ;;  %v9088_v5 = vrot.slane %v9087_v40, 4 }
0x15e7   :  { %v9065_v30 = vadd.f32 %v9064_v12, %v9063_v44  ;;  %v9089_v10 = vadd.f32 %v9088_v5, %v9087_v40 }
0x15e9   :  { %v9066_v8 = vrot.slane %v9065_v30, 1  ;;  %v9090_v11 = vrot.slane %v9089_v10, 2 }
0x15eb   :  { %v9067_v19 = vadd.f32 %v9066_v8, %v9065_v30  ;;  %v9091_v37 = vadd.f32 %v9090_v11, %v9089_v10 }
0x15ed   :  { %v9068_v23 = vsub.f32 0.0, %v9067_v19  ;;  %v9092_v33 = vrot.slane %v9091_v37, 1 }
0x15ef   :  { %v9069_v7 = vmul.f32 1.442695, %v9068_v23  ;;  %v9093_v25 = vadd.f32 %v9092_v33, %v9091_v37 }
0x15f1   :  { %11460 = vpow2.f32 %v9069_v7  ;;  %v9094_v0 = vsub.f32 0.0, %v9093_v25 }
0x15f3   :  { %v9095_v32 = vmul.f32 1.442695, %v9094_v0 }
0x15f5   :  { %11462 = vpow2.f32 %v9095_v32 }
0x15fe   :  { %v11461_v53 = vpop.eup %11460 }
0x15ff   :  { %v9071_v54 = vadd.f32 1.0, %v11461_v53 }
0x1601   :  { %11464 = vrcp.f32 %v9071_v54 }
0x1602   :  { %v11463_v2 = vpop.eup %11462 }
0x1603   :  { %v9097_v52 = vadd.f32 1.0, %v11463_v2 }
0x1605   :  { %11466 = vrcp.f32 %v9097_v52 }
0x160e   :  { %v11465_v14 = vpop.eup %11464 }
0x160f   :  { %9075 = vst.msk [vmem:[%s15502_s22] sm:$0x1] %vm9074_vm6, %v11465_v14 }
0x1612   :  { %v11467_v28 = vpop.eup %11466 }
0x1613   :  { %9100 = vst.msk [vmem:[%s15502_s22 + $0x1] sm:$0x1] %vm9074_vm6, %v11467_v28 }
0x1614   :  { %9105 = vsyncpa [#allocation7], 1 }
0x1615   :  { %9106 = vsyncpa [#allocation9], 1 }

</bundles_post_ra>
